<compile_context>
chip_gen: v7x
topology: tpu7x:2x2x1
jax: 0.10.0
libtpu: 0.0.40
codegen_flags: <defaults>
</compile_context>

<pallas_src>
import functools

import jax
import jax.numpy as jnp
from jax import lax
from jax.experimental import pallas as pl
from jax.experimental.pallas import tpu as pltpu

EPS = 1e-5


def basic_block_kernel(x_ref, w1_ref, g1_ref, b1_ref, w2_ref, g2_ref, b2_ref,
                       o_ref, pad_ref, y_ref, *, N, H, W, C, Cp, Wp):
    """Whole BasicBlock forward, resident in VMEM.

    x_ref    : (N, H, W, C)       true channels (no padding)
    w*_ref   : (9, C, Cp) bf16    per-tap weights, Cout zero-padded to Cp=128
    g*/b*_ref: (1, Cp)    f32     BN gamma/beta, zero-padded channels
    o_ref    : (N, H, W, C)
    pad_ref  : (N, H+2, Wp, C) f32  zero-bordered activation scratch (shared)
    y_ref    : (N, H*W, Cp)    f32  raw conv-output staging (shared by conv1/2)
    """
    HW = H * W
    inv_nhw = jnp.float32(1.0 / (N * HW))

    # Zero the padded-activation scratch once: the 1-px border and the Wp
    # alignment tail stay zero for both convs; the interior is overwritten.
    pad_ref[...] = jnp.zeros((N, H + 2, Wp, C), jnp.float32)

    def conv3x3(n, w_ref):
        """3x3 'same' conv for image n.

        9 per-tap MXU matmuls with K = Cin (no zero-row padding), bf16
        operands, f32 accumulation.  One shifted window extraction per kx
        (hoisted out of the ky loop); the ky slices below are whole sublane-
        tile-row slices, i.e. free.
        Returns the raw (H*W, Cp) f32 conv output.
        """
        acc = jnp.zeros((HW, Cp), jnp.float32)
        for kx in range(3):
            # TODO(synk): the kx=1,2 windows are sublane-misaligned; if they
            # ever show up as a binding slot, replace with an explicit XLU
            # rotate (pltpu.roll along the W axis), which co-issues with MXU.
            src = pad_ref[n, :, kx:kx + W, :]                 # (H+2, W, C)
            for ky in range(3):
                lhs = src[ky:ky + H].reshape(HW, C).astype(jnp.bfloat16)
                acc = acc + jnp.dot(lhs, w_ref[3 * ky + kx],
                                    preferred_element_type=jnp.float32)
        return acc

    def bn_affine(s, q, g_ref, b_ref):
        # Training-mode BN (biased variance) from fused per-band sums, f32.
        mean = s * inv_nhw
        var = jnp.maximum(q * inv_nhw - mean * mean, 0.0)     # clamp: guard E[y^2]-E[y]^2 < 0
        scale = g_ref[...] * lax.rsqrt(var + EPS)
        shift = b_ref[...] - mean * scale
        return scale, shift

    # ---- conv1, BN1 statistics fused into the producer (per image band) ----
    s1 = jnp.zeros((1, Cp), jnp.float32)
    q1 = jnp.zeros((1, Cp), jnp.float32)
    for n in range(N):
        pad_ref[n, 1:H + 1, 1:W + 1, :] = x_ref[n]
        y = conv3x3(n, w1_ref)
        y_ref[n] = y
        s1 = s1 + jnp.sum(y, axis=0, keepdims=True)
        q1 = q1 + jnp.sum(y * y, axis=0, keepdims=True)
    scale1, shift1 = bn_affine(s1, q1, g1_ref, b1_ref)

    # ---- bn1 + relu -> conv2 input ; conv2 + fused BN2 statistics ----
    s2 = jnp.zeros((1, Cp), jnp.float32)
    q2 = jnp.zeros((1, Cp), jnp.float32)
    for n in range(N):
        h = jnp.maximum(y_ref[n] * scale1 + shift1, 0.0)      # (HW, Cp) f32
        pad_ref[n, 1:H + 1, 1:W + 1, :] = h[:, :C].reshape(H, W, C)
        y = conv3x3(n, w2_ref)
        y_ref[n] = y                                          # overwrite conv1 staging
        s2 = s2 + jnp.sum(y, axis=0, keepdims=True)
        q2 = q2 + jnp.sum(y * y, axis=0, keepdims=True)
    scale2, shift2 = bn_affine(s2, q2, g2_ref, b2_ref)

    # ---- bn2 + residual (clean, true-C x) + relu -> output ----
    for n in range(N):
        h2 = y_ref[n] * scale2 + shift2                       # (HW, Cp) f32
        out = jnp.maximum(h2[:, :C] + x_ref[n].reshape(HW, C), 0.0)
        o_ref[n] = out.reshape(H, W, C)

    # TODO(synk): for real ResNet shapes (e.g. N=32, C=64, 56x56) and to use
    # both v7x TensorCores, lift the per-image band loop into a (pass, band)
    # grid: pass 0 conv1 + stats, pass 1 bn1/relu + conv2 + stats, pass 2
    # bn2 + residual + relu, with raw conv outputs staged in HBM and the band
    # axis marked "parallel" only once the BN sums are reduced across cores
    # (batch statistics couple bands).  For C >= 128 stages, also emit
    # 256-wide Cout tiles to fill the v6e/v7x 256x256 MXU.


def basic_block(x_nchw, w1, g1, b1, w2, g2, b2):
    """x_nchw: (N,C,H,W) f32; w*: (C,C,3,3) torch OIHW; g*/b*: (C,)."""
    N, C, H, W = x_nchw.shape
    Cp = 128 * ((C + 127) // 128)        # lane width for conv outputs / BN math
    Wp = 8 * ((W + 2 + 7) // 8)          # padded-W rounded to sublane multiple

    # Torch-layout boundary: NCHW -> NHWC with the TRUE channel count
    # (no 8x channel-pad inflation of HBM traffic).
    x = jnp.transpose(x_nchw, (0, 2, 3, 1))

    def pack_w(w):
        # OIHW -> (3,3,Cin,Cout); pad ONLY Cout to Cp; per-tap (9, Cin, Cp) bf16.
        w = jnp.transpose(w, (2, 3, 1, 0))
        w = jnp.pad(w, ((0, 0), (0, 0), (0, 0), (0, Cp - C)))
        return w.reshape(9, C, Cp).astype(jnp.bfloat16)

    def pack_v(v):
        # Zero-pad gamma/beta so padded output channels stay exactly zero.
        return jnp.pad(v, (0, Cp - C)).reshape(1, Cp).astype(jnp.float32)

    # VMEM budget from actual residency (review: don't hardcode 32 MiB);
    # floor for compiler temporaries, ceiling chosen with v7x (64 MiB) in mind.
    in_out_bytes = 2 * N * H * W * C * 4
    w_bytes = 2 * 9 * C * Cp * 2 + 4 * Cp * 4
    scratch_bytes = N * (H + 2) * Wp * C * 4 + N * H * W * Cp * 4
    vmem_limit = int(max(16 * 2**20,
                         min(56 * 2**20,
                             3 * (in_out_bytes + w_bytes + scratch_bytes))))

    kernel = functools.partial(basic_block_kernel,
                               N=N, H=H, W=W, C=C, Cp=Cp, Wp=Wp)
    vmem = pl.BlockSpec(memory_space=pltpu.MemorySpace.VMEM)
    out_nhwc = pl.pallas_call(
        kernel,
        out_shape=jax.ShapeDtypeStruct((N, H, W, C), jnp.float32),
        in_specs=[vmem] * 7,
        out_specs=vmem,
        scratch_shapes=[
            pltpu.VMEM((N, H + 2, Wp, C), jnp.float32),   # padded activation
            pltpu.VMEM((N, H * W, Cp), jnp.float32),      # raw conv staging
        ],
        compiler_params=pltpu.CompilerParams(vmem_limit_bytes=vmem_limit),
    )(x, pack_w(w1), pack_v(g1), pack_v(b1), pack_w(w2), pack_v(g2), pack_v(b2))

    # Back to torch NCHW (already true-C, nothing to slice off).
    return jnp.transpose(out_nhwc, (0, 3, 1, 2))


def basic_block_ref(x, w1, g1, b1, w2, g2, b2):
    """Pure-JAX f32 reference (NCHW, identical math) for the correctness check."""
    def conv(x, w):
        return lax.conv_general_dilated(
            x, w, window_strides=(1, 1), padding=((1, 1), (1, 1)),
            dimension_numbers=("NCHW", "OIHW", "NCHW"))

    def bn(y, g, b):
        mean = jnp.mean(y, axis=(0, 2, 3), keepdims=True)
        var = jnp.mean((y - mean) ** 2, axis=(0, 2, 3), keepdims=True)
        return (y - mean) * lax.rsqrt(var + EPS) * g.reshape(1, -1, 1, 1) \
            + b.reshape(1, -1, 1, 1)

    h = jax.nn.relu(bn(conv(x, w1), g1, b1))
    h2 = bn(conv(h, w2), g2, b2)
    return jax.nn.relu(h2 + x)


if __name__ == "__main__":
    # Small shapes consistent with BasicBlock(inplanes=planes=16, stride=1).
    N, C, H, W = 2, 16, 16, 16
    key = jax.random.PRNGKey(0)
    kx, kw1, kw2 = jax.random.split(key, 3)

    x = jax.random.normal(kx, (N, C, H, W), dtype=jnp.float32)
    # conv3x3 weights (bias=False), torch OIHW layout; deterministic init.
    w1 = 0.1 * jax.random.normal(kw1, (C, C, 3, 3), dtype=jnp.float32)
    w2 = 0.1 * jax.random.normal(kw2, (C, C, 3, 3), dtype=jnp.float32)
    # BatchNorm2d default init: weight=1, bias=0.
    g1 = jnp.ones((C,), jnp.float32)
    b1 = jnp.zeros((C,), jnp.float32)
    g2 = jnp.ones((C,), jnp.float32)
    b2 = jnp.zeros((C,), jnp.float32)

    out = jax.block_until_ready(basic_block(x, w1, g1, b1, w2, g2, b2))
    ref = jax.block_until_ready(basic_block_ref(x, w1, g1, b1, w2, g2, b2))

    assert out.shape == (N, C, H, W)
    err = jnp.max(jnp.abs(out - ref))
    # bf16 MXU operands (per perf review) -> loosened tolerance vs the f32 ref.
    assert jnp.allclose(out, ref, atol=5e-2, rtol=5e-2), f"max abs err = {err}"
    print("KERNEL_OK")
</pallas_src>

<mosaic_0001>
module attributes {stable_mosaic.version = 11 : i64} {
  func.func @basic_block_kernel(%arg0: memref<2x16x16x16xf32, #tpu.memory_space<vmem>>, %arg1: memref<9x16x128xbf16, #tpu.memory_space<vmem>>, %arg2: memref<1x128xf32, #tpu.memory_space<vmem>>, %arg3: memref<1x128xf32, #tpu.memory_space<vmem>>, %arg4: memref<9x16x128xbf16, #tpu.memory_space<vmem>>, %arg5: memref<1x128xf32, #tpu.memory_space<vmem>>, %arg6: memref<1x128xf32, #tpu.memory_space<vmem>>, %arg7: memref<2x16x16x16xf32, #tpu.memory_space<vmem>>, %arg8: memref<2x18x24x16xf32, #tpu.memory_space<vmem>>, %arg9: memref<2x256x128xf32, #tpu.memory_space<vmem>>) attributes {dimension_semantics = [], scalar_prefetch = 0 : i64, scratch_operands = 2 : i64, tpu.core_type = #tpu.core_type<tc>} {
    %cst = arith.constant 0.000000e+00 : f32
    %0 = vector.broadcast %cst : f32 to vector<2x18x24x16xf32>
    %c0 = arith.constant 0 : index
    %c0_0 = arith.constant 0 : index
    %c0_1 = arith.constant 0 : index
    %c0_2 = arith.constant 0 : index
    %1 = vector.load %arg8[%c0, %c0_0, %c0_1, %c0_2] : memref<2x18x24x16xf32, #tpu.memory_space<vmem>>, vector<2x18x24x16xf32>
    tpu.vector_store %arg8[%c0, %c0_0, %c0_1, %c0_2], %0 {strides = array<i32>} : memref<2x18x24x16xf32, #tpu.memory_space<vmem>>, vector<2x18x24x16xf32>,
    %cst_3 = arith.constant 0.000000e+00 : f32
    %2 = vector.broadcast %cst_3 : f32 to vector<1x128xf32>
    %cst_4 = arith.constant 0.000000e+00 : f32
    %3 = vector.broadcast %cst_4 : f32 to vector<1x128xf32>
    %c0_5 = arith.constant 0 : index
    %c0_6 = arith.constant 0 : index
    %c0_7 = arith.constant 0 : index
    %c0_8 = arith.constant 0 : index
    %4 = vector.load %arg0[%c0_5, %c0_6, %c0_7, %c0_8] : memref<2x16x16x16xf32, #tpu.memory_space<vmem>>, vector<1x16x16x16xf32>
    %5 = vector.shape_cast %4 : vector<1x16x16x16xf32> to vector<16x16x16xf32>
    %c0_9 = arith.constant 0 : index
    %c1 = arith.constant 1 : index
    %c1_10 = arith.constant 1 : index
    %c0_11 = arith.constant 0 : index
    %6 = vector.load %arg8[%c0_9, %c1, %c1_10, %c0_11] : memref<2x18x24x16xf32, #tpu.memory_space<vmem>>, vector<1x16x16x16xf32>
    %7 = vector.shape_cast %6 : vector<1x16x16x16xf32> to vector<16x16x16xf32>
    %8 = vector.shape_cast %5 : vector<16x16x16xf32> to vector<1x16x16x16xf32>
    tpu.vector_store %arg8[%c0_9, %c1, %c1_10, %c0_11], %8 {strides = array<i32>} : memref<2x18x24x16xf32, #tpu.memory_space<vmem>>, vector<1x16x16x16xf32>,
    %cst_12 = arith.constant 0.000000e+00 : f32
    %9 = vector.broadcast %cst_12 : f32 to vector<256x128xf32>
    %c0_13 = arith.constant 0 : index
    %c0_14 = arith.constant 0 : index
    %c0_15 = arith.constant 0 : index
    %c0_16 = arith.constant 0 : index
    %10 = vector.load %arg8[%c0_13, %c0_14, %c0_15, %c0_16] : memref<2x18x24x16xf32, #tpu.memory_space<vmem>>, vector<1x18x16x16xf32>
    %11 = vector.shape_cast %10 : vector<1x18x16x16xf32> to vector<18x16x16xf32>
    %12 = vector.extract_strided_slice %11 {offsets = [0, 0, 0], sizes = [16, 16, 16], strides = [1, 1, 1]} : vector<18x16x16xf32> to vector<16x16x16xf32>
    %13 = vector.shape_cast %12 : vector<16x16x16xf32> to vector<256x16xf32>
    %14 = arith.truncf %13 : vector<256x16xf32> to vector<256x16xbf16>
    %c0_17 = arith.constant 0 : index
    %c0_18 = arith.constant 0 : index
    %c0_19 = arith.constant 0 : index
    %15 = vector.load %arg1[%c0_17, %c0_18, %c0_19] : memref<9x16x128xbf16, #tpu.memory_space<vmem>>, vector<1x16x128xbf16>
    %16 = vector.shape_cast %15 : vector<1x16x128xbf16> to vector<16x128xbf16>
    %cst_20 = arith.constant dense<0.000000e+00> : vector<256x128xf32>
    %17 = tpu.matmul %14, %16, %cst_20 {dimension_numbers = #tpu.dot_dimension_numbers<[1], [0], [0], [1], [0, 0, 1, 1], [], []>} : vector<256x16xbf16>, vector<16x128xbf16>, vector<256x128xf32> -> vector<256x128xf32>
    %18 = arith.addf %9, %17 : vector<256x128xf32>
    %19 = vector.extract_strided_slice %11 {offsets = [1, 0, 0], sizes = [16, 16, 16], strides = [1, 1, 1]} : vector<18x16x16xf32> to vector<16x16x16xf32>
    %20 = vector.shape_cast %19 : vector<16x16x16xf32> to vector<256x16xf32>
    %21 = arith.truncf %20 : vector<256x16xf32> to vector<256x16xbf16>
    %c3 = arith.constant 3 : index
    %c0_21 = arith.constant 0 : index
    %c0_22 = arith.constant 0 : index
    %22 = vector.load %arg1[%c3, %c0_21, %c0_22] : memref<9x16x128xbf16, #tpu.memory_space<vmem>>, vector<1x16x128xbf16>
    %23 = vector.shape_cast %22 : vector<1x16x128xbf16> to vector<16x128xbf16>
    %cst_23 = arith.constant dense<0.000000e+00> : vector<256x128xf32>
    %24 = tpu.matmul %21, %23, %cst_23 {dimension_numbers = #tpu.dot_dimension_numbers<[1], [0], [0], [1], [0, 0, 1, 1], [], []>} : vector<256x16xbf16>, vector<16x128xbf16>, vector<256x128xf32> -> vector<256x128xf32>
    %25 = arith.addf %18, %24 : vector<256x128xf32>
    %26 = vector.extract_strided_slice %11 {offsets = [2, 0, 0], sizes = [16, 16, 16], strides = [1, 1, 1]} : vector<18x16x16xf32> to vector<16x16x16xf32>
    %27 = vector.shape_cast %26 : vector<16x16x16xf32> to vector<256x16xf32>
    %28 = arith.truncf %27 : vector<256x16xf32> to vector<256x16xbf16>
    %c6 = arith.constant 6 : index
    %c0_24 = arith.constant 0 : index
    %c0_25 = arith.constant 0 : index
    %29 = vector.load %arg1[%c6, %c0_24, %c0_25] : memref<9x16x128xbf16, #tpu.memory_space<vmem>>, vector<1x16x128xbf16>
    %30 = vector.shape_cast %29 : vector<1x16x128xbf16> to vector<16x128xbf16>
    %cst_26 = arith.constant dense<0.000000e+00> : vector<256x128xf32>
    %31 = tpu.matmul %28, %30, %cst_26 {dimension_numbers = #tpu.dot_dimension_numbers<[1], [0], [0], [1], [0, 0, 1, 1], [], []>} : vector<256x16xbf16>, vector<16x128xbf16>, vector<256x128xf32> -> vector<256x128xf32>
    %32 = arith.addf %25, %31 : vector<256x128xf32>
    %c0_27 = arith.constant 0 : index
    %c0_28 = arith.constant 0 : index
    %c1_29 = arith.constant 1 : index
    %c0_30 = arith.constant 0 : index
    %33 = vector.load %arg8[%c0_27, %c0_28, %c1_29, %c0_30] : memref<2x18x24x16xf32, #tpu.memory_space<vmem>>, vector<1x18x16x16xf32>
    %34 = vector.shape_cast %33 : vector<1x18x16x16xf32> to vector<18x16x16xf32>
    %35 = vector.extract_strided_slice %34 {offsets = [0, 0, 0], sizes = [16, 16, 16], strides = [1, 1, 1]} : vector<18x16x16xf32> to vector<16x16x16xf32>
    %36 = vector.shape_cast %35 : vector<16x16x16xf32> to vector<256x16xf32>
    %37 = arith.truncf %36 : vector<256x16xf32> to vector<256x16xbf16>
    %c1_31 = arith.constant 1 : index
    %c0_32 = arith.constant 0 : index
    %c0_33 = arith.constant 0 : index
    %38 = vector.load %arg1[%c1_31, %c0_32, %c0_33] : memref<9x16x128xbf16, #tpu.memory_space<vmem>>, vector<1x16x128xbf16>
    %39 = vector.shape_cast %38 : vector<1x16x128xbf16> to vector<16x128xbf16>
    %cst_34 = arith.constant dense<0.000000e+00> : vector<256x128xf32>
    %40 = tpu.matmul %37, %39, %cst_34 {dimension_numbers = #tpu.dot_dimension_numbers<[1], [0], [0], [1], [0, 0, 1, 1], [], []>} : vector<256x16xbf16>, vector<16x128xbf16>, vector<256x128xf32> -> vector<256x128xf32>
    %41 = arith.addf %32, %40 : vector<256x128xf32>
    %42 = vector.extract_strided_slice %34 {offsets = [1, 0, 0], sizes = [16, 16, 16], strides = [1, 1, 1]} : vector<18x16x16xf32> to vector<16x16x16xf32>
    %43 = vector.shape_cast %42 : vector<16x16x16xf32> to vector<256x16xf32>
    %44 = arith.truncf %43 : vector<256x16xf32> to vector<256x16xbf16>
    %c4 = arith.constant 4 : index
    %c0_35 = arith.constant 0 : index
    %c0_36 = arith.constant 0 : index
    %45 = vector.load %arg1[%c4, %c0_35, %c0_36] : memref<9x16x128xbf16, #tpu.memory_space<vmem>>, vector<1x16x128xbf16>
    %46 = vector.shape_cast %45 : vector<1x16x128xbf16> to vector<16x128xbf16>
    %cst_37 = arith.constant dense<0.000000e+00> : vector<256x128xf32>
    %47 = tpu.matmul %44, %46, %cst_37 {dimension_numbers = #tpu.dot_dimension_numbers<[1], [0], [0], [1], [0, 0, 1, 1], [], []>} : vector<256x16xbf16>, vector<16x128xbf16>, vector<256x128xf32> -> vector<256x128xf32>
    %48 = arith.addf %41, %47 : vector<256x128xf32>
    %49 = vector.extract_strided_slice %34 {offsets = [2, 0, 0], sizes = [16, 16, 16], strides = [1, 1, 1]} : vector<18x16x16xf32> to vector<16x16x16xf32>
    %50 = vector.shape_cast %49 : vector<16x16x16xf32> to vector<256x16xf32>
    %51 = arith.truncf %50 : vector<256x16xf32> to vector<256x16xbf16>
    %c7 = arith.constant 7 : index
    %c0_38 = arith.constant 0 : index
    %c0_39 = arith.constant 0 : index
    %52 = vector.load %arg1[%c7, %c0_38, %c0_39] : memref<9x16x128xbf16, #tpu.memory_space<vmem>>, vector<1x16x128xbf16>
    %53 = vector.shape_cast %52 : vector<1x16x128xbf16> to vector<16x128xbf16>
    %cst_40 = arith.constant dense<0.000000e+00> : vector<256x128xf32>
    %54 = tpu.matmul %51, %53, %cst_40 {dimension_numbers = #tpu.dot_dimension_numbers<[1], [0], [0], [1], [0, 0, 1, 1], [], []>} : vector<256x16xbf16>, vector<16x128xbf16>, vector<256x128xf32> -> vector<256x128xf32>
    %55 = arith.addf %48, %54 : vector<256x128xf32>
    %c0_41 = arith.constant 0 : index
    %c0_42 = arith.constant 0 : index
    %c2 = arith.constant 2 : index
    %c0_43 = arith.constant 0 : index
    %56 = vector.load %arg8[%c0_41, %c0_42, %c2, %c0_43] : memref<2x18x24x16xf32, #tpu.memory_space<vmem>>, vector<1x18x16x16xf32>
    %57 = vector.shape_cast %56 : vector<1x18x16x16xf32> to vector<18x16x16xf32>
    %58 = vector.extract_strided_slice %57 {offsets = [0, 0, 0], sizes = [16, 16, 16], strides = [1, 1, 1]} : vector<18x16x16xf32> to vector<16x16x16xf32>
    %59 = vector.shape_cast %58 : vector<16x16x16xf32> to vector<256x16xf32>
    %60 = arith.truncf %59 : vector<256x16xf32> to vector<256x16xbf16>
    %c2_44 = arith.constant 2 : index
    %c0_45 = arith.constant 0 : index
    %c0_46 = arith.constant 0 : index
    %61 = vector.load %arg1[%c2_44, %c0_45, %c0_46] : memref<9x16x128xbf16, #tpu.memory_space<vmem>>, vector<1x16x128xbf16>
    %62 = vector.shape_cast %61 : vector<1x16x128xbf16> to vector<16x128xbf16>
    %cst_47 = arith.constant dense<0.000000e+00> : vector<256x128xf32>
    %63 = tpu.matmul %60, %62, %cst_47 {dimension_numbers = #tpu.dot_dimension_numbers<[1], [0], [0], [1], [0, 0, 1, 1], [], []>} : vector<256x16xbf16>, vector<16x128xbf16>, vector<256x128xf32> -> vector<256x128xf32>
    %64 = arith.addf %55, %63 : vector<256x128xf32>
    %65 = vector.extract_strided_slice %57 {offsets = [1, 0, 0], sizes = [16, 16, 16], strides = [1, 1, 1]} : vector<18x16x16xf32> to vector<16x16x16xf32>
    %66 = vector.shape_cast %65 : vector<16x16x16xf32> to vector<256x16xf32>
    %67 = arith.truncf %66 : vector<256x16xf32> to vector<256x16xbf16>
    %c5 = arith.constant 5 : index
    %c0_48 = arith.constant 0 : index
    %c0_49 = arith.constant 0 : index
    %68 = vector.load %arg1[%c5, %c0_48, %c0_49] : memref<9x16x128xbf16, #tpu.memory_space<vmem>>, vector<1x16x128xbf16>
    %69 = vector.shape_cast %68 : vector<1x16x128xbf16> to vector<16x128xbf16>
    %cst_50 = arith.constant dense<0.000000e+00> : vector<256x128xf32>
    %70 = tpu.matmul %67, %69, %cst_50 {dimension_numbers = #tpu.dot_dimension_numbers<[1], [0], [0], [1], [0, 0, 1, 1], [], []>} : vector<256x16xbf16>, vector<16x128xbf16>, vector<256x128xf32> -> vector<256x128xf32>
    %71 = arith.addf %64, %70 : vector<256x128xf32>
    %72 = vector.extract_strided_slice %57 {offsets = [2, 0, 0], sizes = [16, 16, 16], strides = [1, 1, 1]} : vector<18x16x16xf32> to vector<16x16x16xf32>
    %73 = vector.shape_cast %72 : vector<16x16x16xf32> to vector<256x16xf32>
    %74 = arith.truncf %73 : vector<256x16xf32> to vector<256x16xbf16>
    %c8 = arith.constant 8 : index
    %c0_51 = arith.constant 0 : index
    %c0_52 = arith.constant 0 : index
    %75 = vector.load %arg1[%c8, %c0_51, %c0_52] : memref<9x16x128xbf16, #tpu.memory_space<vmem>>, vector<1x16x128xbf16>
    %76 = vector.shape_cast %75 : vector<1x16x128xbf16> to vector<16x128xbf16>
    %cst_53 = arith.constant dense<0.000000e+00> : vector<256x128xf32>
    %77 = tpu.matmul %74, %76, %cst_53 {dimension_numbers = #tpu.dot_dimension_numbers<[1], [0], [0], [1], [0, 0, 1, 1], [], []>} : vector<256x16xbf16>, vector<16x128xbf16>, vector<256x128xf32> -> vector<256x128xf32>
    %78 = arith.addf %71, %77 : vector<256x128xf32>
    %c0_54 = arith.constant 0 : index
    %c0_55 = arith.constant 0 : index
    %c0_56 = arith.constant 0 : index
    %79 = vector.load %arg9[%c0_54, %c0_55, %c0_56] : memref<2x256x128xf32, #tpu.memory_space<vmem>>, vector<1x256x128xf32>
    %80 = vector.shape_cast %79 : vector<1x256x128xf32> to vector<256x128xf32>
    %81 = vector.shape_cast %78 : vector<256x128xf32> to vector<1x256x128xf32>
    tpu.vector_store %arg9[%c0_54, %c0_55, %c0_56], %81 {strides = array<i32>} : memref<2x256x128xf32, #tpu.memory_space<vmem>>, vector<1x256x128xf32>,
    %cst_57 = arith.constant dense<0.000000e+00> : vector<128xf32>
    %82 = vector.multi_reduction <add>, %78, %cst_57 [0] : vector<256x128xf32> to vector<128xf32>
    %83 = vector.shape_cast %82 : vector<128xf32> to vector<1x128xf32>
    %84 = arith.addf %2, %83 : vector<1x128xf32>
    %85 = arith.mulf %78, %78 : vector<256x128xf32>
    %cst_58 = arith.constant dense<0.000000e+00> : vector<128xf32>
    %86 = vector.multi_reduction <add>, %85, %cst_58 [0] : vector<256x128xf32> to vector<128xf32>
    %87 = vector.shape_cast %86 : vector<128xf32> to vector<1x128xf32>
    %88 = arith.addf %3, %87 : vector<1x128xf32>
    %c1_59 = arith.constant 1 : index
    %c0_60 = arith.constant 0 : index
    %c0_61 = arith.constant 0 : index
    %c0_62 = arith.constant 0 : index
    %89 = vector.load %arg0[%c1_59, %c0_60, %c0_61, %c0_62] : memref<2x16x16x16xf32, #tpu.memory_space<vmem>>, vector<1x16x16x16xf32>
    %90 = vector.shape_cast %89 : vector<1x16x16x16xf32> to vector<16x16x16xf32>
    %c1_63 = arith.constant 1 : index
    %c1_64 = arith.constant 1 : index
    %c1_65 = arith.constant 1 : index
    %c0_66 = arith.constant 0 : index
    %91 = vector.load %arg8[%c1_63, %c1_64, %c1_65, %c0_66] : memref<2x18x24x16xf32, #tpu.memory_space<vmem>>, vector<1x16x16x16xf32>
    %92 = vector.shape_cast %91 : vector<1x16x16x16xf32> to vector<16x16x16xf32>
    %93 = vector.shape_cast %90 : vector<16x16x16xf32> to vector<1x16x16x16xf32>
    tpu.vector_store %arg8[%c1_63, %c1_64, %c1_65, %c0_66], %93 {strides = array<i32>} : memref<2x18x24x16xf32, #tpu.memory_space<vmem>>, vector<1x16x16x16xf32>,
    %cst_67 = arith.constant 0.000000e+00 : f32
    %94 = vector.broadcast %cst_67 : f32 to vector<256x128xf32>
    %c1_68 = arith.constant 1 : index
    %c0_69 = arith.constant 0 : index
    %c0_70 = arith.constant 0 : index
    %c0_71 = arith.constant 0 : index
    %95 = vector.load %arg8[%c1_68, %c0_69, %c0_70, %c0_71] : memref<2x18x24x16xf32, #tpu.memory_space<vmem>>, vector<1x18x16x16xf32>
    %96 = vector.shape_cast %95 : vector<1x18x16x16xf32> to vector<18x16x16xf32>
    %97 = vector.extract_strided_slice %96 {offsets = [0, 0, 0], sizes = [16, 16, 16], strides = [1, 1, 1]} : vector<18x16x16xf32> to vector<16x16x16xf32>
    %98 = vector.shape_cast %97 : vector<16x16x16xf32> to vector<256x16xf32>
    %99 = arith.truncf %98 : vector<256x16xf32> to vector<256x16xbf16>
    %c0_72 = arith.constant 0 : index
    %c0_73 = arith.constant 0 : index
    %c0_74 = arith.constant 0 : index
    %100 = vector.load %arg1[%c0_72, %c0_73, %c0_74] : memref<9x16x128xbf16, #tpu.memory_space<vmem>>, vector<1x16x128xbf16>
    %101 = vector.shape_cast %100 : vector<1x16x128xbf16> to vector<16x128xbf16>
    %cst_75 = arith.constant dense<0.000000e+00> : vector<256x128xf32>
    %102 = tpu.matmul %99, %101, %cst_75 {dimension_numbers = #tpu.dot_dimension_numbers<[1], [0], [0], [1], [0, 0, 1, 1], [], []>} : vector<256x16xbf16>, vector<16x128xbf16>, vector<256x128xf32> -> vector<256x128xf32>
    %103 = arith.addf %94, %102 : vector<256x128xf32>
    %104 = vector.extract_strided_slice %96 {offsets = [1, 0, 0], sizes = [16, 16, 16], strides = [1, 1, 1]} : vector<18x16x16xf32> to vector<16x16x16xf32>
    %105 = vector.shape_cast %104 : vector<16x16x16xf32> to vector<256x16xf32>
    %106 = arith.truncf %105 : vector<256x16xf32> to vector<256x16xbf16>
    %c3_76 = arith.constant 3 : index
    %c0_77 = arith.constant 0 : index
    %c0_78 = arith.constant 0 : index
    %107 = vector.load %arg1[%c3_76, %c0_77, %c0_78] : memref<9x16x128xbf16, #tpu.memory_space<vmem>>, vector<1x16x128xbf16>
    %108 = vector.shape_cast %107 : vector<1x16x128xbf16> to vector<16x128xbf16>
    %cst_79 = arith.constant dense<0.000000e+00> : vector<256x128xf32>
    %109 = tpu.matmul %106, %108, %cst_79 {dimension_numbers = #tpu.dot_dimension_numbers<[1], [0], [0], [1], [0, 0, 1, 1], [], []>} : vector<256x16xbf16>, vector<16x128xbf16>, vector<256x128xf32> -> vector<256x128xf32>
    %110 = arith.addf %103, %109 : vector<256x128xf32>
    %111 = vector.extract_strided_slice %96 {offsets = [2, 0, 0], sizes = [16, 16, 16], strides = [1, 1, 1]} : vector<18x16x16xf32> to vector<16x16x16xf32>
    %112 = vector.shape_cast %111 : vector<16x16x16xf32> to vector<256x16xf32>
    %113 = arith.truncf %112 : vector<256x16xf32> to vector<256x16xbf16>
    %c6_80 = arith.constant 6 : index
    %c0_81 = arith.constant 0 : index
    %c0_82 = arith.constant 0 : index
    %114 = vector.load %arg1[%c6_80, %c0_81, %c0_82] : memref<9x16x128xbf16, #tpu.memory_space<vmem>>, vector<1x16x128xbf16>
    %115 = vector.shape_cast %114 : vector<1x16x128xbf16> to vector<16x128xbf16>
    %cst_83 = arith.constant dense<0.000000e+00> : vector<256x128xf32>
    %116 = tpu.matmul %113, %115, %cst_83 {dimension_numbers = #tpu.dot_dimension_numbers<[1], [0], [0], [1], [0, 0, 1, 1], [], []>} : vector<256x16xbf16>, vector<16x128xbf16>, vector<256x128xf32> -> vector<256x128xf32>
    %117 = arith.addf %110, %116 : vector<256x128xf32>
    %c1_84 = arith.constant 1 : index
    %c0_85 = arith.constant 0 : index
    %c1_86 = arith.constant 1 : index
    %c0_87 = arith.constant 0 : index
    %118 = vector.load %arg8[%c1_84, %c0_85, %c1_86, %c0_87] : memref<2x18x24x16xf32, #tpu.memory_space<vmem>>, vector<1x18x16x16xf32>
    %119 = vector.shape_cast %118 : vector<1x18x16x16xf32> to vector<18x16x16xf32>
    %120 = vector.extract_strided_slice %119 {offsets = [0, 0, 0], sizes = [16, 16, 16], strides = [1, 1, 1]} : vector<18x16x16xf32> to vector<16x16x16xf32>
    %121 = vector.shape_cast %120 : vector<16x16x16xf32> to vector<256x16xf32>
    %122 = arith.truncf %121 : vector<256x16xf32> to vector<256x16xbf16>
    %c1_88 = arith.constant 1 : index
    %c0_89 = arith.constant 0 : index
    %c0_90 = arith.constant 0 : index
    %123 = vector.load %arg1[%c1_88, %c0_89, %c0_90] : memref<9x16x128xbf16, #tpu.memory_space<vmem>>, vector<1x16x128xbf16>
    %124 = vector.shape_cast %123 : vector<1x16x128xbf16> to vector<16x128xbf16>
    %cst_91 = arith.constant dense<0.000000e+00> : vector<256x128xf32>
    %125 = tpu.matmul %122, %124, %cst_91 {dimension_numbers = #tpu.dot_dimension_numbers<[1], [0], [0], [1], [0, 0, 1, 1], [], []>} : vector<256x16xbf16>, vector<16x128xbf16>, vector<256x128xf32> -> vector<256x128xf32>
    %126 = arith.addf %117, %125 : vector<256x128xf32>
    %127 = vector.extract_strided_slice %119 {offsets = [1, 0, 0], sizes = [16, 16, 16], strides = [1, 1, 1]} : vector<18x16x16xf32> to vector<16x16x16xf32>
    %128 = vector.shape_cast %127 : vector<16x16x16xf32> to vector<256x16xf32>
    %129 = arith.truncf %128 : vector<256x16xf32> to vector<256x16xbf16>
    %c4_92 = arith.constant 4 : index
    %c0_93 = arith.constant 0 : index
    %c0_94 = arith.constant 0 : index
    %130 = vector.load %arg1[%c4_92, %c0_93, %c0_94] : memref<9x16x128xbf16, #tpu.memory_space<vmem>>, vector<1x16x128xbf16>
    %131 = vector.shape_cast %130 : vector<1x16x128xbf16> to vector<16x128xbf16>
    %cst_95 = arith.constant dense<0.000000e+00> : vector<256x128xf32>
    %132 = tpu.matmul %129, %131, %cst_95 {dimension_numbers = #tpu.dot_dimension_numbers<[1], [0], [0], [1], [0, 0, 1, 1], [], []>} : vector<256x16xbf16>, vector<16x128xbf16>, vector<256x128xf32> -> vector<256x128xf32>
    %133 = arith.addf %126, %132 : vector<256x128xf32>
    %134 = vector.extract_strided_slice %119 {offsets = [2, 0, 0], sizes = [16, 16, 16], strides = [1, 1, 1]} : vector<18x16x16xf32> to vector<16x16x16xf32>
    %135 = vector.shape_cast %134 : vector<16x16x16xf32> to vector<256x16xf32>
    %136 = arith.truncf %135 : vector<256x16xf32> to vector<256x16xbf16>
    %c7_96 = arith.constant 7 : index
    %c0_97 = arith.constant 0 : index
    %c0_98 = arith.constant 0 : index
    %137 = vector.load %arg1[%c7_96, %c0_97, %c0_98] : memref<9x16x128xbf16, #tpu.memory_space<vmem>>, vector<1x16x128xbf16>
    %138 = vector.shape_cast %137 : vector<1x16x128xbf16> to vector<16x128xbf16>
    %cst_99 = arith.constant dense<0.000000e+00> : vector<256x128xf32>
    %139 = tpu.matmul %136, %138, %cst_99 {dimension_numbers = #tpu.dot_dimension_numbers<[1], [0], [0], [1], [0, 0, 1, 1], [], []>} : vector<256x16xbf16>, vector<16x128xbf16>, vector<256x128xf32> -> vector<256x128xf32>
    %140 = arith.addf %133, %139 : vector<256x128xf32>
    %c1_100 = arith.constant 1 : index
    %c0_101 = arith.constant 0 : index
    %c2_102 = arith.constant 2 : index
    %c0_103 = arith.constant 0 : index
    %141 = vector.load %arg8[%c1_100, %c0_101, %c2_102, %c0_103] : memref<2x18x24x16xf32, #tpu.memory_space<vmem>>, vector<1x18x16x16xf32>
    %142 = vector.shape_cast %141 : vector<1x18x16x16xf32> to vector<18x16x16xf32>
    %143 = vector.extract_strided_slice %142 {offsets = [0, 0, 0], sizes = [16, 16, 16], strides = [1, 1, 1]} : vector<18x16x16xf32> to vector<16x16x16xf32>
    %144 = vector.shape_cast %143 : vector<16x16x16xf32> to vector<256x16xf32>
    %145 = arith.truncf %144 : vector<256x16xf32> to vector<256x16xbf16>
    %c2_104 = arith.constant 2 : index
    %c0_105 = arith.constant 0 : index
    %c0_106 = arith.constant 0 : index
    %146 = vector.load %arg1[%c2_104, %c0_105, %c0_106] : memref<9x16x128xbf16, #tpu.memory_space<vmem>>, vector<1x16x128xbf16>
    %147 = vector.shape_cast %146 : vector<1x16x128xbf16> to vector<16x128xbf16>
    %cst_107 = arith.constant dense<0.000000e+00> : vector<256x128xf32>
    %148 = tpu.matmul %145, %147, %cst_107 {dimension_numbers = #tpu.dot_dimension_numbers<[1], [0], [0], [1], [0, 0, 1, 1], [], []>} : vector<256x16xbf16>, vector<16x128xbf16>, vector<256x128xf32> -> vector<256x128xf32>
    %149 = arith.addf %140, %148 : vector<256x128xf32>
    %150 = vector.extract_strided_slice %142 {offsets = [1, 0, 0], sizes = [16, 16, 16], strides = [1, 1, 1]} : vector<18x16x16xf32> to vector<16x16x16xf32>
    %151 = vector.shape_cast %150 : vector<16x16x16xf32> to vector<256x16xf32>
    %152 = arith.truncf %151 : vector<256x16xf32> to vector<256x16xbf16>
    %c5_108 = arith.constant 5 : index
    %c0_109 = arith.constant 0 : index
    %c0_110 = arith.constant 0 : index
    %153 = vector.load %arg1[%c5_108, %c0_109, %c0_110] : memref<9x16x128xbf16, #tpu.memory_space<vmem>>, vector<1x16x128xbf16>
    %154 = vector.shape_cast %153 : vector<1x16x128xbf16> to vector<16x128xbf16>
    %cst_111 = arith.constant dense<0.000000e+00> : vector<256x128xf32>
    %155 = tpu.matmul %152, %154, %cst_111 {dimension_numbers = #tpu.dot_dimension_numbers<[1], [0], [0], [1], [0, 0, 1, 1], [], []>} : vector<256x16xbf16>, vector<16x128xbf16>, vector<256x128xf32> -> vector<256x128xf32>
    %156 = arith.addf %149, %155 : vector<256x128xf32>
    %157 = vector.extract_strided_slice %142 {offsets = [2, 0, 0], sizes = [16, 16, 16], strides = [1, 1, 1]} : vector<18x16x16xf32> to vector<16x16x16xf32>
    %158 = vector.shape_cast %157 : vector<16x16x16xf32> to vector<256x16xf32>
    %159 = arith.truncf %158 : vector<256x16xf32> to vector<256x16xbf16>
    %c8_112 = arith.constant 8 : index
    %c0_113 = arith.constant 0 : index
    %c0_114 = arith.constant 0 : index
    %160 = vector.load %arg1[%c8_112, %c0_113, %c0_114] : memref<9x16x128xbf16, #tpu.memory_space<vmem>>, vector<1x16x128xbf16>
    %161 = vector.shape_cast %160 : vector<1x16x128xbf16> to vector<16x128xbf16>
    %cst_115 = arith.constant dense<0.000000e+00> : vector<256x128xf32>
    %162 = tpu.matmul %159, %161, %cst_115 {dimension_numbers = #tpu.dot_dimension_numbers<[1], [0], [0], [1], [0, 0, 1, 1], [], []>} : vector<256x16xbf16>, vector<16x128xbf16>, vector<256x128xf32> -> vector<256x128xf32>
    %163 = arith.addf %156, %162 : vector<256x128xf32>
    %c1_116 = arith.constant 1 : index
    %c0_117 = arith.constant 0 : index
    %c0_118 = arith.constant 0 : index
    %164 = vector.load %arg9[%c1_116, %c0_117, %c0_118] : memref<2x256x128xf32, #tpu.memory_space<vmem>>, vector<1x256x128xf32>
    %165 = vector.shape_cast %164 : vector<1x256x128xf32> to vector<256x128xf32>
    %166 = vector.shape_cast %163 : vector<256x128xf32> to vector<1x256x128xf32>
    tpu.vector_store %arg9[%c1_116, %c0_117, %c0_118], %166 {strides = array<i32>} : memref<2x256x128xf32, #tpu.memory_space<vmem>>, vector<1x256x128xf32>,
    %cst_119 = arith.constant dense<0.000000e+00> : vector<128xf32>
    %167 = vector.multi_reduction <add>, %163, %cst_119 [0] : vector<256x128xf32> to vector<128xf32>
    %168 = vector.shape_cast %167 : vector<128xf32> to vector<1x128xf32>
    %169 = arith.addf %84, %168 : vector<1x128xf32>
    %170 = arith.mulf %163, %163 : vector<256x128xf32>
    %cst_120 = arith.constant dense<0.000000e+00> : vector<128xf32>
    %171 = vector.multi_reduction <add>, %170, %cst_120 [0] : vector<256x128xf32> to vector<128xf32>
    %172 = vector.shape_cast %171 : vector<128xf32> to vector<1x128xf32>
    %173 = arith.addf %88, %172 : vector<1x128xf32>
    %cst_121 = arith.constant 0.001953125 : f32
    %174 = vector.broadcast %cst_121 : f32 to vector<1x128xf32>
    %175 = arith.mulf %169, %174 : vector<1x128xf32>
    %cst_122 = arith.constant 0.001953125 : f32
    %176 = vector.broadcast %cst_122 : f32 to vector<1x128xf32>
    %177 = arith.mulf %173, %176 : vector<1x128xf32>
    %178 = arith.mulf %175, %175 : vector<1x128xf32>
    %179 = arith.subf %177, %178 : vector<1x128xf32>
    %cst_123 = arith.constant 0.000000e+00 : f32
    %180 = vector.broadcast %cst_123 : f32 to vector<1x128xf32>
    %181 = arith.maximumf %179, %180 : vector<1x128xf32>
    %c0_124 = arith.constant 0 : index
    %c0_125 = arith.constant 0 : index
    %182 = vector.load %arg2[%c0_124, %c0_125] : memref<1x128xf32, #tpu.memory_space<vmem>>, vector<1x128xf32>
    %cst_126 = arith.constant 9.99999974E-6 : f32
    %183 = vector.broadcast %cst_126 : f32 to vector<1x128xf32>
    %184 = arith.addf %181, %183 : vector<1x128xf32>
    %185 = math.rsqrt %184 : vector<1x128xf32>
    %186 = arith.mulf %182, %185 : vector<1x128xf32>
    %c0_127 = arith.constant 0 : index
    %c0_128 = arith.constant 0 : index
    %187 = vector.load %arg3[%c0_127, %c0_128] : memref<1x128xf32, #tpu.memory_space<vmem>>, vector<1x128xf32>
    %188 = arith.mulf %175, %186 : vector<1x128xf32>
    %189 = arith.subf %187, %188 : vector<1x128xf32>
    %cst_129 = arith.constant 0.000000e+00 : f32
    %190 = vector.broadcast %cst_129 : f32 to vector<1x128xf32>
    %cst_130 = arith.constant 0.000000e+00 : f32
    %191 = vector.broadcast %cst_130 : f32 to vector<1x128xf32>
    %c0_131 = arith.constant 0 : index
    %c0_132 = arith.constant 0 : index
    %c0_133 = arith.constant 0 : index
    %192 = vector.load %arg9[%c0_131, %c0_132, %c0_133] : memref<2x256x128xf32, #tpu.memory_space<vmem>>, vector<1x256x128xf32>
    %193 = vector.shape_cast %192 : vector<1x256x128xf32> to vector<256x128xf32>
    %194 = vector.broadcast %186 : vector<1x128xf32> to vector<256x128xf32>
    %195 = arith.mulf %193, %194 : vector<256x128xf32>
    %196 = vector.broadcast %189 : vector<1x128xf32> to vector<256x128xf32>
    %197 = arith.addf %195, %196 : vector<256x128xf32>
    %cst_134 = arith.constant 0.000000e+00 : f32
    %198 = vector.broadcast %cst_134 : f32 to vector<256x128xf32>
    %199 = arith.maximumf %197, %198 : vector<256x128xf32>
    %200 = vector.extract_strided_slice %199 {offsets = [0, 0], sizes = [256, 16], strides = [1, 1]} : vector<256x128xf32> to vector<256x16xf32>
    %201 = vector.shape_cast %200 : vector<256x16xf32> to vector<16x16x16xf32>
    %c0_135 = arith.constant 0 : index
    %c1_136 = arith.constant 1 : index
    %c1_137 = arith.constant 1 : index
    %c0_138 = arith.constant 0 : index
    %202 = vector.load %arg8[%c0_135, %c1_136, %c1_137, %c0_138] : memref<2x18x24x16xf32, #tpu.memory_space<vmem>>, vector<1x16x16x16xf32>
    %203 = vector.shape_cast %202 : vector<1x16x16x16xf32> to vector<16x16x16xf32>
    %204 = vector.shape_cast %201 : vector<16x16x16xf32> to vector<1x16x16x16xf32>
    tpu.vector_store %arg8[%c0_135, %c1_136, %c1_137, %c0_138], %204 {strides = array<i32>} : memref<2x18x24x16xf32, #tpu.memory_space<vmem>>, vector<1x16x16x16xf32>,
    %cst_139 = arith.constant 0.000000e+00 : f32
    %205 = vector.broadcast %cst_139 : f32 to vector<256x128xf32>
    %c0_140 = arith.constant 0 : index
    %c0_141 = arith.constant 0 : index
    %c0_142 = arith.constant 0 : index
    %c0_143 = arith.constant 0 : index
    %206 = vector.load %arg8[%c0_140, %c0_141, %c0_142, %c0_143] : memref<2x18x24x16xf32, #tpu.memory_space<vmem>>, vector<1x18x16x16xf32>
    %207 = vector.shape_cast %206 : vector<1x18x16x16xf32> to vector<18x16x16xf32>
    %208 = vector.extract_strided_slice %207 {offsets = [0, 0, 0], sizes = [16, 16, 16], strides = [1, 1, 1]} : vector<18x16x16xf32> to vector<16x16x16xf32>
    %209 = vector.shape_cast %208 : vector<16x16x16xf32> to vector<256x16xf32>
    %210 = arith.truncf %209 : vector<256x16xf32> to vector<256x16xbf16>
    %c0_144 = arith.constant 0 : index
    %c0_145 = arith.constant 0 : index
    %c0_146 = arith.constant 0 : index
    %211 = vector.load %arg4[%c0_144, %c0_145, %c0_146] : memref<9x16x128xbf16, #tpu.memory_space<vmem>>, vector<1x16x128xbf16>
    %212 = vector.shape_cast %211 : vector<1x16x128xbf16> to vector<16x128xbf16>
    %cst_147 = arith.constant dense<0.000000e+00> : vector<256x128xf32>
    %213 = tpu.matmul %210, %212, %cst_147 {dimension_numbers = #tpu.dot_dimension_numbers<[1], [0], [0], [1], [0, 0, 1, 1], [], []>} : vector<256x16xbf16>, vector<16x128xbf16>, vector<256x128xf32> -> vector<256x128xf32>
    %214 = arith.addf %205, %213 : vector<256x128xf32>
    %215 = vector.extract_strided_slice %207 {offsets = [1, 0, 0], sizes = [16, 16, 16], strides = [1, 1, 1]} : vector<18x16x16xf32> to vector<16x16x16xf32>
    %216 = vector.shape_cast %215 : vector<16x16x16xf32> to vector<256x16xf32>
    %217 = arith.truncf %216 : vector<256x16xf32> to vector<256x16xbf16>
    %c3_148 = arith.constant 3 : index
    %c0_149 = arith.constant 0 : index
    %c0_150 = arith.constant 0 : index
    %218 = vector.load %arg4[%c3_148, %c0_149, %c0_150] : memref<9x16x128xbf16, #tpu.memory_space<vmem>>, vector<1x16x128xbf16>
    %219 = vector.shape_cast %218 : vector<1x16x128xbf16> to vector<16x128xbf16>
    %cst_151 = arith.constant dense<0.000000e+00> : vector<256x128xf32>
    %220 = tpu.matmul %217, %219, %cst_151 {dimension_numbers = #tpu.dot_dimension_numbers<[1], [0], [0], [1], [0, 0, 1, 1], [], []>} : vector<256x16xbf16>, vector<16x128xbf16>, vector<256x128xf32> -> vector<256x128xf32>
    %221 = arith.addf %214, %220 : vector<256x128xf32>
    %222 = vector.extract_strided_slice %207 {offsets = [2, 0, 0], sizes = [16, 16, 16], strides = [1, 1, 1]} : vector<18x16x16xf32> to vector<16x16x16xf32>
    %223 = vector.shape_cast %222 : vector<16x16x16xf32> to vector<256x16xf32>
    %224 = arith.truncf %223 : vector<256x16xf32> to vector<256x16xbf16>
    %c6_152 = arith.constant 6 : index
    %c0_153 = arith.constant 0 : index
    %c0_154 = arith.constant 0 : index
    %225 = vector.load %arg4[%c6_152, %c0_153, %c0_154] : memref<9x16x128xbf16, #tpu.memory_space<vmem>>, vector<1x16x128xbf16>
    %226 = vector.shape_cast %225 : vector<1x16x128xbf16> to vector<16x128xbf16>
    %cst_155 = arith.constant dense<0.000000e+00> : vector<256x128xf32>
    %227 = tpu.matmul %224, %226, %cst_155 {dimension_numbers = #tpu.dot_dimension_numbers<[1], [0], [0], [1], [0, 0, 1, 1], [], []>} : vector<256x16xbf16>, vector<16x128xbf16>, vector<256x128xf32> -> vector<256x128xf32>
    %228 = arith.addf %221, %227 : vector<256x128xf32>
    %c0_156 = arith.constant 0 : index
    %c0_157 = arith.constant 0 : index
    %c1_158 = arith.constant 1 : index
    %c0_159 = arith.constant 0 : index
    %229 = vector.load %arg8[%c0_156, %c0_157, %c1_158, %c0_159] : memref<2x18x24x16xf32, #tpu.memory_space<vmem>>, vector<1x18x16x16xf32>
    %230 = vector.shape_cast %229 : vector<1x18x16x16xf32> to vector<18x16x16xf32>
    %231 = vector.extract_strided_slice %230 {offsets = [0, 0, 0], sizes = [16, 16, 16], strides = [1, 1, 1]} : vector<18x16x16xf32> to vector<16x16x16xf32>
    %232 = vector.shape_cast %231 : vector<16x16x16xf32> to vector<256x16xf32>
    %233 = arith.truncf %232 : vector<256x16xf32> to vector<256x16xbf16>
    %c1_160 = arith.constant 1 : index
    %c0_161 = arith.constant 0 : index
    %c0_162 = arith.constant 0 : index
    %234 = vector.load %arg4[%c1_160, %c0_161, %c0_162] : memref<9x16x128xbf16, #tpu.memory_space<vmem>>, vector<1x16x128xbf16>
    %235 = vector.shape_cast %234 : vector<1x16x128xbf16> to vector<16x128xbf16>
    %cst_163 = arith.constant dense<0.000000e+00> : vector<256x128xf32>
    %236 = tpu.matmul %233, %235, %cst_163 {dimension_numbers = #tpu.dot_dimension_numbers<[1], [0], [0], [1], [0, 0, 1, 1], [], []>} : vector<256x16xbf16>, vector<16x128xbf16>, vector<256x128xf32> -> vector<256x128xf32>
    %237 = arith.addf %228, %236 : vector<256x128xf32>
    %238 = vector.extract_strided_slice %230 {offsets = [1, 0, 0], sizes = [16, 16, 16], strides = [1, 1, 1]} : vector<18x16x16xf32> to vector<16x16x16xf32>
    %239 = vector.shape_cast %238 : vector<16x16x16xf32> to vector<256x16xf32>
    %240 = arith.truncf %239 : vector<256x16xf32> to vector<256x16xbf16>
    %c4_164 = arith.constant 4 : index
    %c0_165 = arith.constant 0 : index
    %c0_166 = arith.constant 0 : index
    %241 = vector.load %arg4[%c4_164, %c0_165, %c0_166] : memref<9x16x128xbf16, #tpu.memory_space<vmem>>, vector<1x16x128xbf16>
    %242 = vector.shape_cast %241 : vector<1x16x128xbf16> to vector<16x128xbf16>
    %cst_167 = arith.constant dense<0.000000e+00> : vector<256x128xf32>
    %243 = tpu.matmul %240, %242, %cst_167 {dimension_numbers = #tpu.dot_dimension_numbers<[1], [0], [0], [1], [0, 0, 1, 1], [], []>} : vector<256x16xbf16>, vector<16x128xbf16>, vector<256x128xf32> -> vector<256x128xf32>
    %244 = arith.addf %237, %243 : vector<256x128xf32>
    %245 = vector.extract_strided_slice %230 {offsets = [2, 0, 0], sizes = [16, 16, 16], strides = [1, 1, 1]} : vector<18x16x16xf32> to vector<16x16x16xf32>
    %246 = vector.shape_cast %245 : vector<16x16x16xf32> to vector<256x16xf32>
    %247 = arith.truncf %246 : vector<256x16xf32> to vector<256x16xbf16>
    %c7_168 = arith.constant 7 : index
    %c0_169 = arith.constant 0 : index
    %c0_170 = arith.constant 0 : index
    %248 = vector.load %arg4[%c7_168, %c0_169, %c0_170] : memref<9x16x128xbf16, #tpu.memory_space<vmem>>, vector<1x16x128xbf16>
    %249 = vector.shape_cast %248 : vector<1x16x128xbf16> to vector<16x128xbf16>
    %cst_171 = arith.constant dense<0.000000e+00> : vector<256x128xf32>
    %250 = tpu.matmul %247, %249, %cst_171 {dimension_numbers = #tpu.dot_dimension_numbers<[1], [0], [0], [1], [0, 0, 1, 1], [], []>} : vector<256x16xbf16>, vector<16x128xbf16>, vector<256x128xf32> -> vector<256x128xf32>
    %251 = arith.addf %244, %250 : vector<256x128xf32>
    %c0_172 = arith.constant 0 : index
    %c0_173 = arith.constant 0 : index
    %c2_174 = arith.constant 2 : index
    %c0_175 = arith.constant 0 : index
    %252 = vector.load %arg8[%c0_172, %c0_173, %c2_174, %c0_175] : memref<2x18x24x16xf32, #tpu.memory_space<vmem>>, vector<1x18x16x16xf32>
    %253 = vector.shape_cast %252 : vector<1x18x16x16xf32> to vector<18x16x16xf32>
    %254 = vector.extract_strided_slice %253 {offsets = [0, 0, 0], sizes = [16, 16, 16], strides = [1, 1, 1]} : vector<18x16x16xf32> to vector<16x16x16xf32>
    %255 = vector.shape_cast %254 : vector<16x16x16xf32> to vector<256x16xf32>
    %256 = arith.truncf %255 : vector<256x16xf32> to vector<256x16xbf16>
    %c2_176 = arith.constant 2 : index
    %c0_177 = arith.constant 0 : index
    %c0_178 = arith.constant 0 : index
    %257 = vector.load %arg4[%c2_176, %c0_177, %c0_178] : memref<9x16x128xbf16, #tpu.memory_space<vmem>>, vector<1x16x128xbf16>
    %258 = vector.shape_cast %257 : vector<1x16x128xbf16> to vector<16x128xbf16>
    %cst_179 = arith.constant dense<0.000000e+00> : vector<256x128xf32>
    %259 = tpu.matmul %256, %258, %cst_179 {dimension_numbers = #tpu.dot_dimension_numbers<[1], [0], [0], [1], [0, 0, 1, 1], [], []>} : vector<256x16xbf16>, vector<16x128xbf16>, vector<256x128xf32> -> vector<256x128xf32>
    %260 = arith.addf %251, %259 : vector<256x128xf32>
    %261 = vector.extract_strided_slice %253 {offsets = [1, 0, 0], sizes = [16, 16, 16], strides = [1, 1, 1]} : vector<18x16x16xf32> to vector<16x16x16xf32>
    %262 = vector.shape_cast %261 : vector<16x16x16xf32> to vector<256x16xf32>
    %263 = arith.truncf %262 : vector<256x16xf32> to vector<256x16xbf16>
    %c5_180 = arith.constant 5 : index
    %c0_181 = arith.constant 0 : index
    %c0_182 = arith.constant 0 : index
    %264 = vector.load %arg4[%c5_180, %c0_181, %c0_182] : memref<9x16x128xbf16, #tpu.memory_space<vmem>>, vector<1x16x128xbf16>
    %265 = vector.shape_cast %264 : vector<1x16x128xbf16> to vector<16x128xbf16>
    %cst_183 = arith.constant dense<0.000000e+00> : vector<256x128xf32>
    %266 = tpu.matmul %263, %265, %cst_183 {dimension_numbers = #tpu.dot_dimension_numbers<[1], [0], [0], [1], [0, 0, 1, 1], [], []>} : vector<256x16xbf16>, vector<16x128xbf16>, vector<256x128xf32> -> vector<256x128xf32>
    %267 = arith.addf %260, %266 : vector<256x128xf32>
    %268 = vector.extract_strided_slice %253 {offsets = [2, 0, 0], sizes = [16, 16, 16], strides = [1, 1, 1]} : vector<18x16x16xf32> to vector<16x16x16xf32>
    %269 = vector.shape_cast %268 : vector<16x16x16xf32> to vector<256x16xf32>
    %270 = arith.truncf %269 : vector<256x16xf32> to vector<256x16xbf16>
    %c8_184 = arith.constant 8 : index
    %c0_185 = arith.constant 0 : index
    %c0_186 = arith.constant 0 : index
    %271 = vector.load %arg4[%c8_184, %c0_185, %c0_186] : memref<9x16x128xbf16, #tpu.memory_space<vmem>>, vector<1x16x128xbf16>
    %272 = vector.shape_cast %271 : vector<1x16x128xbf16> to vector<16x128xbf16>
    %cst_187 = arith.constant dense<0.000000e+00> : vector<256x128xf32>
    %273 = tpu.matmul %270, %272, %cst_187 {dimension_numbers = #tpu.dot_dimension_numbers<[1], [0], [0], [1], [0, 0, 1, 1], [], []>} : vector<256x16xbf16>, vector<16x128xbf16>, vector<256x128xf32> -> vector<256x128xf32>
    %274 = arith.addf %267, %273 : vector<256x128xf32>
    %c0_188 = arith.constant 0 : index
    %c0_189 = arith.constant 0 : index
    %c0_190 = arith.constant 0 : index
    %275 = vector.load %arg9[%c0_188, %c0_189, %c0_190] : memref<2x256x128xf32, #tpu.memory_space<vmem>>, vector<1x256x128xf32>
    %276 = vector.shape_cast %275 : vector<1x256x128xf32> to vector<256x128xf32>
    %277 = vector.shape_cast %274 : vector<256x128xf32> to vector<1x256x128xf32>
    tpu.vector_store %arg9[%c0_188, %c0_189, %c0_190], %277 {strides = array<i32>} : memref<2x256x128xf32, #tpu.memory_space<vmem>>, vector<1x256x128xf32>,
    %cst_191 = arith.constant dense<0.000000e+00> : vector<128xf32>
    %278 = vector.multi_reduction <add>, %274, %cst_191 [0] : vector<256x128xf32> to vector<128xf32>
    %279 = vector.shape_cast %278 : vector<128xf32> to vector<1x128xf32>
    %280 = arith.addf %190, %279 : vector<1x128xf32>
    %281 = arith.mulf %274, %274 : vector<256x128xf32>
    %cst_192 = arith.constant dense<0.000000e+00> : vector<128xf32>
    %282 = vector.multi_reduction <add>, %281, %cst_192 [0] : vector<256x128xf32> to vector<128xf32>
    %283 = vector.shape_cast %282 : vector<128xf32> to vector<1x128xf32>
    %284 = arith.addf %191, %283 : vector<1x128xf32>
    %c1_193 = arith.constant 1 : index
    %c0_194 = arith.constant 0 : index
    %c0_195 = arith.constant 0 : index
    %285 = vector.load %arg9[%c1_193, %c0_194, %c0_195] : memref<2x256x128xf32, #tpu.memory_space<vmem>>, vector<1x256x128xf32>
    %286 = vector.shape_cast %285 : vector<1x256x128xf32> to vector<256x128xf32>
    %287 = vector.broadcast %186 : vector<1x128xf32> to vector<256x128xf32>
    %288 = arith.mulf %286, %287 : vector<256x128xf32>
    %289 = vector.broadcast %189 : vector<1x128xf32> to vector<256x128xf32>
    %290 = arith.addf %288, %289 : vector<256x128xf32>
    %cst_196 = arith.constant 0.000000e+00 : f32
    %291 = vector.broadcast %cst_196 : f32 to vector<256x128xf32>
    %292 = arith.maximumf %290, %291 : vector<256x128xf32>
    %293 = vector.extract_strided_slice %292 {offsets = [0, 0], sizes = [256, 16], strides = [1, 1]} : vector<256x128xf32> to vector<256x16xf32>
    %294 = vector.shape_cast %293 : vector<256x16xf32> to vector<16x16x16xf32>
    %c1_197 = arith.constant 1 : index
    %c1_198 = arith.constant 1 : index
    %c1_199 = arith.constant 1 : index
    %c0_200 = arith.constant 0 : index
    %295 = vector.load %arg8[%c1_197, %c1_198, %c1_199, %c0_200] : memref<2x18x24x16xf32, #tpu.memory_space<vmem>>, vector<1x16x16x16xf32>
    %296 = vector.shape_cast %295 : vector<1x16x16x16xf32> to vector<16x16x16xf32>
    %297 = vector.shape_cast %294 : vector<16x16x16xf32> to vector<1x16x16x16xf32>
    tpu.vector_store %arg8[%c1_197, %c1_198, %c1_199, %c0_200], %297 {strides = array<i32>} : memref<2x18x24x16xf32, #tpu.memory_space<vmem>>, vector<1x16x16x16xf32>,
    %cst_201 = arith.constant 0.000000e+00 : f32
    %298 = vector.broadcast %cst_201 : f32 to vector<256x128xf32>
    %c1_202 = arith.constant 1 : index
    %c0_203 = arith.constant 0 : index
    %c0_204 = arith.constant 0 : index
    %c0_205 = arith.constant 0 : index
    %299 = vector.load %arg8[%c1_202, %c0_203, %c0_204, %c0_205] : memref<2x18x24x16xf32, #tpu.memory_space<vmem>>, vector<1x18x16x16xf32>
    %300 = vector.shape_cast %299 : vector<1x18x16x16xf32> to vector<18x16x16xf32>
    %301 = vector.extract_strided_slice %300 {offsets = [0, 0, 0], sizes = [16, 16, 16], strides = [1, 1, 1]} : vector<18x16x16xf32> to vector<16x16x16xf32>
    %302 = vector.shape_cast %301 : vector<16x16x16xf32> to vector<256x16xf32>
    %303 = arith.truncf %302 : vector<256x16xf32> to vector<256x16xbf16>
    %c0_206 = arith.constant 0 : index
    %c0_207 = arith.constant 0 : index
    %c0_208 = arith.constant 0 : index
    %304 = vector.load %arg4[%c0_206, %c0_207, %c0_208] : memref<9x16x128xbf16, #tpu.memory_space<vmem>>, vector<1x16x128xbf16>
    %305 = vector.shape_cast %304 : vector<1x16x128xbf16> to vector<16x128xbf16>
    %cst_209 = arith.constant dense<0.000000e+00> : vector<256x128xf32>
    %306 = tpu.matmul %303, %305, %cst_209 {dimension_numbers = #tpu.dot_dimension_numbers<[1], [0], [0], [1], [0, 0, 1, 1], [], []>} : vector<256x16xbf16>, vector<16x128xbf16>, vector<256x128xf32> -> vector<256x128xf32>
    %307 = arith.addf %298, %306 : vector<256x128xf32>
    %308 = vector.extract_strided_slice %300 {offsets = [1, 0, 0], sizes = [16, 16, 16], strides = [1, 1, 1]} : vector<18x16x16xf32> to vector<16x16x16xf32>
    %309 = vector.shape_cast %308 : vector<16x16x16xf32> to vector<256x16xf32>
    %310 = arith.truncf %309 : vector<256x16xf32> to vector<256x16xbf16>
    %c3_210 = arith.constant 3 : index
    %c0_211 = arith.constant 0 : index
    %c0_212 = arith.constant 0 : index
    %311 = vector.load %arg4[%c3_210, %c0_211, %c0_212] : memref<9x16x128xbf16, #tpu.memory_space<vmem>>, vector<1x16x128xbf16>
    %312 = vector.shape_cast %311 : vector<1x16x128xbf16> to vector<16x128xbf16>
    %cst_213 = arith.constant dense<0.000000e+00> : vector<256x128xf32>
    %313 = tpu.matmul %310, %312, %cst_213 {dimension_numbers = #tpu.dot_dimension_numbers<[1], [0], [0], [1], [0, 0, 1, 1], [], []>} : vector<256x16xbf16>, vector<16x128xbf16>, vector<256x128xf32> -> vector<256x128xf32>
    %314 = arith.addf %307, %313 : vector<256x128xf32>
    %315 = vector.extract_strided_slice %300 {offsets = [2, 0, 0], sizes = [16, 16, 16], strides = [1, 1, 1]} : vector<18x16x16xf32> to vector<16x16x16xf32>
    %316 = vector.shape_cast %315 : vector<16x16x16xf32> to vector<256x16xf32>
    %317 = arith.truncf %316 : vector<256x16xf32> to vector<256x16xbf16>
    %c6_214 = arith.constant 6 : index
    %c0_215 = arith.constant 0 : index
    %c0_216 = arith.constant 0 : index
    %318 = vector.load %arg4[%c6_214, %c0_215, %c0_216] : memref<9x16x128xbf16, #tpu.memory_space<vmem>>, vector<1x16x128xbf16>
    %319 = vector.shape_cast %318 : vector<1x16x128xbf16> to vector<16x128xbf16>
    %cst_217 = arith.constant dense<0.000000e+00> : vector<256x128xf32>
    %320 = tpu.matmul %317, %319, %cst_217 {dimension_numbers = #tpu.dot_dimension_numbers<[1], [0], [0], [1], [0, 0, 1, 1], [], []>} : vector<256x16xbf16>, vector<16x128xbf16>, vector<256x128xf32> -> vector<256x128xf32>
    %321 = arith.addf %314, %320 : vector<256x128xf32>
    %c1_218 = arith.constant 1 : index
    %c0_219 = arith.constant 0 : index
    %c1_220 = arith.constant 1 : index
    %c0_221 = arith.constant 0 : index
    %322 = vector.load %arg8[%c1_218, %c0_219, %c1_220, %c0_221] : memref<2x18x24x16xf32, #tpu.memory_space<vmem>>, vector<1x18x16x16xf32>
    %323 = vector.shape_cast %322 : vector<1x18x16x16xf32> to vector<18x16x16xf32>
    %324 = vector.extract_strided_slice %323 {offsets = [0, 0, 0], sizes = [16, 16, 16], strides = [1, 1, 1]} : vector<18x16x16xf32> to vector<16x16x16xf32>
    %325 = vector.shape_cast %324 : vector<16x16x16xf32> to vector<256x16xf32>
    %326 = arith.truncf %325 : vector<256x16xf32> to vector<256x16xbf16>
    %c1_222 = arith.constant 1 : index
    %c0_223 = arith.constant 0 : index
    %c0_224 = arith.constant 0 : index
    %327 = vector.load %arg4[%c1_222, %c0_223, %c0_224] : memref<9x16x128xbf16, #tpu.memory_space<vmem>>, vector<1x16x128xbf16>
    %328 = vector.shape_cast %327 : vector<1x16x128xbf16> to vector<16x128xbf16>
    %cst_225 = arith.constant dense<0.000000e+00> : vector<256x128xf32>
    %329 = tpu.matmul %326, %328, %cst_225 {dimension_numbers = #tpu.dot_dimension_numbers<[1], [0], [0], [1], [0, 0, 1, 1], [], []>} : vector<256x16xbf16>, vector<16x128xbf16>, vector<256x128xf32> -> vector<256x128xf32>
    %330 = arith.addf %321, %329 : vector<256x128xf32>
    %331 = vector.extract_strided_slice %323 {offsets = [1, 0, 0], sizes = [16, 16, 16], strides = [1, 1, 1]} : vector<18x16x16xf32> to vector<16x16x16xf32>
    %332 = vector.shape_cast %331 : vector<16x16x16xf32> to vector<256x16xf32>
    %333 = arith.truncf %332 : vector<256x16xf32> to vector<256x16xbf16>
    %c4_226 = arith.constant 4 : index
    %c0_227 = arith.constant 0 : index
    %c0_228 = arith.constant 0 : index
    %334 = vector.load %arg4[%c4_226, %c0_227, %c0_228] : memref<9x16x128xbf16, #tpu.memory_space<vmem>>, vector<1x16x128xbf16>
    %335 = vector.shape_cast %334 : vector<1x16x128xbf16> to vector<16x128xbf16>
    %cst_229 = arith.constant dense<0.000000e+00> : vector<256x128xf32>
    %336 = tpu.matmul %333, %335, %cst_229 {dimension_numbers = #tpu.dot_dimension_numbers<[1], [0], [0], [1], [0, 0, 1, 1], [], []>} : vector<256x16xbf16>, vector<16x128xbf16>, vector<256x128xf32> -> vector<256x128xf32>
    %337 = arith.addf %330, %336 : vector<256x128xf32>
    %338 = vector.extract_strided_slice %323 {offsets = [2, 0, 0], sizes = [16, 16, 16], strides = [1, 1, 1]} : vector<18x16x16xf32> to vector<16x16x16xf32>
    %339 = vector.shape_cast %338 : vector<16x16x16xf32> to vector<256x16xf32>
    %340 = arith.truncf %339 : vector<256x16xf32> to vector<256x16xbf16>
    %c7_230 = arith.constant 7 : index
    %c0_231 = arith.constant 0 : index
    %c0_232 = arith.constant 0 : index
    %341 = vector.load %arg4[%c7_230, %c0_231, %c0_232] : memref<9x16x128xbf16, #tpu.memory_space<vmem>>, vector<1x16x128xbf16>
    %342 = vector.shape_cast %341 : vector<1x16x128xbf16> to vector<16x128xbf16>
    %cst_233 = arith.constant dense<0.000000e+00> : vector<256x128xf32>
    %343 = tpu.matmul %340, %342, %cst_233 {dimension_numbers = #tpu.dot_dimension_numbers<[1], [0], [0], [1], [0, 0, 1, 1], [], []>} : vector<256x16xbf16>, vector<16x128xbf16>, vector<256x128xf32> -> vector<256x128xf32>
    %344 = arith.addf %337, %343 : vector<256x128xf32>
    %c1_234 = arith.constant 1 : index
    %c0_235 = arith.constant 0 : index
    %c2_236 = arith.constant 2 : index
    %c0_237 = arith.constant 0 : index
    %345 = vector.load %arg8[%c1_234, %c0_235, %c2_236, %c0_237] : memref<2x18x24x16xf32, #tpu.memory_space<vmem>>, vector<1x18x16x16xf32>
    %346 = vector.shape_cast %345 : vector<1x18x16x16xf32> to vector<18x16x16xf32>
    %347 = vector.extract_strided_slice %346 {offsets = [0, 0, 0], sizes = [16, 16, 16], strides = [1, 1, 1]} : vector<18x16x16xf32> to vector<16x16x16xf32>
    %348 = vector.shape_cast %347 : vector<16x16x16xf32> to vector<256x16xf32>
    %349 = arith.truncf %348 : vector<256x16xf32> to vector<256x16xbf16>
    %c2_238 = arith.constant 2 : index
    %c0_239 = arith.constant 0 : index
    %c0_240 = arith.constant 0 : index
    %350 = vector.load %arg4[%c2_238, %c0_239, %c0_240] : memref<9x16x128xbf16, #tpu.memory_space<vmem>>, vector<1x16x128xbf16>
    %351 = vector.shape_cast %350 : vector<1x16x128xbf16> to vector<16x128xbf16>
    %cst_241 = arith.constant dense<0.000000e+00> : vector<256x128xf32>
    %352 = tpu.matmul %349, %351, %cst_241 {dimension_numbers = #tpu.dot_dimension_numbers<[1], [0], [0], [1], [0, 0, 1, 1], [], []>} : vector<256x16xbf16>, vector<16x128xbf16>, vector<256x128xf32> -> vector<256x128xf32>
    %353 = arith.addf %344, %352 : vector<256x128xf32>
    %354 = vector.extract_strided_slice %346 {offsets = [1, 0, 0], sizes = [16, 16, 16], strides = [1, 1, 1]} : vector<18x16x16xf32> to vector<16x16x16xf32>
    %355 = vector.shape_cast %354 : vector<16x16x16xf32> to vector<256x16xf32>
    %356 = arith.truncf %355 : vector<256x16xf32> to vector<256x16xbf16>
    %c5_242 = arith.constant 5 : index
    %c0_243 = arith.constant 0 : index
    %c0_244 = arith.constant 0 : index
    %357 = vector.load %arg4[%c5_242, %c0_243, %c0_244] : memref<9x16x128xbf16, #tpu.memory_space<vmem>>, vector<1x16x128xbf16>
    %358 = vector.shape_cast %357 : vector<1x16x128xbf16> to vector<16x128xbf16>
    %cst_245 = arith.constant dense<0.000000e+00> : vector<256x128xf32>
    %359 = tpu.matmul %356, %358, %cst_245 {dimension_numbers = #tpu.dot_dimension_numbers<[1], [0], [0], [1], [0, 0, 1, 1], [], []>} : vector<256x16xbf16>, vector<16x128xbf16>, vector<256x128xf32> -> vector<256x128xf32>
    %360 = arith.addf %353, %359 : vector<256x128xf32>
    %361 = vector.extract_strided_slice %346 {offsets = [2, 0, 0], sizes = [16, 16, 16], strides = [1, 1, 1]} : vector<18x16x16xf32> to vector<16x16x16xf32>
    %362 = vector.shape_cast %361 : vector<16x16x16xf32> to vector<256x16xf32>
    %363 = arith.truncf %362 : vector<256x16xf32> to vector<256x16xbf16>
    %c8_246 = arith.constant 8 : index
    %c0_247 = arith.constant 0 : index
    %c0_248 = arith.constant 0 : index
    %364 = vector.load %arg4[%c8_246, %c0_247, %c0_248] : memref<9x16x128xbf16, #tpu.memory_space<vmem>>, vector<1x16x128xbf16>
    %365 = vector.shape_cast %364 : vector<1x16x128xbf16> to vector<16x128xbf16>
    %cst_249 = arith.constant dense<0.000000e+00> : vector<256x128xf32>
    %366 = tpu.matmul %363, %365, %cst_249 {dimension_numbers = #tpu.dot_dimension_numbers<[1], [0], [0], [1], [0, 0, 1, 1], [], []>} : vector<256x16xbf16>, vector<16x128xbf16>, vector<256x128xf32> -> vector<256x128xf32>
    %367 = arith.addf %360, %366 : vector<256x128xf32>
    %c1_250 = arith.constant 1 : index
    %c0_251 = arith.constant 0 : index
    %c0_252 = arith.constant 0 : index
    %368 = vector.load %arg9[%c1_250, %c0_251, %c0_252] : memref<2x256x128xf32, #tpu.memory_space<vmem>>, vector<1x256x128xf32>
    %369 = vector.shape_cast %368 : vector<1x256x128xf32> to vector<256x128xf32>
    %370 = vector.shape_cast %367 : vector<256x128xf32> to vector<1x256x128xf32>
    tpu.vector_store %arg9[%c1_250, %c0_251, %c0_252], %370 {strides = array<i32>} : memref<2x256x128xf32, #tpu.memory_space<vmem>>, vector<1x256x128xf32>,
    %cst_253 = arith.constant dense<0.000000e+00> : vector<128xf32>
    %371 = vector.multi_reduction <add>, %367, %cst_253 [0] : vector<256x128xf32> to vector<128xf32>
    %372 = vector.shape_cast %371 : vector<128xf32> to vector<1x128xf32>
    %373 = arith.addf %280, %372 : vector<1x128xf32>
    %374 = arith.mulf %367, %367 : vector<256x128xf32>
    %cst_254 = arith.constant dense<0.000000e+00> : vector<128xf32>
    %375 = vector.multi_reduction <add>, %374, %cst_254 [0] : vector<256x128xf32> to vector<128xf32>
    %376 = vector.shape_cast %375 : vector<128xf32> to vector<1x128xf32>
    %377 = arith.addf %284, %376 : vector<1x128xf32>
    %cst_255 = arith.constant 0.001953125 : f32
    %378 = vector.broadcast %cst_255 : f32 to vector<1x128xf32>
    %379 = arith.mulf %373, %378 : vector<1x128xf32>
    %cst_256 = arith.constant 0.001953125 : f32
    %380 = vector.broadcast %cst_256 : f32 to vector<1x128xf32>
    %381 = arith.mulf %377, %380 : vector<1x128xf32>
    %382 = arith.mulf %379, %379 : vector<1x128xf32>
    %383 = arith.subf %381, %382 : vector<1x128xf32>
    %cst_257 = arith.constant 0.000000e+00 : f32
    %384 = vector.broadcast %cst_257 : f32 to vector<1x128xf32>
    %385 = arith.maximumf %383, %384 : vector<1x128xf32>
    %c0_258 = arith.constant 0 : index
    %c0_259 = arith.constant 0 : index
    %386 = vector.load %arg5[%c0_258, %c0_259] : memref<1x128xf32, #tpu.memory_space<vmem>>, vector<1x128xf32>
    %cst_260 = arith.constant 9.99999974E-6 : f32
    %387 = vector.broadcast %cst_260 : f32 to vector<1x128xf32>
    %388 = arith.addf %385, %387 : vector<1x128xf32>
    %389 = math.rsqrt %388 : vector<1x128xf32>
    %390 = arith.mulf %386, %389 : vector<1x128xf32>
    %c0_261 = arith.constant 0 : index
    %c0_262 = arith.constant 0 : index
    %391 = vector.load %arg6[%c0_261, %c0_262] : memref<1x128xf32, #tpu.memory_space<vmem>>, vector<1x128xf32>
    %392 = arith.mulf %379, %390 : vector<1x128xf32>
    %393 = arith.subf %391, %392 : vector<1x128xf32>
    %c0_263 = arith.constant 0 : index
    %c0_264 = arith.constant 0 : index
    %c0_265 = arith.constant 0 : index
    %394 = vector.load %arg9[%c0_263, %c0_264, %c0_265] : memref<2x256x128xf32, #tpu.memory_space<vmem>>, vector<1x256x128xf32>
    %395 = vector.shape_cast %394 : vector<1x256x128xf32> to vector<256x128xf32>
    %396 = vector.broadcast %390 : vector<1x128xf32> to vector<256x128xf32>
    %397 = arith.mulf %395, %396 : vector<256x128xf32>
    %398 = vector.broadcast %393 : vector<1x128xf32> to vector<256x128xf32>
    %399 = arith.addf %397, %398 : vector<256x128xf32>
    %400 = vector.extract_strided_slice %399 {offsets = [0, 0], sizes = [256, 16], strides = [1, 1]} : vector<256x128xf32> to vector<256x16xf32>
    %c0_266 = arith.constant 0 : index
    %c0_267 = arith.constant 0 : index
    %c0_268 = arith.constant 0 : index
    %c0_269 = arith.constant 0 : index
    %401 = vector.load %arg0[%c0_266, %c0_267, %c0_268, %c0_269] : memref<2x16x16x16xf32, #tpu.memory_space<vmem>>, vector<1x16x16x16xf32>
    %402 = vector.shape_cast %401 : vector<1x16x16x16xf32> to vector<16x16x16xf32>
    %403 = vector.shape_cast %402 : vector<16x16x16xf32> to vector<256x16xf32>
    %404 = arith.addf %400, %403 : vector<256x16xf32>
    %cst_270 = arith.constant 0.000000e+00 : f32
    %405 = vector.broadcast %cst_270 : f32 to vector<256x16xf32>
    %406 = arith.maximumf %404, %405 : vector<256x16xf32>
    %407 = vector.shape_cast %406 : vector<256x16xf32> to vector<16x16x16xf32>
    %c0_271 = arith.constant 0 : index
    %c0_272 = arith.constant 0 : index
    %c0_273 = arith.constant 0 : index
    %c0_274 = arith.constant 0 : index
    %408 = vector.load %arg7[%c0_271, %c0_272, %c0_273, %c0_274] : memref<2x16x16x16xf32, #tpu.memory_space<vmem>>, vector<1x16x16x16xf32>
    %409 = vector.shape_cast %408 : vector<1x16x16x16xf32> to vector<16x16x16xf32>
    %410 = vector.shape_cast %407 : vector<16x16x16xf32> to vector<1x16x16x16xf32>
    tpu.vector_store %arg7[%c0_271, %c0_272, %c0_273, %c0_274], %410 {strides = array<i32>} : memref<2x16x16x16xf32, #tpu.memory_space<vmem>>, vector<1x16x16x16xf32>,
    %c1_275 = arith.constant 1 : index
    %c0_276 = arith.constant 0 : index
    %c0_277 = arith.constant 0 : index
    %411 = vector.load %arg9[%c1_275, %c0_276, %c0_277] : memref<2x256x128xf32, #tpu.memory_space<vmem>>, vector<1x256x128xf32>
    %412 = vector.shape_cast %411 : vector<1x256x128xf32> to vector<256x128xf32>
    %413 = vector.broadcast %390 : vector<1x128xf32> to vector<256x128xf32>
    %414 = arith.mulf %412, %413 : vector<256x128xf32>
    %415 = vector.broadcast %393 : vector<1x128xf32> to vector<256x128xf32>
    %416 = arith.addf %414, %415 : vector<256x128xf32>
    %417 = vector.extract_strided_slice %416 {offsets = [0, 0], sizes = [256, 16], strides = [1, 1]} : vector<256x128xf32> to vector<256x16xf32>
    %c1_278 = arith.constant 1 : index
    %c0_279 = arith.constant 0 : index
    %c0_280 = arith.constant 0 : index
    %c0_281 = arith.constant 0 : index
    %418 = vector.load %arg0[%c1_278, %c0_279, %c0_280, %c0_281] : memref<2x16x16x16xf32, #tpu.memory_space<vmem>>, vector<1x16x16x16xf32>
    %419 = vector.shape_cast %418 : vector<1x16x16x16xf32> to vector<16x16x16xf32>
    %420 = vector.shape_cast %419 : vector<16x16x16xf32> to vector<256x16xf32>
    %421 = arith.addf %417, %420 : vector<256x16xf32>
    %cst_282 = arith.constant 0.000000e+00 : f32
    %422 = vector.broadcast %cst_282 : f32 to vector<256x16xf32>
    %423 = arith.maximumf %421, %422 : vector<256x16xf32>
    %424 = vector.shape_cast %423 : vector<256x16xf32> to vector<16x16x16xf32>
    %c1_283 = arith.constant 1 : index
    %c0_284 = arith.constant 0 : index
    %c0_285 = arith.constant 0 : index
    %c0_286 = arith.constant 0 : index
    %425 = vector.load %arg7[%c1_283, %c0_284, %c0_285, %c0_286] : memref<2x16x16x16xf32, #tpu.memory_space<vmem>>, vector<1x16x16x16xf32>
    %426 = vector.shape_cast %425 : vector<1x16x16x16xf32> to vector<16x16x16xf32>
    %427 = vector.shape_cast %424 : vector<16x16x16xf32> to vector<1x16x16x16xf32>
    tpu.vector_store %arg7[%c1_283, %c0_284, %c0_285, %c0_286], %427 {strides = array<i32>} : memref<2x16x16x16xf32, #tpu.memory_space<vmem>>, vector<1x16x16x16xf32>,
    return
  }
}

</mosaic_0001>

<bundles_post_ra>
// kernel: tpu_custom_call.1
= control target key start
LH: loop header
LB: loop body
LE: loop exit
PB: predicated region body
PF: predicated region fallthrough
CT: control target
= control target key end

     0   :  { %12 = vsyncpa [#allocation5], 0  ;;  %s17265_s0 = inlined_call_operand.hbm [shape: f32[2,16,16,16], index: 0, kind: input, shape index: {}]   ;;  %s17266_s1 = inlined_call_operand.hbm [shape: bf16[9,16,128], index: 1, kind: input, shape index: {}]   ;;  %s17267_s2 = inlined_call_operand.vmem [shape: f32[1,128], index: 2, kind: input, shape index: {}]   ;;  %s17268_s3 = inlined_call_operand.vmem [shape: f32[1,128], index: 3, kind: input, shape index: {}]   ;;  %s17269_s4 = inlined_call_operand.hbm [shape: bf16[9,16,128], index: 4, kind: input, shape index: {}]   ;;  %s17270_s5 = inlined_call_operand.vmem [shape: f32[1,128], index: 5, kind: input, shape index: {}]   ;;  %s17271_s6 = inlined_call_operand.vmem [shape: f32[1,128], index: 6, kind: input, shape index: {}]   ;;  %s17272_s7 = inlined_call_operand.hbm [shape: f32[2,16,16,16], index: 7, kind: output, shape index: {}]  }
   0x1   :  { %13 = vsyncpa [#allocation8], 0 }
   0x2   :  { %14 = vsyncpa [#allocation6], 0  ;;  %s13613_s24 = smov [#allocation7]   ;;  %s13519_s28 = scalar_lea.hbm %s17266_s1, 1152 }
   0x3   :  { %s32_s25 = sshll.u32 %s13613_s24, 4  ;;  %p13520_p0 = scmp.ne.s32.totalorder %s17266_s1, %s13519_s28  ;;  %s33_s25 = int_to_ptr.vmem [resolvable:$true] %s32_s25 }
   0x4   :  { %p13523_p1 = scmp.lt.u32.totalorder %s13519_s28, %s17266_s1 }
   0x6   :  { %p13525_p2 = pnand %p13523_p1, %p13520_p0 }
   0x8   :  { %13528 = shalt.err (!%p13525_p2)
}
   0x9   :  { %s13529_s10 = scalar_lea.vmem %s33_s25, 1152  ;;  %p13534_p4 = scmp.lt.s32.totalorder %s33_s25, %s33_s25 }
   0xa   :  { %p13530_p3 = scmp.ne.s32.totalorder %s33_s25, %s13529_s10  ;;  %p13535_p5 = scmp.lt.s32.totalorder %s13529_s10, %s13529_s10 }
   0xc   :  { %p13536_p6 = por %p13535_p5, %p13534_p4 }
   0xe   :  { %p13537_p7 = pnand %p13536_p6, %p13530_p3 }
  0x10   :  { %13540 = shalt.err (!%p13537_p7)
}
  0x11   :  { %s13614_s11 = smov 64   ;;  %s13615_s12 = smov 4  }
  0x12   :  { %38 = dma.hbm_to_vmem [thread:$0]  %s17266_s1, 1152, %s33_s25, [#allocation8], %s13614_s11, %s13614_s11, %s13615_s12  }
  0x13   :  { %s13616_s15 = smov [#allocation4]   ;;  %s13541_s19 = scalar_lea.hbm %s17265_s0, 8192 }
  0x14   :  { %s20_s16 = sshll.u32 %s13616_s15, 4  ;;  %p13542_p8 = scmp.ne.s32.totalorder %s17265_s0, %s13541_s19  ;;  %s21_s16 = int_to_ptr.vmem [resolvable:$true] %s20_s16 }
  0x15   :  { %p13545_p9 = scmp.lt.u32.totalorder %s13541_s19, %s17265_s0 }
  0x17   :  { %p13547_p10 = pnand %p13545_p9, %p13542_p8 }
  0x19   :  { %13550 = shalt.err (!%p13547_p10)
}
  0x1a   :  { %s13551_s24 = scalar_lea.vmem %s21_s16, 8192  ;;  %p13556_p12 = scmp.lt.s32.totalorder %s21_s16, %s21_s16 }
  0x1b   :  { %p13552_p11 = scmp.ne.s32.totalorder %s21_s16, %s13551_s24  ;;  %p13557_p13 = scmp.lt.s32.totalorder %s13551_s24, %s13551_s24 }
  0x1d   :  { %p13558_p0 = por %p13557_p13, %p13556_p12 }
  0x1f   :  { %p13559_p1 = pnand %p13558_p0, %p13552_p11 }
  0x21   :  { %13562 = shalt.err (!%p13559_p1)
}
  0x22   :  { %s13617_s1 = smov 128   ;;  %s13618_s25 = smov 8  }
  0x23   :  { %26 = dma.hbm_to_vmem [thread:$0]  %s17265_s0, 8192, %s21_s16, [#allocation5], %s13617_s1, %s13617_s1, %s13618_s25  }
  0x24   :  { %s13619_s28 = smov [#allocation9]   ;;  %s13563_s9 = scalar_lea.hbm %s17269_s4, 1152 }
  0x25   :  { %s48_s29 = sshll.u32 %s13619_s28, 4  ;;  %p13564_p2 = scmp.ne.s32.totalorder %s17269_s4, %s13563_s9  ;;  %s49_s29 = int_to_ptr.vmem [resolvable:$true] %s48_s29 }
  0x26   :  { %p13567_p3 = scmp.lt.u32.totalorder %s13563_s9, %s17269_s4 }
  0x28   :  { %p13569_p4 = pnand %p13567_p3, %p13564_p2 }
  0x2a   :  { %13572 = shalt.err (!%p13569_p4)
}
  0x2b   :  { %s13573_s17 = scalar_lea.vmem %s49_s29, 1152  ;;  %p13578_p6 = scmp.lt.s32.totalorder %s49_s29, %s49_s29 }
  0x2c   :  { %p13574_p5 = scmp.ne.s32.totalorder %s49_s29, %s13573_s17  ;;  %p13579_p7 = scmp.lt.s32.totalorder %s13573_s17, %s13573_s17 }
  0x2e   :  { %p13580_p8 = por %p13579_p7, %p13578_p6 }
  0x30   :  { %p13581_p9 = pnand %p13580_p8, %p13574_p5 }
  0x32   :  { %13584 = shalt.err (!%p13581_p9)
}
  0x33   :  { %54 = dma.hbm_to_vmem [thread:$0]  %s17269_s4, 1152, %s49_s29, [#allocation8], %s13614_s11, %s13614_s11, %s13615_s12  }
  0x34   :  { %13607 = dma.done.wait [#allocation5], 8192  }
  0x35   :  { %13608 = vsyncadd [#allocation5], 4294959104 }
  0x36   :  { %13609 = dma.done.wait [#allocation8], 2304  }
  0x37   :  { %13610 = vsyncadd [#allocation8], 4294964992  ;;  %vm69_vm0 = vcmask 130048   ;;  %v13620_v0 = vmov 0.0   ;;  %v13479_v1 = vld [vmem:[#allocation7 + $0x18] sm:$0xff]   ;;  %v178_v3 = vld [vmem:[#allocation4] sm:$0xff] }
  0x38   :  { %73 = vst.msk [vmem:[#allocation2 + $0x18] sm:$0xff] %vm69_vm0, %v13620_v0  ;;  %74 = vst.msk [vmem:[#allocation2 + $0x20] sm:$0xff] %vm69_vm0, %v13620_v0  ;;  %v13480_v2 = vld [vmem:[#allocation7 + $0x18] sm:$0xff]   ;;  %11222 = vmatprep.subr.bf16.mxu0 %v13479_v1  ;;  %v179_v4 = vld [vmem:[#allocation4 + $0x8] sm:$0xff] }
  0x39   :  { %75 = vst.msk [vmem:[#allocation2 + $0x28] sm:$0xff] %vm69_vm0, %v13620_v0  ;;  %70 = vst.msk [vmem:[#allocation2] sm:$0xff] %vm69_vm0, %v13620_v0  ;;  %11528 = vmatprep.subr.bf16.mxu1 %v13480_v2  ;;  %11223 = vmatpush3.bf16.msra.mxu0 %v13479_v1  ;;  %v13925_v5 = vld [vmem:[#allocation7] sm:$0xff]   ;;  %v2462_v7 = vld [vmem:[#allocation4 + $0x108] sm:$0xff] }
  0x3a   :  { %71 = vst.msk [vmem:[#allocation2 + $0x8] sm:$0xff] %vm69_vm0, %v13620_v0  ;;  %72 = vst.msk [vmem:[#allocation2 + $0x10] sm:$0xff] %vm69_vm0, %v13620_v0  ;;  %v2461_v6 = vld [vmem:[#allocation4 + $0x100] sm:$0xff]  ;;  %11529 = vmatpush3.bf16.msra.mxu1 %v13480_v2  ;;  %11256 = vmatprep.subr.bf16.mxu0 %v13925_v5  ;;  %v180_v9 = vld [vmem:[#allocation4 + $0x10] sm:$0xff] }
  0x3b   :  { %76 = vst.msk [vmem:[#allocation2 + $0x30] sm:$0xff] %vm69_vm0, %v13620_v0  ;;  %77 = vst.msk [vmem:[#allocation2 + $0x38] sm:$0xff] %vm69_vm0, %v13620_v0  ;;  %v13930_v8 = vld [vmem:[#allocation7] sm:$0xff]   ;;  %v181_v10 = vld [vmem:[#allocation4 + $0x18] sm:$0xff] }
  0x3c   :  { %78 = vst.msk [vmem:[#allocation2 + $0x40] sm:$0xff] %vm69_vm0, %v13620_v0  ;;  %79 = vst.msk [vmem:[#allocation2 + $0x48] sm:$0xff] %vm69_vm0, %v13620_v0  ;;  %v2463_v11 = vld [vmem:[#allocation4 + $0x110] sm:$0xff]  ;;  %v2464_v12 = vld [vmem:[#allocation4 + $0x118] sm:$0xff]  ;;  %11562 = vmatprep.subr.bf16.mxu1 %v13930_v8 }
  0x3d   :  { %80 = vst.msk [vmem:[#allocation2 + $0x50] sm:$0xff] %vm69_vm0, %v13620_v0  ;;  %81 = vst.msk [vmem:[#allocation2 + $0x58] sm:$0xff] %vm69_vm0, %v13620_v0  ;;  %v182_v13 = vld [vmem:[#allocation4 + $0x20] sm:$0xff]  ;;  %v183_v14 = vld [vmem:[#allocation4 + $0x28] sm:$0xff] }
  0x3e   :  { %82 = vst.msk [vmem:[#allocation2 + $0x60] sm:$0xff] %vm69_vm0, %v13620_v0  ;;  %83 = vst.msk [vmem:[#allocation2 + $0x68] sm:$0xff] %vm69_vm0, %v13620_v0  ;;  %v2465_v15 = vld [vmem:[#allocation4 + $0x120] sm:$0xff]  ;;  %v2466_v16 = vld [vmem:[#allocation4 + $0x128] sm:$0xff] }
  0x3f   :  { %84 = vst.msk [vmem:[#allocation2 + $0x70] sm:$0xff] %vm69_vm0, %v13620_v0  ;;  %85 = vst.msk [vmem:[#allocation2 + $0x78] sm:$0xff] %vm69_vm0, %v13620_v0  ;;  %v184_v17 = vld [vmem:[#allocation4 + $0x30] sm:$0xff]  ;;  %v185_v18 = vld [vmem:[#allocation4 + $0x38] sm:$0xff] }
  0x40   :  { %86 = vst.msk [vmem:[#allocation2 + $0x80] sm:$0xff] %vm69_vm0, %v13620_v0  ;;  %87 = vst.msk [vmem:[#allocation2 + $0x88] sm:$0xff] %vm69_vm0, %v13620_v0  ;;  %v2467_v19 = vld [vmem:[#allocation4 + $0x130] sm:$0xff]  ;;  %v2468_v20 = vld [vmem:[#allocation4 + $0x138] sm:$0xff] }
  0x41   :  { %88 = vst.msk [vmem:[#allocation2 + $0x90] sm:$0xff] %vm69_vm0, %v13620_v0  ;;  %89 = vst.msk [vmem:[#allocation2 + $0x98] sm:$0xff] %vm69_vm0, %v13620_v0  ;;  %v186_v21 = vld [vmem:[#allocation4 + $0x40] sm:$0xff]  ;;  %v187_v22 = vld [vmem:[#allocation4 + $0x48] sm:$0xff] }
  0x42   :  { %90 = vst.msk [vmem:[#allocation2 + $0xa0] sm:$0xff] %vm69_vm0, %v13620_v0  ;;  %91 = vst.msk [vmem:[#allocation2 + $0xa8] sm:$0xff] %vm69_vm0, %v13620_v0  ;;  %v2469_v25 = vld [vmem:[#allocation4 + $0x140] sm:$0xff]  ;;  %v2470_v28 = vld [vmem:[#allocation4 + $0x148] sm:$0xff] }
  0x43   :  { %92 = vst.msk [vmem:[#allocation2 + $0xb0] sm:$0xff] %vm69_vm0, %v13620_v0  ;;  %93 = vst.msk [vmem:[#allocation2 + $0xb8] sm:$0xff] %vm69_vm0, %v13620_v0  ;;  %v188_v29 = vld [vmem:[#allocation4 + $0x50] sm:$0xff]  ;;  %v189_v31 = vld [vmem:[#allocation4 + $0x58] sm:$0xff] }
  0x44   :  { %94 = vst.msk [vmem:[#allocation2 + $0xc0] sm:$0xff] %vm69_vm0, %v13620_v0  ;;  %95 = vst.msk [vmem:[#allocation2 + $0xc8] sm:$0xff] %vm69_vm0, %v13620_v0  ;;  %v2471_v32 = vld [vmem:[#allocation4 + $0x150] sm:$0xff]  ;;  %v2472_v36 = vld [vmem:[#allocation4 + $0x158] sm:$0xff] }
  0x45   :  { %96 = vst.msk [vmem:[#allocation2 + $0xd0] sm:$0xff] %vm69_vm0, %v13620_v0  ;;  %97 = vst.msk [vmem:[#allocation2 + $0xd8] sm:$0xff] %vm69_vm0, %v13620_v0  ;;  %v190_v53 = vld [vmem:[#allocation4 + $0x60] sm:$0xff]  ;;  %v191_v54 = vld [vmem:[#allocation4 + $0x68] sm:$0xff] }
  0x46   :  { %98 = vst.msk [vmem:[#allocation2 + $0xe0] sm:$0xff] %vm69_vm0, %v13620_v0  ;;  %99 = vst.msk [vmem:[#allocation2 + $0xe8] sm:$0xff] %vm69_vm0, %v13620_v0  ;;  %v2473_v57 = vld [vmem:[#allocation4 + $0x160] sm:$0xff]  ;;  %v2474_v59 = vld [vmem:[#allocation4 + $0x168] sm:$0xff] }
  0x47   :  { %100 = vst.msk [vmem:[#allocation2 + $0xf0] sm:$0xff] %vm69_vm0, %v13620_v0  ;;  %101 = vst.msk [vmem:[#allocation2 + $0xf8] sm:$0xff] %vm69_vm0, %v13620_v0  ;;  %v192_v62 = vld [vmem:[#allocation4 + $0x70] sm:$0xff]  ;;  %v193_v63 = vld [vmem:[#allocation4 + $0x78] sm:$0xff] }
  0x48   :  { %102 = vst.msk [vmem:[#allocation2 + $0x100] sm:$0xff] %vm69_vm0, %v13620_v0  ;;  %103 = vst.msk [vmem:[#allocation2 + $0x108] sm:$0xff] %vm69_vm0, %v13620_v0  ;;  %v2475_v1 = vld [vmem:[#allocation4 + $0x170] sm:$0xff]  ;;  %v2476_v2 = vld [vmem:[#allocation4 + $0x178] sm:$0xff] }
  0x49   :  { %104 = vst.msk [vmem:[#allocation2 + $0x110] sm:$0xff] %vm69_vm0, %v13620_v0  ;;  %105 = vst.msk [vmem:[#allocation2 + $0x118] sm:$0xff] %vm69_vm0, %v13620_v0 }
  0x4a   :  { %106 = vst.msk [vmem:[#allocation2 + $0x120] sm:$0xff] %vm69_vm0, %v13620_v0  ;;  %107 = vst.msk [vmem:[#allocation2 + $0x128] sm:$0xff] %vm69_vm0, %v13620_v0 }
  0x4b   :  { %108 = vst.msk [vmem:[#allocation2 + $0x130] sm:$0xff] %vm69_vm0, %v13620_v0  ;;  %109 = vst.msk [vmem:[#allocation2 + $0x138] sm:$0xff] %vm69_vm0, %v13620_v0 }
  0x4c   :  { %110 = vst.msk [vmem:[#allocation2 + $0x140] sm:$0xff] %vm69_vm0, %v13620_v0  ;;  %111 = vst.msk [vmem:[#allocation2 + $0x148] sm:$0xff] %vm69_vm0, %v13620_v0 }
  0x4d   :  { %112 = vst.msk [vmem:[#allocation2 + $0x150] sm:$0xff] %vm69_vm0, %v13620_v0  ;;  %113 = vst.msk [vmem:[#allocation2 + $0x158] sm:$0xff] %vm69_vm0, %v13620_v0 }
  0x4e   :  { %114 = vst.msk [vmem:[#allocation2 + $0x160] sm:$0xff] %vm69_vm0, %v13620_v0  ;;  %115 = vst.msk [vmem:[#allocation2 + $0x168] sm:$0xff] %vm69_vm0, %v13620_v0 }
  0x4f   :  { %116 = vst.msk [vmem:[#allocation2 + $0x170] sm:$0xff] %vm69_vm0, %v13620_v0  ;;  %117 = vst.msk [vmem:[#allocation2 + $0x178] sm:$0xff] %vm69_vm0, %v13620_v0 }
  0x50   :  { %118 = vst.msk [vmem:[#allocation2 + $0x180] sm:$0xff] %vm69_vm0, %v13620_v0  ;;  %119 = vst.msk [vmem:[#allocation2 + $0x188] sm:$0xff] %vm69_vm0, %v13620_v0 }
  0x51   :  { %120 = vst.msk [vmem:[#allocation2 + $0x190] sm:$0xff] %vm69_vm0, %v13620_v0  ;;  %121 = vst.msk [vmem:[#allocation2 + $0x198] sm:$0xff] %vm69_vm0, %v13620_v0 }
  0x52   :  { %122 = vst.msk [vmem:[#allocation2 + $0x1a0] sm:$0xff] %vm69_vm0, %v13620_v0  ;;  %123 = vst.msk [vmem:[#allocation2 + $0x1a8] sm:$0xff] %vm69_vm0, %v13620_v0 }
  0x53   :  { %124 = vst.msk [vmem:[#allocation2 + $0x1b0] sm:$0xff] %vm69_vm0, %v13620_v0  ;;  %125 = vst.msk [vmem:[#allocation2 + $0x1b8] sm:$0xff] %vm69_vm0, %v13620_v0 }
  0x54   :  { %126 = vst.msk [vmem:[#allocation2 + $0x1c0] sm:$0xff] %vm69_vm0, %v13620_v0  ;;  %127 = vst.msk [vmem:[#allocation2 + $0x1c8] sm:$0xff] %vm69_vm0, %v13620_v0 }
  0x55   :  { %128 = vst.msk [vmem:[#allocation2 + $0x1d0] sm:$0xff] %vm69_vm0, %v13620_v0  ;;  %129 = vst.msk [vmem:[#allocation2 + $0x1d8] sm:$0xff] %vm69_vm0, %v13620_v0 }
  0x56   :  { %130 = vst.msk [vmem:[#allocation2 + $0x1e0] sm:$0xff] %vm69_vm0, %v13620_v0  ;;  %131 = vst.msk [vmem:[#allocation2 + $0x1e8] sm:$0xff] %vm69_vm0, %v13620_v0 }
  0x57   :  { %132 = vst.msk [vmem:[#allocation2 + $0x1f0] sm:$0xff] %vm69_vm0, %v13620_v0  ;;  %133 = vst.msk [vmem:[#allocation2 + $0x1f8] sm:$0xff] %vm69_vm0, %v13620_v0 }
  0x58   :  { %134 = vst.msk [vmem:[#allocation2 + $0x200] sm:$0xff] %vm69_vm0, %v13620_v0  ;;  %135 = vst.msk [vmem:[#allocation2 + $0x208] sm:$0xff] %vm69_vm0, %v13620_v0 }
  0x59   :  { %136 = vst.msk [vmem:[#allocation2 + $0x210] sm:$0xff] %vm69_vm0, %v13620_v0  ;;  %137 = vst.msk [vmem:[#allocation2 + $0x218] sm:$0xff] %vm69_vm0, %v13620_v0 }
  0x5a   :  { %138 = vst.msk [vmem:[#allocation2 + $0x220] sm:$0xff] %vm69_vm0, %v13620_v0  ;;  %139 = vst.msk [vmem:[#allocation2 + $0x228] sm:$0xff] %vm69_vm0, %v13620_v0 }
  0x5b   :  { %140 = vst.msk [vmem:[#allocation2 + $0x230] sm:$0xff] %vm69_vm0, %v13620_v0  ;;  %141 = vst.msk [vmem:[#allocation2 + $0x238] sm:$0xff] %vm69_vm0, %v13620_v0 }
  0x5c   :  { %142 = vst.msk [vmem:[#allocation2 + $0x240] sm:$0xff] %vm69_vm0, %v13620_v0  ;;  %143 = vst.msk [vmem:[#allocation2 + $0x248] sm:$0xff] %vm69_vm0, %v13620_v0 }
  0x5d   :  { %144 = vst.msk [vmem:[#allocation2 + $0x250] sm:$0xff] %vm69_vm0, %v13620_v0  ;;  %145 = vst.msk [vmem:[#allocation2 + $0x258] sm:$0xff] %vm69_vm0, %v13620_v0 }
  0x5e   :  { %146 = vst.msk [vmem:[#allocation2 + $0x260] sm:$0xff] %vm69_vm0, %v13620_v0  ;;  %147 = vst.msk [vmem:[#allocation2 + $0x268] sm:$0xff] %vm69_vm0, %v13620_v0 }
  0x5f   :  { %148 = vst.msk [vmem:[#allocation2 + $0x270] sm:$0xff] %vm69_vm0, %v13620_v0  ;;  %149 = vst.msk [vmem:[#allocation2 + $0x278] sm:$0xff] %vm69_vm0, %v13620_v0 }
  0x60   :  { %150 = vst.msk [vmem:[#allocation2 + $0x280] sm:$0xff] %vm69_vm0, %v13620_v0  ;;  %151 = vst.msk [vmem:[#allocation2 + $0x288] sm:$0xff] %vm69_vm0, %v13620_v0 }
  0x61   :  { %152 = vst.msk [vmem:[#allocation2 + $0x290] sm:$0xff] %vm69_vm0, %v13620_v0  ;;  %153 = vst.msk [vmem:[#allocation2 + $0x298] sm:$0xff] %vm69_vm0, %v13620_v0 }
  0x62   :  { %154 = vst.msk [vmem:[#allocation2 + $0x2a0] sm:$0xff] %vm69_vm0, %v13620_v0  ;;  %155 = vst.msk [vmem:[#allocation2 + $0x2a8] sm:$0xff] %vm69_vm0, %v13620_v0 }
  0x63   :  { %156 = vst.msk [vmem:[#allocation2 + $0x2b0] sm:$0xff] %vm69_vm0, %v13620_v0  ;;  %157 = vst.msk [vmem:[#allocation2 + $0x2b8] sm:$0xff] %vm69_vm0, %v13620_v0 }
  0x64   :  { %158 = vst.msk [vmem:[#allocation2 + $0x2c0] sm:$0xff] %vm69_vm0, %v13620_v0  ;;  %159 = vst.msk [vmem:[#allocation2 + $0x2c8] sm:$0xff] %vm69_vm0, %v13620_v0 }
  0x65   :  { %160 = vst.msk [vmem:[#allocation2 + $0x2d0] sm:$0xff] %vm69_vm0, %v13620_v0  ;;  %161 = vst.msk [vmem:[#allocation2 + $0x2d8] sm:$0xff] %vm69_vm0, %v13620_v0 }
  0x66   :  { %162 = vst.msk [vmem:[#allocation2 + $0x2e0] sm:$0xff] %vm69_vm0, %v13620_v0  ;;  %163 = vst.msk [vmem:[#allocation2 + $0x2e8] sm:$0xff] %vm69_vm0, %v13620_v0 }
  0x67   :  { %164 = vst.msk [vmem:[#allocation2 + $0x2f0] sm:$0xff] %vm69_vm0, %v13620_v0  ;;  %165 = vst.msk [vmem:[#allocation2 + $0x2f8] sm:$0xff] %vm69_vm0, %v13620_v0 }
  0x68   :  { %166 = vst.msk [vmem:[#allocation2 + $0x300] sm:$0xff] %vm69_vm0, %v13620_v0  ;;  %167 = vst.msk [vmem:[#allocation2 + $0x308] sm:$0xff] %vm69_vm0, %v13620_v0 }
  0x69   :  { %168 = vst.msk [vmem:[#allocation2 + $0x310] sm:$0xff] %vm69_vm0, %v13620_v0  ;;  %169 = vst.msk [vmem:[#allocation2 + $0x318] sm:$0xff] %vm69_vm0, %v13620_v0 }
  0x6a   :  { %170 = vst.msk [vmem:[#allocation2 + $0x320] sm:$0xff] %vm69_vm0, %v13620_v0  ;;  %171 = vst.msk [vmem:[#allocation2 + $0x328] sm:$0xff] %vm69_vm0, %v13620_v0 }
  0x6b   :  { %172 = vst.msk [vmem:[#allocation2 + $0x330] sm:$0xff] %vm69_vm0, %v13620_v0  ;;  %173 = vst.msk [vmem:[#allocation2 + $0x338] sm:$0xff] %vm69_vm0, %v13620_v0 }
  0x6c   :  { %174 = vst.msk [vmem:[#allocation2 + $0x340] sm:$0xff] %vm69_vm0, %v13620_v0  ;;  %175 = vst.msk [vmem:[#allocation2 + $0x348] sm:$0xff] %vm69_vm0, %v13620_v0 }
  0x6d   :  { %176 = vst.msk [vmem:[#allocation2 + $0x350] sm:$0xff] %vm69_vm0, %v13620_v0  ;;  %177 = vst.msk [vmem:[#allocation2 + $0x358] sm:$0xff] %vm69_vm0, %v13620_v0 }
  0x6e   :  { %211 = vst.msk [vmem:[#allocation2 + $0x19] sm:$0xff] %vm69_vm0, %v178_v3  ;;  %212 = vst.msk [vmem:[#allocation2 + $0x21] sm:$0xff] %vm69_vm0, %v179_v4  ;;  %v194_v3 = vld [vmem:[#allocation4 + $0x80] sm:$0xff] }
  0x6f   :  { %2494 = vst.msk [vmem:[#allocation2 + $0x1c9] sm:$0xff] %vm69_vm0, %v2461_v6  ;;  %2495 = vst.msk [vmem:[#allocation2 + $0x1d1] sm:$0xff] %vm69_vm0, %v2462_v7  ;;  %v195_v6 = vld [vmem:[#allocation4 + $0x88] sm:$0xff]  ;;  %v2477_v7 = vld [vmem:[#allocation4 + $0x180] sm:$0xff] }
  0x70   :  { %213 = vst.msk [vmem:[#allocation2 + $0x31] sm:$0xff] %vm69_vm0, %v180_v9  ;;  %214 = vst.msk [vmem:[#allocation2 + $0x39] sm:$0xff] %vm69_vm0, %v181_v10 }
  0x71   :  { %2496 = vst.msk [vmem:[#allocation2 + $0x1e1] sm:$0xff] %vm69_vm0, %v2463_v11  ;;  %2497 = vst.msk [vmem:[#allocation2 + $0x1e9] sm:$0xff] %vm69_vm0, %v2464_v12  ;;  %v196_v11 = vld [vmem:[#allocation4 + $0x90] sm:$0xff]  ;;  %v197_v12 = vld [vmem:[#allocation4 + $0x98] sm:$0xff] }
  0x72   :  { %215 = vst.msk [vmem:[#allocation2 + $0x49] sm:$0xff] %vm69_vm0, %v182_v13  ;;  %216 = vst.msk [vmem:[#allocation2 + $0x51] sm:$0xff] %vm69_vm0, %v183_v14  ;;  %v2479_v13 = vld [vmem:[#allocation4 + $0x190] sm:$0xff]  ;;  %v2480_v14 = vld [vmem:[#allocation4 + $0x198] sm:$0xff] }
  0x73   :  { %2498 = vst.msk [vmem:[#allocation2 + $0x1f9] sm:$0xff] %vm69_vm0, %v2465_v15  ;;  %2499 = vst.msk [vmem:[#allocation2 + $0x201] sm:$0xff] %vm69_vm0, %v2466_v16  ;;  %v198_v15 = vld [vmem:[#allocation4 + $0xa0] sm:$0xff]  ;;  %v199_v16 = vld [vmem:[#allocation4 + $0xa8] sm:$0xff] }
  0x74   :  { %217 = vst.msk [vmem:[#allocation2 + $0x61] sm:$0xff] %vm69_vm0, %v184_v17  ;;  %218 = vst.msk [vmem:[#allocation2 + $0x69] sm:$0xff] %vm69_vm0, %v185_v18 }
  0x75   :  { %2500 = vst.msk [vmem:[#allocation2 + $0x211] sm:$0xff] %vm69_vm0, %v2467_v19  ;;  %v245_v23 = vld [vmem:[#allocation2 + $0x18] sm:$0xff]  ;;  %v246_v24 = vld [vmem:[#allocation2 + $0x20] sm:$0xff]  ;;  %2501 = vst.msk [vmem:[#allocation2 + $0x219] sm:$0xff] %vm69_vm0, %v2468_v20 }
  0x76   :  { %219 = vst.msk [vmem:[#allocation2 + $0x79] sm:$0xff] %vm69_vm0, %v186_v21  ;;  %220 = vst.msk [vmem:[#allocation2 + $0x81] sm:$0xff] %vm69_vm0, %v187_v22  ;;  %v13947_v26 = vpack.c.bf16 %v246_v24, %v245_v23  ;;  %v2529_v27 = vld [vmem:[#allocation2 + $0x1c8] sm:$0xff]  ;;  %v2530_v30 = vld [vmem:[#allocation2 + $0x1d0] sm:$0xff] }
  0x77   :  { %2502 = vst.msk [vmem:[#allocation2 + $0x229] sm:$0xff] %vm69_vm0, %v2469_v25  ;;  %2503 = vst.msk [vmem:[#allocation2 + $0x231] sm:$0xff] %vm69_vm0, %v2470_v28  ;;  %v13954_v33 = vpack.c.bf16 %v2530_v30, %v2529_v27  ;;  %v247_v34 = vld [vmem:[#allocation2 + $0x30] sm:$0xff]  ;;  %v248_v35 = vld [vmem:[#allocation2 + $0x38] sm:$0xff] }
  0x78   :  { %221 = vst.msk [vmem:[#allocation2 + $0x91] sm:$0xff] %vm69_vm0, %v188_v29  ;;  %11224 = vmatprep.mubr.msk.bf16.mxu0 %vm69_vm0, %v13947_v26  ;;  %222 = vst.msk [vmem:[#allocation2 + $0x99] sm:$0xff] %vm69_vm0, %v189_v31  ;;  %v13958_v37 = vpack.c.bf16 %v248_v35, %v247_v34  ;;  %v2531_v38 = vld [vmem:[#allocation2 + $0x1e0] sm:$0xff]  ;;  %v2532_v39 = vld [vmem:[#allocation2 + $0x1e8] sm:$0xff] }
  0x79   :  { %2504 = vst.msk [vmem:[#allocation2 + $0x241] sm:$0xff] %vm69_vm0, %v2471_v32  ;;  %v249_v40 = vld [vmem:[#allocation2 + $0x48] sm:$0xff]  ;;  %2505 = vst.msk [vmem:[#allocation2 + $0x249] sm:$0xff] %vm69_vm0, %v2472_v36  ;;  %11530 = vmatprep.mubr.msk.bf16.mxu1 %vm69_vm0, %v13954_v33  ;;  %v13963_v41 = vpack.c.bf16 %v2532_v39, %v2531_v38  ;;  %v250_v42 = vld [vmem:[#allocation2 + $0x50] sm:$0xff] }
  0x7a   :  { %v2533_v43 = vld [vmem:[#allocation2 + $0x1f8] sm:$0xff]  ;;  %v2534_v44 = vld [vmem:[#allocation2 + $0x200] sm:$0xff]  ;;  %11225 = vmatmul.mubr.msk.bf16.vlgmr.msra.gmra.mrb[0].mxu0 %vm69_vm0, %v13958_v37  ;;  %v13967_v45 = vpack.c.bf16 %v250_v42, %v249_v40  ;;  %223 = vst.msk [vmem:[#allocation2 + $0xa9] sm:$0xff] %vm69_vm0, %v190_v53  ;;  %224 = vst.msk [vmem:[#allocation2 + $0xb1] sm:$0xff] %vm69_vm0, %v191_v54 }
  0x7b   :  { %v13969_v46 = vpack.c.bf16 %v2534_v44, %v2533_v43  ;;  %v251_v47 = vld [vmem:[#allocation2 + $0x60] sm:$0xff]  ;;  %v252_v48 = vld [vmem:[#allocation2 + $0x68] sm:$0xff]  ;;  %11257 = vmatpush3.bf16.msra.mxu0 %v13925_v5  ;;  %11531 = vmatmul.mubr.msk.bf16.vlgmr.msra.gmra.mrb[0].mxu1 %vm69_vm0, %v13963_v41  ;;  %2506 = vst.msk [vmem:[#allocation2 + $0x259] sm:$0xff] %vm69_vm0, %v2473_v57  ;;  %2507 = vst.msk [vmem:[#allocation2 + $0x261] sm:$0xff] %vm69_vm0, %v2474_v59 }
  0x7c   :  { %v2535_v49 = vld [vmem:[#allocation2 + $0x210] sm:$0xff]  ;;  %v2536_v50 = vld [vmem:[#allocation2 + $0x218] sm:$0xff]  ;;  %11563 = vmatpush3.bf16.msra.mxu1 %v13930_v8  ;;  %11228 = vmatprep.mubr.msk.bf16.mxu0 %vm69_vm0, %v13967_v45  ;;  %v13981_v58 = vpack.c.bf16 %v252_v48, %v251_v47  ;;  %225 = vst.msk [vmem:[#allocation2 + $0xc1] sm:$0xff] %vm69_vm0, %v192_v62  ;;  %226 = vst.msk [vmem:[#allocation2 + $0xc9] sm:$0xff] %vm69_vm0, %v193_v63 }
  0x7d   :  { %v253_v51 = vld [vmem:[#allocation2 + $0x78] sm:$0xff]  ;;  %v254_v52 = vld [vmem:[#allocation2 + $0x80] sm:$0xff]  ;;  %11534 = vmatprep.mubr.msk.bf16.mxu1 %vm69_vm0, %v13969_v46  ;;  %v13984_v60 = vpack.c.bf16 %v2536_v50, %v2535_v49  ;;  %2508 = vst.msk [vmem:[#allocation2 + $0x271] sm:$0xff] %vm69_vm0, %v2475_v1  ;;  %2509 = vst.msk [vmem:[#allocation2 + $0x279] sm:$0xff] %vm69_vm0, %v2476_v2 }
  0x7e   :  { %v2537_v55 = vld [vmem:[#allocation2 + $0x228] sm:$0xff]  ;;  %v2538_v56 = vld [vmem:[#allocation2 + $0x230] sm:$0xff]  ;;  %v13986_v61 = vpack.c.bf16 %v254_v52, %v253_v51  ;;  %227 = vst.msk [vmem:[#allocation2 + $0xd9] sm:$0xff] %vm69_vm0, %v194_v3  ;;  %228 = vst.msk [vmem:[#allocation2 + $0xe1] sm:$0xff] %vm69_vm0, %v195_v6 }
  0x7f   :  { %v13989_v0 = vpack.c.bf16 %v2538_v56, %v2537_v55  ;;  %v255_v4 = vld [vmem:[#allocation2 + $0x90] sm:$0xff]  ;;  %v256_v5 = vld [vmem:[#allocation2 + $0x98] sm:$0xff]  ;;  %v2478_v8 = vld [vmem:[#allocation4 + $0x188] sm:$0xff]  ;;  %2510 = vst.msk [vmem:[#allocation2 + $0x289] sm:$0xff] %vm69_vm0, %v2477_v7 }
  0x80   :  { %v2539_v9 = vld [vmem:[#allocation2 + $0x240] sm:$0xff]  ;;  %v2540_v10 = vld [vmem:[#allocation2 + $0x248] sm:$0xff]  ;;  %2511 = vst.msk [vmem:[#allocation2 + $0x291] sm:$0xff] %vm69_vm0, %v2478_v8  ;;  %229 = vst.msk [vmem:[#allocation2 + $0xf1] sm:$0xff] %vm69_vm0, %v196_v11  ;;  %v14014_v23 = vpack.c.bf16 %v256_v5, %v255_v4 }
  0x81   :  { %230 = vst.msk [vmem:[#allocation2 + $0xf9] sm:$0xff] %vm69_vm0, %v197_v12  ;;  %2512 = vst.msk [vmem:[#allocation2 + $0x2a1] sm:$0xff] %vm69_vm0, %v2479_v13  ;;  %v257_v17 = vld [vmem:[#allocation2 + $0xa8] sm:$0xff]  ;;  %v258_v18 = vld [vmem:[#allocation2 + $0xb0] sm:$0xff]  ;;  %v14018_v28 = vpack.c.bf16 %v2540_v10, %v2539_v9 }
  0x82   :  { %11229 = vmatmul.mubr.msk.bf16.gmra.mrb[4].mxu0 %vm69_vm0, %v13981_v58  ;;  %2513 = vst.msk [vmem:[#allocation2 + $0x2a9] sm:$0xff] %vm69_vm0, %v2480_v14  ;;  %231 = vst.msk [vmem:[#allocation2 + $0x109] sm:$0xff] %vm69_vm0, %v198_v15  ;;  %v2481_v19 = vld [vmem:[#allocation4 + $0x1a0] sm:$0xff]  ;;  %v2541_v20 = vld [vmem:[#allocation2 + $0x258] sm:$0xff]  ;;  %v14020_v29 = vpack.c.bf16 %v258_v18, %v257_v17 }
  0x83   :  { %11535 = vmatmul.mubr.msk.bf16.gmra.mrb[4].mxu1 %vm69_vm0, %v13984_v60  ;;  %11232 = vmatprep.mubr.msk.bf16.mxu0 %vm69_vm0, %v13986_v61  ;;  %232 = vst.msk [vmem:[#allocation2 + $0x111] sm:$0xff] %vm69_vm0, %v199_v16  ;;  %v2482_v21 = vld [vmem:[#allocation4 + $0x1a8] sm:$0xff]  ;;  %2514 = vst.msk [vmem:[#allocation2 + $0x2b9] sm:$0xff] %vm69_vm0, %v2481_v19  ;;  %v200_v22 = vld [vmem:[#allocation4 + $0xb0] sm:$0xff] }
  0x84   :  { %11538 = vmatprep.mubr.msk.bf16.mxu1 %vm69_vm0, %v13989_v0  ;;  %v2542_v24 = vld [vmem:[#allocation2 + $0x260] sm:$0xff]  ;;  %2515 = vst.msk [vmem:[#allocation2 + $0x2c1] sm:$0xff] %vm69_vm0, %v2482_v21  ;;  %v201_v25 = vld [vmem:[#allocation4 + $0xb8] sm:$0xff]  ;;  %233 = vst.msk [vmem:[#allocation2 + $0x121] sm:$0xff] %vm69_vm0, %v200_v22 }
  0x85   :  { %v2483_v27 = vld [vmem:[#allocation4 + $0x1b0] sm:$0xff]  ;;  %234 = vst.msk [vmem:[#allocation2 + $0x129] sm:$0xff] %vm69_vm0, %v201_v25  ;;  %v2484_v30 = vld [vmem:[#allocation4 + $0x1b8] sm:$0xff]  ;;  %v14024_v31 = vpack.c.bf16 %v2542_v24, %v2541_v20  ;;  %v259_v32 = vld [vmem:[#allocation2 + $0xc0] sm:$0xff] }
  0x86   :  { %2516 = vst.msk [vmem:[#allocation2 + $0x2d1] sm:$0xff] %vm69_vm0, %v2483_v27  ;;  %2517 = vst.msk [vmem:[#allocation2 + $0x2d9] sm:$0xff] %vm69_vm0, %v2484_v30  ;;  %v260_v34 = vld [vmem:[#allocation2 + $0xc8] sm:$0xff]  ;;  %v2543_v35 = vld [vmem:[#allocation2 + $0x270] sm:$0xff] }
  0x87   :  { %v2544_v36 = vld [vmem:[#allocation2 + $0x278] sm:$0xff]  ;;  %v262_v39 = vld [vmem:[#allocation2 + $0xe0] sm:$0xff]  ;;  %v203_v42 = vld [vmem:[#allocation4 + $0xc8] sm:$0xff]  ;;  %v14037_v48 = vpack.c.bf16 %v260_v34, %v259_v32 }
  0x88   :  { %v261_v38 = vld [vmem:[#allocation2 + $0xd8] sm:$0xff]  ;;  %v202_v40 = vld [vmem:[#allocation4 + $0xc0] sm:$0xff]  ;;  %v2545_v43 = vld [vmem:[#allocation2 + $0x288] sm:$0xff]  ;;  %236 = vst.msk [vmem:[#allocation2 + $0x141] sm:$0xff] %vm69_vm0, %v203_v42  ;;  %v14040_v50 = vpack.c.bf16 %v2544_v36, %v2543_v35 }
  0x89   :  { %v2546_v44 = vld [vmem:[#allocation2 + $0x290] sm:$0xff]  ;;  %235 = vst.msk [vmem:[#allocation2 + $0x139] sm:$0xff] %vm69_vm0, %v202_v40  ;;  %v2485_v47 = vld [vmem:[#allocation4 + $0x1c0] sm:$0xff]  ;;  %v2486_v49 = vld [vmem:[#allocation4 + $0x1c8] sm:$0xff]  ;;  %v14042_v51 = vpack.c.bf16 %v262_v39, %v261_v38 }
  0x8a   :  { %11233 = vmatmul.mubr.msk.bf16.gmra.mrb[8].mxu0 %vm69_vm0, %v14014_v23  ;;  %2518 = vst.msk [vmem:[#allocation2 + $0x2e9] sm:$0xff] %vm69_vm0, %v2485_v47  ;;  %2519 = vst.msk [vmem:[#allocation2 + $0x2f1] sm:$0xff] %vm69_vm0, %v2486_v49  ;;  %v204_v52 = vld [vmem:[#allocation4 + $0xd0] sm:$0xff]  ;;  %v205_v53 = vld [vmem:[#allocation4 + $0xd8] sm:$0xff]  ;;  %v14045_v54 = vpack.c.bf16 %v2546_v44, %v2545_v43 }
  0x8b   :  { %11539 = vmatmul.mubr.msk.bf16.gmra.mrb[8].mxu1 %vm69_vm0, %v14018_v28  ;;  %11236 = vmatprep.mubr.msk.bf16.mxu0 %vm69_vm0, %v14020_v29  ;;  %237 = vst.msk [vmem:[#allocation2 + $0x151] sm:$0xff] %vm69_vm0, %v204_v52  ;;  %238 = vst.msk [vmem:[#allocation2 + $0x159] sm:$0xff] %vm69_vm0, %v205_v53  ;;  %v2487_v55 = vld [vmem:[#allocation4 + $0x1d0] sm:$0xff]  ;;  %v2488_v56 = vld [vmem:[#allocation4 + $0x1d8] sm:$0xff] }
  0x8c   :  { %11542 = vmatprep.mubr.msk.bf16.mxu1 %vm69_vm0, %v14024_v31  ;;  %v206_v57 = vld [vmem:[#allocation4 + $0xe0] sm:$0xff]  ;;  %v263_v59 = vld [vmem:[#allocation2 + $0xf0] sm:$0xff]  ;;  %v264_v62 = vld [vmem:[#allocation2 + $0xf8] sm:$0xff]  ;;  %2520 = vst.msk [vmem:[#allocation2 + $0x301] sm:$0xff] %vm69_vm0, %v2487_v55 }
  0x8d   :  { %2521 = vst.msk [vmem:[#allocation2 + $0x309] sm:$0xff] %vm69_vm0, %v2488_v56  ;;  %v207_v63 = vld [vmem:[#allocation4 + $0xe8] sm:$0xff]  ;;  %239 = vst.msk [vmem:[#allocation2 + $0x169] sm:$0xff] %vm69_vm0, %v206_v57  ;;  %v2489_v1 = vld [vmem:[#allocation4 + $0x1e0] sm:$0xff]  ;;  %v14067_v14 = vpack.c.bf16 %v264_v62, %v263_v59 }
  0x8e   :  { %v2490_v2 = vld [vmem:[#allocation4 + $0x1e8] sm:$0xff]  ;;  %v2547_v3 = vld [vmem:[#allocation2 + $0x2a0] sm:$0xff]  ;;  %240 = vst.msk [vmem:[#allocation2 + $0x171] sm:$0xff] %vm69_vm0, %v207_v63  ;;  %2522 = vst.msk [vmem:[#allocation2 + $0x319] sm:$0xff] %vm69_vm0, %v2489_v1 }
  0x8f   :  { %2523 = vst.msk [vmem:[#allocation2 + $0x321] sm:$0xff] %vm69_vm0, %v2490_v2  ;;  %v208_v4 = vld [vmem:[#allocation4 + $0xf0] sm:$0xff]  ;;  %v209_v5 = vld [vmem:[#allocation4 + $0xf8] sm:$0xff]  ;;  %v2548_v7 = vld [vmem:[#allocation2 + $0x2a8] sm:$0xff] }
  0x90   :  { %v2491_v6 = vld [vmem:[#allocation4 + $0x1f0] sm:$0xff]  ;;  %v265_v8 = vld [vmem:[#allocation2 + $0x108] sm:$0xff]  ;;  %241 = vst.msk [vmem:[#allocation2 + $0x181] sm:$0xff] %vm69_vm0, %v208_v4  ;;  %242 = vst.msk [vmem:[#allocation2 + $0x189] sm:$0xff] %vm69_vm0, %v209_v5  ;;  %v14069_v15 = vpack.c.bf16 %v2548_v7, %v2547_v3 }
  0x91   :  { %v2492_v9 = vld [vmem:[#allocation4 + $0x1f8] sm:$0xff]  ;;  %2524 = vst.msk [vmem:[#allocation2 + $0x331] sm:$0xff] %vm69_vm0, %v2491_v6  ;;  %v266_v10 = vld [vmem:[#allocation2 + $0x110] sm:$0xff]  ;;  %v2550_v12 = vld [vmem:[#allocation2 + $0x2c0] sm:$0xff] }
  0x92   :  { %11237 = vmatmul.mubr.msk.bf16.gmra.mrb[12].mxu0 %vm69_vm0, %v14037_v48  ;;  %v2549_v11 = vld [vmem:[#allocation2 + $0x2b8] sm:$0xff]  ;;  %2525 = vst.msk [vmem:[#allocation2 + $0x339] sm:$0xff] %vm69_vm0, %v2492_v9  ;;  %v13483_v13 = vld [vmem:[#allocation7 + $0x30] sm:$0xff]   ;;  %v14071_v16 = vpack.c.bf16 %v266_v10, %v265_v8  ;;  %v267_v18 = vld [vmem:[#allocation2 + $0x120] sm:$0xff] }
  0x93   :  { %11543 = vmatmul.mubr.msk.bf16.gmra.mrb[12].mxu1 %vm69_vm0, %v14040_v50  ;;  %11240 = vmatprep.mubr.msk.bf16.mxu0 %vm69_vm0, %v14042_v51  ;;  %v14073_v17 = vpack.c.bf16 %v2550_v12, %v2549_v11  ;;  %v268_v19 = vld [vmem:[#allocation2 + $0x128] sm:$0xff]  ;;  %v2551_v20 = vld [vmem:[#allocation2 + $0x2d0] sm:$0xff]  ;;  %v2552_v21 = vld [vmem:[#allocation2 + $0x2d8] sm:$0xff] }
  0x94   :  { %11546 = vmatprep.mubr.msk.bf16.mxu1 %vm69_vm0, %v14045_v54  ;;  %11290 = vmatprep.subr.bf16.mxu0 %v13483_v13  ;;  %v269_v22 = vld [vmem:[#allocation2 + $0x138] sm:$0xff]  ;;  %v270_v24 = vld [vmem:[#allocation2 + $0x140] sm:$0xff]  ;;  %v13484_v25 = vld [vmem:[#allocation7 + $0x30] sm:$0xff]   ;;  %v14083_v32 = vpack.c.bf16 %v268_v19, %v267_v18  ;;  %v14085_v34 = vpack.c.bf16 %v2552_v21, %v2551_v20 }
  0x95   :  { %v2553_v27 = vld [vmem:[#allocation2 + $0x2e8] sm:$0xff]  ;;  %v2554_v30 = vld [vmem:[#allocation2 + $0x2f0] sm:$0xff]  ;;  %11596 = vmatprep.subr.bf16.mxu1 %v13484_v25  ;;  %v14087_v35 = vpack.c.bf16 %v270_v24, %v269_v22  ;;  %v272_v39 = vld [vmem:[#allocation2 + $0x158] sm:$0xff] }
  0x96   :  { %v14089_v36 = vpack.c.bf16 %v2554_v30, %v2553_v27  ;;  %v271_v38 = vld [vmem:[#allocation2 + $0x150] sm:$0xff]  ;;  %v2555_v40 = vld [vmem:[#allocation2 + $0x300] sm:$0xff]  ;;  %v2556_v42 = vld [vmem:[#allocation2 + $0x308] sm:$0xff] }
  0x97   :  { %v273_v43 = vld [vmem:[#allocation2 + $0x168] sm:$0xff]  ;;  %v274_v44 = vld [vmem:[#allocation2 + $0x170] sm:$0xff]  ;;  %v2557_v47 = vld [vmem:[#allocation2 + $0x318] sm:$0xff]  ;;  %v14099_v52 = vpack.c.bf16 %v272_v39, %v271_v38  ;;  %v14101_v53 = vpack.c.bf16 %v2556_v42, %v2555_v40 }
  0x98   :  { %v2558_v49 = vld [vmem:[#allocation2 + $0x320] sm:$0xff]  ;;  %v14103_v55 = vpack.c.bf16 %v274_v44, %v273_v43  ;;  %v276_v59 = vld [vmem:[#allocation2 + $0x188] sm:$0xff]  ;;  %v2527_v1 = vld [vmem:[#allocation2 + $0x1b0] sm:$0xff] }
  0x99   :  { %v14105_v56 = vpack.c.bf16 %v2558_v49, %v2557_v47  ;;  %v275_v57 = vld [vmem:[#allocation2 + $0x180] sm:$0xff]  ;;  %v244_v63 = vld [vmem:[#allocation2 + $0x8] sm:$0xff]  ;;  %v2528_v2 = vld [vmem:[#allocation2 + $0x1b8] sm:$0xff] }
  0x9a   :  { %11241 = vmatmul.mubr.msk.bf16.gmra.mrb[16].mxu0 %vm69_vm0, %v14067_v14  ;;  %v243_v62 = vld [vmem:[#allocation2] sm:$0xff]  ;;  %v2559_v3 = vld [vmem:[#allocation2 + $0x330] sm:$0xff]  ;;  %v2560_v4 = vld [vmem:[#allocation2 + $0x338] sm:$0xff]  ;;  %v14115_v5 = vpack.c.bf16 %v276_v59, %v275_v57  ;;  %v2563_v8 = vpack.c.bf16 %v2528_v2, %v2527_v1 }
  0x9b   :  { %11547 = vmatmul.mubr.msk.bf16.gmra.mrb[16].mxu1 %vm69_vm0, %v14069_v15  ;;  %11244 = vmatprep.mubr.msk.bf16.mxu0 %vm69_vm0, %v14071_v16  ;;  %v14117_v6 = vpack.c.bf16 %v2560_v4, %v2559_v3  ;;  %v279_v7 = vpack.c.bf16 %v244_v63, %v243_v62  ;;  %v13485_v9 = vld [vmem:[#allocation7 + $0x8] sm:$0xff]   ;;  %v896_v11 = vld [vmem:[#allocation2 + $0x31] sm:$0xff]  ;;  %v897_v12 = vld [vmem:[#allocation2 + $0x39] sm:$0xff] }
  0x9c   :  { %11550 = vmatprep.mubr.msk.bf16.mxu1 %vm69_vm0, %v14073_v17  ;;  %v13486_v10 = vld [vmem:[#allocation7 + $0x8] sm:$0xff]   ;;  %v14263_v19 = vld [vmem:[#allocation7 + $0x38] sm:$0xff]  }
  0x9d   :  { %v14267_v20 = vld [vmem:[#allocation7 + $0x38] sm:$0xff]   ;;  %v898_v21 = vld [vmem:[#allocation2 + $0x49] sm:$0xff]  ;;  %v900_v27 = vld [vmem:[#allocation2 + $0x61] sm:$0xff] }
  0x9e   :  { %v899_v22 = vld [vmem:[#allocation2 + $0x51] sm:$0xff]  ;;  %v3180_v24 = vld [vmem:[#allocation2 + $0x1f9] sm:$0xff]  ;;  %v901_v30 = vld [vmem:[#allocation2 + $0x69] sm:$0xff] }
  0x9f   :  { %v14283_v38 = vpack.c.bf16 %v901_v30, %v900_v27  ;;  %v902_v40 = vld [vmem:[#allocation2 + $0x79] sm:$0xff]  ;;  %v903_v42 = vld [vmem:[#allocation2 + $0x81] sm:$0xff]  ;;  %v3184_v43 = vld [vmem:[#allocation2 + $0x229] sm:$0xff] }
  0xa0   :  { %v3185_v44 = vld [vmem:[#allocation2 + $0x231] sm:$0xff]  ;;  %v905_v49 = vld [vmem:[#allocation2 + $0x99] sm:$0xff]  ;;  %v906_v62 = vld [vmem:[#allocation2 + $0xa9] sm:$0xff] }
  0xa1   :  { %v904_v47 = vld [vmem:[#allocation2 + $0x91] sm:$0xff]  ;;  %v3188_v1 = vld [vmem:[#allocation2 + $0x259] sm:$0xff]  ;;  %v3189_v2 = vld [vmem:[#allocation2 + $0x261] sm:$0xff] }
  0xa2   :  { %11245 = vmatmul.mubr.msk.bf16.gmra.mrb[20].mxu0 %vm69_vm0, %v14083_v32  ;;  %v14299_v57 = vpack.c.bf16 %v905_v49, %v904_v47  ;;  %v907_v63 = vld [vmem:[#allocation2 + $0xb1] sm:$0xff]  ;;  %v908_v3 = vld [vmem:[#allocation2 + $0xc1] sm:$0xff]  ;;  %v909_v4 = vld [vmem:[#allocation2 + $0xc9] sm:$0xff] }
  0xa3   :  { %11551 = vmatmul.mubr.msk.bf16.gmra.mrb[20].mxu1 %vm69_vm0, %v14085_v34  ;;  %11248 = vmatprep.mubr.msk.bf16.mxu0 %vm69_vm0, %v14087_v35  ;;  %v3200_v27 = vld [vmem:[#allocation2 + $0x2e9] sm:$0xff]  ;;  %v3201_v30 = vld [vmem:[#allocation2 + $0x2f1] sm:$0xff] }
  0xa4   :  { %11554 = vmatprep.mubr.msk.bf16.mxu1 %vm69_vm0, %v14089_v36 }
  0xaa   :  { %11249 = vmatmul.mubr.msk.bf16.gmra.mrb[24].mxu0 %vm69_vm0, %v14099_v52 }
  0xab   :  { %11555 = vmatmul.mubr.msk.bf16.gmra.mrb[24].mxu1 %vm69_vm0, %v14101_v53  ;;  %11252 = vmatprep.mubr.msk.bf16.mxu0 %vm69_vm0, %v14103_v55 }
  0xac   :  { %11558 = vmatprep.mubr.msk.bf16.mxu1 %vm69_vm0, %v14105_v56 }
  0xb2   :  { %11253 = vmatmul.mubr.msk.bf16.gmra.mrb[28].mxu0 %vm69_vm0, %v14115_v5 }
  0xb3   :  { %11559 = vmatmul.mubr.msk.bf16.gmra.mrb[28].mxu1 %vm69_vm0, %v14117_v6  ;;  %11258 = vmatprep.mubr.msk.bf16.mxu0 %vm69_vm0, %v279_v7  ;;  %v14311_v7 = vpack.c.bf16 %v907_v63, %v906_v62  ;;  %v3204_v62 = vld [vmem:[#allocation2 + $0x319] sm:$0xff]  ;;  %v3205_v63 = vld [vmem:[#allocation2 + $0x321] sm:$0xff] }
  0xb4   :  { %11564 = vmatprep.mubr.msk.bf16.mxu1 %vm69_vm0, %v2563_v8  ;;  %v14313_v8 = vpack.c.bf16 %v3189_v2, %v3188_v1  ;;  %v14377_v2 = vpack.c.bf16 %v3205_v63, %v3204_v62  ;;  %v1620_v62 = vld [vmem:[#allocation2 + $0xaa] sm:$0xff]  ;;  %v1621_v63 = vld [vmem:[#allocation2 + $0xb2] sm:$0xff] }
  0xba   :  { %11259 = vmatmul.mubr.msk.bf16.vlgmr.msra.gmra.mrb[0].mxu0 %vm69_vm0, %v13947_v26  ;;  %v14189_v26 = vld [vmem:[#allocation7 + $0x20] sm:$0xff]  }
  0xbb   :  { %11291 = vmatpush3.bf16.msra.mxu0 %v13483_v13  ;;  %11565 = vmatmul.mubr.msk.bf16.vlgmr.msra.gmra.mrb[0].mxu1 %vm69_vm0, %v13954_v33  ;;  %v14193_v33 = vld [vmem:[#allocation7 + $0x20] sm:$0xff]  }
  0xbc   :  { %11597 = vmatpush3.bf16.msra.mxu1 %v13484_v25  ;;  %11262 = vmatprep.mubr.msk.bf16.mxu0 %vm69_vm0, %v13958_v37  ;;  %v3181_v25 = vld [vmem:[#allocation2 + $0x201] sm:$0xff] }
  0xbd   :  { %11568 = vmatprep.mubr.msk.bf16.mxu1 %vm69_vm0, %v13963_v41  ;;  %11324 = vmatprep.subr.bf16.mxu0 %v13485_v9 }
  0xbe   :  { %11630 = vmatprep.subr.bf16.mxu1 %v13486_v10 }
  0xc2   :  { %11263 = vmatmul.mubr.msk.bf16.gmra.mrb[4].mxu0 %vm69_vm0, %v13967_v45 }
  0xc3   :  { %11569 = vmatmul.mubr.msk.bf16.gmra.mrb[4].mxu1 %vm69_vm0, %v13969_v46  ;;  %11266 = vmatprep.mubr.msk.bf16.mxu0 %vm69_vm0, %v13981_v58 }
  0xc4   :  { %11572 = vmatprep.mubr.msk.bf16.mxu1 %vm69_vm0, %v13984_v60 }
  0xca   :  { %11267 = vmatmul.mubr.msk.bf16.gmra.mrb[8].mxu0 %vm69_vm0, %v13986_v61 }
  0xcb   :  { %11573 = vmatmul.mubr.msk.bf16.gmra.mrb[8].mxu1 %vm69_vm0, %v13989_v0  ;;  %11270 = vmatprep.mubr.msk.bf16.mxu0 %vm69_vm0, %v14014_v23 }
  0xcc   :  { %11576 = vmatprep.mubr.msk.bf16.mxu1 %vm69_vm0, %v14018_v28 }
  0xd2   :  { %11271 = vmatmul.mubr.msk.bf16.gmra.mrb[12].mxu0 %vm69_vm0, %v14020_v29 }
  0xd3   :  { %11577 = vmatmul.mubr.msk.bf16.gmra.mrb[12].mxu1 %vm69_vm0, %v14024_v31  ;;  %11274 = vmatprep.mubr.msk.bf16.mxu0 %vm69_vm0, %v14037_v48 }
  0xd4   :  { %11580 = vmatprep.mubr.msk.bf16.mxu1 %vm69_vm0, %v14040_v50 }
  0xda   :  { %11275 = vmatmul.mubr.msk.bf16.gmra.mrb[16].mxu0 %vm69_vm0, %v14042_v51 }
  0xdb   :  { %11581 = vmatmul.mubr.msk.bf16.gmra.mrb[16].mxu1 %vm69_vm0, %v14045_v54  ;;  %11278 = vmatprep.mubr.msk.bf16.mxu0 %vm69_vm0, %v14067_v14 }
  0xdc   :  { %11584 = vmatprep.mubr.msk.bf16.mxu1 %vm69_vm0, %v14069_v15 }
  0xe2   :  { %11279 = vmatmul.mubr.msk.bf16.gmra.mrb[20].mxu0 %vm69_vm0, %v14071_v16 }
  0xe3   :  { %11585 = vmatmul.mubr.msk.bf16.gmra.mrb[20].mxu1 %vm69_vm0, %v14073_v17  ;;  %11282 = vmatprep.mubr.msk.bf16.mxu0 %vm69_vm0, %v14083_v32 }
  0xe4   :  { %11588 = vmatprep.mubr.msk.bf16.mxu1 %vm69_vm0, %v14085_v34 }
  0xea   :  { %11283 = vmatmul.mubr.msk.bf16.gmra.mrb[24].mxu0 %vm69_vm0, %v14087_v35 }
  0xeb   :  { %11589 = vmatmul.mubr.msk.bf16.gmra.mrb[24].mxu1 %vm69_vm0, %v14089_v36  ;;  %11286 = vmatprep.mubr.msk.bf16.mxu0 %vm69_vm0, %v14099_v52 }
  0xec   :  { %11592 = vmatprep.mubr.msk.bf16.mxu1 %vm69_vm0, %v14101_v53 }
  0xf2   :  { %11287 = vmatmul.mubr.msk.bf16.gmra.mrb[28].mxu0 %vm69_vm0, %v14103_v55 }
  0xf3   :  { %11593 = vmatmul.mubr.msk.bf16.gmra.mrb[28].mxu1 %vm69_vm0, %v14105_v56  ;;  %11292 = vmatprep.mubr.msk.bf16.mxu0 %vm69_vm0, %v13958_v37  ;;  %v277_v37 = vld [vmem:[#allocation2 + $0x198] sm:$0xff] }
  0xf4   :  { %11598 = vmatprep.mubr.msk.bf16.mxu1 %vm69_vm0, %v13963_v41  ;;  %v278_v41 = vld [vmem:[#allocation2 + $0x1a0] sm:$0xff] }
  0xfa   :  { %11293 = vmatmul.mubr.msk.bf16.vlgmr.msra.gmra.mrb[0].mxu0 %vm69_vm0, %v13967_v45  ;;  %v2561_v45 = vld [vmem:[#allocation2 + $0x348] sm:$0xff] }
  0xfb   :  { %11325 = vmatpush3.bf16.msra.mxu0 %v13485_v9  ;;  %11599 = vmatmul.mubr.msk.bf16.vlgmr.msra.gmra.mrb[0].mxu1 %vm69_vm0, %v13969_v46  ;;  %v2562_v46 = vld [vmem:[#allocation2 + $0x350] sm:$0xff]  ;;  %v14315_v9 = vpack.c.bf16 %v909_v4, %v908_v3 }
  0xfc   :  { %11631 = vmatpush3.bf16.msra.mxu1 %v13486_v10  ;;  %11296 = vmatprep.mubr.msk.bf16.mxu0 %vm69_vm0, %v13981_v58  ;;  %v892_v58 = vld [vmem:[#allocation2 + $0x1] sm:$0xff]  ;;  %v13491_v3 = vld [vmem:[#allocation7 + $0x10] sm:$0xff]  }
  0xfd   :  { %11602 = vmatprep.mubr.msk.bf16.mxu1 %vm69_vm0, %v13984_v60  ;;  %11358 = vmatprep.subr.bf16.mxu0 %v14189_v26  ;;  %v893_v60 = vld [vmem:[#allocation2 + $0x9] sm:$0xff] }
  0xfe   :  { %11664 = vmatprep.subr.bf16.mxu1 %v14193_v33  ;;  %v13492_v4 = vld [vmem:[#allocation7 + $0x10] sm:$0xff]  }
 0x102   :  { %11297 = vmatmul.mubr.msk.bf16.gmra.mrb[4].mxu0 %vm69_vm0, %v13986_v61  ;;  %v3174_v61 = vld [vmem:[#allocation2 + $0x1b1] sm:$0xff] }
 0x103   :  { %11603 = vmatmul.mubr.msk.bf16.gmra.mrb[4].mxu1 %vm69_vm0, %v13989_v0  ;;  %11300 = vmatprep.mubr.msk.bf16.mxu0 %vm69_vm0, %v14014_v23  ;;  %v3175_v0 = vld [vmem:[#allocation2 + $0x1b9] sm:$0xff]  ;;  %v686_v23 = vpack.c.bf16 %v278_v41, %v277_v37  ;;  %v3192_v37 = vld [vmem:[#allocation2 + $0x289] sm:$0xff]  ;;  %v3193_v41 = vld [vmem:[#allocation2 + $0x291] sm:$0xff] }
 0x104   :  { %11606 = vmatprep.mubr.msk.bf16.mxu1 %vm69_vm0, %v14018_v28  ;;  %v2969_v28 = vpack.c.bf16 %v2562_v46, %v2561_v45  ;;  %v912_v45 = vld [vmem:[#allocation2 + $0xf1] sm:$0xff]  ;;  %v913_v46 = vld [vmem:[#allocation2 + $0xf9] sm:$0xff] }
 0x10a   :  { %11301 = vmatmul.mubr.msk.bf16.gmra.mrb[8].mxu0 %vm69_vm0, %v14020_v29  ;;  %v928_v29 = vpack.c.bf16 %v893_v60, %v892_v58  ;;  %v3194_v58 = vld [vmem:[#allocation2 + $0x2a1] sm:$0xff]  ;;  %v3195_v60 = vld [vmem:[#allocation2 + $0x2a9] sm:$0xff] }
 0x10b   :  { %11607 = vmatmul.mubr.msk.bf16.gmra.mrb[8].mxu1 %vm69_vm0, %v14024_v31  ;;  %11304 = vmatprep.mubr.msk.bf16.mxu0 %vm69_vm0, %v14037_v48  ;;  %v3210_v31 = vpack.c.bf16 %v3175_v0, %v3174_v61  ;;  %v894_v48 = vld [vmem:[#allocation2 + $0x19] sm:$0xff]  ;;  %v14329_v0 = vpack.c.bf16 %v3193_v41, %v3192_v37  ;;  %v3887_v37 = vld [vmem:[#allocation2 + $0x1ca] sm:$0xff] }
 0x10c   :  { %11610 = vmatprep.mubr.msk.bf16.mxu1 %vm69_vm0, %v14040_v50  ;;  %v895_v50 = vld [vmem:[#allocation2 + $0x21] sm:$0xff]  ;;  %v3888_v41 = vld [vmem:[#allocation2 + $0x1d2] sm:$0xff] }
 0x10d   :  { %v14255_v13 = vpack.c.bf16 %v895_v50, %v894_v48  ;;  %v3196_v48 = vld [vmem:[#allocation2 + $0x2b9] sm:$0xff]  ;;  %v3197_v50 = vld [vmem:[#allocation2 + $0x2c1] sm:$0xff] }
 0x112   :  { %11305 = vmatmul.mubr.msk.bf16.gmra.mrb[12].mxu0 %vm69_vm0, %v14042_v51  ;;  %v3176_v51 = vld [vmem:[#allocation2 + $0x1c9] sm:$0xff] }
 0x113   :  { %11611 = vmatmul.mubr.msk.bf16.gmra.mrb[12].mxu1 %vm69_vm0, %v14045_v54  ;;  %11308 = vmatprep.mubr.msk.bf16.mxu0 %vm69_vm0, %v14067_v14  ;;  %v3177_v54 = vld [vmem:[#allocation2 + $0x1d1] sm:$0xff]  ;;  %v3178_v14 = vld [vmem:[#allocation2 + $0x1e1] sm:$0xff] }
 0x114   :  { %11614 = vmatprep.mubr.msk.bf16.mxu1 %vm69_vm0, %v14069_v15  ;;  %v3179_v15 = vld [vmem:[#allocation2 + $0x1e9] sm:$0xff] }
 0x115   :  { %v14261_v18 = vpack.c.bf16 %v3179_v15, %v3178_v14  ;;  %v14345_v15 = vpack.c.bf16 %v3197_v50, %v3196_v48  ;;  %v1612_v48 = vld [vmem:[#allocation2 + $0x4a] sm:$0xff]  ;;  %v1613_v50 = vld [vmem:[#allocation2 + $0x52] sm:$0xff] }
 0x11a   :  { %11309 = vmatmul.mubr.msk.bf16.gmra.mrb[16].mxu0 %vm69_vm0, %v14071_v16  ;;  %v14257_v16 = vpack.c.bf16 %v3177_v54, %v3176_v51  ;;  %v916_v51 = vld [vmem:[#allocation2 + $0x121] sm:$0xff]  ;;  %v917_v54 = vld [vmem:[#allocation2 + $0x129] sm:$0xff] }
 0x11b   :  { %11615 = vmatmul.mubr.msk.bf16.gmra.mrb[16].mxu1 %vm69_vm0, %v14073_v17  ;;  %11312 = vmatprep.mubr.msk.bf16.mxu0 %vm69_vm0, %v14083_v32  ;;  %v14259_v17 = vpack.c.bf16 %v897_v12, %v896_v11  ;;  %v3182_v32 = vld [vmem:[#allocation2 + $0x211] sm:$0xff]  ;;  %v3199_v12 = vld [vmem:[#allocation2 + $0x2d9] sm:$0xff] }
 0x11c   :  { %11618 = vmatprep.mubr.msk.bf16.mxu1 %vm69_vm0, %v14085_v34  ;;  %v3183_v34 = vld [vmem:[#allocation2 + $0x219] sm:$0xff]  ;;  %v3198_v11 = vld [vmem:[#allocation2 + $0x2d1] sm:$0xff] }
 0x11d   :  { %v14285_v39 = vpack.c.bf16 %v3183_v34, %v3182_v32  ;;  %v920_v32 = vld [vmem:[#allocation2 + $0x151] sm:$0xff]  ;;  %v921_v34 = vld [vmem:[#allocation2 + $0x159] sm:$0xff] }
 0x11e   :  { %v14363_v47 = vpack.c.bf16 %v921_v34, %v920_v32  ;;  %v3895_v32 = vld [vmem:[#allocation2 + $0x22a] sm:$0xff]  ;;  %v3896_v34 = vld [vmem:[#allocation2 + $0x232] sm:$0xff] }
 0x122   :  { %11313 = vmatmul.mubr.msk.bf16.gmra.mrb[20].mxu0 %vm69_vm0, %v14087_v35  ;;  %v14278_v35 = vpack.c.bf16 %v899_v22, %v898_v21  ;;  %v14347_v21 = vpack.c.bf16 %v917_v54, %v916_v51  ;;  %v14349_v22 = vpack.c.bf16 %v3199_v12, %v3198_v11  ;;  %v3891_v51 = vld [vmem:[#allocation2 + $0x1fa] sm:$0xff]  ;;  %v3892_v54 = vld [vmem:[#allocation2 + $0x202] sm:$0xff]  ;;  %v1615_v12 = vld [vmem:[#allocation2 + $0x6a] sm:$0xff] }
 0x123   :  { %11619 = vmatmul.mubr.msk.bf16.gmra.mrb[20].mxu1 %vm69_vm0, %v14089_v36  ;;  %11316 = vmatprep.mubr.msk.bf16.mxu0 %vm69_vm0, %v14099_v52  ;;  %v14281_v36 = vpack.c.bf16 %v3181_v25, %v3180_v24  ;;  %v3186_v52 = vld [vmem:[#allocation2 + $0x241] sm:$0xff]  ;;  %v918_v24 = vld [vmem:[#allocation2 + $0x139] sm:$0xff] }
 0x124   :  { %11622 = vmatprep.mubr.msk.bf16.mxu1 %vm69_vm0, %v14101_v53  ;;  %v3187_v53 = vld [vmem:[#allocation2 + $0x249] sm:$0xff]  ;;  %v919_v25 = vld [vmem:[#allocation2 + $0x141] sm:$0xff] }
 0x125   :  { %v14301_v59 = vpack.c.bf16 %v3187_v53, %v3186_v52  ;;  %v922_v52 = vld [vmem:[#allocation2 + $0x169] sm:$0xff]  ;;  %v923_v53 = vld [vmem:[#allocation2 + $0x171] sm:$0xff] }
 0x126   :  { %v14375_v1 = vpack.c.bf16 %v923_v53, %v922_v52  ;;  %v1614_v11 = vld [vmem:[#allocation2 + $0x62] sm:$0xff] }
 0x12a   :  { %11317 = vmatmul.mubr.msk.bf16.gmra.mrb[24].mxu0 %vm69_vm0, %v14103_v55  ;;  %v14295_v55 = vpack.c.bf16 %v903_v42, %v902_v40  ;;  %v3202_v40 = vld [vmem:[#allocation2 + $0x301] sm:$0xff]  ;;  %v3203_v42 = vld [vmem:[#allocation2 + $0x309] sm:$0xff] }
 0x12b   :  { %11623 = vmatmul.mubr.msk.bf16.gmra.mrb[24].mxu1 %vm69_vm0, %v14105_v56  ;;  %11320 = vmatprep.mubr.msk.bf16.mxu0 %vm69_vm0, %v14115_v5  ;;  %v14297_v56 = vpack.c.bf16 %v3185_v44, %v3184_v43  ;;  %v3190_v5 = vld [vmem:[#allocation2 + $0x271] sm:$0xff]  ;;  %v14359_v43 = vpack.c.bf16 %v919_v25, %v918_v24  ;;  %v14361_v44 = vpack.c.bf16 %v3201_v30, %v3200_v27  ;;  %v1616_v27 = vld [vmem:[#allocation2 + $0x7a] sm:$0xff]  ;;  %v1617_v30 = vld [vmem:[#allocation2 + $0x82] sm:$0xff] }
 0x12c   :  { %11626 = vmatprep.mubr.msk.bf16.mxu1 %vm69_vm0, %v14117_v6  ;;  %v3191_v6 = vld [vmem:[#allocation2 + $0x279] sm:$0xff]  ;;  %v14365_v49 = vpack.c.bf16 %v3203_v42, %v3202_v40  ;;  %v14543_v24 = vpack.c.bf16 %v1615_v12, %v1614_v11  ;;  %v3911_v11 = vld [vmem:[#allocation2 + $0x2ea] sm:$0xff] }
 0x12d   :  { %v14317_v10 = vpack.c.bf16 %v3191_v6, %v3190_v5  ;;  %v1618_v40 = vld [vmem:[#allocation2 + $0x92] sm:$0xff]  ;;  %v1619_v42 = vld [vmem:[#allocation2 + $0x9a] sm:$0xff] }
 0x12e   :  { %v14559_v52 = vpack.c.bf16 %v1619_v42, %v1618_v40  ;;  %v3912_v12 = vld [vmem:[#allocation2 + $0x2f2] sm:$0xff] }
 0x132   :  { %11321 = vmatmul.mubr.msk.bf16.gmra.mrb[28].mxu0 %vm69_vm0, %v686_v23  ;;  %v14331_v23 = vpack.c.bf16 %v913_v46, %v912_v45  ;;  %v1610_v45 = vld [vmem:[#allocation2 + $0x32] sm:$0xff]  ;;  %v1611_v46 = vld [vmem:[#allocation2 + $0x3a] sm:$0xff] }
 0x133   :  { %11627 = vmatmul.mubr.msk.bf16.gmra.mrb[28].mxu1 %vm69_vm0, %v2969_v28  ;;  %11326 = vmatprep.mubr.msk.bf16.mxu0 %vm69_vm0, %v928_v29  ;;  %v14333_v28 = vpack.c.bf16 %v3195_v60, %v3194_v58  ;;  %v914_v29 = vld [vmem:[#allocation2 + $0x109] sm:$0xff] }
 0x134   :  { %11632 = vmatprep.mubr.msk.bf16.mxu1 %vm69_vm0, %v3210_v31  ;;  %v915_v31 = vld [vmem:[#allocation2 + $0x111] sm:$0xff]  ;;  %v3889_v60 = vld [vmem:[#allocation2 + $0x1e2] sm:$0xff] }
 0x135   :  { %v14343_v14 = vpack.c.bf16 %v915_v31, %v914_v29  ;;  %v14523_v29 = vld [vmem:[#allocation7 + $0x40] sm:$0xff]  }
 0x136   :  { %v14527_v31 = vld [vmem:[#allocation7 + $0x40] sm:$0xff]  }
 0x13a   :  { %11327 = vmatmul.mubr.msk.bf16.vlgmr.msra.gmra.mrb[0].mxu0 %vm69_vm0, %v14255_v13 }
 0x13b   :  { %11359 = vmatpush3.bf16.msra.mxu0 %v14189_v26  ;;  %11633 = vmatmul.mubr.msk.bf16.vlgmr.msra.gmra.mrb[0].mxu1 %vm69_vm0, %v14257_v16  ;;  %v910_v26 = vld [vmem:[#allocation2 + $0xd9] sm:$0xff] }
 0x13c   :  { %11665 = vmatpush3.bf16.msra.mxu1 %v14193_v33  ;;  %11330 = vmatprep.mubr.msk.bf16.mxu0 %vm69_vm0, %v14259_v17  ;;  %v911_v33 = vld [vmem:[#allocation2 + $0xe1] sm:$0xff] }
 0x13d   :  { %11636 = vmatprep.mubr.msk.bf16.mxu1 %vm69_vm0, %v14261_v18  ;;  %11392 = vmatprep.subr.bf16.mxu0 %v14263_v19  ;;  %v14327_v61 = vpack.c.bf16 %v911_v33, %v910_v26  ;;  %v14451_v26 = vld [vmem:[#allocation7 + $0x28] sm:$0xff]  }
 0x13e   :  { %11698 = vmatprep.subr.bf16.mxu1 %v14267_v20  ;;  %v14455_v33 = vld [vmem:[#allocation7 + $0x28] sm:$0xff]  }
 0x142   :  { %11331 = vmatmul.mubr.msk.bf16.gmra.mrb[4].mxu0 %vm69_vm0, %v14278_v35 }
 0x143   :  { %11637 = vmatmul.mubr.msk.bf16.gmra.mrb[4].mxu1 %vm69_vm0, %v14281_v36  ;;  %11334 = vmatprep.mubr.msk.bf16.mxu0 %vm69_vm0, %v14283_v38 }
 0x144   :  { %11640 = vmatprep.mubr.msk.bf16.mxu1 %vm69_vm0, %v14285_v39 }
 0x14a   :  { %11335 = vmatmul.mubr.msk.bf16.gmra.mrb[8].mxu0 %vm69_vm0, %v14295_v55 }
 0x14b   :  { %11641 = vmatmul.mubr.msk.bf16.gmra.mrb[8].mxu1 %vm69_vm0, %v14297_v56  ;;  %11338 = vmatprep.mubr.msk.bf16.mxu0 %vm69_vm0, %v14299_v57 }
 0x14c   :  { %11644 = vmatprep.mubr.msk.bf16.mxu1 %vm69_vm0, %v14301_v59 }
 0x152   :  { %11339 = vmatmul.mubr.msk.bf16.gmra.mrb[12].mxu0 %vm69_vm0, %v14311_v7 }
 0x153   :  { %11645 = vmatmul.mubr.msk.bf16.gmra.mrb[12].mxu1 %vm69_vm0, %v14313_v8  ;;  %11342 = vmatprep.mubr.msk.bf16.mxu0 %vm69_vm0, %v14315_v9 }
 0x154   :  { %11648 = vmatprep.mubr.msk.bf16.mxu1 %vm69_vm0, %v14317_v10 }
 0x15a   :  { %11343 = vmatmul.mubr.msk.bf16.gmra.mrb[16].mxu0 %vm69_vm0, %v14327_v61 }
 0x15b   :  { %11649 = vmatmul.mubr.msk.bf16.gmra.mrb[16].mxu1 %vm69_vm0, %v14329_v0  ;;  %11346 = vmatprep.mubr.msk.bf16.mxu0 %vm69_vm0, %v14331_v23 }
 0x15c   :  { %11652 = vmatprep.mubr.msk.bf16.mxu1 %vm69_vm0, %v14333_v28 }
 0x162   :  { %11347 = vmatmul.mubr.msk.bf16.gmra.mrb[20].mxu0 %vm69_vm0, %v14343_v14 }
 0x163   :  { %11653 = vmatmul.mubr.msk.bf16.gmra.mrb[20].mxu1 %vm69_vm0, %v14345_v15  ;;  %11350 = vmatprep.mubr.msk.bf16.mxu0 %vm69_vm0, %v14347_v21 }
 0x164   :  { %11656 = vmatprep.mubr.msk.bf16.mxu1 %vm69_vm0, %v14349_v22 }
 0x16a   :  { %11351 = vmatmul.mubr.msk.bf16.gmra.mrb[24].mxu0 %vm69_vm0, %v14359_v43 }
 0x16b   :  { %11657 = vmatmul.mubr.msk.bf16.gmra.mrb[24].mxu1 %vm69_vm0, %v14361_v44  ;;  %11354 = vmatprep.mubr.msk.bf16.mxu0 %vm69_vm0, %v14363_v47 }
 0x16c   :  { %11660 = vmatprep.mubr.msk.bf16.mxu1 %vm69_vm0, %v14365_v49 }
 0x172   :  { %11355 = vmatmul.mubr.msk.bf16.gmra.mrb[28].mxu0 %vm69_vm0, %v14375_v1 }
 0x173   :  { %11661 = vmatmul.mubr.msk.bf16.gmra.mrb[28].mxu1 %vm69_vm0, %v14377_v2  ;;  %11360 = vmatprep.mubr.msk.bf16.mxu0 %vm69_vm0, %v14255_v13  ;;  %v924_v13 = vld [vmem:[#allocation2 + $0x181] sm:$0xff] }
 0x174   :  { %11666 = vmatprep.mubr.msk.bf16.mxu1 %vm69_vm0, %v14257_v16  ;;  %v925_v16 = vld [vmem:[#allocation2 + $0x189] sm:$0xff] }
 0x175   :  { %v1194_v5 = vpack.c.bf16 %v925_v16, %v924_v13  ;;  %v3901_v13 = vld [vmem:[#allocation2 + $0x272] sm:$0xff]  ;;  %v3902_v16 = vld [vmem:[#allocation2 + $0x27a] sm:$0xff] }
 0x17a   :  { %11361 = vmatmul.mubr.msk.bf16.vlgmr.msra.gmra.mrb[0].mxu0 %vm69_vm0, %v14259_v17 }
 0x17b   :  { %11393 = vmatpush3.bf16.msra.mxu0 %v14263_v19  ;;  %11667 = vmatmul.mubr.msk.bf16.vlgmr.msra.gmra.mrb[0].mxu1 %vm69_vm0, %v14261_v18  ;;  %v3206_v19 = vld [vmem:[#allocation2 + $0x331] sm:$0xff] }
 0x17c   :  { %11699 = vmatpush3.bf16.msra.mxu1 %v14267_v20  ;;  %11364 = vmatprep.mubr.msk.bf16.mxu0 %vm69_vm0, %v14278_v35  ;;  %v3207_v20 = vld [vmem:[#allocation2 + $0x339] sm:$0xff] }
 0x17d   :  { %11670 = vmatprep.mubr.msk.bf16.mxu1 %vm69_vm0, %v14281_v36  ;;  %11426 = vmatprep.subr.bf16.mxu0 %v13491_v3  ;;  %v3475_v6 = vpack.c.bf16 %v3207_v20, %v3206_v19  ;;  %v14571_v19 = vpack.c.bf16 %v1621_v63, %v1620_v62  ;;  %v3915_v62 = vld [vmem:[#allocation2 + $0x31a] sm:$0xff]  ;;  %v3916_v63 = vld [vmem:[#allocation2 + $0x322] sm:$0xff] }
 0x17e   :  { %11732 = vmatprep.subr.bf16.mxu1 %v13492_v4 }
 0x182   :  { %11365 = vmatmul.mubr.msk.bf16.gmra.mrb[4].mxu0 %vm69_vm0, %v14283_v38 }
 0x183   :  { %11671 = vmatmul.mubr.msk.bf16.gmra.mrb[4].mxu1 %vm69_vm0, %v14285_v39  ;;  %11368 = vmatprep.mubr.msk.bf16.mxu0 %vm69_vm0, %v14295_v55 }
 0x184   :  { %11674 = vmatprep.mubr.msk.bf16.mxu1 %vm69_vm0, %v14297_v56 }
 0x18a   :  { %11369 = vmatmul.mubr.msk.bf16.gmra.mrb[8].mxu0 %vm69_vm0, %v14299_v57 }
 0x18b   :  { %11675 = vmatmul.mubr.msk.bf16.gmra.mrb[8].mxu1 %vm69_vm0, %v14301_v59  ;;  %11372 = vmatprep.mubr.msk.bf16.mxu0 %vm69_vm0, %v14311_v7 }
 0x18c   :  { %11678 = vmatprep.mubr.msk.bf16.mxu1 %vm69_vm0, %v14313_v8 }
 0x192   :  { %11373 = vmatmul.mubr.msk.bf16.gmra.mrb[12].mxu0 %vm69_vm0, %v14315_v9 }
 0x193   :  { %11679 = vmatmul.mubr.msk.bf16.gmra.mrb[12].mxu1 %vm69_vm0, %v14317_v10  ;;  %11376 = vmatprep.mubr.msk.bf16.mxu0 %vm69_vm0, %v14327_v61 }
 0x194   :  { %11682 = vmatprep.mubr.msk.bf16.mxu1 %vm69_vm0, %v14329_v0 }
 0x19a   :  { %11377 = vmatmul.mubr.msk.bf16.gmra.mrb[16].mxu0 %vm69_vm0, %v14331_v23 }
 0x19b   :  { %11683 = vmatmul.mubr.msk.bf16.gmra.mrb[16].mxu1 %vm69_vm0, %v14333_v28  ;;  %11380 = vmatprep.mubr.msk.bf16.mxu0 %vm69_vm0, %v14343_v14 }
 0x19c   :  { %11686 = vmatprep.mubr.msk.bf16.mxu1 %vm69_vm0, %v14345_v15 }
 0x1a2   :  { %11381 = vmatmul.mubr.msk.bf16.gmra.mrb[20].mxu0 %vm69_vm0, %v14347_v21 }
 0x1a3   :  { %11687 = vmatmul.mubr.msk.bf16.gmra.mrb[20].mxu1 %vm69_vm0, %v14349_v22  ;;  %11384 = vmatprep.mubr.msk.bf16.mxu0 %vm69_vm0, %v14359_v43 }
 0x1a4   :  { %11690 = vmatprep.mubr.msk.bf16.mxu1 %vm69_vm0, %v14361_v44 }
 0x1aa   :  { %11385 = vmatmul.mubr.msk.bf16.gmra.mrb[24].mxu0 %vm69_vm0, %v14363_v47 }
 0x1ab   :  { %11691 = vmatmul.mubr.msk.bf16.gmra.mrb[24].mxu1 %vm69_vm0, %v14365_v49  ;;  %11388 = vmatprep.mubr.msk.bf16.mxu0 %vm69_vm0, %v14375_v1 }
 0x1ac   :  { %11694 = vmatprep.mubr.msk.bf16.mxu1 %vm69_vm0, %v14377_v2 }
 0x1b2   :  { %11389 = vmatmul.mubr.msk.bf16.gmra.mrb[28].mxu0 %vm69_vm0, %v1194_v5 }
 0x1b3   :  { %11695 = vmatmul.mubr.msk.bf16.gmra.mrb[28].mxu1 %vm69_vm0, %v3475_v6  ;;  %11394 = vmatprep.mubr.msk.bf16.mxu0 %vm69_vm0, %v14259_v17  ;;  %v926_v17 = vld [vmem:[#allocation2 + $0x199] sm:$0xff] }
 0x1b4   :  { %11700 = vmatprep.mubr.msk.bf16.mxu1 %vm69_vm0, %v14261_v18  ;;  %v927_v18 = vld [vmem:[#allocation2 + $0x1a1] sm:$0xff] }
 0x1ba   :  { %11395 = vmatmul.mubr.msk.bf16.vlgmr.msra.gmra.mrb[0].mxu0 %vm69_vm0, %v14278_v35  ;;  %v3208_v35 = vld [vmem:[#allocation2 + $0x349] sm:$0xff] }
 0x1bb   :  { %11427 = vmatpush3.bf16.msra.mxu0 %v13491_v3  ;;  %11701 = vmatmul.mubr.msk.bf16.vlgmr.msra.gmra.mrb[0].mxu1 %vm69_vm0, %v14281_v36  ;;  %v3209_v36 = vld [vmem:[#allocation2 + $0x351] sm:$0xff]  ;;  %v1622_v3 = vld [vmem:[#allocation2 + $0xc2] sm:$0xff] }
 0x1bc   :  { %11733 = vmatpush3.bf16.msra.mxu1 %v13492_v4  ;;  %11398 = vmatprep.mubr.msk.bf16.mxu0 %vm69_vm0, %v14283_v38  ;;  %v1606_v38 = vld [vmem:[#allocation2 + $0x2] sm:$0xff]  ;;  %v1623_v4 = vld [vmem:[#allocation2 + $0xca] sm:$0xff] }
 0x1bd   :  { %11704 = vmatprep.mubr.msk.bf16.mxu1 %vm69_vm0, %v14285_v39  ;;  %11460 = vmatprep.subr.bf16.mxu0 %v14451_v26  ;;  %v1607_v39 = vld [vmem:[#allocation2 + $0xa] sm:$0xff] }
 0x1be   :  { %11766 = vmatprep.subr.bf16.mxu1 %v14455_v33 }
 0x1c2   :  { %11399 = vmatmul.mubr.msk.bf16.gmra.mrb[4].mxu0 %vm69_vm0, %v14295_v55  ;;  %v3885_v55 = vld [vmem:[#allocation2 + $0x1b2] sm:$0xff] }
 0x1c3   :  { %11705 = vmatmul.mubr.msk.bf16.gmra.mrb[4].mxu1 %vm69_vm0, %v14297_v56  ;;  %11402 = vmatprep.mubr.msk.bf16.mxu0 %vm69_vm0, %v14299_v57  ;;  %v3886_v56 = vld [vmem:[#allocation2 + $0x1ba] sm:$0xff]  ;;  %v1400_v57 = vpack.c.bf16 %v927_v18, %v926_v17  ;;  %v3903_v17 = vld [vmem:[#allocation2 + $0x28a] sm:$0xff]  ;;  %v3904_v18 = vld [vmem:[#allocation2 + $0x292] sm:$0xff] }
 0x1c4   :  { %11708 = vmatprep.mubr.msk.bf16.mxu1 %vm69_vm0, %v14301_v59  ;;  %v3680_v59 = vpack.c.bf16 %v3209_v36, %v3208_v35  ;;  %v1626_v35 = vld [vmem:[#allocation2 + $0xf2] sm:$0xff]  ;;  %v1627_v36 = vld [vmem:[#allocation2 + $0xfa] sm:$0xff] }
 0x1ca   :  { %11403 = vmatmul.mubr.msk.bf16.gmra.mrb[8].mxu0 %vm69_vm0, %v14311_v7  ;;  %v1642_v7 = vpack.c.bf16 %v1607_v39, %v1606_v38  ;;  %v3905_v38 = vld [vmem:[#allocation2 + $0x2a2] sm:$0xff]  ;;  %v3906_v39 = vld [vmem:[#allocation2 + $0x2aa] sm:$0xff] }
 0x1cb   :  { %11709 = vmatmul.mubr.msk.bf16.gmra.mrb[8].mxu1 %vm69_vm0, %v14313_v8  ;;  %11406 = vmatprep.mubr.msk.bf16.mxu0 %vm69_vm0, %v14315_v9  ;;  %v3921_v8 = vpack.c.bf16 %v3886_v56, %v3885_v55  ;;  %v1608_v9 = vld [vmem:[#allocation2 + $0x1a] sm:$0xff]  ;;  %v14589_v56 = vpack.c.bf16 %v3904_v18, %v3903_v17 }
 0x1cc   :  { %11712 = vmatprep.mubr.msk.bf16.mxu1 %vm69_vm0, %v14317_v10  ;;  %v1609_v10 = vld [vmem:[#allocation2 + $0x22] sm:$0xff] }
 0x1cd   :  { %v14515_v58 = vpack.c.bf16 %v1609_v10, %v1608_v9  ;;  %v3907_v9 = vld [vmem:[#allocation2 + $0x2ba] sm:$0xff]  ;;  %v3908_v10 = vld [vmem:[#allocation2 + $0x2c2] sm:$0xff] }
 0x1d2   :  { %11407 = vmatmul.mubr.msk.bf16.gmra.mrb[12].mxu0 %vm69_vm0, %v14327_v61  ;;  %v3890_v61 = vld [vmem:[#allocation2 + $0x1ea] sm:$0xff] }
 0x1d3   :  { %11713 = vmatmul.mubr.msk.bf16.gmra.mrb[12].mxu1 %vm69_vm0, %v14329_v0  ;;  %11410 = vmatprep.mubr.msk.bf16.mxu0 %vm69_vm0, %v14331_v23  ;;  %v14517_v0 = vpack.c.bf16 %v3888_v41, %v3887_v37  ;;  %v14519_v23 = vpack.c.bf16 %v1611_v46, %v1610_v45  ;;  %v1630_v37 = vld [vmem:[#allocation2 + $0x122] sm:$0xff]  ;;  %v1631_v41 = vld [vmem:[#allocation2 + $0x12a] sm:$0xff]  ;;  %v3909_v45 = vld [vmem:[#allocation2 + $0x2d2] sm:$0xff] }
 0x1d4   :  { %11716 = vmatprep.mubr.msk.bf16.mxu1 %vm69_vm0, %v14333_v28  ;;  %v14521_v28 = vpack.c.bf16 %v3890_v61, %v3889_v60  ;;  %v3910_v46 = vld [vmem:[#allocation2 + $0x2da] sm:$0xff]  ;;  %v14605_v61 = vpack.c.bf16 %v3908_v10, %v3907_v9 }
 0x1da   :  { %11411 = vmatmul.mubr.msk.bf16.gmra.mrb[16].mxu0 %vm69_vm0, %v14343_v14  ;;  %v3893_v14 = vld [vmem:[#allocation2 + $0x212] sm:$0xff] }
 0x1db   :  { %11717 = vmatmul.mubr.msk.bf16.gmra.mrb[16].mxu1 %vm69_vm0, %v14345_v15  ;;  %11414 = vmatprep.mubr.msk.bf16.mxu0 %vm69_vm0, %v14347_v21  ;;  %v3894_v15 = vld [vmem:[#allocation2 + $0x21a] sm:$0xff]  ;;  %v14538_v21 = vpack.c.bf16 %v1613_v50, %v1612_v48  ;;  %v14607_v48 = vpack.c.bf16 %v1631_v41, %v1630_v37  ;;  %v14609_v50 = vpack.c.bf16 %v3910_v46, %v3909_v45 }
 0x1dc   :  { %11720 = vmatprep.mubr.msk.bf16.mxu1 %vm69_vm0, %v14349_v22  ;;  %v14541_v22 = vpack.c.bf16 %v3892_v54, %v3891_v51  ;;  %v14545_v25 = vpack.c.bf16 %v3894_v15, %v3893_v14  ;;  %v1632_v51 = vld [vmem:[#allocation2 + $0x13a] sm:$0xff]  ;;  %v1633_v54 = vld [vmem:[#allocation2 + $0x142] sm:$0xff]  ;;  %v1634_v14 = vld [vmem:[#allocation2 + $0x152] sm:$0xff] }
 0x1dd   :  { %v1635_v15 = vld [vmem:[#allocation2 + $0x15a] sm:$0xff] }
 0x1de   :  { %v14623_v40 = vpack.c.bf16 %v1635_v15, %v1634_v14 }
 0x1e2   :  { %11415 = vmatmul.mubr.msk.bf16.gmra.mrb[20].mxu0 %vm69_vm0, %v14359_v43  ;;  %v3897_v43 = vld [vmem:[#allocation2 + $0x242] sm:$0xff] }
 0x1e3   :  { %11721 = vmatmul.mubr.msk.bf16.gmra.mrb[20].mxu1 %vm69_vm0, %v14361_v44  ;;  %11418 = vmatprep.mubr.msk.bf16.mxu0 %vm69_vm0, %v14363_v47  ;;  %v3898_v44 = vld [vmem:[#allocation2 + $0x24a] sm:$0xff]  ;;  %v14555_v47 = vpack.c.bf16 %v1617_v30, %v1616_v27  ;;  %v3913_v27 = vld [vmem:[#allocation2 + $0x302] sm:$0xff] }
 0x1e4   :  { %11724 = vmatprep.mubr.msk.bf16.mxu1 %vm69_vm0, %v14365_v49  ;;  %v14557_v49 = vpack.c.bf16 %v3896_v34, %v3895_v32  ;;  %v14561_v53 = vpack.c.bf16 %v3898_v44, %v3897_v43  ;;  %v3914_v30 = vld [vmem:[#allocation2 + $0x30a] sm:$0xff]  ;;  %v14619_v32 = vpack.c.bf16 %v1633_v54, %v1632_v51  ;;  %v14621_v34 = vpack.c.bf16 %v3912_v12, %v3911_v11  ;;  %v1637_v44 = vld [vmem:[#allocation2 + $0x172] sm:$0xff] }
 0x1e5   :  { %v14625_v42 = vpack.c.bf16 %v3914_v30, %v3913_v27  ;;  %v1636_v43 = vld [vmem:[#allocation2 + $0x16a] sm:$0xff] }
 0x1ea   :  { %11419 = vmatmul.mubr.msk.bf16.gmra.mrb[24].mxu0 %vm69_vm0, %v14375_v1  ;;  %v3899_v1 = vld [vmem:[#allocation2 + $0x25a] sm:$0xff] }
 0x1eb   :  { %11725 = vmatmul.mubr.msk.bf16.gmra.mrb[24].mxu1 %vm69_vm0, %v14377_v2  ;;  %11422 = vmatprep.mubr.msk.bf16.mxu0 %vm69_vm0, %v1194_v5  ;;  %v3900_v2 = vld [vmem:[#allocation2 + $0x262] sm:$0xff]  ;;  %v14575_v5 = vpack.c.bf16 %v1623_v4, %v1622_v3 }
 0x1ec   :  { %11728 = vmatprep.mubr.msk.bf16.mxu1 %vm69_vm0, %v3475_v6  ;;  %v14573_v20 = vpack.c.bf16 %v3900_v2, %v3899_v1  ;;  %v14577_v6 = vpack.c.bf16 %v3902_v16, %v3901_v13  ;;  %v14635_v1 = vpack.c.bf16 %v1637_v44, %v1636_v43  ;;  %v14637_v2 = vpack.c.bf16 %v3916_v63, %v3915_v62 }
 0x1f2   :  { %11423 = vmatmul.mubr.msk.bf16.gmra.mrb[28].mxu0 %vm69_vm0, %v1400_v57  ;;  %v14591_v57 = vpack.c.bf16 %v1627_v36, %v1626_v35 }
 0x1f3   :  { %11729 = vmatmul.mubr.msk.bf16.gmra.mrb[28].mxu1 %vm69_vm0, %v3680_v59  ;;  %11428 = vmatprep.mubr.msk.bf16.mxu0 %vm69_vm0, %v1642_v7  ;;  %v14593_v59 = vpack.c.bf16 %v3906_v39, %v3905_v38  ;;  %v1628_v7 = vld [vmem:[#allocation2 + $0x10a] sm:$0xff] }
 0x1f4   :  { %11734 = vmatprep.mubr.msk.bf16.mxu1 %vm69_vm0, %v3921_v8  ;;  %v1629_v8 = vld [vmem:[#allocation2 + $0x112] sm:$0xff] }
 0x1f5   :  { %v14603_v60 = vpack.c.bf16 %v1629_v8, %v1628_v7 }
 0x1fa   :  { %11429 = vmatmul.mubr.msk.bf16.vlgmr.msra.gmra.mrb[0].mxu0 %vm69_vm0, %v14515_v58 }
 0x1fb   :  { %11461 = vmatpush3.bf16.msra.mxu0 %v14451_v26  ;;  %11735 = vmatmul.mubr.msk.bf16.vlgmr.msra.gmra.mrb[0].mxu1 %vm69_vm0, %v14517_v0  ;;  %v1624_v26 = vld [vmem:[#allocation2 + $0xda] sm:$0xff] }
 0x1fc   :  { %11767 = vmatpush3.bf16.msra.mxu1 %v14455_v33  ;;  %11432 = vmatprep.mubr.msk.bf16.mxu0 %vm69_vm0, %v14519_v23  ;;  %v1625_v33 = vld [vmem:[#allocation2 + $0xe2] sm:$0xff] }
 0x1fd   :  { %11738 = vmatprep.mubr.msk.bf16.mxu1 %vm69_vm0, %v14521_v28  ;;  %11494 = vmatprep.subr.bf16.mxu0 %v14523_v29  ;;  %v14587_v55 = vpack.c.bf16 %v1625_v33, %v1624_v26 }
 0x1fe   :  { %11800 = vmatprep.subr.bf16.mxu1 %v14527_v31 }
 0x202   :  { %11433 = vmatmul.mubr.msk.bf16.gmra.mrb[4].mxu0 %vm69_vm0, %v14538_v21 }
 0x203   :  { %11739 = vmatmul.mubr.msk.bf16.gmra.mrb[4].mxu1 %vm69_vm0, %v14541_v22  ;;  %11436 = vmatprep.mubr.msk.bf16.mxu0 %vm69_vm0, %v14543_v24 }
 0x204   :  { %11742 = vmatprep.mubr.msk.bf16.mxu1 %vm69_vm0, %v14545_v25 }
 0x20a   :  { %11437 = vmatmul.mubr.msk.bf16.gmra.mrb[8].mxu0 %vm69_vm0, %v14555_v47 }
 0x20b   :  { %11743 = vmatmul.mubr.msk.bf16.gmra.mrb[8].mxu1 %vm69_vm0, %v14557_v49  ;;  %11440 = vmatprep.mubr.msk.bf16.mxu0 %vm69_vm0, %v14559_v52 }
 0x20c   :  { %11746 = vmatprep.mubr.msk.bf16.mxu1 %vm69_vm0, %v14561_v53 }
 0x212   :  { %11441 = vmatmul.mubr.msk.bf16.gmra.mrb[12].mxu0 %vm69_vm0, %v14571_v19 }
 0x213   :  { %11747 = vmatmul.mubr.msk.bf16.gmra.mrb[12].mxu1 %vm69_vm0, %v14573_v20  ;;  %11444 = vmatprep.mubr.msk.bf16.mxu0 %vm69_vm0, %v14575_v5 }
 0x214   :  { %11750 = vmatprep.mubr.msk.bf16.mxu1 %vm69_vm0, %v14577_v6 }
 0x21a   :  { %11445 = vmatmul.mubr.msk.bf16.gmra.mrb[16].mxu0 %vm69_vm0, %v14587_v55 }
 0x21b   :  { %11751 = vmatmul.mubr.msk.bf16.gmra.mrb[16].mxu1 %vm69_vm0, %v14589_v56  ;;  %11448 = vmatprep.mubr.msk.bf16.mxu0 %vm69_vm0, %v14591_v57 }
 0x21c   :  { %11754 = vmatprep.mubr.msk.bf16.mxu1 %vm69_vm0, %v14593_v59 }
 0x222   :  { %11449 = vmatmul.mubr.msk.bf16.gmra.mrb[20].mxu0 %vm69_vm0, %v14603_v60 }
 0x223   :  { %11755 = vmatmul.mubr.msk.bf16.gmra.mrb[20].mxu1 %vm69_vm0, %v14605_v61  ;;  %11452 = vmatprep.mubr.msk.bf16.mxu0 %vm69_vm0, %v14607_v48 }
 0x224   :  { %11758 = vmatprep.mubr.msk.bf16.mxu1 %vm69_vm0, %v14609_v50 }
 0x22a   :  { %11453 = vmatmul.mubr.msk.bf16.gmra.mrb[24].mxu0 %vm69_vm0, %v14619_v32 }
 0x22b   :  { %11759 = vmatmul.mubr.msk.bf16.gmra.mrb[24].mxu1 %vm69_vm0, %v14621_v34  ;;  %11456 = vmatprep.mubr.msk.bf16.mxu0 %vm69_vm0, %v14623_v40 }
 0x22c   :  { %11762 = vmatprep.mubr.msk.bf16.mxu1 %vm69_vm0, %v14625_v42 }
 0x232   :  { %11457 = vmatmul.mubr.msk.bf16.gmra.mrb[28].mxu0 %vm69_vm0, %v14635_v1 }
 0x233   :  { %11763 = vmatmul.mubr.msk.bf16.gmra.mrb[28].mxu1 %vm69_vm0, %v14637_v2  ;;  %11462 = vmatprep.mubr.msk.bf16.mxu0 %vm69_vm0, %v14515_v58  ;;  %v1638_v58 = vld [vmem:[#allocation2 + $0x182] sm:$0xff] }
 0x234   :  { %11768 = vmatprep.mubr.msk.bf16.mxu1 %vm69_vm0, %v14517_v0  ;;  %v1639_v0 = vld [vmem:[#allocation2 + $0x18a] sm:$0xff] }
 0x235   :  { %v1908_v3 = vpack.c.bf16 %v1639_v0, %v1638_v58 }
 0x23a   :  { %11463 = vmatmul.mubr.msk.bf16.vlgmr.msra.gmra.mrb[0].mxu0 %vm69_vm0, %v14519_v23 }
 0x23b   :  { %11495 = vmatpush3.bf16.msra.mxu0 %v14523_v29  ;;  %11769 = vmatmul.mubr.msk.bf16.vlgmr.msra.gmra.mrb[0].mxu1 %vm69_vm0, %v14521_v28  ;;  %v3917_v29 = vld [vmem:[#allocation2 + $0x332] sm:$0xff] }
 0x23c   :  { %11801 = vmatpush3.bf16.msra.mxu1 %v14527_v31  ;;  %11466 = vmatprep.mubr.msk.bf16.mxu0 %vm69_vm0, %v14538_v21  ;;  %v3918_v31 = vld [vmem:[#allocation2 + $0x33a] sm:$0xff] }
 0x23d   :  { %11772 = vmatprep.mubr.msk.bf16.mxu1 %vm69_vm0, %v14541_v22  ;;  %v4186_v4 = vpack.c.bf16 %v3918_v31, %v3917_v29 }
 0x242   :  { %11467 = vmatmul.mubr.msk.bf16.gmra.mrb[4].mxu0 %vm69_vm0, %v14543_v24 }
 0x243   :  { %11773 = vmatmul.mubr.msk.bf16.gmra.mrb[4].mxu1 %vm69_vm0, %v14545_v25  ;;  %11470 = vmatprep.mubr.msk.bf16.mxu0 %vm69_vm0, %v14555_v47 }
 0x244   :  { %11776 = vmatprep.mubr.msk.bf16.mxu1 %vm69_vm0, %v14557_v49 }
 0x24a   :  { %11471 = vmatmul.mubr.msk.bf16.gmra.mrb[8].mxu0 %vm69_vm0, %v14559_v52 }
 0x24b   :  { %11777 = vmatmul.mubr.msk.bf16.gmra.mrb[8].mxu1 %vm69_vm0, %v14561_v53  ;;  %11474 = vmatprep.mubr.msk.bf16.mxu0 %vm69_vm0, %v14571_v19 }
 0x24c   :  { %11780 = vmatprep.mubr.msk.bf16.mxu1 %vm69_vm0, %v14573_v20 }
 0x252   :  { %11475 = vmatmul.mubr.msk.bf16.gmra.mrb[12].mxu0 %vm69_vm0, %v14575_v5 }
 0x253   :  { %11781 = vmatmul.mubr.msk.bf16.gmra.mrb[12].mxu1 %vm69_vm0, %v14577_v6  ;;  %11478 = vmatprep.mubr.msk.bf16.mxu0 %vm69_vm0, %v14587_v55 }
 0x254   :  { %11784 = vmatprep.mubr.msk.bf16.mxu1 %vm69_vm0, %v14589_v56 }
 0x25a   :  { %11479 = vmatmul.mubr.msk.bf16.gmra.mrb[16].mxu0 %vm69_vm0, %v14591_v57 }
 0x25b   :  { %11785 = vmatmul.mubr.msk.bf16.gmra.mrb[16].mxu1 %vm69_vm0, %v14593_v59  ;;  %11482 = vmatprep.mubr.msk.bf16.mxu0 %vm69_vm0, %v14603_v60 }
 0x25c   :  { %11788 = vmatprep.mubr.msk.bf16.mxu1 %vm69_vm0, %v14605_v61 }
 0x262   :  { %11483 = vmatmul.mubr.msk.bf16.gmra.mrb[20].mxu0 %vm69_vm0, %v14607_v48 }
 0x263   :  { %11789 = vmatmul.mubr.msk.bf16.gmra.mrb[20].mxu1 %vm69_vm0, %v14609_v50  ;;  %11486 = vmatprep.mubr.msk.bf16.mxu0 %vm69_vm0, %v14619_v32 }
 0x264   :  { %11792 = vmatprep.mubr.msk.bf16.mxu1 %vm69_vm0, %v14621_v34 }
 0x26a   :  { %11487 = vmatmul.mubr.msk.bf16.gmra.mrb[24].mxu0 %vm69_vm0, %v14623_v40 }
 0x26b   :  { %11793 = vmatmul.mubr.msk.bf16.gmra.mrb[24].mxu1 %vm69_vm0, %v14625_v42  ;;  %11490 = vmatprep.mubr.msk.bf16.mxu0 %vm69_vm0, %v14635_v1 }
 0x26c   :  { %11796 = vmatprep.mubr.msk.bf16.mxu1 %vm69_vm0, %v14637_v2 }
 0x272   :  { %11491 = vmatmul.mubr.msk.bf16.gmra.mrb[28].mxu0 %vm69_vm0, %v1908_v3 }
 0x273   :  { %11797 = vmatmul.mubr.msk.bf16.gmra.mrb[28].mxu1 %vm69_vm0, %v4186_v4  ;;  %11496 = vmatprep.mubr.msk.bf16.mxu0 %vm69_vm0, %v14519_v23  ;;  %v1640_v23 = vld [vmem:[#allocation2 + $0x19a] sm:$0xff] }
 0x274   :  { %11802 = vmatprep.mubr.msk.bf16.mxu1 %vm69_vm0, %v14521_v28  ;;  %v1641_v28 = vld [vmem:[#allocation2 + $0x1a2] sm:$0xff] }
 0x27a   :  { %11497 = vmatmul.mubr.msk.bf16.vlgmr.msra.gmra.mrb[0].mxu0 %vm69_vm0, %v14538_v21  ;;  %v3919_v21 = vld [vmem:[#allocation2 + $0x34a] sm:$0xff] }
 0x27b   :  { %11803 = vmatmul.mubr.msk.bf16.vlgmr.msra.gmra.mrb[0].mxu1 %vm69_vm0, %v14541_v22  ;;  %11500 = vmatprep.mubr.msk.bf16.mxu0 %vm69_vm0, %v14543_v24  ;;  %v3920_v22 = vld [vmem:[#allocation2 + $0x352] sm:$0xff]  ;;  %v2114_v24 = vpack.c.bf16 %v1641_v28, %v1640_v23 }
 0x27c   :  { %11806 = vmatprep.mubr.msk.bf16.mxu1 %vm69_vm0, %v14545_v25  ;;  %v4391_v25 = vpack.c.bf16 %v3920_v22, %v3919_v21 }
 0x282   :  { %11501 = vmatmul.mubr.msk.bf16.gmra.mrb[4].mxu0 %vm69_vm0, %v14555_v47 }
 0x283   :  { %11807 = vmatmul.mubr.msk.bf16.gmra.mrb[4].mxu1 %vm69_vm0, %v14557_v49  ;;  %11504 = vmatprep.mubr.msk.bf16.mxu0 %vm69_vm0, %v14559_v52 }
 0x284   :  { %11810 = vmatprep.mubr.msk.bf16.mxu1 %vm69_vm0, %v14561_v53 }
 0x28a   :  { %11505 = vmatmul.mubr.msk.bf16.gmra.mrb[8].mxu0 %vm69_vm0, %v14571_v19 }
 0x28b   :  { %11811 = vmatmul.mubr.msk.bf16.gmra.mrb[8].mxu1 %vm69_vm0, %v14573_v20  ;;  %11508 = vmatprep.mubr.msk.bf16.mxu0 %vm69_vm0, %v14575_v5 }
 0x28c   :  { %11814 = vmatprep.mubr.msk.bf16.mxu1 %vm69_vm0, %v14577_v6 }
 0x292   :  { %11509 = vmatmul.mubr.msk.bf16.gmra.mrb[12].mxu0 %vm69_vm0, %v14587_v55 }
 0x293   :  { %11815 = vmatmul.mubr.msk.bf16.gmra.mrb[12].mxu1 %vm69_vm0, %v14589_v56  ;;  %11512 = vmatprep.mubr.msk.bf16.mxu0 %vm69_vm0, %v14591_v57 }
 0x294   :  { %11818 = vmatprep.mubr.msk.bf16.mxu1 %vm69_vm0, %v14593_v59 }
 0x29a   :  { %11513 = vmatmul.mubr.msk.bf16.gmra.mrb[16].mxu0 %vm69_vm0, %v14603_v60 }
 0x29b   :  { %11819 = vmatmul.mubr.msk.bf16.gmra.mrb[16].mxu1 %vm69_vm0, %v14605_v61  ;;  %11516 = vmatprep.mubr.msk.bf16.mxu0 %vm69_vm0, %v14607_v48 }
 0x29c   :  { %11822 = vmatprep.mubr.msk.bf16.mxu1 %vm69_vm0, %v14609_v50 }
 0x2a2   :  { %11517 = vmatmul.mubr.msk.bf16.gmra.mrb[20].mxu0 %vm69_vm0, %v14619_v32 }
 0x2a3   :  { %11823 = vmatmul.mubr.msk.bf16.gmra.mrb[20].mxu1 %vm69_vm0, %v14621_v34  ;;  %11520 = vmatprep.mubr.msk.bf16.mxu0 %vm69_vm0, %v14623_v40  ;;  %v13497_v34 = vld [vmem:[#allocation9 + $0x18] sm:$0xff]  }
 0x2a4   :  { %11826 = vmatprep.mubr.msk.bf16.mxu1 %vm69_vm0, %v14625_v42  ;;  %11834 = vmatprep.subr.bf16.mxu0 %v13497_v34 }
 0x2a5   :  { %11835 = vmatpush3.bf16.msra.mxu0 %v13497_v34 }
 0x2aa   :  { %11521 = vmatmul.mubr.msk.bf16.gmra.mrb[24].mxu0 %vm69_vm0, %v14635_v1 }
 0x2ab   :  { %11827 = vmatmul.mubr.msk.bf16.gmra.mrb[24].mxu1 %vm69_vm0, %v14637_v2  ;;  %11524 = vmatprep.mubr.msk.bf16.mxu0 %vm69_vm0, %v1908_v3 }
 0x2ac   :  { %11830 = vmatprep.mubr.msk.bf16.mxu1 %vm69_vm0, %v4186_v4 }
 0x2b2   :  { %11525 = vmatmul.mubr.msk.bf16.gmra.mrb[28].mxu0 %vm69_vm0, %v2114_v24 }
 0x2b3   :  { %11831 = vmatmul.mubr.msk.bf16.gmra.mrb[28].mxu1 %vm69_vm0, %v4391_v25 }
 0x34d   :  { %v14767_v47 = vpop.f32.mrb[0].mxu0 }
 0x34e   :  { %v14769_v49 = vpop.f32.mrb[0].mxu1  ;;  %v14771_v52 = vpop.f32.mrb[1].mxu0  ;;  %v2392_v35 = vmul.f32 %v14767_v47, %v14767_v47 }
 0x34f   :  { %v14773_v53 = vpop.f32.mrb[1].mxu1  ;;  %v14775_v13 = vpop.f32.mrb[2].mxu0  ;;  %v2390_v20 = vmul.f32 %v14771_v52, %v14771_v52  ;;  %v4669_v39 = vmul.f32 %v14769_v49, %v14769_v49 }
 0x350   :  { %v14777_v16 = vpop.f32.mrb[2].mxu1  ;;  %v14779_v19 = vpop.f32.mrb[3].mxu0  ;;  %v4667_v33 = vmul.f32 %v14773_v53, %v14773_v53  ;;  %v2393_v57 = vmul.f32 %v14775_v13, %v14775_v13 }
 0x351   :  { %17333 = vst [vmem:[#allocation14_spill] sm:$0xff] %v14777_v16  ;;  %v2352_v5 = vadd.f32 %v14779_v19, %v14771_v52  ;;  %v2391_v6 = vmul.f32 %v14779_v19, %v14779_v19  ;;  %v14787_v26 = vpop.f32.mrb[3].mxu1  ;;  %v4670_v9 = vmul.f32 %v14777_v16, %v14777_v16 }
 0x352   :  { %v4629_v17 = vadd.f32 %v14787_v26, %v14773_v53  ;;  %v4668_v18 = vmul.f32 %v14787_v26, %v14787_v26 }
 0x353   :  { %v2353_v36 = vadd.f32 %v14767_v47, %v2352_v5  ;;  %v2422_v38 = vadd.f32 %v2391_v6, %v2390_v20 }
 0x354   :  { %v4630_v55 = vadd.f32 %v14769_v49, %v4629_v17  ;;  %v4699_v56 = vadd.f32 %v4668_v18, %v4667_v33 }
 0x355   :  { %v2423_v59 = vadd.f32 %v2422_v38, %v2392_v35  ;;  %v14803_v7 = vpop.f32.mrb[4].mxu0  ;;  %v2354_v8 = vadd.f32 %v14775_v13, %v2353_v36 }
 0x356   :  { %v4700_v10 = vadd.f32 %v4699_v56, %v4669_v39  ;;  %v14808_v37 = vpop.f32.mrb[4].mxu1  ;;  %v14810_v41 = vpop.f32.mrb[5].mxu0  ;;  %v4631_v45 = vadd.f32 %v14777_v16, %v4630_v55  ;;  %v2396_v44 = vmul.f32 %v14803_v7, %v14803_v7 }
 0x357   :  { %17334 = vst [vmem:[#allocation15_spill] sm:$0xff] %v14808_v37  ;;  %v2355_v46 = vadd.f32 %v2354_v8, %v14810_v41  ;;  %v2394_v60 = vmul.f32 %v14810_v41, %v14810_v41  ;;  %v2424_v61 = vadd.f32 %v2423_v59, %v2393_v57  ;;  %v14816_v48 = vpop.f32.mrb[5].mxu1  ;;  %v14818_v50 = vpop.f32.mrb[6].mxu0  ;;  %v4673_v1 = vmul.f32 %v14808_v37, %v14808_v37 }
 0x358   :  { %17335 = vst [vmem:[#allocation16_spill] sm:$0xff] %v14816_v48  ;;  %v4632_v51 = vadd.f32 %v4631_v45, %v14816_v48  ;;  %v4671_v54 = vmul.f32 %v14816_v48, %v14816_v48  ;;  %v4701_v11 = vadd.f32 %v4700_v10, %v4670_v9  ;;  %v14823_v12 = vpop.f32.mrb[6].mxu1  ;;  %v14825_v14 = vpop.f32.mrb[7].mxu0  ;;  %v2397_v0 = vmul.f32 %v14818_v50, %v14818_v50 }
 0x359   :  { %17336 = vst [vmem:[#allocation17_spill] sm:$0xff] %v14823_v12  ;;  %v2425_v15 = vadd.f32 %v2424_v61, %v2394_v60  ;;  %v2356_v27 = vadd.f32 %v2355_v46, %v14825_v14  ;;  %v2395_v30 = vmul.f32 %v14825_v14, %v14825_v14  ;;  %v14830_v32 = vpop.f32.mrb[7].mxu1  ;;  %v4674_v4 = vmul.f32 %v14823_v12, %v14823_v12 }
 0x35a   :  { %17337 = vst [vmem:[#allocation18_spill] sm:$0xff] %v14830_v32  ;;  %v4702_v40 = vadd.f32 %v4701_v11, %v4671_v54  ;;  %v4633_v42 = vadd.f32 %v4632_v51, %v14830_v32  ;;  %v4672_v43 = vmul.f32 %v14830_v32, %v14830_v32 }
 0x35b   :  { %v2357_v62 = vadd.f32 %v14803_v7, %v2356_v27  ;;  %v2426_v63 = vadd.f32 %v2425_v15, %v2395_v30 }
 0x35c   :  { %v4634_v2 = vadd.f32 %v14808_v37, %v4633_v42  ;;  %v4703_v58 = vadd.f32 %v4702_v40, %v4672_v43 }
 0x35d   :  { %v2427_v29 = vadd.f32 %v2426_v63, %v2396_v44  ;;  %v14843_v31 = vpop.f32.mrb[8].mxu0  ;;  %v2358_v3 = vadd.f32 %v14818_v50, %v2357_v62 }
 0x35e   :  { %v4704_v23 = vadd.f32 %v4703_v58, %v4673_v1  ;;  %v14848_v28 = vpop.f32.mrb[8].mxu1  ;;  %v14850_v21 = vpop.f32.mrb[9].mxu0  ;;  %v4635_v22 = vadd.f32 %v14823_v12, %v4634_v2  ;;  %v2400_v9 = vmul.f32 %v14843_v31, %v14843_v31 }
 0x35f   :  { %17338 = vst [vmem:[#allocation19_spill] sm:$0xff] %v14848_v28  ;;  %v2359_v24 = vadd.f32 %v2358_v3, %v14850_v21  ;;  %v2398_v25 = vmul.f32 %v14850_v21, %v14850_v21  ;;  %v2428_v20 = vadd.f32 %v2427_v29, %v2397_v0  ;;  %v14856_v5 = vpop.f32.mrb[9].mxu1  ;;  %v14858_v6 = vpop.f32.mrb[10].mxu0  ;;  %v4677_v46 = vmul.f32 %v14848_v28, %v14848_v28 }
 0x360   :  { %17339 = vst [vmem:[#allocation20_spill] sm:$0xff] %v14856_v5  ;;  %v4636_v33 = vadd.f32 %v4635_v22, %v14856_v5  ;;  %v4675_v17 = vmul.f32 %v14856_v5, %v14856_v5  ;;  %v4705_v18 = vadd.f32 %v4704_v23, %v4674_v4  ;;  %v14863_v35 = vpop.f32.mrb[10].mxu1  ;;  %v14865_v36 = vpop.f32.mrb[11].mxu0  ;;  %v2401_v51 = vmul.f32 %v14858_v6, %v14858_v6 }
 0x361   :  { %17340 = vst [vmem:[#allocation21_spill] sm:$0xff] %v14863_v35  ;;  %v2429_v38 = vadd.f32 %v2428_v20, %v2398_v25  ;;  %v2360_v39 = vadd.f32 %v2359_v24, %v14865_v36  ;;  %v2399_v55 = vmul.f32 %v14865_v36, %v14865_v36  ;;  %v14870_v56 = vpop.f32.mrb[11].mxu1  ;;  %v4678_v27 = vmul.f32 %v14863_v35, %v14863_v35  ;;  %v13498_v25 = vld [vmem:[#allocation9 + $0x18] sm:$0xff]   ;;  %v14912_v20 = vld [vmem:[#allocation9] sm:$0xff]  }
 0x362   :  { %17341 = vst [vmem:[#allocation22_spill] sm:$0xff] %v14870_v56  ;;  %v4706_v57 = vadd.f32 %v4705_v18, %v4675_v17  ;;  %v4637_v59 = vadd.f32 %v4636_v33, %v14870_v56  ;;  %v4676_v8 = vmul.f32 %v14870_v56, %v14870_v56  ;;  %17346 = vst [vmem:[#allocation27_spill] sm:$0xff] %v14912_v20  ;;  %12140 = vmatprep.subr.bf16.mxu1 %v13498_v25 }
 0x363   :  { %v2361_v10 = vadd.f32 %v14843_v31, %v2360_v39  ;;  %v2430_v45 = vadd.f32 %v2429_v38, %v2399_v55  ;;  %11868 = vmatprep.subr.bf16.mxu0 %v14912_v20  ;;  %12141 = vmatpush3.bf16.msra.mxu1 %v13498_v25 }
 0x364   :  { %v4638_v60 = vadd.f32 %v14848_v28, %v4637_v59  ;;  %v4707_v61 = vadd.f32 %v4706_v57, %v4676_v8 }
 0x365   :  { %v2431_v54 = vadd.f32 %v2430_v45, %v2400_v9  ;;  %v14883_v11 = vpop.f32.mrb[12].mxu0  ;;  %v2362_v15 = vadd.f32 %v14858_v6, %v2361_v10  ;;  %v14924_v9 = vld [vmem:[#allocation9] sm:$0xff]  }
 0x366   :  { %v4708_v30 = vadd.f32 %v4707_v61, %v4677_v46  ;;  %v14888_v34 = vpop.f32.mrb[12].mxu1  ;;  %v14890_v40 = vpop.f32.mrb[13].mxu0  ;;  %v4639_v42 = vadd.f32 %v14863_v35, %v4638_v60  ;;  %v2404_v38 = vmul.f32 %v14883_v11, %v14883_v11  ;;  %17347 = vst [vmem:[#allocation28_spill] sm:$0xff] %v14924_v9  ;;  %12174 = vmatprep.subr.bf16.mxu1 %v14924_v9 }
 0x367   :  { %17342 = vst [vmem:[#allocation23_spill] sm:$0xff] %v14888_v34  ;;  %v2363_v43 = vadd.f32 %v2362_v15, %v14890_v40  ;;  %v2402_v44 = vmul.f32 %v14890_v40, %v14890_v40  ;;  %v2432_v62 = vadd.f32 %v2431_v54, %v2401_v51  ;;  %v14896_v63 = vpop.f32.mrb[13].mxu1  ;;  %v14898_v1 = vpop.f32.mrb[14].mxu0  ;;  %v4681_v57 = vmul.f32 %v14888_v34, %v14888_v34 }
 0x368   :  { %17343 = vst [vmem:[#allocation24_spill] sm:$0xff] %v14896_v63  ;;  %v4640_v2 = vadd.f32 %v4639_v42, %v14896_v63  ;;  %v4679_v58 = vmul.f32 %v14896_v63, %v14896_v63  ;;  %v4709_v0 = vadd.f32 %v4708_v30, %v4678_v27  ;;  %v14903_v29 = vpop.f32.mrb[14].mxu1  ;;  %v14905_v3 = vpop.f32.mrb[15].mxu0  ;;  %v2405_v10 = vmul.f32 %v14898_v1, %v14898_v1 }
 0x369   :  { %17344 = vst [vmem:[#allocation25_spill] sm:$0xff] %v14903_v29  ;;  %v2433_v4 = vadd.f32 %v2432_v62, %v2402_v44  ;;  %v2364_v23 = vadd.f32 %v2363_v43, %v14905_v3  ;;  %v2403_v22 = vmul.f32 %v14905_v3, %v14905_v3  ;;  %v14910_v24 = vpop.f32.mrb[15].mxu1  ;;  %v4682_v61 = vmul.f32 %v14903_v29, %v14903_v29 }
 0x36a   :  { %17345 = vst [vmem:[#allocation26_spill] sm:$0xff] %v14910_v24  ;;  %v4710_v33 = vadd.f32 %v4709_v0, %v4679_v58  ;;  %v4641_v17 = vadd.f32 %v4640_v2, %v14910_v24  ;;  %v4680_v18 = vmul.f32 %v14910_v24, %v14910_v24 }
 0x36b   :  { %v2365_v39 = vadd.f32 %v14883_v11, %v2364_v23  ;;  %v2434_v55 = vadd.f32 %v2433_v4, %v2403_v22 }
 0x36c   :  { %v4642_v59 = vadd.f32 %v14888_v34, %v4641_v17  ;;  %v4711_v8 = vadd.f32 %v4710_v33, %v4680_v18 }
 0x36d   :  { %v2435_v45 = vadd.f32 %v2434_v55, %v2404_v38  ;;  %v14928_v46 = vpop.f32.mrb[16].mxu0  ;;  %v2366_v60 = vadd.f32 %v14898_v1, %v2365_v39 }
 0x36e   :  { %v4712_v51 = vadd.f32 %v4711_v8, %v4681_v57  ;;  %v14933_v54 = vpop.f32.mrb[16].mxu1  ;;  %v14935_v15 = vpop.f32.mrb[17].mxu0  ;;  %v4643_v27 = vadd.f32 %v14903_v29, %v4642_v59  ;;  %v2408_v55 = vmul.f32 %v14928_v46, %v14928_v46 }
 0x36f   :  { %17348 = vst [vmem:[#allocation29_spill] sm:$0xff] %v14933_v54  ;;  %v2367_v30 = vadd.f32 %v2366_v60, %v14935_v15  ;;  %v2406_v42 = vmul.f32 %v14935_v15, %v14935_v15  ;;  %v2436_v43 = vadd.f32 %v2435_v45, %v2405_v10  ;;  %v14942_v44 = vpop.f32.mrb[17].mxu1  ;;  %v14944_v62 = vpop.f32.mrb[18].mxu0  ;;  %v4685_v8 = vmul.f32 %v14933_v54, %v14933_v54 }
 0x370   :  { %17349 = vst [vmem:[#allocation30_spill] sm:$0xff] %v14942_v44  ;;  %v4644_v2 = vadd.f32 %v4643_v27, %v14942_v44  ;;  %v4683_v58 = vmul.f32 %v14942_v44, %v14942_v44  ;;  %v4713_v0 = vadd.f32 %v4712_v51, %v4682_v61  ;;  %v14949_v4 = vpop.f32.mrb[18].mxu1  ;;  %v14951_v23 = vpop.f32.mrb[19].mxu0  ;;  %v2409_v60 = vmul.f32 %v14944_v62, %v14944_v62 }
 0x371   :  { %17350 = vst [vmem:[#allocation31_spill] sm:$0xff] %v14949_v4  ;;  %v2437_v22 = vadd.f32 %v2436_v43, %v2406_v42  ;;  %v2368_v25 = vadd.f32 %v2367_v30, %v14951_v23  ;;  %v2407_v33 = vmul.f32 %v14951_v23, %v14951_v23  ;;  %v14956_v17 = vpop.f32.mrb[19].mxu1  ;;  %v4686_v30 = vmul.f32 %v14949_v4, %v14949_v4 }
 0x372   :  { %17351 = vst [vmem:[#allocation32_spill] sm:$0xff] %v14956_v17  ;;  %v4714_v18 = vadd.f32 %v4713_v0, %v4683_v58  ;;  %v4645_v38 = vadd.f32 %v4644_v2, %v14956_v17  ;;  %v4684_v39 = vmul.f32 %v14956_v17, %v14956_v17 }
 0x373   :  { %v2369_v57 = vadd.f32 %v14928_v46, %v2368_v25  ;;  %v2438_v59 = vadd.f32 %v2437_v22, %v2407_v33 }
 0x374   :  { %v4646_v10 = vadd.f32 %v14933_v54, %v4645_v38  ;;  %v4715_v45 = vadd.f32 %v4714_v18, %v4684_v39 }
 0x375   :  { %v2439_v61 = vadd.f32 %v2438_v59, %v2408_v55  ;;  %v14969_v51 = vpop.f32.mrb[20].mxu0  ;;  %v2370_v27 = vadd.f32 %v14944_v62, %v2369_v57 }
 0x376   :  { %v4716_v42 = vadd.f32 %v4715_v45, %v4685_v8  ;;  %v14974_v43 = vpop.f32.mrb[20].mxu1  ;;  %v14976_v2 = vpop.f32.mrb[21].mxu0  ;;  %v4647_v58 = vadd.f32 %v14949_v4, %v4646_v10 }
 0x377   :  { %17352 = vst [vmem:[#allocation33_spill] sm:$0xff] %v14974_v43  ;;  %v2371_v0 = vadd.f32 %v2370_v27, %v14976_v2  ;;  %v2410_v22 = vmul.f32 %v14976_v2, %v14976_v2  ;;  %v2440_v25 = vadd.f32 %v2439_v61, %v2409_v60  ;;  %v14982_v33 = vpop.f32.mrb[21].mxu1  ;;  %v14984_v18 = vpop.f32.mrb[22].mxu0 }
 0x378   :  { %17353 = vst [vmem:[#allocation34_spill] sm:$0xff] %v14982_v33  ;;  %v4648_v38 = vadd.f32 %v4647_v58, %v14982_v33  ;;  %v4687_v39 = vmul.f32 %v14982_v33, %v14982_v33  ;;  %v4717_v55 = vadd.f32 %v4716_v42, %v4686_v30  ;;  %v14989_v57 = vpop.f32.mrb[22].mxu1  ;;  %v14991_v59 = vpop.f32.mrb[23].mxu0  ;;  %v2412_v30 = vmul.f32 %v14969_v51, %v14969_v51 }
 0x379   :  { %17354 = vst [vmem:[#allocation35_spill] sm:$0xff] %v14989_v57  ;;  %v2441_v8 = vadd.f32 %v2440_v25, %v2410_v22  ;;  %v2372_v10 = vadd.f32 %v2371_v0, %v14991_v59  ;;  %v2411_v45 = vmul.f32 %v14991_v59, %v14991_v59  ;;  %v14996_v60 = vpop.f32.mrb[23].mxu1  ;;  %v4689_v0 = vmul.f32 %v14974_v43, %v14974_v43 }
 0x37a   :  { %17355 = vst [vmem:[#allocation36_spill] sm:$0xff] %v14996_v60  ;;  %v4718_v61 = vadd.f32 %v4717_v55, %v4687_v39  ;;  %v4649_v27 = vadd.f32 %v4648_v38, %v14996_v60  ;;  %v4688_v58 = vmul.f32 %v14996_v60, %v14996_v60  ;;  %v2413_v39 = vmul.f32 %v14984_v18, %v14984_v18 }
 0x37b   :  { %v2373_v42 = vadd.f32 %v14969_v51, %v2372_v10  ;;  %v2442_v9 = vadd.f32 %v2441_v8, %v2411_v45  ;;  %v4690_v60 = vmul.f32 %v14989_v57, %v14989_v57 }
 0x37c   :  { %v4650_v22 = vadd.f32 %v14974_v43, %v4649_v27  ;;  %v4719_v25 = vadd.f32 %v4718_v61, %v4688_v58 }
 0x37d   :  { %v2443_v55 = vadd.f32 %v2442_v9, %v2412_v30  ;;  %v15009_v38 = vpop.f32.mrb[24].mxu0  ;;  %v2374_v20 = vadd.f32 %v14984_v18, %v2373_v42 }
 0x37e   :  { %v4720_v33 = vadd.f32 %v4719_v25, %v4689_v0  ;;  %v15014_v10 = vpop.f32.mrb[24].mxu1  ;;  %v15016_v8 = vpop.f32.mrb[25].mxu0  ;;  %v4651_v45 = vadd.f32 %v14989_v57, %v4650_v22 }
 0x37f   :  { %17356 = vst [vmem:[#allocation37_spill] sm:$0xff] %v15014_v10  ;;  %v2375_v61 = vadd.f32 %v2374_v20, %v15016_v8  ;;  %v2414_v27 = vmul.f32 %v15016_v8, %v15016_v8  ;;  %v2444_v9 = vadd.f32 %v2443_v55, %v2413_v39  ;;  %v15022_v58 = vpop.f32.mrb[25].mxu1  ;;  %v15024_v30 = vpop.f32.mrb[26].mxu0 }
 0x380   :  { %17357 = vst [vmem:[#allocation38_spill] sm:$0xff] %v15022_v58  ;;  %v4652_v42 = vadd.f32 %v4651_v45, %v15022_v58  ;;  %v4691_v0 = vmul.f32 %v15022_v58, %v15022_v58  ;;  %v4721_v25 = vadd.f32 %v4720_v33, %v4690_v60  ;;  %v15029_v43 = vpop.f32.mrb[26].mxu1  ;;  %v15031_v4 = vpop.f32.mrb[27].mxu0  ;;  %v2416_v33 = vmul.f32 %v15009_v38, %v15009_v38 }
 0x381   :  { %17358 = vst [vmem:[#allocation39_spill] sm:$0xff] %v15029_v43  ;;  %v2445_v22 = vadd.f32 %v2444_v9, %v2414_v27  ;;  %v2376_v20 = vadd.f32 %v2375_v61, %v15031_v4  ;;  %v2415_v39 = vmul.f32 %v15031_v4, %v15031_v4  ;;  %v15036_v55 = vpop.f32.mrb[27].mxu1  ;;  %v4693_v61 = vmul.f32 %v15014_v10, %v15014_v10 }
 0x382   :  { %17359 = vst [vmem:[#allocation40_spill] sm:$0xff] %v15036_v55  ;;  %v4722_v57 = vadd.f32 %v4721_v25, %v4691_v0  ;;  %v4653_v54 = vadd.f32 %v4652_v42, %v15036_v55  ;;  %v4692_v45 = vmul.f32 %v15036_v55, %v15036_v55  ;;  %v2417_v0 = vmul.f32 %v15024_v30, %v15024_v30 }
 0x383   :  { %v2377_v60 = vadd.f32 %v15009_v38, %v2376_v20  ;;  %v2446_v58 = vadd.f32 %v2445_v22, %v2415_v39  ;;  %v4694_v17 = vmul.f32 %v15029_v43, %v15029_v43 }
 0x384   :  { %v4654_v27 = vadd.f32 %v15014_v10, %v4653_v54  ;;  %v4723_v9 = vadd.f32 %v4722_v57, %v4692_v45 }
 0x385   :  { %v2447_v25 = vadd.f32 %v2446_v58, %v2416_v33  ;;  %v15049_v42 = vpop.f32.mrb[28].mxu0  ;;  %v2378_v55 = vadd.f32 %v15024_v30, %v2377_v60 }
 0x386   :  { %v4724_v44 = vadd.f32 %v4723_v9, %v4693_v61  ;;  %v15054_v20 = vpop.f32.mrb[28].mxu1  ;;  %v15056_v22 = vpop.f32.mrb[29].mxu0  ;;  %v4655_v39 = vadd.f32 %v15029_v43, %v4654_v27 }
 0x387   :  { %17360 = vst [vmem:[#allocation41_spill] sm:$0xff] %v15054_v20  ;;  %v2379_v54 = vadd.f32 %v2378_v55, %v15056_v22  ;;  %v2418_v57 = vmul.f32 %v15056_v22, %v15056_v22  ;;  %v2448_v58 = vadd.f32 %v2447_v25, %v2417_v0  ;;  %v15062_v45 = vpop.f32.mrb[29].mxu1  ;;  %v15064_v33 = vpop.f32.mrb[30].mxu0 }
 0x388   :  { %17361 = vst [vmem:[#allocation42_spill] sm:$0xff] %v15062_v45  ;;  %v4656_v60 = vadd.f32 %v4655_v39, %v15062_v45  ;;  %v4695_v61 = vmul.f32 %v15062_v45, %v15062_v45  ;;  %v4725_v9 = vadd.f32 %v4724_v44, %v4694_v17  ;;  %v15069_v10 = vpop.f32.mrb[30].mxu1  ;;  %v15071_v29 = vpop.f32.mrb[31].mxu0  ;;  %v2420_v39 = vmul.f32 %v15049_v42, %v15049_v42 }
 0x389   :  { %v2449_v27 = vadd.f32 %v2448_v58, %v2418_v57  ;;  %v2380_v55 = vadd.f32 %v2379_v54, %v15071_v29  ;;  %v2419_v0 = vmul.f32 %v15071_v29, %v15071_v29  ;;  %v4552_v25 = vpop.f32.mrb[31].mxu1  ;;  %v4697_v17 = vmul.f32 %v15054_v20, %v15054_v20 }
 0x38a   :  { %v4726_v43 = vadd.f32 %v4725_v9, %v4695_v61  ;;  %v4657_v34 = vadd.f32 %v4656_v60, %v4552_v25  ;;  %v4696_v24 = vmul.f32 %v4552_v25, %v4552_v25  ;;  %v2421_v54 = vmul.f32 %v15064_v33, %v15064_v33 }
 0x38b   :  { %v2381_v45 = vadd.f32 %v15049_v42, %v2380_v55  ;;  %v2450_v44 = vadd.f32 %v2449_v27, %v2419_v0  ;;  %v4698_v60 = vmul.f32 %v15069_v10, %v15069_v10 }
 0x38c   :  { %v4658_v57 = vadd.f32 %v15054_v20, %v4657_v34  ;;  %v4727_v58 = vadd.f32 %v4726_v43, %v4696_v24 }
 0x38d   :  { %v2382_v63 = vadd.f32 %v15064_v33, %v2381_v45  ;;  %v2451_v61 = vadd.f32 %v2450_v44, %v2420_v39 }
 0x38e   :  { %v4659_v9 = vadd.f32 %v15069_v10, %v4658_v57  ;;  %v4728_v35 = vadd.f32 %v4727_v58, %v4697_v17 }
 0x38f   :  { %v2383_v55 = vrot.slane %v2382_v63, 4  ;;  %v2452_v27 = vadd.f32 %v2451_v61, %v2421_v54 }
 0x390   :  { %v4660_v0 = vrot.slane %v4659_v9, 4  ;;  %v4729_v28 = vadd.f32 %v4728_v35, %v4698_v60 }
 0x391   :  { %v2384_v56 = vadd.f32 %v2383_v55, %v2382_v63  ;;  %v2453_v5 = vrot.slane %v2452_v27, 4 }
 0x392   :  { %v4661_v34 = vadd.f32 %v4660_v0, %v4659_v9  ;;  %v4730_v24 = vrot.slane %v4729_v28, 4 }
 0x393   :  { %v2385_v43 = vrot.slane %v2384_v56, 2  ;;  %v2454_v20 = vadd.f32 %v2453_v5, %v2452_v27 }
 0x394   :  { %v4662_v12 = vrot.slane %v4661_v34, 2  ;;  %v4731_v37 = vadd.f32 %v4730_v24, %v4729_v28 }
 0x395   :  { %v2386_v45 = vadd.f32 %v2385_v43, %v2384_v56  ;;  %v2455_v39 = vrot.slane %v2454_v20, 2 }
 0x396   :  { %v4663_v44 = vadd.f32 %v4662_v12, %v4661_v34  ;;  %v4732_v32 = vrot.slane %v4731_v37, 2  ;;  %v4782_v12 = vlaneseq }
 0x397   :  { %v2387_v48 = vrot.slane %v2386_v45, 1  ;;  %v2456_v16 = vadd.f32 %v2455_v39, %v2454_v20  ;;  %v4746_v20 = vld [vmem:[%s17268_s3] sm:$0x1] }
 0x398   :  { %v4664_v57 = vrot.slane %v4663_v44, 1  ;;  %v4733_v17 = vadd.f32 %v4732_v32, %v4731_v37  ;;  %v4783_v34 = vshrl.u32 %v4782_v12, 7  ;;  %v4742_v37 = vld [vmem:[%s17267_s2] sm:$0x1]  ;;  %v17370_v12 = vld [vmem:[#allocation19_spill] sm:$0xff] }
 0x399   :  { %v2388_v58 = vadd.f32 %v2387_v48, %v2386_v45  ;;  %v2457_v54 = vrot.slane %v2456_v16, 1 }
 0x39a   :  { %v4665_v61 = vadd.f32 %v4664_v57, %v4663_v44  ;;  %v4734_v35 = vrot.slane %v4733_v17, 1  ;;  %v15091_v48 = vsub.s32 0, %v4783_v34 }
 0x39b   :  { %v2458_v63 = vadd.f32 %v2457_v54, %v2456_v16 }
 0x39c   :  { %v4666_v60 = vadd.f32 %v4665_v61, %v2388_v58  ;;  %v4735_v9 = vadd.f32 %v4734_v35, %v4733_v17  ;;  %17362 = vst [vmem:[#allocation43_spill] sm:$0xff] %v15091_v48 }
 0x39e   :  { %v4736_v55 = vadd.f32 %v4735_v9, %v2458_v63  ;;  %v4737_v0 = vmul.f32 0.001953125, %v4666_v60  ;;  %v17363_v60 = vld [vmem:[#allocation14_spill] sm:$0xff]  ;;  %v17364_v9 = vld [vmem:[#allocation16_spill] sm:$0xff] }
 0x3a0   :  { %v4738_v5 = vmul.f32 0.001953125, %v4736_v55  ;;  %v4739_v27 = vmul.f32 %v4737_v0, %v4737_v0  ;;  %v17365_v55 = vld [vmem:[#allocation18_spill] sm:$0xff] }
 0x3a2   :  { %v4740_v28 = vsub.f32 %v4738_v5, %v4739_v27  ;;  %v17367_v5 = vld [vmem:[#allocation17_spill] sm:$0xff]  ;;  %v17368_v27 = vld [vmem:[#allocation20_spill] sm:$0xff] }
 0x3a4   :  { %v4741_v56 = vmax.f32 %v4740_v28, 0.0 }
 0x3a6   :  { %v4743_v24 = vadd.f32 1e-05, %v4741_v56  ;;  %v17369_v56 = vld [vmem:[#allocation22_spill] sm:$0xff] }
 0x3a8   :  { %13515 = vrsqrt.f32 %v4743_v24 }
 0x3b2   :  { %v13516_v32 = vpop.eup %13515 }
 0x3b3   :  { %v4745_v16 = vmul.f32 %v13516_v32, %v4742_v37  ;;  %v17371_v37 = vld [vmem:[#allocation21_spill] sm:$0xff] }
 0x3b5   :  { %v4747_v43 = vmul.f32 %v4745_v16, %v4737_v0  ;;  %v15097_v45 = vrot.slane %v4745_v16, %v15091_v48  ;;  %v17366_v0 = vld [vmem:[#allocation15_spill] sm:$0xff]  ;;  %v17372_v16 = vld [vmem:[#allocation24_spill] sm:$0xff] }
 0x3b7   :  { %v4748_v39 = vsub.f32 %v4746_v20, %v4747_v43  ;;  %v7199_v44 = vmul.f32 %v15097_v45, %v4552_v25  ;;  %v15102_v57 = vmul.f32 %v15097_v45, %v14771_v52  ;;  %v15106_v17 = vmul.f32 %v15097_v45, %v14779_v19  ;;  %v17373_v43 = vld [vmem:[#allocation26_spill] sm:$0xff] }
 0x3b8   :  { %v15110_v58 = vmul.f32 %v14767_v47, %v15097_v45  ;;  %v15114_v54 = vmul.f32 %v14775_v13, %v15097_v45  ;;  %v15118_v61 = vmul.f32 %v15097_v45, %v14810_v41  ;;  %v15122_v52 = vmul.f32 %v15097_v45, %v14825_v14 }
 0x3b9   :  { %v15125_v25 = vrot.slane %v4748_v39, %v15091_v48  ;;  %v15129_v19 = vmul.f32 %v14803_v7, %v15097_v45  ;;  %v15133_v47 = vmul.f32 %v14818_v50, %v15097_v45  ;;  %v15137_v13 = vmul.f32 %v15097_v45, %v14850_v21  ;;  %v17389_v48 = vld [vmem:[#allocation35_spill] sm:$0xff] }
 0x3ba   :  { %v15141_v41 = vmul.f32 %v15097_v45, %v14865_v36  ;;  %v15145_v14 = vmul.f32 %v14843_v31, %v15097_v45  ;;  %v15149_v7 = vmul.f32 %v14858_v6, %v15097_v45  ;;  %v15153_v50 = vmul.f32 %v15097_v45, %v14890_v40 }
 0x3bb   :  { %v7231_v35 = vadd.f32 %v7199_v44, %v15125_v25  ;;  %v15158_v21 = vmul.f32 %v15097_v45, %v14905_v3  ;;  %v15162_v36 = vmul.f32 %v14883_v11, %v15097_v45  ;;  %v15166_v31 = vmul.f32 %v14898_v1, %v15097_v45  ;;  %v17374_v44 = vld [vmem:[#allocation23_spill] sm:$0xff] }
 0x3bc   :  { %v15170_v6 = vmul.f32 %v15097_v45, %v14935_v15  ;;  %v15174_v40 = vmul.f32 %v15097_v45, %v14951_v23  ;;  %v15178_v3 = vmul.f32 %v14928_v46, %v15097_v45  ;;  %v15182_v11 = vmul.f32 %v14944_v62, %v15097_v45 }
 0x3bd   :  { %v7263_v63 = vmax.f32 %v7231_v35, 0.0  ;;  %v15186_v1 = vmul.f32 %v15097_v45, %v14976_v2  ;;  %v15190_v15 = vmul.f32 %v15097_v45, %v14991_v59  ;;  %v15194_v23 = vmul.f32 %v14969_v51, %v15097_v45 }
 0x3be   :  { %v15198_v46 = vmul.f32 %v14984_v18, %v15097_v45  ;;  %v15202_v62 = vmul.f32 %v15097_v45, %v15016_v8  ;;  %v15206_v2 = vmul.f32 %v15097_v45, %v15031_v4  ;;  %v15210_v59 = vmul.f32 %v15009_v38, %v15097_v45 }
 0x3bf   :  { %7295 = vst.msk [vmem:[#allocation2 + $0x321] sm:$0xff] %vm69_vm0, %v7263_v63  ;;  %v15215_v51 = vmul.f32 %v15024_v30, %v15097_v45  ;;  %v15219_v18 = vmul.f32 %v15097_v45, %v15056_v22  ;;  %v15223_v8 = vmul.f32 %v15097_v45, %v15071_v29  ;;  %v15227_v4 = vmul.f32 %v15049_v42, %v15097_v45  ;;  %v17375_v63 = vld [vmem:[#allocation25_spill] sm:$0xff] }
 0x3c0   :  { %v15231_v38 = vmul.f32 %v15064_v33, %v15097_v45  ;;  %v15235_v30 = vmul.f32 %v15097_v45, %v14773_v53  ;;  %v15239_v22 = vmul.f32 %v15097_v45, %v14787_v26  ;;  %v15243_v29 = vmul.f32 %v14769_v49, %v15097_v45 }
 0x3c1   :  { %v15247_v42 = vmul.f32 %v17363_v60, %v15097_v45  ;;  %v15251_v33 = vmul.f32 %v15097_v45, %v17364_v9  ;;  %v15255_v53 = vmul.f32 %v15097_v45, %v17365_v55  ;;  %v15259_v26 = vmul.f32 %v17366_v0, %v15097_v45  ;;  %v17376_v9 = vld [vmem:[#allocation30_spill] sm:$0xff]  ;;  %v17377_v0 = vld [vmem:[#allocation32_spill] sm:$0xff] }
 0x3c2   :  { %v15263_v49 = vmul.f32 %v17367_v5, %v15097_v45  ;;  %v15267_v28 = vmul.f32 %v15097_v45, %v17368_v27  ;;  %v15271_v24 = vmul.f32 %v15097_v45, %v17369_v56  ;;  %v15275_v34 = vmul.f32 %v17370_v12, %v15097_v45  ;;  %v17379_v27 = vld [vmem:[#allocation29_spill] sm:$0xff]  ;;  %v17381_v12 = vld [vmem:[#allocation31_spill] sm:$0xff] }
 0x3c3   :  { %v15279_v32 = vmul.f32 %v17371_v37, %v15097_v45  ;;  %v15283_v20 = vmul.f32 %v15097_v45, %v17372_v16  ;;  %v15287_v39 = vmul.f32 %v15097_v45, %v17373_v43  ;;  %v15291_v35 = vmul.f32 %v17374_v44, %v15097_v45  ;;  %v17383_v16 = vld [vmem:[#allocation34_spill] sm:$0xff]  ;;  %v17385_v44 = vld [vmem:[#allocation36_spill] sm:$0xff] }
 0x3c4   :  { %v15295_v60 = vmul.f32 %v17375_v63, %v15097_v45  ;;  %v15299_v55 = vmul.f32 %v15097_v45, %v17376_v9  ;;  %v15303_v5 = vmul.f32 %v15097_v45, %v17377_v0  ;;  %v15307_v56 = vmul.f32 %v17379_v27, %v15097_v45  ;;  %v17387_v9 = vld [vmem:[#allocation33_spill] sm:$0xff] }
 0x3c5   :  { %v15311_v37 = vmul.f32 %v17381_v12, %v15097_v45  ;;  %v15315_v43 = vmul.f32 %v15097_v45, %v17383_v16  ;;  %v15319_v63 = vmul.f32 %v15097_v45, %v17385_v44  ;;  %v15323_v0 = vmul.f32 %v17387_v9, %v15097_v45 }
 0x3c6   :  { %17378 = vst [vmem:[#allocation14_spill] sm:$0xff] %v15303_v5  ;;  %17380 = vst [vmem:[#allocation16_spill] sm:$0xff] %v15307_v56  ;;  %v15327_v27 = vmul.f32 %v17389_v48, %v15097_v45  ;;  %v17391_v56 = vld [vmem:[#allocation38_spill] sm:$0xff] }
 0x3c7   :  { %17382 = vst [vmem:[#allocation18_spill] sm:$0xff] %v15311_v37  ;;  %17384 = vst [vmem:[#allocation15_spill] sm:$0xff] %v15315_v43  ;;  %v15331_v12 = vmul.f32 %v15097_v45, %v17391_v56  ;;  %v17393_v37 = vld [vmem:[#allocation40_spill] sm:$0xff]  ;;  %v17395_v43 = vld [vmem:[#allocation37_spill] sm:$0xff] }
 0x3c8   :  { %17386 = vst [vmem:[#allocation17_spill] sm:$0xff] %v15319_v63  ;;  %17388 = vst [vmem:[#allocation20_spill] sm:$0xff] %v15323_v0  ;;  %v15335_v16 = vmul.f32 %v15097_v45, %v17393_v37  ;;  %v15339_v44 = vmul.f32 %v17395_v43, %v15097_v45  ;;  %v17397_v63 = vld [vmem:[#allocation39_spill] sm:$0xff]  ;;  %v17399_v0 = vld [vmem:[#allocation42_spill] sm:$0xff]  ;;  %v15355_v37 = vmul.f32 %v15069_v10, %v15097_v45 }
 0x3c9   :  { %17390 = vst [vmem:[#allocation22_spill] sm:$0xff] %v15327_v27  ;;  %17392 = vst [vmem:[#allocation19_spill] sm:$0xff] %v15331_v12  ;;  %v15343_v9 = vmul.f32 %v17397_v63, %v15097_v45  ;;  %v15347_v48 = vmul.f32 %v15097_v45, %v17399_v0  ;;  %v17401_v27 = vld [vmem:[#allocation41_spill] sm:$0xff]  ;;  %v4825_v43 = vadd.f32 %v15125_v25, %v15102_v57 }
 0x3ca   :  { %17394 = vst [vmem:[#allocation21_spill] sm:$0xff] %v15335_v16  ;;  %17396 = vst [vmem:[#allocation24_spill] sm:$0xff] %v15339_v44  ;;  %v15351_v56 = vmul.f32 %v17401_v27, %v15097_v45  ;;  %v4826_v44 = vadd.f32 %v15125_v25, %v15106_v17  ;;  %v4827_v63 = vadd.f32 %v15125_v25, %v15110_v58 }
 0x3cb   :  { %17398 = vst [vmem:[#allocation26_spill] sm:$0xff] %v15343_v9  ;;  %17400 = vst [vmem:[#allocation23_spill] sm:$0xff] %v15347_v48  ;;  %v4828_v0 = vadd.f32 %v15125_v25, %v15114_v54  ;;  %v4829_v27 = vadd.f32 %v15125_v25, %v15118_v61  ;;  %v4831_v10 = vadd.f32 %v15125_v25, %v15129_v19 }
 0x3cc   :  { %17402 = vst [vmem:[#allocation25_spill] sm:$0xff] %v15351_v56  ;;  %17403 = vst [vmem:[#allocation30_spill] sm:$0xff] %v15355_v37  ;;  %v4830_v56 = vadd.f32 %v15125_v25, %v15122_v52  ;;  %v4832_v45 = vadd.f32 %v15125_v25, %v15133_v47  ;;  %v4833_v57 = vadd.f32 %v15125_v25, %v15137_v13 }
 0x3cd   :  { %v4834_v17 = vadd.f32 %v15125_v25, %v15141_v41  ;;  %v4835_v58 = vadd.f32 %v15125_v25, %v15145_v14  ;;  %v4836_v54 = vadd.f32 %v15125_v25, %v15149_v7  ;;  %v4837_v61 = vadd.f32 %v15125_v25, %v15153_v50 }
 0x3ce   :  { %v4838_v52 = vadd.f32 %v15125_v25, %v15158_v21  ;;  %v4839_v19 = vadd.f32 %v15125_v25, %v15162_v36  ;;  %v4840_v47 = vadd.f32 %v15125_v25, %v15166_v31  ;;  %v4841_v13 = vadd.f32 %v15125_v25, %v15170_v6 }
 0x3cf   :  { %v4842_v41 = vadd.f32 %v15125_v25, %v15174_v40  ;;  %v4843_v14 = vadd.f32 %v15125_v25, %v15178_v3  ;;  %v4844_v7 = vadd.f32 %v15125_v25, %v15182_v11  ;;  %v15399_v50 = vadd.f32 %v15125_v25, %v15186_v1 }
 0x3d0   :  { %v15403_v21 = vadd.f32 %v15125_v25, %v15190_v15  ;;  %v15407_v36 = vadd.f32 %v15125_v25, %v15194_v23  ;;  %v15411_v31 = vadd.f32 %v15125_v25, %v15198_v46  ;;  %v15415_v6 = vadd.f32 %v15125_v25, %v15202_v62 }
 0x3d1   :  { %v15419_v40 = vadd.f32 %v15125_v25, %v15206_v2  ;;  %v15423_v3 = vadd.f32 %v15125_v25, %v15210_v59  ;;  %v15427_v11 = vadd.f32 %v15125_v25, %v15215_v51  ;;  %v15431_v1 = vadd.f32 %v15125_v25, %v15219_v18 }
 0x3d2   :  { %v15435_v15 = vadd.f32 %v15125_v25, %v15223_v8  ;;  %v15439_v23 = vadd.f32 %v15125_v25, %v15227_v4  ;;  %v15443_v46 = vadd.f32 %v15125_v25, %v15231_v38  ;;  %v4857_v62 = vmax.f32 %v4825_v43, 0.0 }
 0x3d3   :  { %v4858_v2 = vmax.f32 %v4826_v44, 0.0  ;;  %v4859_v59 = vmax.f32 %v4827_v63, 0.0  ;;  %v4860_v51 = vmax.f32 %v4828_v0, 0.0  ;;  %v4861_v37 = vmax.f32 %v4829_v27, 0.0 }
 0x3d4   :  { %v4862_v48 = vmax.f32 %v4830_v56, 0.0  ;;  %v4863_v18 = vmax.f32 %v4831_v10, 0.0  ;;  %v4864_v9 = vmax.f32 %v4832_v45, 0.0  ;;  %v4865_v16 = vmax.f32 %v4833_v57, 0.0  ;;  %4889 = vst.msk [vmem:[#allocation2 + $0x19] sm:$0xff] %vm69_vm0, %v4857_v62  ;;  %v17414_v62 = vld [vmem:[#allocation26_spill] sm:$0xff] }
 0x3d5   :  { %v4866_v12 = vmax.f32 %v4834_v17, 0.0  ;;  %v4867_v8 = vmax.f32 %v4835_v58, 0.0  ;;  %v4868_v5 = vmax.f32 %v4836_v54, 0.0  ;;  %4890 = vst.msk [vmem:[#allocation2 + $0x21] sm:$0xff] %vm69_vm0, %v4858_v2  ;;  %4891 = vst.msk [vmem:[#allocation2 + $0x31] sm:$0xff] %vm69_vm0, %v4859_v59  ;;  %v4869_v4 = vmax.f32 %v4837_v61, 0.0 }
 0x3d6   :  { %4892 = vst.msk [vmem:[#allocation2 + $0x39] sm:$0xff] %vm69_vm0, %v4860_v51  ;;  %v4870_v38 = vmax.f32 %v4838_v52, 0.0  ;;  %v4871_v44 = vmax.f32 %v4839_v19, 0.0  ;;  %v4872_v43 = vmax.f32 %v4840_v47, 0.0  ;;  %4893 = vst.msk [vmem:[#allocation2 + $0x49] sm:$0xff] %vm69_vm0, %v4861_v37  ;;  %v4873_v56 = vmax.f32 %v4841_v13, 0.0 }
 0x3d7   :  { %4894 = vst.msk [vmem:[#allocation2 + $0x51] sm:$0xff] %vm69_vm0, %v4862_v48  ;;  %4895 = vst.msk [vmem:[#allocation2 + $0x61] sm:$0xff] %vm69_vm0, %v4863_v18  ;;  %v4874_v63 = vmax.f32 %v4842_v41, 0.0  ;;  %v4875_v0 = vmax.f32 %v4843_v14, 0.0  ;;  %v4876_v27 = vmax.f32 %v4844_v7, 0.0  ;;  %v4877_v37 = vmax.f32 %v15399_v50, 0.0 }
 0x3d8   :  { %4896 = vst.msk [vmem:[#allocation2 + $0x69] sm:$0xff] %vm69_vm0, %v4864_v9  ;;  %4897 = vst.msk [vmem:[#allocation2 + $0x79] sm:$0xff] %vm69_vm0, %v4865_v16  ;;  %v4878_v48 = vmax.f32 %v15403_v21, 0.0  ;;  %v4879_v10 = vmax.f32 %v15407_v36, 0.0  ;;  %v4880_v9 = vmax.f32 %v15411_v31, 0.0  ;;  %v4883_v16 = vmax.f32 %v15423_v3, 0.0 }
 0x3d9   :  { %4898 = vst.msk [vmem:[#allocation2 + $0x81] sm:$0xff] %vm69_vm0, %v4866_v12  ;;  %4899 = vst.msk [vmem:[#allocation2 + $0x91] sm:$0xff] %vm69_vm0, %v4867_v8  ;;  %v4881_v12 = vmax.f32 %v15415_v6, 0.0  ;;  %v4884_v45 = vmax.f32 %v15427_v11, 0.0  ;;  %v4885_v57 = vmax.f32 %v15431_v1, 0.0  ;;  %v4886_v17 = vmax.f32 %v15435_v15, 0.0 }
 0x3da   :  { %4900 = vst.msk [vmem:[#allocation2 + $0x99] sm:$0xff] %vm69_vm0, %v4868_v5  ;;  %4901 = vst.msk [vmem:[#allocation2 + $0xa9] sm:$0xff] %vm69_vm0, %v4869_v4  ;;  %v4882_v5 = vmax.f32 %v15419_v40, 0.0  ;;  %v4887_v58 = vmax.f32 %v15439_v23, 0.0  ;;  %v4888_v54 = vmax.f32 %v15443_v46, 0.0  ;;  %v7202_v61 = vadd.f32 %v15235_v30, %v15125_v25  ;;  %v17410_v6 = vld [vmem:[#allocation22_spill] sm:$0xff] }
 0x3db   :  { %4902 = vst.msk [vmem:[#allocation2 + $0xb1] sm:$0xff] %vm69_vm0, %v4870_v38  ;;  %4903 = vst.msk [vmem:[#allocation2 + $0xc1] sm:$0xff] %vm69_vm0, %v4871_v44  ;;  %v7203_v52 = vadd.f32 %v15239_v22, %v15125_v25  ;;  %v7204_v19 = vadd.f32 %v15243_v29, %v15125_v25  ;;  %v7205_v47 = vadd.f32 %v15247_v42, %v15125_v25  ;;  %v17411_v3 = vld [vmem:[#allocation19_spill] sm:$0xff]  ;;  %v17412_v1 = vld [vmem:[#allocation21_spill] sm:$0xff] }
 0x3dc   :  { %4904 = vst.msk [vmem:[#allocation2 + $0xc9] sm:$0xff] %vm69_vm0, %v4872_v43  ;;  %4905 = vst.msk [vmem:[#allocation2 + $0xd9] sm:$0xff] %vm69_vm0, %v4873_v56  ;;  %v7206_v30 = vadd.f32 %v15251_v33, %v15125_v25  ;;  %v7207_v22 = vadd.f32 %v15255_v53, %v15125_v25  ;;  %v7208_v29 = vadd.f32 %v15259_v26, %v15125_v25  ;;  %v17413_v23 = vld [vmem:[#allocation24_spill] sm:$0xff]  ;;  %v17415_v59 = vld [vmem:[#allocation23_spill] sm:$0xff]  ;;  %v7234_v44 = vmax.f32 %v7202_v61, 0.0 }
 0x3dd   :  { %4906 = vst.msk [vmem:[#allocation2 + $0xe1] sm:$0xff] %vm69_vm0, %v4874_v63  ;;  %4907 = vst.msk [vmem:[#allocation2 + $0xf1] sm:$0xff] %vm69_vm0, %v4875_v0  ;;  %v7209_v42 = vadd.f32 %v15263_v49, %v15125_v25  ;;  %v7210_v13 = vadd.f32 %v15267_v28, %v15125_v25  ;;  %v7211_v41 = vadd.f32 %v15271_v24, %v15125_v25  ;;  %v17416_v18 = vld [vmem:[#allocation25_spill] sm:$0xff]  ;;  %v17417_v4 = vld [vmem:[#allocation30_spill] sm:$0xff]  ;;  %v7235_v43 = vmax.f32 %v7203_v52, 0.0 }
 0x3de   :  { %4908 = vst.msk [vmem:[#allocation2 + $0xf9] sm:$0xff] %vm69_vm0, %v4876_v27  ;;  %4909 = vst.msk [vmem:[#allocation2 + $0x109] sm:$0xff] %vm69_vm0, %v4877_v37  ;;  %v7212_v14 = vadd.f32 %v15275_v34, %v15125_v25  ;;  %v7213_v33 = vadd.f32 %v15279_v32, %v15125_v25  ;;  %v7214_v53 = vadd.f32 %v15283_v20, %v15125_v25  ;;  %v17404_v34 = vld [vmem:[#allocation14_spill] sm:$0xff]  ;;  %v17405_v32 = vld [vmem:[#allocation16_spill] sm:$0xff]  ;;  %v7236_v56 = vmax.f32 %v7204_v19, 0.0 }
 0x3df   :  { %4910 = vst.msk [vmem:[#allocation2 + $0x111] sm:$0xff] %vm69_vm0, %v4878_v48  ;;  %4911 = vst.msk [vmem:[#allocation2 + $0x121] sm:$0xff] %vm69_vm0, %v4879_v10  ;;  %v7215_v26 = vadd.f32 %v15287_v39, %v15125_v25  ;;  %v7216_v49 = vadd.f32 %v15291_v35, %v15125_v25  ;;  %v7217_v28 = vadd.f32 %v15295_v60, %v15125_v25  ;;  %v17406_v20 = vld [vmem:[#allocation18_spill] sm:$0xff]  ;;  %v17407_v35 = vld [vmem:[#allocation15_spill] sm:$0xff]  ;;  %v7237_v63 = vmax.f32 %v7205_v47, 0.0 }
 0x3e0   :  { %4912 = vst.msk [vmem:[#allocation2 + $0x129] sm:$0xff] %vm69_vm0, %v4880_v9  ;;  %4913 = vst.msk [vmem:[#allocation2 + $0x139] sm:$0xff] %vm69_vm0, %v4881_v12  ;;  %v7218_v24 = vadd.f32 %v15299_v55, %v15125_v25  ;;  %v15525_v7 = vadd.f32 %v17404_v34, %v15125_v25  ;;  %v15529_v50 = vadd.f32 %v17405_v32, %v15125_v25  ;;  %v17408_v60 = vld [vmem:[#allocation17_spill] sm:$0xff]  ;;  %v17409_v55 = vld [vmem:[#allocation20_spill] sm:$0xff]  ;;  %v7238_v0 = vmax.f32 %v7206_v30, 0.0 }
 0x3e1   :  { %4914 = vst.msk [vmem:[#allocation2 + $0x141] sm:$0xff] %vm69_vm0, %v4882_v5  ;;  %4915 = vst.msk [vmem:[#allocation2 + $0x151] sm:$0xff] %vm69_vm0, %v4883_v16  ;;  %v15533_v39 = vadd.f32 %v17406_v20, %v15125_v25  ;;  %v15537_v21 = vadd.f32 %v17407_v35, %v15125_v25  ;;  %v15541_v36 = vadd.f32 %v17408_v60, %v15125_v25  ;;  %v7239_v27 = vmax.f32 %v7207_v22, 0.0  ;;  %v4925_v30 = vld [vmem:[#allocation2 + $0x30] sm:$0xff]  ;;  %v4926_v22 = vld [vmem:[#allocation2 + $0x38] sm:$0xff] }
 0x3e2   :  { %4916 = vst.msk [vmem:[#allocation2 + $0x159] sm:$0xff] %vm69_vm0, %v4884_v45  ;;  %4917 = vst.msk [vmem:[#allocation2 + $0x169] sm:$0xff] %vm69_vm0, %v4885_v57  ;;  %v15545_v31 = vadd.f32 %v17409_v55, %v15125_v25  ;;  %v15549_v40 = vadd.f32 %v17410_v6, %v15125_v25  ;;  %v15553_v11 = vadd.f32 %v17411_v3, %v15125_v25  ;;  %v7240_v37 = vmax.f32 %v7208_v29, 0.0  ;;  %v15626_v20 = vld [vmem:[#allocation9 + $0x30] sm:$0xff]  }
 0x3e3   :  { %4918 = vst.msk [vmem:[#allocation2 + $0x171] sm:$0xff] %vm69_vm0, %v4886_v17  ;;  %4919 = vst.msk [vmem:[#allocation2 + $0x181] sm:$0xff] %vm69_vm0, %v4887_v58  ;;  %v15557_v15 = vadd.f32 %v17412_v1, %v15125_v25  ;;  %v15561_v46 = vadd.f32 %v17413_v23, %v15125_v25  ;;  %v15565_v2 = vadd.f32 %v17414_v62, %v15125_v25  ;;  %v7241_v48 = vmax.f32 %v7209_v42, 0.0  ;;  %v4923_v58 = vld [vmem:[#allocation2 + $0x18] sm:$0xff]  ;;  %v4929_v1 = vld [vmem:[#allocation2 + $0x60] sm:$0xff] }
 0x3e4   :  { %4920 = vst.msk [vmem:[#allocation2 + $0x189] sm:$0xff] %vm69_vm0, %v4888_v54  ;;  %v15569_v51 = vadd.f32 %v17415_v59, %v15125_v25  ;;  %v15573_v8 = vadd.f32 %v17416_v18, %v15125_v25  ;;  %v15577_v38 = vadd.f32 %v17417_v4, %v15125_v25  ;;  %v7242_v10 = vmax.f32 %v7210_v13, 0.0  ;;  %7266 = vst.msk [vmem:[#allocation2 + $0x1c9] sm:$0xff] %vm69_vm0, %v7234_v44  ;;  %v4924_v54 = vld [vmem:[#allocation2 + $0x20] sm:$0xff]  ;;  %v15643_v3 = vld [vmem:[#allocation9 + $0x30] sm:$0xff]  }
 0x3e5   :  { %v7243_v9 = vmax.f32 %v7211_v41, 0.0  ;;  %v7244_v12 = vmax.f32 %v7212_v14, 0.0  ;;  %v7245_v5 = vmax.f32 %v7213_v33, 0.0  ;;  %v7246_v16 = vmax.f32 %v7214_v53, 0.0  ;;  %7267 = vst.msk [vmem:[#allocation2 + $0x1d1] sm:$0xff] %vm69_vm0, %v7235_v43  ;;  %7268 = vst.msk [vmem:[#allocation2 + $0x1e1] sm:$0xff] %vm69_vm0, %v7236_v56 }
 0x3e6   :  { %7269 = vst.msk [vmem:[#allocation2 + $0x1e9] sm:$0xff] %vm69_vm0, %v7237_v63  ;;  %7270 = vst.msk [vmem:[#allocation2 + $0x1f9] sm:$0xff] %vm69_vm0, %v7238_v0  ;;  %v7247_v25 = vmax.f32 %v7215_v26, 0.0  ;;  %v7248_v45 = vmax.f32 %v7216_v49, 0.0  ;;  %v7249_v57 = vmax.f32 %v7217_v28, 0.0  ;;  %v7250_v17 = vmax.f32 %v7218_v24, 0.0 }
 0x3e7   :  { %7271 = vst.msk [vmem:[#allocation2 + $0x201] sm:$0xff] %vm69_vm0, %v7239_v27  ;;  %7272 = vst.msk [vmem:[#allocation2 + $0x211] sm:$0xff] %vm69_vm0, %v7240_v37  ;;  %v7251_v61 = vmax.f32 %v15525_v7, 0.0  ;;  %v7252_v52 = vmax.f32 %v15529_v50, 0.0  ;;  %v7253_v19 = vmax.f32 %v15533_v39, 0.0  ;;  %v7254_v47 = vmax.f32 %v15537_v21, 0.0 }
 0x3e8   :  { %7273 = vst.msk [vmem:[#allocation2 + $0x219] sm:$0xff] %vm69_vm0, %v7241_v48  ;;  %7274 = vst.msk [vmem:[#allocation2 + $0x229] sm:$0xff] %vm69_vm0, %v7242_v10  ;;  %v7255_v29 = vmax.f32 %v15541_v36, 0.0  ;;  %v7256_v42 = vmax.f32 %v15545_v31, 0.0  ;;  %v7257_v13 = vmax.f32 %v15549_v40, 0.0  ;;  %v7258_v41 = vmax.f32 %v15553_v11, 0.0 }
 0x3e9   :  { %7275 = vst.msk [vmem:[#allocation2 + $0x231] sm:$0xff] %vm69_vm0, %v7243_v9  ;;  %7276 = vst.msk [vmem:[#allocation2 + $0x241] sm:$0xff] %vm69_vm0, %v7244_v12  ;;  %v7259_v14 = vmax.f32 %v15557_v15, 0.0  ;;  %v7260_v33 = vmax.f32 %v15561_v46, 0.0  ;;  %v7261_v53 = vmax.f32 %v15565_v2, 0.0  ;;  %v7262_v26 = vmax.f32 %v15569_v51, 0.0 }
 0x3ea   :  { %7277 = vst.msk [vmem:[#allocation2 + $0x249] sm:$0xff] %vm69_vm0, %v7245_v5  ;;  %7278 = vst.msk [vmem:[#allocation2 + $0x259] sm:$0xff] %vm69_vm0, %v7246_v16  ;;  %v4927_v49 = vld [vmem:[#allocation2 + $0x48] sm:$0xff]  ;;  %v4928_v28 = vld [vmem:[#allocation2 + $0x50] sm:$0xff]  ;;  %v7264_v24 = vmax.f32 %v15573_v8, 0.0  ;;  %v7265_v34 = vmax.f32 %v15577_v38, 0.0  ;;  %v15618_v7 = vpack.c.bf16 %v4924_v54, %v4923_v58  ;;  %v15620_v32 = vpack.c.bf16 %v4926_v22, %v4925_v30 }
 0x3eb   :  { %7279 = vst.msk [vmem:[#allocation2 + $0x261] sm:$0xff] %vm69_vm0, %v7247_v25  ;;  %7280 = vst.msk [vmem:[#allocation2 + $0x271] sm:$0xff] %vm69_vm0, %v7248_v45  ;;  %v7300_v50 = vld [vmem:[#allocation2 + $0x1c8] sm:$0xff]  ;;  %v15632_v60 = vpack.c.bf16 %v4928_v28, %v4927_v49  ;;  %v17418_v40 = vld [vmem:[#allocation27_spill] sm:$0xff] }
 0x3ec   :  { %7281 = vst.msk [vmem:[#allocation2 + $0x279] sm:$0xff] %vm69_vm0, %v7249_v57  ;;  %7282 = vst.msk [vmem:[#allocation2 + $0x289] sm:$0xff] %vm69_vm0, %v7250_v17  ;;  %11836 = vmatprep.mubr.msk.bf16.mxu0 %vm69_vm0, %v15618_v7  ;;  %v7301_v39 = vld [vmem:[#allocation2 + $0x1d0] sm:$0xff]  ;;  %v7302_v35 = vld [vmem:[#allocation2 + $0x1e0] sm:$0xff] }
 0x3ed   :  { %7283 = vst.msk [vmem:[#allocation2 + $0x291] sm:$0xff] %vm69_vm0, %v7251_v61  ;;  %7284 = vst.msk [vmem:[#allocation2 + $0x2a1] sm:$0xff] %vm69_vm0, %v7252_v52  ;;  %v7303_v21 = vld [vmem:[#allocation2 + $0x1e8] sm:$0xff]  ;;  %v15634_v36 = vpack.c.bf16 %v7301_v39, %v7300_v50  ;;  %11837 = vmatmul.mubr.msk.bf16.vlgmr.msra.gmra.mrb[32].mxu0 %vm69_vm0, %v15620_v32  ;;  %v7304_v31 = vld [vmem:[#allocation2 + $0x1f8] sm:$0xff] }
 0x3ee   :  { %7285 = vst.msk [vmem:[#allocation2 + $0x2a9] sm:$0xff] %vm69_vm0, %v7253_v19  ;;  %7286 = vst.msk [vmem:[#allocation2 + $0x2b9] sm:$0xff] %vm69_vm0, %v7254_v47  ;;  %v15638_v55 = vpack.c.bf16 %v7303_v21, %v7302_v35  ;;  %v7305_v6 = vld [vmem:[#allocation2 + $0x200] sm:$0xff]  ;;  %11869 = vmatpush3.bf16.msra.mxu0 %v17418_v40  ;;  %11840 = vmatprep.mubr.msk.bf16.mxu0 %vm69_vm0, %v15632_v60  ;;  %v4930_v15 = vld [vmem:[#allocation2 + $0x68] sm:$0xff] }
 0x3ef   :  { %7287 = vst.msk [vmem:[#allocation2 + $0x2c1] sm:$0xff] %vm69_vm0, %v7255_v29  ;;  %7288 = vst.msk [vmem:[#allocation2 + $0x2d1] sm:$0xff] %vm69_vm0, %v7256_v42  ;;  %12142 = vmatprep.mubr.msk.bf16.mxu1 %vm69_vm0, %v15634_v36  ;;  %v15647_v11 = vpack.c.bf16 %v7305_v6, %v7304_v31  ;;  %11902 = vmatprep.subr.bf16.mxu0 %v15626_v20  ;;  %v17419_v23 = vld [vmem:[#allocation28_spill] sm:$0xff]  ;;  %v4931_v46 = vld [vmem:[#allocation2 + $0x78] sm:$0xff]  ;;  %v15656_v2 = vpack.c.bf16 %v4930_v15, %v4929_v1 }
 0x3f0   :  { %7289 = vst.msk [vmem:[#allocation2 + $0x2d9] sm:$0xff] %vm69_vm0, %v7257_v13  ;;  %7290 = vst.msk [vmem:[#allocation2 + $0x2e9] sm:$0xff] %vm69_vm0, %v7258_v41  ;;  %12143 = vmatmul.mubr.msk.bf16.vlgmr.msra.gmra.mrb[32].mxu1 %vm69_vm0, %v15638_v55  ;;  %v4932_v62 = vld [vmem:[#allocation2 + $0x80] sm:$0xff]  ;;  %v7306_v59 = vld [vmem:[#allocation2 + $0x210] sm:$0xff] }
 0x3f1   :  { %7291 = vst.msk [vmem:[#allocation2 + $0x2f1] sm:$0xff] %vm69_vm0, %v7259_v14  ;;  %7292 = vst.msk [vmem:[#allocation2 + $0x301] sm:$0xff] %vm69_vm0, %v7260_v33  ;;  %12175 = vmatpush3.bf16.msra.mxu1 %v17419_v23  ;;  %12146 = vmatprep.mubr.msk.bf16.mxu1 %vm69_vm0, %v15647_v11  ;;  %v7307_v51 = vld [vmem:[#allocation2 + $0x218] sm:$0xff]  ;;  %v15658_v18 = vpack.c.bf16 %v4932_v62, %v4931_v46  ;;  %v7308_v8 = vld [vmem:[#allocation2 + $0x228] sm:$0xff] }
 0x3f2   :  { %7293 = vst.msk [vmem:[#allocation2 + $0x309] sm:$0xff] %vm69_vm0, %v7261_v53  ;;  %7294 = vst.msk [vmem:[#allocation2 + $0x319] sm:$0xff] %vm69_vm0, %v7262_v26  ;;  %12208 = vmatprep.subr.bf16.mxu1 %v15643_v3  ;;  %v7309_v4 = vld [vmem:[#allocation2 + $0x230] sm:$0xff]  ;;  %v15662_v38 = vpack.c.bf16 %v7307_v51, %v7306_v59  ;;  %v4934_v56 = vld [vmem:[#allocation2 + $0x98] sm:$0xff] }
 0x3f3   :  { %7296 = vst.msk [vmem:[#allocation2 + $0x331] sm:$0xff] %vm69_vm0, %v7264_v24  ;;  %7297 = vst.msk [vmem:[#allocation2 + $0x339] sm:$0xff] %vm69_vm0, %v7265_v34  ;;  %v15666_v44 = vpack.c.bf16 %v7309_v4, %v7308_v8  ;;  %v4933_v43 = vld [vmem:[#allocation2 + $0x90] sm:$0xff]  ;;  %v4935_v63 = vld [vmem:[#allocation2 + $0xa8] sm:$0xff] }
 0x3f4   :  { %v4936_v0 = vld [vmem:[#allocation2 + $0xb0] sm:$0xff]  ;;  %v15672_v27 = vpack.c.bf16 %v4934_v56, %v4933_v43  ;;  %v7310_v37 = vld [vmem:[#allocation2 + $0x240] sm:$0xff]  ;;  %v7311_v48 = vld [vmem:[#allocation2 + $0x248] sm:$0xff] }
 0x3f5   :  { %11841 = vmatmul.mubr.msk.bf16.gmra.mrb[36].mxu0 %vm69_vm0, %v15656_v2  ;;  %v15674_v10 = vpack.c.bf16 %v4936_v0, %v4935_v63  ;;  %v7312_v9 = vld [vmem:[#allocation2 + $0x258] sm:$0xff]  ;;  %v7313_v12 = vld [vmem:[#allocation2 + $0x260] sm:$0xff]  ;;  %v15678_v5 = vpack.c.bf16 %v7311_v48, %v7310_v37  ;;  %v4938_v45 = vld [vmem:[#allocation2 + $0xc8] sm:$0xff] }
 0x3f6   :  { %11844 = vmatprep.mubr.msk.bf16.mxu0 %vm69_vm0, %v15658_v18  ;;  %v15682_v16 = vpack.c.bf16 %v7313_v12, %v7312_v9  ;;  %v4937_v25 = vld [vmem:[#allocation2 + $0xc0] sm:$0xff]  ;;  %v4939_v57 = vld [vmem:[#allocation2 + $0xd8] sm:$0xff]  ;;  %v7314_v54 = vld [vmem:[#allocation2 + $0x270] sm:$0xff] }
 0x3f7   :  { %v4940_v17 = vld [vmem:[#allocation2 + $0xe0] sm:$0xff]  ;;  %v15688_v58 = vpack.c.bf16 %v4938_v45, %v4937_v25  ;;  %v7315_v61 = vld [vmem:[#allocation2 + $0x278] sm:$0xff]  ;;  %v7316_v19 = vld [vmem:[#allocation2 + $0x288] sm:$0xff] }
 0x3f8   :  { %12147 = vmatmul.mubr.msk.bf16.gmra.mrb[36].mxu1 %vm69_vm0, %v15662_v38  ;;  %v15690_v52 = vpack.c.bf16 %v4940_v17, %v4939_v57  ;;  %v7317_v47 = vld [vmem:[#allocation2 + $0x290] sm:$0xff]  ;;  %v15694_v30 = vpack.c.bf16 %v7315_v61, %v7314_v54  ;;  %v4942_v42 = vld [vmem:[#allocation2 + $0xf8] sm:$0xff]  ;;  %v4943_v13 = vld [vmem:[#allocation2 + $0x108] sm:$0xff] }
 0x3f9   :  { %12150 = vmatprep.mubr.msk.bf16.mxu1 %vm69_vm0, %v15666_v44  ;;  %v15698_v22 = vpack.c.bf16 %v7317_v47, %v7316_v19  ;;  %v4941_v29 = vld [vmem:[#allocation2 + $0xf0] sm:$0xff]  ;;  %v7318_v33 = vld [vmem:[#allocation2 + $0x2a0] sm:$0xff]  ;;  %v7319_v53 = vld [vmem:[#allocation2 + $0x2a8] sm:$0xff] }
 0x3fa   :  { %v4944_v41 = vld [vmem:[#allocation2 + $0x110] sm:$0xff]  ;;  %v15704_v14 = vpack.c.bf16 %v4942_v42, %v4941_v29  ;;  %v7320_v49 = vld [vmem:[#allocation2 + $0x2b8] sm:$0xff]  ;;  %v7321_v28 = vld [vmem:[#allocation2 + $0x2c0] sm:$0xff]  ;;  %v15710_v24 = vpack.c.bf16 %v7319_v53, %v7318_v33 }
 0x3fb   :  { %v15706_v26 = vpack.c.bf16 %v4944_v41, %v4943_v13  ;;  %v15714_v34 = vpack.c.bf16 %v7321_v28, %v7320_v49  ;;  %v4945_v50 = vld [vmem:[#allocation2 + $0x120] sm:$0xff]  ;;  %v4946_v39 = vld [vmem:[#allocation2 + $0x128] sm:$0xff]  ;;  %v4947_v35 = vld [vmem:[#allocation2 + $0x138] sm:$0xff] }
 0x3fc   :  { %v4948_v21 = vld [vmem:[#allocation2 + $0x140] sm:$0xff]  ;;  %v15720_v31 = vpack.c.bf16 %v4946_v39, %v4945_v50  ;;  %v7322_v6 = vld [vmem:[#allocation2 + $0x2d0] sm:$0xff]  ;;  %v7323_v40 = vld [vmem:[#allocation2 + $0x2d8] sm:$0xff] }
 0x3fd   :  { %11845 = vmatmul.mubr.msk.bf16.gmra.mrb[40].mxu0 %vm69_vm0, %v15672_v27  ;;  %v15722_v1 = vpack.c.bf16 %v4948_v21, %v4947_v35  ;;  %v7324_v15 = vld [vmem:[#allocation2 + $0x2e8] sm:$0xff]  ;;  %v7325_v23 = vld [vmem:[#allocation2 + $0x2f0] sm:$0xff]  ;;  %v15726_v46 = vpack.c.bf16 %v7323_v40, %v7322_v6  ;;  %v4950_v51 = vld [vmem:[#allocation2 + $0x158] sm:$0xff] }
 0x3fe   :  { %11848 = vmatprep.mubr.msk.bf16.mxu0 %vm69_vm0, %v15674_v10  ;;  %v15730_v62 = vpack.c.bf16 %v7325_v23, %v7324_v15  ;;  %v4949_v59 = vld [vmem:[#allocation2 + $0x150] sm:$0xff]  ;;  %v4951_v8 = vld [vmem:[#allocation2 + $0x168] sm:$0xff]  ;;  %v7326_v56 = vld [vmem:[#allocation2 + $0x300] sm:$0xff] }
 0x3ff   :  { %v4952_v4 = vld [vmem:[#allocation2 + $0x170] sm:$0xff]  ;;  %v15736_v43 = vpack.c.bf16 %v4950_v51, %v4949_v59  ;;  %v7327_v63 = vld [vmem:[#allocation2 + $0x308] sm:$0xff]  ;;  %v7328_v37 = vld [vmem:[#allocation2 + $0x318] sm:$0xff] }
 0x400   :  { %12151 = vmatmul.mubr.msk.bf16.gmra.mrb[40].mxu1 %vm69_vm0, %v15678_v5  ;;  %v15738_v0 = vpack.c.bf16 %v4952_v4, %v4951_v8  ;;  %v7329_v48 = vld [vmem:[#allocation2 + $0x320] sm:$0xff]  ;;  %v15742_v9 = vpack.c.bf16 %v7327_v63, %v7326_v56  ;;  %v4922_v45 = vld [vmem:[#allocation2 + $0x8] sm:$0xff]  ;;  %v7298_v61 = vld [vmem:[#allocation2 + $0x1b0] sm:$0xff] }
 0x401   :  { %12154 = vmatprep.mubr.msk.bf16.mxu1 %vm69_vm0, %v15682_v16  ;;  %v15746_v12 = vpack.c.bf16 %v7329_v48, %v7328_v37  ;;  %v4921_v25 = vld [vmem:[#allocation2] sm:$0xff]  ;;  %v4954_v17 = vld [vmem:[#allocation2 + $0x188] sm:$0xff]  ;;  %v7299_v19 = vld [vmem:[#allocation2 + $0x1b8] sm:$0xff] }
 0x402   :  { %v4953_v57 = vld [vmem:[#allocation2 + $0x180] sm:$0xff]  ;;  %v4957_v54 = vpack.c.bf16 %v4922_v45, %v4921_v25  ;;  %v7330_v29 = vld [vmem:[#allocation2 + $0x330] sm:$0xff]  ;;  %v7331_v42 = vld [vmem:[#allocation2 + $0x338] sm:$0xff]  ;;  %v7334_v13 = vpack.c.bf16 %v7299_v19, %v7298_v61 }
 0x403   :  { %v15752_v47 = vpack.c.bf16 %v4954_v17, %v4953_v57  ;;  %v15756_v41 = vpack.c.bf16 %v7331_v42, %v7330_v29  ;;  %v13503_v33 = vld [vmem:[#allocation9 + $0x8] sm:$0xff]   ;;  %v7949_v28 = vld [vmem:[#allocation2 + $0x1e1] sm:$0xff]  ;;  %v5580_v8 = vld [vmem:[#allocation2 + $0x79] sm:$0xff] }
 0x404   :  { %v13504_v53 = vld [vmem:[#allocation9 + $0x8] sm:$0xff]   ;;  %v15903_v50 = vld [vmem:[#allocation9 + $0x38] sm:$0xff]  }
 0x405   :  { %11849 = vmatmul.mubr.msk.bf16.gmra.mrb[44].mxu0 %vm69_vm0, %v15688_v58  ;;  %v5576_v35 = vld [vmem:[#allocation2 + $0x49] sm:$0xff]  ;;  %v5577_v21 = vld [vmem:[#allocation2 + $0x51] sm:$0xff]  ;;  %v7952_v15 = vld [vmem:[#allocation2 + $0x201] sm:$0xff] }
 0x406   :  { %11852 = vmatprep.mubr.msk.bf16.mxu0 %vm69_vm0, %v15690_v52  ;;  %v5579_v6 = vld [vmem:[#allocation2 + $0x69] sm:$0xff]  ;;  %v15914_v40 = vpack.c.bf16 %v5577_v21, %v5576_v35  ;;  %v5581_v4 = vld [vmem:[#allocation2 + $0x81] sm:$0xff]  ;;  %v5583_v56 = vld [vmem:[#allocation2 + $0x99] sm:$0xff] }
 0x407   :  { %v15930_v63 = vpack.c.bf16 %v5581_v4, %v5580_v8  ;;  %v7956_v37 = vld [vmem:[#allocation2 + $0x231] sm:$0xff]  ;;  %v5584_v57 = vld [vmem:[#allocation2 + $0xa9] sm:$0xff]  ;;  %v7960_v29 = vld [vmem:[#allocation2 + $0x261] sm:$0xff] }
 0x408   :  { %12155 = vmatmul.mubr.msk.bf16.gmra.mrb[44].mxu1 %vm69_vm0, %v15694_v30  ;;  %v5585_v17 = vld [vmem:[#allocation2 + $0xb1] sm:$0xff]  ;;  %v5587_v61 = vld [vmem:[#allocation2 + $0xc9] sm:$0xff] }
 0x409   :  { %12158 = vmatprep.mubr.msk.bf16.mxu1 %vm69_vm0, %v15698_v22  ;;  %v15946_v19 = vpack.c.bf16 %v5585_v17, %v5584_v57  ;;  %v7972_v8 = vld [vmem:[#allocation2 + $0x2f1] sm:$0xff]  ;;  %v7975_v17 = vld [vmem:[#allocation2 + $0x319] sm:$0xff] }
 0x40d   :  { %11853 = vmatmul.mubr.msk.bf16.gmra.mrb[48].mxu0 %vm69_vm0, %v15704_v14 }
 0x40e   :  { %11856 = vmatprep.mubr.msk.bf16.mxu0 %vm69_vm0, %v15706_v26 }
 0x410   :  { %12159 = vmatmul.mubr.msk.bf16.gmra.mrb[48].mxu1 %vm69_vm0, %v15710_v24 }
 0x411   :  { %12162 = vmatprep.mubr.msk.bf16.mxu1 %vm69_vm0, %v15714_v34 }
 0x415   :  { %11857 = vmatmul.mubr.msk.bf16.gmra.mrb[52].mxu0 %vm69_vm0, %v15720_v31 }
 0x416   :  { %11860 = vmatprep.mubr.msk.bf16.mxu0 %vm69_vm0, %v15722_v1 }
 0x418   :  { %12163 = vmatmul.mubr.msk.bf16.gmra.mrb[52].mxu1 %vm69_vm0, %v15726_v46 }
 0x419   :  { %12166 = vmatprep.mubr.msk.bf16.mxu1 %vm69_vm0, %v15730_v62 }
 0x41d   :  { %11861 = vmatmul.mubr.msk.bf16.gmra.mrb[56].mxu0 %vm69_vm0, %v15736_v43 }
 0x41e   :  { %11864 = vmatprep.mubr.msk.bf16.mxu0 %vm69_vm0, %v15738_v0 }
 0x420   :  { %12167 = vmatmul.mubr.msk.bf16.gmra.mrb[56].mxu1 %vm69_vm0, %v15742_v9 }
 0x421   :  { %12170 = vmatprep.mubr.msk.bf16.mxu1 %vm69_vm0, %v15746_v12 }
 0x425   :  { %11865 = vmatmul.mubr.msk.bf16.gmra.mrb[60].mxu0 %vm69_vm0, %v15752_v47 }
 0x426   :  { %11870 = vmatprep.mubr.msk.bf16.mxu0 %vm69_vm0, %v4957_v54  ;;  %v5586_v54 = vld [vmem:[#allocation2 + $0xc1] sm:$0xff] }
 0x427   :  { %v15948_v42 = vpack.c.bf16 %v5587_v61, %v5586_v54  ;;  %v7976_v54 = vld [vmem:[#allocation2 + $0x321] sm:$0xff] }
 0x428   :  { %12171 = vmatmul.mubr.msk.bf16.gmra.mrb[60].mxu1 %vm69_vm0, %v15756_v41  ;;  %v16014_v61 = vpack.c.bf16 %v7976_v54, %v7975_v17  ;;  %v6299_v17 = vld [vmem:[#allocation2 + $0xb2] sm:$0xff]  ;;  %v6300_v54 = vld [vmem:[#allocation2 + $0xc2] sm:$0xff] }
 0x429   :  { %12176 = vmatprep.mubr.msk.bf16.mxu1 %vm69_vm0, %v7334_v13  ;;  %v7961_v13 = vld [vmem:[#allocation2 + $0x271] sm:$0xff] }
 0x42d   :  { %11871 = vmatmul.mubr.msk.bf16.vlgmr.msra.gmra.mrb[32].mxu0 %vm69_vm0, %v15618_v7  ;;  %v13505_v7 = vld [vmem:[#allocation9 + $0x20] sm:$0xff]  }
 0x42e   :  { %11903 = vmatpush3.bf16.msra.mxu0 %v15626_v20  ;;  %11874 = vmatprep.mubr.msk.bf16.mxu0 %vm69_vm0, %v15620_v32  ;;  %v15832_v20 = vld [vmem:[#allocation9 + $0x20] sm:$0xff]  }
 0x42f   :  { %11936 = vmatprep.subr.bf16.mxu0 %v13503_v33 }
 0x430   :  { %12177 = vmatmul.mubr.msk.bf16.vlgmr.msra.gmra.mrb[32].mxu1 %vm69_vm0, %v15634_v36  ;;  %v5570_v36 = vld [vmem:[#allocation2 + $0x1] sm:$0xff] }
 0x431   :  { %12209 = vmatpush3.bf16.msra.mxu1 %v15643_v3  ;;  %12180 = vmatprep.mubr.msk.bf16.mxu1 %vm69_vm0, %v15638_v55 }
 0x432   :  { %12242 = vmatprep.subr.bf16.mxu1 %v13504_v53 }
 0x435   :  { %11875 = vmatmul.mubr.msk.bf16.gmra.mrb[36].mxu0 %vm69_vm0, %v15632_v60 }
 0x436   :  { %11878 = vmatprep.mubr.msk.bf16.mxu0 %vm69_vm0, %v15656_v2 }
 0x438   :  { %12181 = vmatmul.mubr.msk.bf16.gmra.mrb[36].mxu1 %vm69_vm0, %v15647_v11 }
 0x439   :  { %12184 = vmatprep.mubr.msk.bf16.mxu1 %vm69_vm0, %v15662_v38 }
 0x43d   :  { %11879 = vmatmul.mubr.msk.bf16.gmra.mrb[40].mxu0 %vm69_vm0, %v15658_v18 }
 0x43e   :  { %11882 = vmatprep.mubr.msk.bf16.mxu0 %vm69_vm0, %v15672_v27 }
 0x440   :  { %12185 = vmatmul.mubr.msk.bf16.gmra.mrb[40].mxu1 %vm69_vm0, %v15666_v44 }
 0x441   :  { %12188 = vmatprep.mubr.msk.bf16.mxu1 %vm69_vm0, %v15678_v5 }
 0x445   :  { %11883 = vmatmul.mubr.msk.bf16.gmra.mrb[44].mxu0 %vm69_vm0, %v15674_v10 }
 0x446   :  { %11886 = vmatprep.mubr.msk.bf16.mxu0 %vm69_vm0, %v15688_v58 }
 0x448   :  { %12189 = vmatmul.mubr.msk.bf16.gmra.mrb[44].mxu1 %vm69_vm0, %v15682_v16 }
 0x449   :  { %12192 = vmatprep.mubr.msk.bf16.mxu1 %vm69_vm0, %v15694_v30 }
 0x44d   :  { %11887 = vmatmul.mubr.msk.bf16.gmra.mrb[48].mxu0 %vm69_vm0, %v15690_v52 }
 0x44e   :  { %11890 = vmatprep.mubr.msk.bf16.mxu0 %vm69_vm0, %v15704_v14 }
 0x450   :  { %12193 = vmatmul.mubr.msk.bf16.gmra.mrb[48].mxu1 %vm69_vm0, %v15698_v22 }
 0x451   :  { %12196 = vmatprep.mubr.msk.bf16.mxu1 %vm69_vm0, %v15710_v24 }
 0x455   :  { %11891 = vmatmul.mubr.msk.bf16.gmra.mrb[52].mxu0 %vm69_vm0, %v15706_v26 }
 0x456   :  { %11894 = vmatprep.mubr.msk.bf16.mxu0 %vm69_vm0, %v15720_v31 }
 0x458   :  { %12197 = vmatmul.mubr.msk.bf16.gmra.mrb[52].mxu1 %vm69_vm0, %v15714_v34 }
 0x459   :  { %12200 = vmatprep.mubr.msk.bf16.mxu1 %vm69_vm0, %v15726_v46 }
 0x45d   :  { %11895 = vmatmul.mubr.msk.bf16.gmra.mrb[56].mxu0 %vm69_vm0, %v15722_v1 }
 0x45e   :  { %11898 = vmatprep.mubr.msk.bf16.mxu0 %vm69_vm0, %v15736_v43 }
 0x460   :  { %12201 = vmatmul.mubr.msk.bf16.gmra.mrb[56].mxu1 %vm69_vm0, %v15730_v62 }
 0x461   :  { %12204 = vmatprep.mubr.msk.bf16.mxu1 %vm69_vm0, %v15742_v9 }
 0x465   :  { %11899 = vmatmul.mubr.msk.bf16.gmra.mrb[60].mxu0 %vm69_vm0, %v15738_v0 }
 0x466   :  { %11904 = vmatprep.mubr.msk.bf16.mxu0 %vm69_vm0, %v15620_v32  ;;  %v4955_v32 = vld [vmem:[#allocation2 + $0x198] sm:$0xff] }
 0x468   :  { %12205 = vmatmul.mubr.msk.bf16.gmra.mrb[60].mxu1 %vm69_vm0, %v15746_v12 }
 0x469   :  { %12210 = vmatprep.mubr.msk.bf16.mxu1 %vm69_vm0, %v15638_v55  ;;  %v5571_v55 = vld [vmem:[#allocation2 + $0x9] sm:$0xff] }
 0x46d   :  { %11905 = vmatmul.mubr.msk.bf16.vlgmr.msra.gmra.mrb[32].mxu0 %vm69_vm0, %v15632_v60  ;;  %v4956_v60 = vld [vmem:[#allocation2 + $0x1a0] sm:$0xff] }
 0x46e   :  { %11937 = vmatpush3.bf16.msra.mxu0 %v13503_v33  ;;  %11908 = vmatprep.mubr.msk.bf16.mxu0 %vm69_vm0, %v15656_v2  ;;  %v5364_v3 = vpack.c.bf16 %v4956_v60, %v4955_v32  ;;  %v7333_v2 = vld [vmem:[#allocation2 + $0x350] sm:$0xff]  ;;  %v5591_v60 = vld [vmem:[#allocation2 + $0xf9] sm:$0xff] }
 0x46f   :  { %11970 = vmatprep.subr.bf16.mxu0 %v13505_v7  ;;  %v5590_v32 = vld [vmem:[#allocation2 + $0xf1] sm:$0xff] }
 0x470   :  { %12211 = vmatmul.mubr.msk.bf16.vlgmr.msra.gmra.mrb[32].mxu1 %vm69_vm0, %v15647_v11  ;;  %v7332_v11 = vld [vmem:[#allocation2 + $0x348] sm:$0xff] }
 0x471   :  { %12243 = vmatpush3.bf16.msra.mxu1 %v13504_v53  ;;  %12214 = vmatprep.mubr.msk.bf16.mxu1 %vm69_vm0, %v15662_v38  ;;  %v7945_v38 = vld [vmem:[#allocation2 + $0x1b1] sm:$0xff] }
 0x472   :  { %12276 = vmatprep.subr.bf16.mxu1 %v15832_v20 }
 0x475   :  { %11909 = vmatmul.mubr.msk.bf16.gmra.mrb[36].mxu0 %vm69_vm0, %v15658_v18  ;;  %v5606_v18 = vpack.c.bf16 %v5571_v55, %v5570_v36  ;;  %v7963_v55 = vld [vmem:[#allocation2 + $0x289] sm:$0xff] }
 0x476   :  { %11912 = vmatprep.mubr.msk.bf16.mxu0 %vm69_vm0, %v15672_v27  ;;  %v7740_v27 = vpack.c.bf16 %v7333_v2, %v7332_v11  ;;  %v15964_v11 = vpack.c.bf16 %v5591_v60, %v5590_v32  ;;  %v7965_v2 = vld [vmem:[#allocation2 + $0x2a1] sm:$0xff]  ;;  %v6288_v32 = vld [vmem:[#allocation2 + $0x32] sm:$0xff] }
 0x477   :  { %v6289_v60 = vld [vmem:[#allocation2 + $0x3a] sm:$0xff] }
 0x478   :  { %12215 = vmatmul.mubr.msk.bf16.gmra.mrb[36].mxu1 %vm69_vm0, %v15666_v44  ;;  %v7946_v44 = vld [vmem:[#allocation2 + $0x1b9] sm:$0xff] }
 0x479   :  { %12218 = vmatprep.mubr.msk.bf16.mxu1 %vm69_vm0, %v15678_v5  ;;  %v5572_v5 = vld [vmem:[#allocation2 + $0x19] sm:$0xff] }
 0x47d   :  { %11913 = vmatmul.mubr.msk.bf16.gmra.mrb[40].mxu0 %vm69_vm0, %v15674_v10  ;;  %v7981_v10 = vpack.c.bf16 %v7946_v44, %v7945_v38 }
 0x47e   :  { %11916 = vmatprep.mubr.msk.bf16.mxu0 %vm69_vm0, %v15688_v58  ;;  %v5574_v58 = vld [vmem:[#allocation2 + $0x31] sm:$0xff] }
 0x480   :  { %12219 = vmatmul.mubr.msk.bf16.gmra.mrb[40].mxu1 %vm69_vm0, %v15682_v16  ;;  %v5573_v16 = vld [vmem:[#allocation2 + $0x21] sm:$0xff] }
 0x481   :  { %12222 = vmatprep.mubr.msk.bf16.mxu1 %vm69_vm0, %v15694_v30  ;;  %v15891_v30 = vpack.c.bf16 %v5573_v16, %v5572_v5  ;;  %v5594_v5 = vld [vmem:[#allocation2 + $0x121] sm:$0xff]  ;;  %v5595_v16 = vld [vmem:[#allocation2 + $0x129] sm:$0xff] }
 0x485   :  { %11917 = vmatmul.mubr.msk.bf16.gmra.mrb[44].mxu0 %vm69_vm0, %v15690_v52  ;;  %v5575_v52 = vld [vmem:[#allocation2 + $0x39] sm:$0xff] }
 0x486   :  { %11920 = vmatprep.mubr.msk.bf16.mxu0 %vm69_vm0, %v15704_v14  ;;  %v7948_v14 = vld [vmem:[#allocation2 + $0x1d1] sm:$0xff]  ;;  %v15895_v49 = vpack.c.bf16 %v5575_v52, %v5574_v58  ;;  %v7967_v52 = vld [vmem:[#allocation2 + $0x2b9] sm:$0xff] }
 0x488   :  { %12223 = vmatmul.mubr.msk.bf16.gmra.mrb[44].mxu1 %vm69_vm0, %v15698_v22  ;;  %v7947_v22 = vld [vmem:[#allocation2 + $0x1c9] sm:$0xff] }
 0x489   :  { %12226 = vmatprep.mubr.msk.bf16.mxu1 %vm69_vm0, %v15710_v24  ;;  %v7950_v24 = vld [vmem:[#allocation2 + $0x1e9] sm:$0xff] }
 0x48a   :  { %v15905_v39 = vpack.c.bf16 %v7950_v24, %v7949_v28  ;;  %v7969_v28 = vld [vmem:[#allocation2 + $0x2d1] sm:$0xff]  ;;  %v7970_v24 = vld [vmem:[#allocation2 + $0x2d9] sm:$0xff] }
 0x48b   :  { %v15988_v21 = vpack.c.bf16 %v7970_v24, %v7969_v28  ;;  %v8663_v28 = vld [vmem:[#allocation2 + $0x202] sm:$0xff] }
 0x48d   :  { %11921 = vmatmul.mubr.msk.bf16.gmra.mrb[48].mxu0 %vm69_vm0, %v15706_v26  ;;  %v15893_v26 = vld [vmem:[#allocation9 + $0x38] sm:$0xff]  }
 0x48e   :  { %11924 = vmatprep.mubr.msk.bf16.mxu0 %vm69_vm0, %v15720_v31  ;;  %v5578_v31 = vld [vmem:[#allocation2 + $0x61] sm:$0xff] }
 0x48f   :  { %v15916_v23 = vpack.c.bf16 %v5579_v6, %v5578_v31  ;;  %v5596_v31 = vld [vmem:[#allocation2 + $0x139] sm:$0xff]  ;;  %v5597_v6 = vld [vmem:[#allocation2 + $0x141] sm:$0xff] }
 0x490   :  { %12227 = vmatmul.mubr.msk.bf16.gmra.mrb[48].mxu1 %vm69_vm0, %v15714_v34  ;;  %v15899_v34 = vpack.c.bf16 %v7948_v14, %v7947_v22  ;;  %v7968_v22 = vld [vmem:[#allocation2 + $0x2c1] sm:$0xff]  ;;  %v15980_v14 = vpack.c.bf16 %v5595_v16, %v5594_v5  ;;  %v6290_v5 = vld [vmem:[#allocation2 + $0x4a] sm:$0xff]  ;;  %v6291_v16 = vld [vmem:[#allocation2 + $0x52] sm:$0xff] }
 0x491   :  { %12230 = vmatprep.mubr.msk.bf16.mxu1 %vm69_vm0, %v15726_v46  ;;  %v7953_v46 = vld [vmem:[#allocation2 + $0x211] sm:$0xff]  ;;  %v15984_v35 = vpack.c.bf16 %v7968_v22, %v7967_v52  ;;  %v16170_v22 = vpack.c.bf16 %v6291_v16, %v6290_v5 }
 0x492   :  { %v6293_v52 = vld [vmem:[#allocation2 + $0x6a] sm:$0xff] }
 0x495   :  { %11925 = vmatmul.mubr.msk.bf16.gmra.mrb[52].mxu0 %vm69_vm0, %v15722_v1  ;;  %v7951_v1 = vld [vmem:[#allocation2 + $0x1f9] sm:$0xff] }
 0x496   :  { %11928 = vmatprep.mubr.msk.bf16.mxu0 %vm69_vm0, %v15736_v43  ;;  %v15920_v59 = vpack.c.bf16 %v7952_v15, %v7951_v1  ;;  %v5582_v43 = vld [vmem:[#allocation2 + $0x91] sm:$0xff]  ;;  %v5599_v15 = vld [vmem:[#allocation2 + $0x159] sm:$0xff] }
 0x497   :  { %v15932_v48 = vpack.c.bf16 %v5583_v56, %v5582_v43  ;;  %v5598_v1 = vld [vmem:[#allocation2 + $0x151] sm:$0xff]  ;;  %v7973_v43 = vld [vmem:[#allocation2 + $0x301] sm:$0xff]  ;;  %v7974_v56 = vld [vmem:[#allocation2 + $0x309] sm:$0xff] }
 0x498   :  { %12231 = vmatmul.mubr.msk.bf16.gmra.mrb[52].mxu1 %vm69_vm0, %v15730_v62  ;;  %v7954_v62 = vld [vmem:[#allocation2 + $0x219] sm:$0xff]  ;;  %v15996_v4 = vpack.c.bf16 %v5599_v15, %v5598_v1  ;;  %v6295_v15 = vld [vmem:[#allocation2 + $0x82] sm:$0xff] }
 0x499   :  { %12234 = vmatprep.mubr.msk.bf16.mxu1 %vm69_vm0, %v15742_v9  ;;  %v15924_v51 = vpack.c.bf16 %v7954_v62, %v7953_v46  ;;  %v7957_v9 = vld [vmem:[#allocation2 + $0x241] sm:$0xff]  ;;  %v15994_v46 = vpack.c.bf16 %v5597_v6, %v5596_v31  ;;  %v7971_v62 = vld [vmem:[#allocation2 + $0x2e9] sm:$0xff] }
 0x49a   :  { %v6294_v1 = vld [vmem:[#allocation2 + $0x7a] sm:$0xff] }
 0x49d   :  { %11929 = vmatmul.mubr.msk.bf16.gmra.mrb[56].mxu0 %vm69_vm0, %v15738_v0  ;;  %v7955_v0 = vld [vmem:[#allocation2 + $0x229] sm:$0xff] }
 0x49e   :  { %11932 = vmatprep.mubr.msk.bf16.mxu0 %vm69_vm0, %v15752_v47  ;;  %v15936_v25 = vpack.c.bf16 %v7956_v37, %v7955_v0  ;;  %v7959_v47 = vld [vmem:[#allocation2 + $0x259] sm:$0xff]  ;;  %v16000_v0 = vpack.c.bf16 %v7972_v8, %v7971_v62  ;;  %v16004_v37 = vpack.c.bf16 %v7974_v56, %v7973_v43  ;;  %v16186_v8 = vpack.c.bf16 %v6295_v15, %v6294_v1 }
 0x49f   :  { %v15952_v33 = vpack.c.bf16 %v7960_v29, %v7959_v47  ;;  %v13509_v47 = vld [vmem:[#allocation9 + $0x10] sm:$0xff]  }
 0x4a0   :  { %12235 = vmatmul.mubr.msk.bf16.gmra.mrb[56].mxu1 %vm69_vm0, %v15746_v12  ;;  %v7958_v12 = vld [vmem:[#allocation2 + $0x249] sm:$0xff]  ;;  %v13510_v29 = vld [vmem:[#allocation9 + $0x10] sm:$0xff]  }
 0x4a1   :  { %12238 = vmatprep.mubr.msk.bf16.mxu1 %vm69_vm0, %v15756_v41  ;;  %v15940_v45 = vpack.c.bf16 %v7958_v12, %v7957_v9  ;;  %v7962_v41 = vld [vmem:[#allocation2 + $0x279] sm:$0xff]  ;;  %v5600_v9 = vld [vmem:[#allocation2 + $0x169] sm:$0xff]  ;;  %v5601_v12 = vld [vmem:[#allocation2 + $0x171] sm:$0xff] }
 0x4a2   :  { %v15956_v53 = vpack.c.bf16 %v7962_v41, %v7961_v13  ;;  %v16010_v57 = vpack.c.bf16 %v5601_v12, %v5600_v9  ;;  %v7978_v13 = vld [vmem:[#allocation2 + $0x339] sm:$0xff] }
 0x4a3   :  { %v6297_v62 = vld [vmem:[#allocation2 + $0x9a] sm:$0xff]  ;;  %v8667_v43 = vld [vmem:[#allocation2 + $0x232] sm:$0xff] }
 0x4a4   :  { %v8683_v1 = vld [vmem:[#allocation2 + $0x2f2] sm:$0xff] }
 0x4a5   :  { %11933 = vmatmul.mubr.msk.bf16.gmra.mrb[60].mxu0 %vm69_vm0, %v5364_v3  ;;  %v7964_v3 = vld [vmem:[#allocation2 + $0x291] sm:$0xff] }
 0x4a6   :  { %11938 = vmatprep.mubr.msk.bf16.mxu0 %vm69_vm0, %v5606_v18  ;;  %v7966_v18 = vld [vmem:[#allocation2 + $0x2a9] sm:$0xff]  ;;  %v15968_v38 = vpack.c.bf16 %v7964_v3, %v7963_v55  ;;  %v8659_v3 = vld [vmem:[#allocation2 + $0x1d2] sm:$0xff] }
 0x4a7   :  { %v15972_v44 = vpack.c.bf16 %v7966_v18, %v7965_v2  ;;  %v8658_v55 = vld [vmem:[#allocation2 + $0x1ca] sm:$0xff]  ;;  %v16151_v2 = vpack.c.bf16 %v6289_v60, %v6288_v32  ;;  %v8660_v18 = vld [vmem:[#allocation2 + $0x1e2] sm:$0xff]  ;;  %v8678_v60 = vld [vmem:[#allocation2 + $0x2ba] sm:$0xff] }
 0x4a8   :  { %12239 = vmatmul.mubr.msk.bf16.gmra.mrb[60].mxu1 %vm69_vm0, %v7740_v27  ;;  %v5592_v27 = vld [vmem:[#allocation2 + $0x109] sm:$0xff] }
 0x4a9   :  { %12244 = vmatprep.mubr.msk.bf16.mxu1 %vm69_vm0, %v7981_v10  ;;  %v5593_v10 = vld [vmem:[#allocation2 + $0x111] sm:$0xff] }
 0x4aa   :  { %v15978_v58 = vpack.c.bf16 %v5593_v10, %v5592_v27  ;;  %v16159_v27 = vld [vmem:[#allocation9 + $0x40] sm:$0xff]  }
 0x4ad   :  { %11939 = vmatmul.mubr.msk.bf16.vlgmr.msra.gmra.mrb[32].mxu0 %vm69_vm0, %v15891_v30 }
 0x4ae   :  { %11971 = vmatpush3.bf16.msra.mxu0 %v13505_v7  ;;  %11942 = vmatprep.mubr.msk.bf16.mxu0 %vm69_vm0, %v15895_v49  ;;  %v5588_v7 = vld [vmem:[#allocation2 + $0xd9] sm:$0xff] }
 0x4af   :  { %12004 = vmatprep.subr.bf16.mxu0 %v15893_v26 }
 0x4b0   :  { %12245 = vmatmul.mubr.msk.bf16.vlgmr.msra.gmra.mrb[32].mxu1 %vm69_vm0, %v15899_v34 }
 0x4b1   :  { %12277 = vmatpush3.bf16.msra.mxu1 %v15832_v20  ;;  %12248 = vmatprep.mubr.msk.bf16.mxu1 %vm69_vm0, %v15905_v39  ;;  %v5589_v20 = vld [vmem:[#allocation2 + $0xe1] sm:$0xff] }
 0x4b2   :  { %12310 = vmatprep.subr.bf16.mxu1 %v15903_v50  ;;  %v15962_v36 = vpack.c.bf16 %v5589_v20, %v5588_v7  ;;  %v13511_v7 = vld [vmem:[#allocation9 + $0x28] sm:$0xff]  }
 0x4b3   :  { %v16090_v20 = vld [vmem:[#allocation9 + $0x28] sm:$0xff]  }
 0x4b5   :  { %11943 = vmatmul.mubr.msk.bf16.gmra.mrb[36].mxu0 %vm69_vm0, %v15914_v40 }
 0x4b6   :  { %11946 = vmatprep.mubr.msk.bf16.mxu0 %vm69_vm0, %v15916_v23 }
 0x4b8   :  { %12249 = vmatmul.mubr.msk.bf16.gmra.mrb[36].mxu1 %vm69_vm0, %v15920_v59 }
 0x4b9   :  { %12252 = vmatprep.mubr.msk.bf16.mxu1 %vm69_vm0, %v15924_v51 }
 0x4bd   :  { %11947 = vmatmul.mubr.msk.bf16.gmra.mrb[40].mxu0 %vm69_vm0, %v15930_v63 }
 0x4be   :  { %11950 = vmatprep.mubr.msk.bf16.mxu0 %vm69_vm0, %v15932_v48 }
 0x4c0   :  { %12253 = vmatmul.mubr.msk.bf16.gmra.mrb[40].mxu1 %vm69_vm0, %v15936_v25 }
 0x4c1   :  { %12256 = vmatprep.mubr.msk.bf16.mxu1 %vm69_vm0, %v15940_v45 }
 0x4c5   :  { %11951 = vmatmul.mubr.msk.bf16.gmra.mrb[44].mxu0 %vm69_vm0, %v15946_v19 }
 0x4c6   :  { %11954 = vmatprep.mubr.msk.bf16.mxu0 %vm69_vm0, %v15948_v42 }
 0x4c8   :  { %12257 = vmatmul.mubr.msk.bf16.gmra.mrb[44].mxu1 %vm69_vm0, %v15952_v33 }
 0x4c9   :  { %12260 = vmatprep.mubr.msk.bf16.mxu1 %vm69_vm0, %v15956_v53 }
 0x4cd   :  { %11955 = vmatmul.mubr.msk.bf16.gmra.mrb[48].mxu0 %vm69_vm0, %v15962_v36 }
 0x4ce   :  { %11958 = vmatprep.mubr.msk.bf16.mxu0 %vm69_vm0, %v15964_v11 }
 0x4d0   :  { %12261 = vmatmul.mubr.msk.bf16.gmra.mrb[48].mxu1 %vm69_vm0, %v15968_v38 }
 0x4d1   :  { %12264 = vmatprep.mubr.msk.bf16.mxu1 %vm69_vm0, %v15972_v44 }
 0x4d5   :  { %11959 = vmatmul.mubr.msk.bf16.gmra.mrb[52].mxu0 %vm69_vm0, %v15978_v58 }
 0x4d6   :  { %11962 = vmatprep.mubr.msk.bf16.mxu0 %vm69_vm0, %v15980_v14 }
 0x4d8   :  { %12265 = vmatmul.mubr.msk.bf16.gmra.mrb[52].mxu1 %vm69_vm0, %v15984_v35 }
 0x4d9   :  { %12268 = vmatprep.mubr.msk.bf16.mxu1 %vm69_vm0, %v15988_v21 }
 0x4dd   :  { %11963 = vmatmul.mubr.msk.bf16.gmra.mrb[56].mxu0 %vm69_vm0, %v15994_v46 }
 0x4de   :  { %11966 = vmatprep.mubr.msk.bf16.mxu0 %vm69_vm0, %v15996_v4 }
 0x4e0   :  { %12269 = vmatmul.mubr.msk.bf16.gmra.mrb[56].mxu1 %vm69_vm0, %v16000_v0 }
 0x4e1   :  { %12272 = vmatprep.mubr.msk.bf16.mxu1 %vm69_vm0, %v16004_v37 }
 0x4e5   :  { %11967 = vmatmul.mubr.msk.bf16.gmra.mrb[60].mxu0 %vm69_vm0, %v16010_v57 }
 0x4e6   :  { %11972 = vmatprep.mubr.msk.bf16.mxu0 %vm69_vm0, %v15891_v30  ;;  %v5602_v30 = vld [vmem:[#allocation2 + $0x181] sm:$0xff] }
 0x4e8   :  { %12273 = vmatmul.mubr.msk.bf16.gmra.mrb[60].mxu1 %vm69_vm0, %v16014_v61 }
 0x4e9   :  { %12278 = vmatprep.mubr.msk.bf16.mxu1 %vm69_vm0, %v15899_v34 }
 0x4ed   :  { %11973 = vmatmul.mubr.msk.bf16.vlgmr.msra.gmra.mrb[32].mxu0 %vm69_vm0, %v15895_v49 }
 0x4ee   :  { %12005 = vmatpush3.bf16.msra.mxu0 %v15893_v26  ;;  %11976 = vmatprep.mubr.msk.bf16.mxu0 %vm69_vm0, %v15914_v40  ;;  %v5603_v26 = vld [vmem:[#allocation2 + $0x189] sm:$0xff] }
 0x4ef   :  { %12038 = vmatprep.subr.bf16.mxu0 %v13509_v47  ;;  %v5872_v34 = vpack.c.bf16 %v5603_v26, %v5602_v30  ;;  %v8671_v30 = vld [vmem:[#allocation2 + $0x262] sm:$0xff] }
 0x4f0   :  { %12279 = vmatmul.mubr.msk.bf16.vlgmr.msra.gmra.mrb[32].mxu1 %vm69_vm0, %v15905_v39 }
 0x4f1   :  { %12311 = vmatpush3.bf16.msra.mxu1 %v15903_v50  ;;  %12282 = vmatprep.mubr.msk.bf16.mxu1 %vm69_vm0, %v15920_v59  ;;  %v7977_v50 = vld [vmem:[#allocation2 + $0x331] sm:$0xff] }
 0x4f2   :  { %12344 = vmatprep.subr.bf16.mxu1 %v13510_v29  ;;  %v8246_v41 = vpack.c.bf16 %v7978_v13, %v7977_v50  ;;  %v8673_v50 = vld [vmem:[#allocation2 + $0x27a] sm:$0xff] }
 0x4f5   :  { %11977 = vmatmul.mubr.msk.bf16.gmra.mrb[36].mxu0 %vm69_vm0, %v15916_v23 }
 0x4f6   :  { %11980 = vmatprep.mubr.msk.bf16.mxu0 %vm69_vm0, %v15930_v63 }
 0x4f8   :  { %12283 = vmatmul.mubr.msk.bf16.gmra.mrb[36].mxu1 %vm69_vm0, %v15924_v51 }
 0x4f9   :  { %12286 = vmatprep.mubr.msk.bf16.mxu1 %vm69_vm0, %v15936_v25 }
 0x4fd   :  { %11981 = vmatmul.mubr.msk.bf16.gmra.mrb[40].mxu0 %vm69_vm0, %v15932_v48 }
 0x4fe   :  { %11984 = vmatprep.mubr.msk.bf16.mxu0 %vm69_vm0, %v15946_v19 }
 0x500   :  { %12287 = vmatmul.mubr.msk.bf16.gmra.mrb[40].mxu1 %vm69_vm0, %v15940_v45 }
 0x501   :  { %12290 = vmatprep.mubr.msk.bf16.mxu1 %vm69_vm0, %v15952_v33 }
 0x505   :  { %11985 = vmatmul.mubr.msk.bf16.gmra.mrb[44].mxu0 %vm69_vm0, %v15948_v42 }
 0x506   :  { %11988 = vmatprep.mubr.msk.bf16.mxu0 %vm69_vm0, %v15962_v36 }
 0x508   :  { %12291 = vmatmul.mubr.msk.bf16.gmra.mrb[44].mxu1 %vm69_vm0, %v15956_v53 }
 0x509   :  { %12294 = vmatprep.mubr.msk.bf16.mxu1 %vm69_vm0, %v15968_v38 }
 0x50d   :  { %11989 = vmatmul.mubr.msk.bf16.gmra.mrb[48].mxu0 %vm69_vm0, %v15964_v11 }
 0x50e   :  { %11992 = vmatprep.mubr.msk.bf16.mxu0 %vm69_vm0, %v15978_v58 }
 0x510   :  { %12295 = vmatmul.mubr.msk.bf16.gmra.mrb[48].mxu1 %vm69_vm0, %v15972_v44 }
 0x511   :  { %12298 = vmatprep.mubr.msk.bf16.mxu1 %vm69_vm0, %v15984_v35 }
 0x515   :  { %11993 = vmatmul.mubr.msk.bf16.gmra.mrb[52].mxu0 %vm69_vm0, %v15980_v14 }
 0x516   :  { %11996 = vmatprep.mubr.msk.bf16.mxu0 %vm69_vm0, %v15994_v46 }
 0x518   :  { %12299 = vmatmul.mubr.msk.bf16.gmra.mrb[52].mxu1 %vm69_vm0, %v15988_v21 }
 0x519   :  { %12302 = vmatprep.mubr.msk.bf16.mxu1 %vm69_vm0, %v16000_v0 }
 0x51d   :  { %11997 = vmatmul.mubr.msk.bf16.gmra.mrb[56].mxu0 %vm69_vm0, %v15996_v4 }
 0x51e   :  { %12000 = vmatprep.mubr.msk.bf16.mxu0 %vm69_vm0, %v16010_v57 }
 0x520   :  { %12303 = vmatmul.mubr.msk.bf16.gmra.mrb[56].mxu1 %vm69_vm0, %v16004_v37 }
 0x521   :  { %12306 = vmatprep.mubr.msk.bf16.mxu1 %vm69_vm0, %v16014_v61 }
 0x525   :  { %12001 = vmatmul.mubr.msk.bf16.gmra.mrb[60].mxu0 %vm69_vm0, %v5872_v34 }
 0x526   :  { %12006 = vmatprep.mubr.msk.bf16.mxu0 %vm69_vm0, %v15895_v49  ;;  %v5604_v49 = vld [vmem:[#allocation2 + $0x199] sm:$0xff] }
 0x528   :  { %12307 = vmatmul.mubr.msk.bf16.gmra.mrb[60].mxu1 %vm69_vm0, %v8246_v41 }
 0x529   :  { %12312 = vmatprep.mubr.msk.bf16.mxu1 %vm69_vm0, %v15905_v39  ;;  %v5605_v39 = vld [vmem:[#allocation2 + $0x1a1] sm:$0xff] }
 0x52d   :  { %12007 = vmatmul.mubr.msk.bf16.vlgmr.msra.gmra.mrb[32].mxu0 %vm69_vm0, %v15914_v40  ;;  %v6284_v40 = vld [vmem:[#allocation2 + $0x2] sm:$0xff] }
 0x52e   :  { %12039 = vmatpush3.bf16.msra.mxu0 %v13509_v47  ;;  %12010 = vmatprep.mubr.msk.bf16.mxu0 %vm69_vm0, %v15916_v23  ;;  %v6285_v23 = vld [vmem:[#allocation2 + $0xa] sm:$0xff] }
 0x52f   :  { %12072 = vmatprep.subr.bf16.mxu0 %v13511_v7 }
 0x530   :  { %12313 = vmatmul.mubr.msk.bf16.vlgmr.msra.gmra.mrb[32].mxu1 %vm69_vm0, %v15920_v59  ;;  %v6078_v59 = vpack.c.bf16 %v5605_v39, %v5604_v49  ;;  %v6304_v49 = vld [vmem:[#allocation2 + $0xf2] sm:$0xff]  ;;  %v6305_v39 = vld [vmem:[#allocation2 + $0xfa] sm:$0xff] }
 0x531   :  { %12345 = vmatpush3.bf16.msra.mxu1 %v13510_v29  ;;  %12316 = vmatprep.mubr.msk.bf16.mxu1 %vm69_vm0, %v15924_v51  ;;  %v7979_v51 = vld [vmem:[#allocation2 + $0x349] sm:$0xff]  ;;  %v8670_v29 = vld [vmem:[#allocation2 + $0x25a] sm:$0xff] }
 0x532   :  { %12378 = vmatprep.subr.bf16.mxu1 %v16090_v20  ;;  %v16208_v13 = vpack.c.bf16 %v8671_v30, %v8670_v29  ;;  %v8689_v29 = vld [vmem:[#allocation2 + $0x33a] sm:$0xff] }
 0x535   :  { %12011 = vmatmul.mubr.msk.bf16.gmra.mrb[36].mxu0 %vm69_vm0, %v15930_v63  ;;  %v7980_v63 = vld [vmem:[#allocation2 + $0x351] sm:$0xff] }
 0x536   :  { %12014 = vmatprep.mubr.msk.bf16.mxu0 %vm69_vm0, %v15932_v48  ;;  %v6320_v48 = vpack.c.bf16 %v6285_v23, %v6284_v40  ;;  %v8674_v23 = vld [vmem:[#allocation2 + $0x28a] sm:$0xff] }
 0x538   :  { %12317 = vmatmul.mubr.msk.bf16.gmra.mrb[36].mxu1 %vm69_vm0, %v15936_v25  ;;  %v8656_v25 = vld [vmem:[#allocation2 + $0x1b2] sm:$0xff] }
 0x539   :  { %12320 = vmatprep.mubr.msk.bf16.mxu1 %vm69_vm0, %v15940_v45  ;;  %v8657_v45 = vld [vmem:[#allocation2 + $0x1ba] sm:$0xff] }
 0x53d   :  { %12015 = vmatmul.mubr.msk.bf16.gmra.mrb[40].mxu0 %vm69_vm0, %v15946_v19  ;;  %v8451_v19 = vpack.c.bf16 %v7980_v63, %v7979_v51  ;;  %v16220_v51 = vpack.c.bf16 %v6305_v39, %v6304_v49  ;;  %v8676_v63 = vld [vmem:[#allocation2 + $0x2a2] sm:$0xff] }
 0x53e   :  { %12018 = vmatprep.mubr.msk.bf16.mxu0 %vm69_vm0, %v15948_v42  ;;  %v8692_v42 = vpack.c.bf16 %v8657_v45, %v8656_v25 }
 0x540   :  { %12321 = vmatmul.mubr.msk.bf16.gmra.mrb[40].mxu1 %vm69_vm0, %v15952_v33  ;;  %v6286_v33 = vld [vmem:[#allocation2 + $0x1a] sm:$0xff] }
 0x541   :  { %12324 = vmatprep.mubr.msk.bf16.mxu1 %vm69_vm0, %v15956_v53  ;;  %v6287_v53 = vld [vmem:[#allocation2 + $0x22] sm:$0xff] }
 0x545   :  { %12019 = vmatmul.mubr.msk.bf16.gmra.mrb[44].mxu0 %vm69_vm0, %v15962_v36  ;;  %v16147_v36 = vpack.c.bf16 %v6287_v53, %v6286_v33  ;;  %v6308_v33 = vld [vmem:[#allocation2 + $0x122] sm:$0xff]  ;;  %v6309_v53 = vld [vmem:[#allocation2 + $0x12a] sm:$0xff] }
 0x546   :  { %12022 = vmatprep.mubr.msk.bf16.mxu0 %vm69_vm0, %v15964_v11  ;;  %v16149_v11 = vld [vmem:[#allocation9 + $0x40] sm:$0xff]  }
 0x548   :  { %12325 = vmatmul.mubr.msk.bf16.gmra.mrb[44].mxu1 %vm69_vm0, %v15968_v38  ;;  %v8661_v38 = vld [vmem:[#allocation2 + $0x1ea] sm:$0xff] }
 0x549   :  { %12328 = vmatprep.mubr.msk.bf16.mxu1 %vm69_vm0, %v15972_v44  ;;  %v16155_v44 = vpack.c.bf16 %v8659_v3, %v8658_v55  ;;  %v16161_v10 = vpack.c.bf16 %v8661_v38, %v8660_v18  ;;  %v8679_v55 = vld [vmem:[#allocation2 + $0x2c2] sm:$0xff]  ;;  %v16236_v3 = vpack.c.bf16 %v6309_v53, %v6308_v33  ;;  %v8680_v18 = vld [vmem:[#allocation2 + $0x2d2] sm:$0xff]  ;;  %v8681_v38 = vld [vmem:[#allocation2 + $0x2da] sm:$0xff] }
 0x54a   :  { %v16240_v5 = vpack.c.bf16 %v8679_v55, %v8678_v60  ;;  %v16244_v16 = vpack.c.bf16 %v8681_v38, %v8680_v18 }
 0x54d   :  { %12023 = vmatmul.mubr.msk.bf16.gmra.mrb[48].mxu0 %vm69_vm0, %v15978_v58  ;;  %v6292_v58 = vld [vmem:[#allocation2 + $0x62] sm:$0xff] }
 0x54e   :  { %12026 = vmatprep.mubr.msk.bf16.mxu0 %vm69_vm0, %v15980_v14  ;;  %v8662_v14 = vld [vmem:[#allocation2 + $0x1fa] sm:$0xff]  ;;  %v16172_v24 = vpack.c.bf16 %v6293_v52, %v6292_v58  ;;  %v6311_v52 = vld [vmem:[#allocation2 + $0x142] sm:$0xff] }
 0x54f   :  { %v16176_v31 = vpack.c.bf16 %v8663_v28, %v8662_v14  ;;  %v6310_v58 = vld [vmem:[#allocation2 + $0x13a] sm:$0xff]  ;;  %v6312_v14 = vld [vmem:[#allocation2 + $0x152] sm:$0xff] }
 0x550   :  { %12329 = vmatmul.mubr.msk.bf16.gmra.mrb[48].mxu1 %vm69_vm0, %v15984_v35  ;;  %v8664_v35 = vld [vmem:[#allocation2 + $0x212] sm:$0xff]  ;;  %v6313_v28 = vld [vmem:[#allocation2 + $0x15a] sm:$0xff] }
 0x551   :  { %12332 = vmatprep.mubr.msk.bf16.mxu1 %vm69_vm0, %v15988_v21  ;;  %v8665_v21 = vld [vmem:[#allocation2 + $0x21a] sm:$0xff]  ;;  %v16252_v15 = vpack.c.bf16 %v6313_v28, %v6312_v14 }
 0x552   :  { %v16180_v6 = vpack.c.bf16 %v8665_v21, %v8664_v35  ;;  %v16250_v35 = vpack.c.bf16 %v6311_v52, %v6310_v58  ;;  %v8682_v21 = vld [vmem:[#allocation2 + $0x2ea] sm:$0xff] }
 0x555   :  { %12027 = vmatmul.mubr.msk.bf16.gmra.mrb[52].mxu0 %vm69_vm0, %v15994_v46  ;;  %v6296_v46 = vld [vmem:[#allocation2 + $0x92] sm:$0xff] }
 0x556   :  { %12030 = vmatprep.mubr.msk.bf16.mxu0 %vm69_vm0, %v15996_v4  ;;  %v8666_v4 = vld [vmem:[#allocation2 + $0x22a] sm:$0xff]  ;;  %v16188_v56 = vpack.c.bf16 %v6297_v62, %v6296_v46  ;;  %v8684_v46 = vld [vmem:[#allocation2 + $0x302] sm:$0xff] }
 0x557   :  { %v16192_v9 = vpack.c.bf16 %v8667_v43, %v8666_v4  ;;  %v8685_v62 = vld [vmem:[#allocation2 + $0x30a] sm:$0xff]  ;;  %v16256_v4 = vpack.c.bf16 %v8683_v1, %v8682_v21 }
 0x558   :  { %12333 = vmatmul.mubr.msk.bf16.gmra.mrb[52].mxu1 %vm69_vm0, %v16000_v0  ;;  %v8668_v0 = vld [vmem:[#allocation2 + $0x242] sm:$0xff]  ;;  %v16260_v43 = vpack.c.bf16 %v8685_v62, %v8684_v46 }
 0x559   :  { %12336 = vmatprep.mubr.msk.bf16.mxu1 %vm69_vm0, %v16004_v37  ;;  %v8669_v37 = vld [vmem:[#allocation2 + $0x24a] sm:$0xff] }
 0x55a   :  { %v16196_v12 = vpack.c.bf16 %v8669_v37, %v8668_v0  ;;  %v6314_v0 = vld [vmem:[#allocation2 + $0x16a] sm:$0xff]  ;;  %v6315_v37 = vld [vmem:[#allocation2 + $0x172] sm:$0xff] }
 0x55d   :  { %12031 = vmatmul.mubr.msk.bf16.gmra.mrb[56].mxu0 %vm69_vm0, %v16010_v57  ;;  %v6298_v57 = vld [vmem:[#allocation2 + $0xaa] sm:$0xff] }
 0x55e   :  { %12034 = vmatprep.mubr.msk.bf16.mxu0 %vm69_vm0, %v5872_v34  ;;  %v16202_v47 = vpack.c.bf16 %v6299_v17, %v6298_v57  ;;  %v8672_v34 = vld [vmem:[#allocation2 + $0x272] sm:$0xff]  ;;  %v16266_v57 = vpack.c.bf16 %v6315_v37, %v6314_v0  ;;  %v8686_v17 = vld [vmem:[#allocation2 + $0x31a] sm:$0xff] }
 0x560   :  { %12337 = vmatmul.mubr.msk.bf16.gmra.mrb[56].mxu1 %vm69_vm0, %v16014_v61  ;;  %v6301_v61 = vld [vmem:[#allocation2 + $0xca] sm:$0xff] }
 0x561   :  { %12340 = vmatprep.mubr.msk.bf16.mxu1 %vm69_vm0, %v8246_v41  ;;  %v16204_v26 = vpack.c.bf16 %v6301_v61, %v6300_v54  ;;  %v16212_v41 = vpack.c.bf16 %v8673_v50, %v8672_v34  ;;  %v8687_v54 = vld [vmem:[#allocation2 + $0x322] sm:$0xff] }
 0x562   :  { %v16270_v61 = vpack.c.bf16 %v8687_v54, %v8686_v17 }
 0x565   :  { %12035 = vmatmul.mubr.msk.bf16.gmra.mrb[60].mxu0 %vm69_vm0, %v6078_v59  ;;  %v8675_v59 = vld [vmem:[#allocation2 + $0x292] sm:$0xff] }
 0x566   :  { %12040 = vmatprep.mubr.msk.bf16.mxu0 %vm69_vm0, %v6320_v48  ;;  %v8677_v48 = vld [vmem:[#allocation2 + $0x2aa] sm:$0xff]  ;;  %v16224_v25 = vpack.c.bf16 %v8675_v59, %v8674_v23 }
 0x567   :  { %v16228_v45 = vpack.c.bf16 %v8677_v48, %v8676_v63 }
 0x568   :  { %12341 = vmatmul.mubr.msk.bf16.gmra.mrb[60].mxu1 %vm69_vm0, %v8451_v19  ;;  %v6306_v19 = vld [vmem:[#allocation2 + $0x10a] sm:$0xff] }
 0x569   :  { %12346 = vmatprep.mubr.msk.bf16.mxu1 %vm69_vm0, %v8692_v42  ;;  %v6307_v42 = vld [vmem:[#allocation2 + $0x112] sm:$0xff] }
 0x56a   :  { %v16234_v32 = vpack.c.bf16 %v6307_v42, %v6306_v19 }
 0x56d   :  { %12041 = vmatmul.mubr.msk.bf16.vlgmr.msra.gmra.mrb[32].mxu0 %vm69_vm0, %v16147_v36 }
 0x56e   :  { %12073 = vmatpush3.bf16.msra.mxu0 %v13511_v7  ;;  %12044 = vmatprep.mubr.msk.bf16.mxu0 %vm69_vm0, %v16151_v2  ;;  %v6302_v7 = vld [vmem:[#allocation2 + $0xda] sm:$0xff] }
 0x56f   :  { %12106 = vmatprep.subr.bf16.mxu0 %v16149_v11 }
 0x570   :  { %12347 = vmatmul.mubr.msk.bf16.vlgmr.msra.gmra.mrb[32].mxu1 %vm69_vm0, %v16155_v44 }
 0x571   :  { %12379 = vmatpush3.bf16.msra.mxu1 %v16090_v20  ;;  %12350 = vmatprep.mubr.msk.bf16.mxu1 %vm69_vm0, %v16161_v10  ;;  %v6303_v20 = vld [vmem:[#allocation2 + $0xe2] sm:$0xff] }
 0x572   :  { %12412 = vmatprep.subr.bf16.mxu1 %v16159_v27  ;;  %v16218_v40 = vpack.c.bf16 %v6303_v20, %v6302_v7 }
 0x575   :  { %12045 = vmatmul.mubr.msk.bf16.gmra.mrb[36].mxu0 %vm69_vm0, %v16170_v22 }
 0x576   :  { %12048 = vmatprep.mubr.msk.bf16.mxu0 %vm69_vm0, %v16172_v24 }
 0x578   :  { %12351 = vmatmul.mubr.msk.bf16.gmra.mrb[36].mxu1 %vm69_vm0, %v16176_v31 }
 0x579   :  { %12354 = vmatprep.mubr.msk.bf16.mxu1 %vm69_vm0, %v16180_v6 }
 0x57d   :  { %12049 = vmatmul.mubr.msk.bf16.gmra.mrb[40].mxu0 %vm69_vm0, %v16186_v8 }
 0x57e   :  { %12052 = vmatprep.mubr.msk.bf16.mxu0 %vm69_vm0, %v16188_v56 }
 0x580   :  { %12355 = vmatmul.mubr.msk.bf16.gmra.mrb[40].mxu1 %vm69_vm0, %v16192_v9 }
 0x581   :  { %12358 = vmatprep.mubr.msk.bf16.mxu1 %vm69_vm0, %v16196_v12 }
 0x585   :  { %12053 = vmatmul.mubr.msk.bf16.gmra.mrb[44].mxu0 %vm69_vm0, %v16202_v47 }
 0x586   :  { %12056 = vmatprep.mubr.msk.bf16.mxu0 %vm69_vm0, %v16204_v26 }
 0x588   :  { %12359 = vmatmul.mubr.msk.bf16.gmra.mrb[44].mxu1 %vm69_vm0, %v16208_v13 }
 0x589   :  { %12362 = vmatprep.mubr.msk.bf16.mxu1 %vm69_vm0, %v16212_v41 }
 0x58d   :  { %12057 = vmatmul.mubr.msk.bf16.gmra.mrb[48].mxu0 %vm69_vm0, %v16218_v40 }
 0x58e   :  { %12060 = vmatprep.mubr.msk.bf16.mxu0 %vm69_vm0, %v16220_v51 }
 0x590   :  { %12363 = vmatmul.mubr.msk.bf16.gmra.mrb[48].mxu1 %vm69_vm0, %v16224_v25 }
 0x591   :  { %12366 = vmatprep.mubr.msk.bf16.mxu1 %vm69_vm0, %v16228_v45 }
 0x595   :  { %12061 = vmatmul.mubr.msk.bf16.gmra.mrb[52].mxu0 %vm69_vm0, %v16234_v32 }
 0x596   :  { %12064 = vmatprep.mubr.msk.bf16.mxu0 %vm69_vm0, %v16236_v3 }
 0x598   :  { %12367 = vmatmul.mubr.msk.bf16.gmra.mrb[52].mxu1 %vm69_vm0, %v16240_v5 }
 0x599   :  { %12370 = vmatprep.mubr.msk.bf16.mxu1 %vm69_vm0, %v16244_v16 }
 0x59d   :  { %12065 = vmatmul.mubr.msk.bf16.gmra.mrb[56].mxu0 %vm69_vm0, %v16250_v35 }
 0x59e   :  { %12068 = vmatprep.mubr.msk.bf16.mxu0 %vm69_vm0, %v16252_v15 }
 0x5a0   :  { %12371 = vmatmul.mubr.msk.bf16.gmra.mrb[56].mxu1 %vm69_vm0, %v16256_v4 }
 0x5a1   :  { %12374 = vmatprep.mubr.msk.bf16.mxu1 %vm69_vm0, %v16260_v43 }
 0x5a5   :  { %12069 = vmatmul.mubr.msk.bf16.gmra.mrb[60].mxu0 %vm69_vm0, %v16266_v57 }
 0x5a6   :  { %12074 = vmatprep.mubr.msk.bf16.mxu0 %vm69_vm0, %v16147_v36  ;;  %v6316_v36 = vld [vmem:[#allocation2 + $0x182] sm:$0xff] }
 0x5a8   :  { %12375 = vmatmul.mubr.msk.bf16.gmra.mrb[60].mxu1 %vm69_vm0, %v16270_v61 }
 0x5a9   :  { %12380 = vmatprep.mubr.msk.bf16.mxu1 %vm69_vm0, %v16155_v44 }
 0x5ad   :  { %12075 = vmatmul.mubr.msk.bf16.vlgmr.msra.gmra.mrb[32].mxu0 %vm69_vm0, %v16151_v2 }
 0x5ae   :  { %12107 = vmatpush3.bf16.msra.mxu0 %v16149_v11  ;;  %12078 = vmatprep.mubr.msk.bf16.mxu0 %vm69_vm0, %v16170_v22  ;;  %v6317_v11 = vld [vmem:[#allocation2 + $0x18a] sm:$0xff] }
 0x5af   :  { %v6586_v44 = vpack.c.bf16 %v6317_v11, %v6316_v36 }
 0x5b0   :  { %12381 = vmatmul.mubr.msk.bf16.vlgmr.msra.gmra.mrb[32].mxu1 %vm69_vm0, %v16161_v10 }
 0x5b1   :  { %12413 = vmatpush3.bf16.msra.mxu1 %v16159_v27  ;;  %12384 = vmatprep.mubr.msk.bf16.mxu1 %vm69_vm0, %v16176_v31  ;;  %v8688_v27 = vld [vmem:[#allocation2 + $0x332] sm:$0xff] }
 0x5b2   :  { %v8957_v30 = vpack.c.bf16 %v8689_v29, %v8688_v27 }
 0x5b5   :  { %12079 = vmatmul.mubr.msk.bf16.gmra.mrb[36].mxu0 %vm69_vm0, %v16172_v24 }
 0x5b6   :  { %12082 = vmatprep.mubr.msk.bf16.mxu0 %vm69_vm0, %v16186_v8 }
 0x5b8   :  { %12385 = vmatmul.mubr.msk.bf16.gmra.mrb[36].mxu1 %vm69_vm0, %v16180_v6 }
 0x5b9   :  { %12388 = vmatprep.mubr.msk.bf16.mxu1 %vm69_vm0, %v16192_v9 }
 0x5bd   :  { %12083 = vmatmul.mubr.msk.bf16.gmra.mrb[40].mxu0 %vm69_vm0, %v16188_v56 }
 0x5be   :  { %12086 = vmatprep.mubr.msk.bf16.mxu0 %vm69_vm0, %v16202_v47 }
 0x5c0   :  { %12389 = vmatmul.mubr.msk.bf16.gmra.mrb[40].mxu1 %vm69_vm0, %v16196_v12 }
 0x5c1   :  { %12392 = vmatprep.mubr.msk.bf16.mxu1 %vm69_vm0, %v16208_v13 }
 0x5c5   :  { %12087 = vmatmul.mubr.msk.bf16.gmra.mrb[44].mxu0 %vm69_vm0, %v16204_v26 }
 0x5c6   :  { %12090 = vmatprep.mubr.msk.bf16.mxu0 %vm69_vm0, %v16218_v40 }
 0x5c8   :  { %12393 = vmatmul.mubr.msk.bf16.gmra.mrb[44].mxu1 %vm69_vm0, %v16212_v41 }
 0x5c9   :  { %12396 = vmatprep.mubr.msk.bf16.mxu1 %vm69_vm0, %v16224_v25 }
 0x5cd   :  { %12091 = vmatmul.mubr.msk.bf16.gmra.mrb[48].mxu0 %vm69_vm0, %v16220_v51 }
 0x5ce   :  { %12094 = vmatprep.mubr.msk.bf16.mxu0 %vm69_vm0, %v16234_v32 }
 0x5d0   :  { %12397 = vmatmul.mubr.msk.bf16.gmra.mrb[48].mxu1 %vm69_vm0, %v16228_v45 }
 0x5d1   :  { %12400 = vmatprep.mubr.msk.bf16.mxu1 %vm69_vm0, %v16240_v5 }
 0x5d5   :  { %12095 = vmatmul.mubr.msk.bf16.gmra.mrb[52].mxu0 %vm69_vm0, %v16236_v3 }
 0x5d6   :  { %12098 = vmatprep.mubr.msk.bf16.mxu0 %vm69_vm0, %v16250_v35 }
 0x5d8   :  { %12401 = vmatmul.mubr.msk.bf16.gmra.mrb[52].mxu1 %vm69_vm0, %v16244_v16 }
 0x5d9   :  { %12404 = vmatprep.mubr.msk.bf16.mxu1 %vm69_vm0, %v16256_v4 }
 0x5dd   :  { %12099 = vmatmul.mubr.msk.bf16.gmra.mrb[56].mxu0 %vm69_vm0, %v16252_v15 }
 0x5de   :  { %12102 = vmatprep.mubr.msk.bf16.mxu0 %vm69_vm0, %v16266_v57 }
 0x5e0   :  { %12405 = vmatmul.mubr.msk.bf16.gmra.mrb[56].mxu1 %vm69_vm0, %v16260_v43 }
 0x5e1   :  { %12408 = vmatprep.mubr.msk.bf16.mxu1 %vm69_vm0, %v16270_v61 }
 0x5e5   :  { %12103 = vmatmul.mubr.msk.bf16.gmra.mrb[60].mxu0 %vm69_vm0, %v6586_v44 }
 0x5e6   :  { %12108 = vmatprep.mubr.msk.bf16.mxu0 %vm69_vm0, %v16151_v2  ;;  %v6318_v2 = vld [vmem:[#allocation2 + $0x19a] sm:$0xff] }
 0x5e8   :  { %12409 = vmatmul.mubr.msk.bf16.gmra.mrb[60].mxu1 %vm69_vm0, %v8957_v30 }
 0x5e9   :  { %12414 = vmatprep.mubr.msk.bf16.mxu1 %vm69_vm0, %v16161_v10  ;;  %v6319_v10 = vld [vmem:[#allocation2 + $0x1a2] sm:$0xff] }
 0x5ed   :  { %12109 = vmatmul.mubr.msk.bf16.vlgmr.msra.gmra.mrb[32].mxu0 %vm69_vm0, %v16170_v22  ;;  %v6792_v22 = vpack.c.bf16 %v6319_v10, %v6318_v2 }
 0x5ee   :  { %12112 = vmatprep.mubr.msk.bf16.mxu0 %vm69_vm0, %v16172_v24  ;;  %v8690_v24 = vld [vmem:[#allocation2 + $0x34a] sm:$0xff] }
 0x5f0   :  { %12415 = vmatmul.mubr.msk.bf16.vlgmr.msra.gmra.mrb[32].mxu1 %vm69_vm0, %v16176_v31  ;;  %v8691_v31 = vld [vmem:[#allocation2 + $0x352] sm:$0xff] }
 0x5f1   :  { %12418 = vmatprep.mubr.msk.bf16.mxu1 %vm69_vm0, %v16180_v6  ;;  %v9162_v6 = vpack.c.bf16 %v8691_v31, %v8690_v24 }
 0x5f5   :  { %12113 = vmatmul.mubr.msk.bf16.gmra.mrb[36].mxu0 %vm69_vm0, %v16186_v8 }
 0x5f6   :  { %12116 = vmatprep.mubr.msk.bf16.mxu0 %vm69_vm0, %v16188_v56 }
 0x5f8   :  { %12419 = vmatmul.mubr.msk.bf16.gmra.mrb[36].mxu1 %vm69_vm0, %v16192_v9 }
 0x5f9   :  { %12422 = vmatprep.mubr.msk.bf16.mxu1 %vm69_vm0, %v16196_v12 }
 0x5fd   :  { %12117 = vmatmul.mubr.msk.bf16.gmra.mrb[40].mxu0 %vm69_vm0, %v16202_v47 }
 0x5fe   :  { %12120 = vmatprep.mubr.msk.bf16.mxu0 %vm69_vm0, %v16204_v26 }
 0x600   :  { %12423 = vmatmul.mubr.msk.bf16.gmra.mrb[40].mxu1 %vm69_vm0, %v16208_v13 }
 0x601   :  { %12426 = vmatprep.mubr.msk.bf16.mxu1 %vm69_vm0, %v16212_v41 }
 0x605   :  { %12121 = vmatmul.mubr.msk.bf16.gmra.mrb[44].mxu0 %vm69_vm0, %v16218_v40 }
 0x606   :  { %12124 = vmatprep.mubr.msk.bf16.mxu0 %vm69_vm0, %v16220_v51 }
 0x608   :  { %12427 = vmatmul.mubr.msk.bf16.gmra.mrb[44].mxu1 %vm69_vm0, %v16224_v25 }
 0x609   :  { %12430 = vmatprep.mubr.msk.bf16.mxu1 %vm69_vm0, %v16228_v45 }
 0x60d   :  { %12125 = vmatmul.mubr.msk.bf16.gmra.mrb[48].mxu0 %vm69_vm0, %v16234_v32 }
 0x60e   :  { %12128 = vmatprep.mubr.msk.bf16.mxu0 %vm69_vm0, %v16236_v3 }
 0x610   :  { %12431 = vmatmul.mubr.msk.bf16.gmra.mrb[48].mxu1 %vm69_vm0, %v16240_v5 }
 0x611   :  { %12434 = vmatprep.mubr.msk.bf16.mxu1 %vm69_vm0, %v16244_v16 }
 0x615   :  { %12129 = vmatmul.mubr.msk.bf16.gmra.mrb[52].mxu0 %vm69_vm0, %v16250_v35 }
 0x616   :  { %12132 = vmatprep.mubr.msk.bf16.mxu0 %vm69_vm0, %v16252_v15 }
 0x618   :  { %12435 = vmatmul.mubr.msk.bf16.gmra.mrb[52].mxu1 %vm69_vm0, %v16256_v4 }
 0x619   :  { %12438 = vmatprep.mubr.msk.bf16.mxu1 %vm69_vm0, %v16260_v43 }
 0x61d   :  { %12133 = vmatmul.mubr.msk.bf16.gmra.mrb[56].mxu0 %vm69_vm0, %v16266_v57 }
 0x61e   :  { %12136 = vmatprep.mubr.msk.bf16.mxu0 %vm69_vm0, %v6586_v44 }
 0x620   :  { %12439 = vmatmul.mubr.msk.bf16.gmra.mrb[56].mxu1 %vm69_vm0, %v16270_v61 }
 0x621   :  { %12442 = vmatprep.mubr.msk.bf16.mxu1 %vm69_vm0, %v8957_v30 }
 0x625   :  { %12137 = vmatmul.mubr.msk.bf16.gmra.mrb[60].mxu0 %vm69_vm0, %v6792_v22 }
 0x628   :  { %12443 = vmatmul.mubr.msk.bf16.gmra.mrb[60].mxu1 %vm69_vm0, %v9162_v6 }
 0x6c0   :  { %v16398_v8 = vpop.f32.mrb[32].mxu0 }
 0x6c1   :  { %v16400_v56 = vpop.f32.mrb[33].mxu0  ;;  %v7070_v7 = vmul.f32 %v16398_v8, %v16398_v8 }
 0x6c2   :  { %v16402_v9 = vpop.f32.mrb[34].mxu0  ;;  %v7068_v26 = vmul.f32 %v16400_v56, %v16400_v56 }
 0x6c3   :  { %v16404_v12 = vpop.f32.mrb[32].mxu1  ;;  %v16406_v47 = vpop.f32.mrb[35].mxu0  ;;  %v7071_v51 = vmul.f32 %v16402_v9, %v16402_v9 }
 0x6c4   :  { %v16410_v34 = vpop.f32.mrb[33].mxu1  ;;  %v7030_v50 = vadd.f32 %v16406_v47, %v16400_v56  ;;  %v7069_v13 = vmul.f32 %v16406_v47, %v16406_v47  ;;  %v9439_v45 = vmul.f32 %v16404_v12, %v16404_v12 }
 0x6c5   :  { %v16416_v41 = vpop.f32.mrb[34].mxu1  ;;  %v9437_v40 = vmul.f32 %v16410_v34, %v16410_v34 }
 0x6c6   :  { %17420 = vst [vmem:[#allocation32_spill] sm:$0xff] %v16416_v41  ;;  %v7031_v20 = vadd.f32 %v16398_v8, %v7030_v50  ;;  %v7100_v49 = vadd.f32 %v7069_v13, %v7068_v26  ;;  %v16421_v39 = vpop.f32.mrb[35].mxu1  ;;  %v9440_v3 = vmul.f32 %v16416_v41, %v16416_v41 }
 0x6c7   :  { %v9399_v23 = vadd.f32 %v16421_v39, %v16410_v34  ;;  %v9438_v59 = vmul.f32 %v16421_v39, %v16421_v39 }
 0x6c8   :  { %v7101_v63 = vadd.f32 %v7100_v49, %v7070_v7  ;;  %v16431_v48 = vpop.f32.mrb[36].mxu0  ;;  %v7032_v25 = vadd.f32 %v16402_v9, %v7031_v20 }
 0x6c9   :  { %v9400_v19 = vadd.f32 %v16404_v12, %v9399_v23  ;;  %v9469_v42 = vadd.f32 %v9438_v59, %v9437_v40  ;;  %v16437_v33 = vpop.f32.mrb[37].mxu0  ;;  %v7074_v46 = vmul.f32 %v16431_v48, %v16431_v48 }
 0x6ca   :  { %v7033_v53 = vadd.f32 %v7032_v25, %v16437_v33  ;;  %v7072_v32 = vmul.f32 %v16437_v33, %v16437_v33  ;;  %v7102_v60 = vadd.f32 %v7101_v63, %v7071_v51  ;;  %v16442_v55 = vpop.f32.mrb[38].mxu0 }
 0x6cb   :  { %v9470_v18 = vadd.f32 %v9469_v42, %v9439_v45  ;;  %v16446_v38 = vpop.f32.mrb[36].mxu1  ;;  %v9401_v5 = vadd.f32 %v16416_v41, %v9400_v19  ;;  %v16449_v16 = vpop.f32.mrb[39].mxu0  ;;  %v7075_v17 = vmul.f32 %v16442_v55, %v16442_v55 }
 0x6cc   :  { %17421 = vst [vmem:[#allocation29_spill] sm:$0xff] %v16446_v38  ;;  %v7103_v58 = vadd.f32 %v7102_v60, %v7072_v32  ;;  %v16451_v52 = vpop.f32.mrb[37].mxu1  ;;  %v7034_v14 = vadd.f32 %v7033_v53, %v16449_v16  ;;  %v7073_v28 = vmul.f32 %v16449_v16, %v16449_v16  ;;  %v9443_v11 = vmul.f32 %v16446_v38, %v16446_v38 }
 0x6cd   :  { %17422 = vst [vmem:[#allocation31_spill] sm:$0xff] %v16451_v52  ;;  %v9402_v35 = vadd.f32 %v9401_v5, %v16451_v52  ;;  %v9441_v21 = vmul.f32 %v16451_v52, %v16451_v52  ;;  %v9471_v1 = vadd.f32 %v9470_v18, %v9440_v3  ;;  %v16459_v15 = vpop.f32.mrb[38].mxu1 }
 0x6ce   :  { %17423 = vst [vmem:[#allocation34_spill] sm:$0xff] %v16459_v15  ;;  %v7035_v62 = vadd.f32 %v16431_v48, %v7034_v14  ;;  %v7104_v4 = vadd.f32 %v7103_v58, %v7073_v28  ;;  %v16464_v43 = vpop.f32.mrb[39].mxu1  ;;  %v9444_v24 = vmul.f32 %v16459_v15, %v16459_v15 }
 0x6cf   :  { %17424 = vst [vmem:[#allocation36_spill] sm:$0xff] %v16464_v43  ;;  %v9472_v0 = vadd.f32 %v9471_v1, %v9441_v21  ;;  %v9403_v37 = vadd.f32 %v9402_v35, %v16464_v43  ;;  %v9442_v57 = vmul.f32 %v16464_v43, %v16464_v43 }
 0x6d0   :  { %v7105_v54 = vadd.f32 %v7104_v4, %v7074_v46  ;;  %v16471_v61 = vpop.f32.mrb[40].mxu0  ;;  %v7036_v36 = vadd.f32 %v16442_v55, %v7035_v62 }
 0x6d1   :  { %v9404_v44 = vadd.f32 %v16446_v38, %v9403_v37  ;;  %v9473_v27 = vadd.f32 %v9472_v0, %v9442_v57  ;;  %v16477_v29 = vpop.f32.mrb[41].mxu0  ;;  %v7078_v63 = vmul.f32 %v16471_v61, %v16471_v61 }
 0x6d2   :  { %v7037_v30 = vadd.f32 %v7036_v36, %v16477_v29  ;;  %v7076_v2 = vmul.f32 %v16477_v29, %v16477_v29  ;;  %v7106_v10 = vadd.f32 %v7105_v54, %v7075_v17  ;;  %v16482_v22 = vpop.f32.mrb[42].mxu0 }
 0x6d3   :  { %v9474_v31 = vadd.f32 %v9473_v27, %v9443_v11  ;;  %v16486_v6 = vpop.f32.mrb[40].mxu1  ;;  %v9405_v26 = vadd.f32 %v16459_v15, %v9404_v44  ;;  %v16489_v50 = vpop.f32.mrb[43].mxu0  ;;  %v7079_v60 = vmul.f32 %v16482_v22, %v16482_v22 }
 0x6d4   :  { %17425 = vst [vmem:[#allocation33_spill] sm:$0xff] %v16486_v6  ;;  %v7107_v13 = vadd.f32 %v7106_v10, %v7076_v2  ;;  %v16491_v7 = vpop.f32.mrb[41].mxu1  ;;  %v7038_v20 = vadd.f32 %v7037_v30, %v16489_v50  ;;  %v7077_v49 = vmul.f32 %v16489_v50, %v16489_v50  ;;  %v9447_v58 = vmul.f32 %v16486_v6, %v16486_v6 }
 0x6d5   :  { %17426 = vst [vmem:[#allocation35_spill] sm:$0xff] %v16491_v7  ;;  %v9406_v40 = vadd.f32 %v9405_v26, %v16491_v7  ;;  %v9445_v23 = vmul.f32 %v16491_v7, %v16491_v7  ;;  %v9475_v59 = vadd.f32 %v9474_v31, %v9444_v24  ;;  %v16499_v51 = vpop.f32.mrb[42].mxu1 }
 0x6d6   :  { %17427 = vst [vmem:[#allocation38_spill] sm:$0xff] %v16499_v51  ;;  %v7039_v25 = vadd.f32 %v16471_v61, %v7038_v20  ;;  %v7108_v45 = vadd.f32 %v7107_v13, %v7077_v49  ;;  %v16504_v19 = vpop.f32.mrb[43].mxu1  ;;  %v9448_v4 = vmul.f32 %v16499_v51, %v16499_v51 }
 0x6d7   :  { %17428 = vst [vmem:[#allocation40_spill] sm:$0xff] %v16504_v19  ;;  %v9476_v42 = vadd.f32 %v9475_v59, %v9445_v23  ;;  %v9407_v53 = vadd.f32 %v9406_v40, %v16504_v19  ;;  %v9446_v32 = vmul.f32 %v16504_v19, %v16504_v19 }
 0x6d8   :  { %v7109_v3 = vadd.f32 %v7108_v45, %v7078_v63  ;;  %v16511_v18 = vpop.f32.mrb[44].mxu0  ;;  %v7040_v5 = vadd.f32 %v16482_v22, %v7039_v25 }
 0x6d9   :  { %v9408_v14 = vadd.f32 %v16486_v6, %v9407_v53  ;;  %v9477_v28 = vadd.f32 %v9476_v42, %v9446_v32  ;;  %v16517_v35 = vpop.f32.mrb[45].mxu0  ;;  %v7082_v24 = vmul.f32 %v16511_v18, %v16511_v18 }
 0x6da   :  { %v7041_v21 = vadd.f32 %v7040_v5, %v16517_v35  ;;  %v7080_v1 = vmul.f32 %v16517_v35, %v16517_v35  ;;  %v7110_v46 = vadd.f32 %v7109_v3, %v7079_v60  ;;  %v16522_v62 = vpop.f32.mrb[46].mxu0 }
 0x6db   :  { %v9478_v0 = vadd.f32 %v9477_v28, %v9447_v58  ;;  %v16526_v37 = vpop.f32.mrb[44].mxu1  ;;  %v9409_v57 = vadd.f32 %v16499_v51, %v9408_v14  ;;  %v16529_v17 = vpop.f32.mrb[47].mxu0  ;;  %v7083_v23 = vmul.f32 %v16522_v62, %v16522_v62 }
 0x6dc   :  { %17429 = vst [vmem:[#allocation37_spill] sm:$0xff] %v16526_v37  ;;  %v7111_v54 = vadd.f32 %v7110_v46, %v7080_v1  ;;  %v16531_v36 = vpop.f32.mrb[45].mxu1  ;;  %v7042_v11 = vadd.f32 %v7041_v21, %v16529_v17  ;;  %v7081_v44 = vmul.f32 %v16529_v17, %v16529_v17  ;;  %v9451_v45 = vmul.f32 %v16526_v37, %v16526_v37 }
 0x6dd   :  { %17430 = vst [vmem:[#allocation39_spill] sm:$0xff] %v16531_v36  ;;  %v9410_v27 = vadd.f32 %v9409_v57, %v16531_v36  ;;  %v9449_v30 = vmul.f32 %v16531_v36, %v16531_v36  ;;  %v9479_v2 = vadd.f32 %v9478_v0, %v9448_v4  ;;  %v16539_v10 = vpop.f32.mrb[46].mxu1 }
 0x6de   :  { %17431 = vst [vmem:[#allocation42_spill] sm:$0xff] %v16539_v10  ;;  %v7043_v31 = vadd.f32 %v16511_v18, %v7042_v11  ;;  %v7112_v26 = vadd.f32 %v7111_v54, %v7081_v44  ;;  %v16544_v13 = vpop.f32.mrb[47].mxu1  ;;  %v9452_v14 = vmul.f32 %v16539_v10, %v16539_v10 }
 0x6df   :  { %17432 = vst [vmem:[#allocation41_spill] sm:$0xff] %v16544_v13  ;;  %v9480_v20 = vadd.f32 %v9479_v2, %v9449_v30  ;;  %v9411_v49 = vadd.f32 %v9410_v27, %v16544_v13  ;;  %v9450_v40 = vmul.f32 %v16544_v13, %v16544_v13 }
 0x6e0   :  { %v7113_v59 = vadd.f32 %v7112_v26, %v7082_v24  ;;  %v16551_v63 = vpop.f32.mrb[48].mxu0  ;;  %v7044_v25 = vadd.f32 %v16522_v62, %v7043_v31 }
 0x6e1   :  { %v9412_v42 = vadd.f32 %v16526_v37, %v9411_v49  ;;  %v9481_v53 = vadd.f32 %v9480_v20, %v9450_v40  ;;  %v16557_v32 = vpop.f32.mrb[49].mxu0  ;;  %v7086_v2 = vmul.f32 %v16551_v63, %v16551_v63 }
 0x6e2   :  { %v7045_v60 = vadd.f32 %v7044_v25, %v16557_v32  ;;  %v7084_v3 = vmul.f32 %v16557_v32, %v16557_v32  ;;  %v7114_v5 = vadd.f32 %v7113_v59, %v7083_v23  ;;  %v16562_v58 = vpop.f32.mrb[50].mxu0 }
 0x6e3   :  { %v9482_v28 = vadd.f32 %v9481_v53, %v9451_v45  ;;  %v16566_v21 = vpop.f32.mrb[48].mxu1  ;;  %v9413_v1 = vadd.f32 %v16539_v10, %v9412_v42  ;;  %v16569_v46 = vpop.f32.mrb[51].mxu0  ;;  %v7087_v23 = vmul.f32 %v16562_v58, %v16562_v58 }
 0x6e4   :  { %17433 = vst [vmem:[#allocation14_spill] sm:$0xff] %v16566_v21  ;;  %v7115_v4 = vadd.f32 %v7114_v5, %v7084_v3  ;;  %v16571_v0 = vpop.f32.mrb[49].mxu1  ;;  %v7046_v57 = vadd.f32 %v7045_v60, %v16569_v46  ;;  %v7085_v54 = vmul.f32 %v16569_v46, %v16569_v46  ;;  %v9455_v42 = vmul.f32 %v16566_v21, %v16566_v21 }
 0x6e5   :  { %17434 = vst [vmem:[#allocation16_spill] sm:$0xff] %v16571_v0  ;;  %v9414_v11 = vadd.f32 %v9413_v1, %v16571_v0  ;;  %v9453_v44 = vmul.f32 %v16571_v0, %v16571_v0  ;;  %v9483_v27 = vadd.f32 %v9482_v28, %v9452_v14  ;;  %v16579_v30 = vpop.f32.mrb[50].mxu1 }
 0x6e6   :  { %17435 = vst [vmem:[#allocation18_spill] sm:$0xff] %v16579_v30  ;;  %v7047_v24 = vadd.f32 %v16551_v63, %v7046_v57  ;;  %v7116_v31 = vadd.f32 %v7115_v4, %v7085_v54  ;;  %v16584_v26 = vpop.f32.mrb[51].mxu1  ;;  %v9456_v4 = vmul.f32 %v16579_v30, %v16579_v30 }
 0x6e7   :  { %17436 = vst [vmem:[#allocation15_spill] sm:$0xff] %v16584_v26  ;;  %v9484_v20 = vadd.f32 %v9483_v27, %v9453_v44  ;;  %v9415_v49 = vadd.f32 %v9414_v11, %v16584_v26  ;;  %v9454_v40 = vmul.f32 %v16584_v26, %v16584_v26 }
 0x6e8   :  { %v7117_v59 = vadd.f32 %v7116_v31, %v7086_v2  ;;  %v16591_v25 = vpop.f32.mrb[52].mxu0  ;;  %v7048_v45 = vadd.f32 %v16562_v58, %v7047_v24 }
 0x6e9   :  { %v9416_v53 = vadd.f32 %v16566_v21, %v9415_v49  ;;  %v9485_v60 = vadd.f32 %v9484_v20, %v9454_v40  ;;  %v16597_v3 = vpop.f32.mrb[53].mxu0 }
 0x6ea   :  { %v7049_v5 = vadd.f32 %v7048_v45, %v16597_v3  ;;  %v7088_v14 = vmul.f32 %v16597_v3, %v16597_v3  ;;  %v7118_v28 = vadd.f32 %v7117_v59, %v7087_v23  ;;  %v16602_v1 = vpop.f32.mrb[54].mxu0  ;;  %v7090_v59 = vmul.f32 %v16591_v25, %v16591_v25 }
 0x6eb   :  { %v9486_v57 = vadd.f32 %v9485_v60, %v9455_v42  ;;  %v16606_v54 = vpop.f32.mrb[52].mxu1  ;;  %v9417_v11 = vadd.f32 %v16579_v30, %v9416_v53  ;;  %v16609_v44 = vpop.f32.mrb[55].mxu0 }
 0x6ec   :  { %17437 = vst [vmem:[#allocation17_spill] sm:$0xff] %v16606_v54  ;;  %v7119_v27 = vadd.f32 %v7118_v28, %v7088_v14  ;;  %v16611_v2 = vpop.f32.mrb[53].mxu1  ;;  %v7050_v24 = vadd.f32 %v7049_v5, %v16609_v44  ;;  %v7089_v31 = vmul.f32 %v16609_v44, %v16609_v44  ;;  %v7091_v28 = vmul.f32 %v16602_v1, %v16602_v1 }
 0x6ed   :  { %17438 = vst [vmem:[#allocation20_spill] sm:$0xff] %v16611_v2  ;;  %v9418_v20 = vadd.f32 %v9417_v11, %v16611_v2  ;;  %v9457_v49 = vmul.f32 %v16611_v2, %v16611_v2  ;;  %v9487_v40 = vadd.f32 %v9486_v57, %v9456_v4  ;;  %v16619_v23 = vpop.f32.mrb[54].mxu1 }
 0x6ee   :  { %17439 = vst [vmem:[#allocation22_spill] sm:$0xff] %v16619_v23  ;;  %v7051_v45 = vadd.f32 %v16591_v25, %v7050_v24  ;;  %v7120_v42 = vadd.f32 %v7119_v27, %v7089_v31  ;;  %v16624_v53 = vpop.f32.mrb[55].mxu1  ;;  %v9459_v24 = vmul.f32 %v16606_v54, %v16606_v54 }
 0x6ef   :  { %17440 = vst [vmem:[#allocation19_spill] sm:$0xff] %v16624_v53  ;;  %v9488_v60 = vadd.f32 %v9487_v40, %v9457_v49  ;;  %v9419_v5 = vadd.f32 %v9418_v20, %v16624_v53  ;;  %v9458_v14 = vmul.f32 %v16624_v53, %v16624_v53 }
 0x6f0   :  { %v7121_v4 = vadd.f32 %v7120_v42, %v7090_v59  ;;  %v16631_v57 = vpop.f32.mrb[56].mxu0  ;;  %v7052_v11 = vadd.f32 %v16602_v1, %v7051_v45  ;;  %v9460_v59 = vmul.f32 %v16619_v23, %v16619_v23 }
 0x6f1   :  { %v9420_v27 = vadd.f32 %v16606_v54, %v9419_v5  ;;  %v9489_v31 = vadd.f32 %v9488_v60, %v9458_v14  ;;  %v16637_v49 = vpop.f32.mrb[57].mxu0 }
 0x6f2   :  { %v7053_v20 = vadd.f32 %v7052_v11, %v16637_v49  ;;  %v7092_v40 = vmul.f32 %v16637_v49, %v16637_v49  ;;  %v7122_v53 = vadd.f32 %v7121_v4, %v7091_v28  ;;  %v16642_v2 = vpop.f32.mrb[58].mxu0 }
 0x6f3   :  { %v9490_v45 = vadd.f32 %v9489_v31, %v9459_v24  ;;  %v16646_v42 = vpop.f32.mrb[56].mxu1  ;;  %v9421_v30 = vadd.f32 %v16619_v23, %v9420_v27  ;;  %v16649_v5 = vpop.f32.mrb[59].mxu0  ;;  %v7094_v27 = vmul.f32 %v16631_v57, %v16631_v57 }
 0x6f4   :  { %17441 = vst [vmem:[#allocation21_spill] sm:$0xff] %v16646_v42  ;;  %v7123_v60 = vadd.f32 %v7122_v53, %v7092_v40  ;;  %v16651_v14 = vpop.f32.mrb[57].mxu1  ;;  %v7054_v11 = vadd.f32 %v7053_v20, %v16649_v5  ;;  %v7093_v28 = vmul.f32 %v16649_v5, %v16649_v5 }
 0x6f5   :  { %17442 = vst [vmem:[#allocation24_spill] sm:$0xff] %v16651_v14  ;;  %v9422_v4 = vadd.f32 %v9421_v30, %v16651_v14  ;;  %v9461_v54 = vmul.f32 %v16651_v14, %v16651_v14  ;;  %v9491_v24 = vadd.f32 %v9490_v45, %v9460_v59  ;;  %v16659_v31 = vpop.f32.mrb[58].mxu1  ;;  %v7095_v14 = vmul.f32 %v16642_v2, %v16642_v2 }
 0x6f6   :  { %17443 = vst [vmem:[#allocation26_spill] sm:$0xff] %v16659_v31  ;;  %v7055_v53 = vadd.f32 %v16631_v57, %v7054_v11  ;;  %v7124_v40 = vadd.f32 %v7123_v60, %v7093_v28  ;;  %v16664_v23 = vpop.f32.mrb[59].mxu1  ;;  %v9463_v11 = vmul.f32 %v16646_v42, %v16646_v42 }
 0x6f7   :  { %17444 = vst [vmem:[#allocation23_spill] sm:$0xff] %v16664_v23  ;;  %v9492_v20 = vadd.f32 %v9491_v24, %v9461_v54  ;;  %v9423_v21 = vadd.f32 %v9422_v4, %v16664_v23  ;;  %v9462_v30 = vmul.f32 %v16664_v23, %v16664_v23 }
 0x6f8   :  { %v7125_v59 = vadd.f32 %v7124_v40, %v7094_v27  ;;  %v16671_v45 = vpop.f32.mrb[60].mxu0  ;;  %v7056_v26 = vadd.f32 %v16642_v2, %v7055_v53  ;;  %v9464_v27 = vmul.f32 %v16659_v31, %v16659_v31 }
 0x6f9   :  { %v9424_v60 = vadd.f32 %v16646_v42, %v9423_v21  ;;  %v9493_v28 = vadd.f32 %v9492_v20, %v9462_v30  ;;  %v16677_v54 = vpop.f32.mrb[61].mxu0 }
 0x6fa   :  { %v7057_v4 = vadd.f32 %v7056_v26, %v16677_v54  ;;  %v7096_v24 = vmul.f32 %v16677_v54, %v16677_v54  ;;  %v7126_v23 = vadd.f32 %v7125_v59, %v7095_v14  ;;  %v16682_v0 = vpop.f32.mrb[62].mxu0 }
 0x6fb   :  { %v9494_v53 = vadd.f32 %v9493_v28, %v9463_v11  ;;  %v16686_v40 = vpop.f32.mrb[60].mxu1  ;;  %v9425_v10 = vadd.f32 %v16659_v31, %v9424_v60  ;;  %v16689_v21 = vpop.f32.mrb[63].mxu0  ;;  %v7098_v60 = vmul.f32 %v16671_v45, %v16671_v45  ;;  %v7099_v36 = vmul.f32 %v16682_v0, %v16682_v0 }
 0x6fc   :  { %17445 = vst [vmem:[#allocation25_spill] sm:$0xff] %v16686_v40  ;;  %v7127_v20 = vadd.f32 %v7126_v23, %v7096_v24  ;;  %v16691_v30 = vpop.f32.mrb[61].mxu1  ;;  %v7058_v26 = vadd.f32 %v7057_v4, %v16689_v21  ;;  %v7097_v14 = vmul.f32 %v16689_v21, %v16689_v21 }
 0x6fd   :  { %17446 = vst [vmem:[#allocation30_spill] sm:$0xff] %v16691_v30  ;;  %v9426_v59 = vadd.f32 %v9425_v10, %v16691_v30  ;;  %v9465_v42 = vmul.f32 %v16691_v30, %v16691_v30  ;;  %v9495_v11 = vadd.f32 %v9494_v53, %v9464_v27  ;;  %v16699_v28 = vpop.f32.mrb[62].mxu1  ;;  %v9467_v27 = vmul.f32 %v16686_v40, %v16686_v40 }
 0x6fe   :  { %v7059_v23 = vadd.f32 %v16671_v45, %v7058_v26  ;;  %v7128_v24 = vadd.f32 %v7127_v20, %v7097_v14  ;;  %v9323_v31 = vpop.f32.mrb[63].mxu1  ;;  %v9468_v20 = vmul.f32 %v16699_v28, %v16699_v28 }
 0x6ff   :  { %v9496_v37 = vadd.f32 %v9495_v11, %v9465_v42  ;;  %v9427_v4 = vadd.f32 %v9426_v59, %v9323_v31  ;;  %v9466_v13 = vmul.f32 %v9323_v31, %v9323_v31 }
 0x700   :  { %v7060_v10 = vadd.f32 %v16682_v0, %v7059_v23  ;;  %v7129_v51 = vadd.f32 %v7128_v24, %v7098_v60 }
 0x701   :  { %v9428_v53 = vadd.f32 %v16686_v40, %v9427_v4  ;;  %v9497_v30 = vadd.f32 %v9496_v37, %v9466_v13 }
 0x702   :  { %v7061_v6 = vrot.slane %v7060_v10, 4  ;;  %v7130_v19 = vadd.f32 %v7129_v51, %v7099_v36 }
 0x703   :  { %v9429_v42 = vadd.f32 %v16699_v28, %v9428_v53  ;;  %v9498_v26 = vadd.f32 %v9497_v30, %v9467_v27 }
 0x704   :  { %v7062_v14 = vadd.f32 %v7061_v6, %v7060_v10  ;;  %v7131_v59 = vrot.slane %v7130_v19, 4 }
 0x705   :  { %v9430_v11 = vrot.slane %v9429_v42, 4  ;;  %v9499_v7 = vadd.f32 %v9498_v26, %v9468_v20 }
 0x706   :  { %v7063_v23 = vrot.slane %v7062_v14, 2  ;;  %v7132_v60 = vadd.f32 %v7131_v59, %v7130_v19 }
 0x707   :  { %v9431_v24 = vadd.f32 %v9430_v11, %v9429_v42  ;;  %v9500_v15 = vrot.slane %v9499_v7, 4 }
 0x708   :  { %v7064_v38 = vadd.f32 %v7063_v23, %v7062_v14  ;;  %v7133_v43 = vrot.slane %v7132_v60, 2 }
 0x709   :  { %v9432_v4 = vrot.slane %v9431_v24, 2  ;;  %v9501_v37 = vadd.f32 %v9500_v15, %v9499_v7 }
 0x70a   :  { %v7065_v13 = vrot.slane %v7064_v38, 1  ;;  %v7134_v51 = vadd.f32 %v7133_v43, %v7132_v60  ;;  %v9512_v43 = vld [vmem:[%s17270_s5] sm:$0x1]  ;;  %s13621_s5 = smov [#allocation10]  }
 0x70b   :  { %v9433_v36 = vadd.f32 %v9432_v4, %v9431_v24  ;;  %v9502_v40 = vrot.slane %v9501_v37, 2 }
 0x70c   :  { %v7135_v52 = vrot.slane %v7134_v51, 1  ;;  %v7066_v41 = vadd.f32 %v7065_v13, %v7064_v38 }
 0x70d   :  { %v9434_v53 = vrot.slane %v9433_v36, 1  ;;  %v9503_v30 = vadd.f32 %v9502_v40, %v9501_v37  ;;  %v17447_v40 = vld [vmem:[#allocation43_spill] sm:$0xff] }
 0x70e   :  { %v7136_v6 = vadd.f32 %v7135_v52, %v7134_v51  ;;  %v9516_v52 = vld [vmem:[%s17271_s6] sm:$0x1]  ;;  %s9985_s6 = sshll.u32 %s13621_s5, 4  ;;  %s9986_s6 = int_to_ptr.vmem [resolvable:$true] %s9985_s6 }
 0x70f   :  { %v9435_v10 = vadd.f32 %v9434_v53, %v9433_v36  ;;  %v9504_v27 = vrot.slane %v9503_v30, 1  ;;  %s13585_s21 = scalar_lea.vmem %s9986_s6, 8192  ;;  %p13590_p11 = scmp.lt.s32.totalorder %s9986_s6, %s9986_s6 }
 0x710   :  { %p13586_p10 = scmp.ne.s32.totalorder %s9986_s6, %s13585_s21  ;;  %p13591_p12 = scmp.lt.s32.totalorder %s13585_s21, %s13585_s21 }
 0x711   :  { %v9436_v20 = vadd.f32 %v9435_v10, %v7066_v41  ;;  %v9505_v26 = vadd.f32 %v9504_v27, %v9503_v30 }
 0x712   :  { %p13592_p13 = por %p13591_p12, %p13590_p11 }
 0x713   :  { %v9506_v19 = vadd.f32 %v9505_v26, %v7136_v6  ;;  %v9507_v42 = vmul.f32 0.001953125, %v9436_v20 }
 0x714   :  { %p13593_p0 = pnand %p13592_p13, %p13586_p10 }
 0x715   :  { %v9508_v59 = vmul.f32 0.001953125, %v9506_v19  ;;  %v9509_v14 = vmul.f32 %v9507_v42, %v9507_v42 }
 0x717   :  { %v9510_v11 = vsub.f32 %v9508_v59, %v9509_v14  ;;  %v17460_v59 = vld [vmem:[#allocation34_spill] sm:$0xff]  ;;  %v17462_v14 = vld [vmem:[#allocation35_spill] sm:$0xff] }
 0x719   :  { %v9511_v23 = vmax.f32 %v9510_v11, 0.0 }
 0x71b   :  { %v9513_v15 = vadd.f32 1e-05, %v9511_v23  ;;  %v17464_v23 = vld [vmem:[#allocation40_spill] sm:$0xff] }
 0x71d   :  { %13517 = vrsqrt.f32 %v9513_v15 }
 0x727   :  { %v13518_v38 = vpop.eup %13517 }
 0x728   :  { %v9515_v7 = vmul.f32 %v13518_v38, %v9512_v43  ;;  %v17466_v43 = vld [vmem:[#allocation33_spill] sm:$0xff] }
 0x72a   :  { %v9517_v41 = vmul.f32 %v9515_v7, %v9507_v42  ;;  %v16720_v60 = vrot.slane %v9515_v7, %v17447_v40  ;;  %v17468_v7 = vld [vmem:[#allocation38_spill] sm:$0xff] }
 0x72c   :  { %v9518_v24 = vsub.f32 %v9516_v52, %v9517_v41  ;;  %v9816_v4 = vmul.f32 %v16720_v60, %v9323_v31  ;;  %v16725_v37 = vmul.f32 %v16720_v60, %v16400_v56  ;;  %v16729_v13 = vmul.f32 %v16720_v60, %v16406_v47  ;;  %v17470_v41 = vld [vmem:[#allocation39_spill] sm:$0xff] }
 0x72d   :  { %v16733_v51 = vmul.f32 %v16398_v8, %v16720_v60  ;;  %v16737_v36 = vmul.f32 %v16402_v9, %v16720_v60  ;;  %v16741_v53 = vmul.f32 %v16720_v60, %v16437_v33  ;;  %v16745_v56 = vmul.f32 %v16720_v60, %v16449_v16  ;;  %v9880_v33 = vld [vmem:[#allocation4 + $0x1e8] sm:$0xff] }
 0x72e   :  { %v16748_v31 = vrot.slane %v9518_v24, %v17447_v40  ;;  %v16752_v47 = vmul.f32 %v16431_v48, %v16720_v60  ;;  %v16756_v8 = vmul.f32 %v16442_v55, %v16720_v60  ;;  %v16760_v9 = vmul.f32 %v16720_v60, %v16477_v29  ;;  %v17472_v24 = vld [vmem:[#allocation41_spill] sm:$0xff] }
 0x72f   :  { %v16764_v16 = vmul.f32 %v16720_v60, %v16489_v50  ;;  %v16768_v30 = vmul.f32 %v16471_v61, %v16720_v60  ;;  %v16772_v48 = vmul.f32 %v16482_v22, %v16720_v60  ;;  %v16776_v55 = vmul.f32 %v16720_v60, %v16517_v35 }
 0x730   :  { %17448 = vst [vmem:[#allocation27_spill] sm:$0xff] %v16748_v31  ;;  %v9848_v29 = vadd.f32 %v9816_v4, %v16748_v31  ;;  %v16781_v6 = vmul.f32 %v16720_v60, %v16529_v17  ;;  %v16785_v50 = vmul.f32 %v16511_v18, %v16720_v60  ;;  %v16789_v61 = vmul.f32 %v16522_v62, %v16720_v60 }
 0x731   :  { %v16793_v22 = vmul.f32 %v16720_v60, %v16557_v32  ;;  %v16797_v35 = vmul.f32 %v16720_v60, %v16569_v46  ;;  %v16801_v17 = vmul.f32 %v16551_v63, %v16720_v60  ;;  %v16805_v18 = vmul.f32 %v16562_v58, %v16720_v60 }
 0x732   :  { %v9912_v10 = vadd.f32 %v9880_v33, %v9848_v29  ;;  %v16809_v62 = vmul.f32 %v16720_v60, %v16597_v3  ;;  %v16813_v32 = vmul.f32 %v16720_v60, %v16609_v44  ;;  %v16817_v46 = vmul.f32 %v16591_v25, %v16720_v60  ;;  %v17474_v33 = vld [vmem:[#allocation37_spill] sm:$0xff] }
 0x733   :  { %v16821_v63 = vmul.f32 %v16602_v1, %v16720_v60  ;;  %v16825_v58 = vmul.f32 %v16720_v60, %v16637_v49  ;;  %v16829_v3 = vmul.f32 %v16720_v60, %v16649_v5  ;;  %v16833_v44 = vmul.f32 %v16631_v57, %v16720_v60 }
 0x734   :  { %v9944_v27 = vmax.f32 %v9912_v10, 0.0  ;;  %v16837_v25 = vmul.f32 %v16642_v2, %v16720_v60  ;;  %v16841_v1 = vmul.f32 %v16720_v60, %v16677_v54  ;;  %v16845_v49 = vmul.f32 %v16720_v60, %v16689_v21  ;;  %v17476_v10 = vld [vmem:[#allocation42_spill] sm:$0xff] }
 0x735   :  { %v16849_v5 = vmul.f32 %v16671_v45, %v16720_v60  ;;  %v16853_v57 = vmul.f32 %v16682_v0, %v16720_v60  ;;  %v16857_v2 = vmul.f32 %v16720_v60, %v16410_v34  ;;  %v16861_v54 = vmul.f32 %v16720_v60, %v16421_v39  ;;  %v17452_v45 = vld [vmem:[#allocation32_spill] sm:$0xff]  ;;  %v17454_v0 = vld [vmem:[#allocation31_spill] sm:$0xff]  ;;  %v17458_v39 = vld [vmem:[#allocation29_spill] sm:$0xff] }
 0x736   :  { %9977 = vst.msk [vmem:[#allocation10 + $0x1e8] sm:$0xff] %vm69_vm0, %v9944_v27  ;;  %v16866_v21 = vmul.f32 %v16404_v12, %v16720_v60  ;;  %v16870_v20 = vmul.f32 %v17452_v45, %v16720_v60  ;;  %v16874_v26 = vmul.f32 %v16720_v60, %v17454_v0  ;;  %v17456_v34 = vld [vmem:[#allocation36_spill] sm:$0xff]  ;;  %v16882_v42 = vmul.f32 %v17458_v39, %v16720_v60 }
 0x737   :  { %17449 = vst [vmem:[#allocation28_spill] sm:$0xff] %v16857_v2  ;;  %17450 = vst [vmem:[#allocation43_spill] sm:$0xff] %v16861_v54  ;;  %v16878_v19 = vmul.f32 %v16720_v60, %v17456_v34  ;;  %v16886_v12 = vmul.f32 %v17460_v59, %v16720_v60  ;;  %v16890_v11 = vmul.f32 %v16720_v60, %v17462_v14  ;;  %v17478_v45 = vld [vmem:[#allocation16_spill] sm:$0xff]  ;;  %v17480_v34 = vld [vmem:[#allocation15_spill] sm:$0xff] }
 0x738   :  { %17451 = vst [vmem:[#allocation44_spill] sm:$0xff] %v16866_v21  ;;  %17453 = vst [vmem:[#allocation32_spill] sm:$0xff] %v16870_v20  ;;  %v16894_v15 = vmul.f32 %v16720_v60, %v17464_v23  ;;  %v16898_v38 = vmul.f32 %v17466_v43, %v16720_v60  ;;  %v16902_v52 = vmul.f32 %v17468_v7, %v16720_v60  ;;  %v17482_v59 = vld [vmem:[#allocation14_spill] sm:$0xff]  ;;  %v17486_v7 = vld [vmem:[#allocation20_spill] sm:$0xff] }
 0x739   :  { %17455 = vst [vmem:[#allocation31_spill] sm:$0xff] %v16874_v26  ;;  %17457 = vst [vmem:[#allocation36_spill] sm:$0xff] %v16878_v19  ;;  %v16906_v40 = vmul.f32 %v16720_v60, %v17470_v41  ;;  %v16910_v4 = vmul.f32 %v16720_v60, %v17472_v24  ;;  %v16914_v29 = vmul.f32 %v17474_v33, %v16720_v60  ;;  %v17484_v23 = vld [vmem:[#allocation18_spill] sm:$0xff]  ;;  %v17488_v24 = vld [vmem:[#allocation19_spill] sm:$0xff] }
 0x73a   :  { %17459 = vst [vmem:[#allocation29_spill] sm:$0xff] %v16882_v42  ;;  %17461 = vst [vmem:[#allocation34_spill] sm:$0xff] %v16886_v12  ;;  %v16918_v27 = vmul.f32 %v17476_v10, %v16720_v60  ;;  %v16922_v0 = vmul.f32 %v16720_v60, %v17478_v45  ;;  %v16926_v39 = vmul.f32 %v16720_v60, %v17480_v34  ;;  %v17490_v10 = vld [vmem:[#allocation17_spill] sm:$0xff]  ;;  %v17492_v34 = vld [vmem:[#allocation22_spill] sm:$0xff] }
 0x73b   :  { %17463 = vst [vmem:[#allocation35_spill] sm:$0xff] %v16890_v11  ;;  %17465 = vst [vmem:[#allocation40_spill] sm:$0xff] %v16894_v15  ;;  %v16930_v14 = vmul.f32 %v17482_v59, %v16720_v60  ;;  %v16934_v43 = vmul.f32 %v17484_v23, %v16720_v60  ;;  %v16938_v41 = vmul.f32 %v16720_v60, %v17486_v7  ;;  %v9645_v11 = vld [vmem:[#allocation4 + $0x90] sm:$0xff]  ;;  %v9646_v12 = vld [vmem:[#allocation4 + $0x98] sm:$0xff] }
 0x73c   :  { %17467 = vst [vmem:[#allocation33_spill] sm:$0xff] %v16898_v38  ;;  %17469 = vst [vmem:[#allocation38_spill] sm:$0xff] %v16902_v52  ;;  %v16942_v33 = vmul.f32 %v16720_v60, %v17488_v24  ;;  %v16946_v45 = vmul.f32 %v17490_v10, %v16720_v60  ;;  %v16950_v59 = vmul.f32 %v17492_v34, %v16720_v60  ;;  %v9639_v52 = vld [vmem:[#allocation4 + $0x60] sm:$0xff]  ;;  %v9640_v38 = vld [vmem:[#allocation4 + $0x68] sm:$0xff] }
 0x73d   :  { %17471 = vst [vmem:[#allocation39_spill] sm:$0xff] %v16906_v40  ;;  %17473 = vst [vmem:[#allocation41_spill] sm:$0xff] %v16910_v4  ;;  %v9641_v4 = vld [vmem:[#allocation4 + $0x70] sm:$0xff]  ;;  %v9619_v40 = vadd.f32 %v16748_v31, %v16825_v58  ;;  %v9623_v15 = vadd.f32 %v16748_v31, %v16841_v1  ;;  %v9625_v58 = vadd.f32 %v16748_v31, %v16849_v5  ;;  %v9644_v20 = vld [vmem:[#allocation4 + $0x88] sm:$0xff] }
 0x73e   :  { %17475 = vst [vmem:[#allocation37_spill] sm:$0xff] %v16914_v29  ;;  %17477 = vst [vmem:[#allocation42_spill] sm:$0xff] %v16918_v27  ;;  %v9615_v27 = vadd.f32 %v16748_v31, %v16809_v62  ;;  %v9636_v29 = vld [vmem:[#allocation4 + $0x48] sm:$0xff]  ;;  %v9621_v62 = vadd.f32 %v16748_v31, %v16833_v44  ;;  %v9626_v44 = vadd.f32 %v16748_v31, %v16853_v57  ;;  %v9647_v21 = vld [vmem:[#allocation4 + $0xa0] sm:$0xff] }
 0x73f   :  { %17479 = vst [vmem:[#allocation16_spill] sm:$0xff] %v16922_v0  ;;  %17481 = vst [vmem:[#allocation15_spill] sm:$0xff] %v16926_v39  ;;  %v9637_v39 = vld [vmem:[#allocation4 + $0x50] sm:$0xff]  ;;  %v9614_v0 = vadd.f32 %v16748_v31, %v16805_v18  ;;  %v9620_v18 = vadd.f32 %v16748_v31, %v16829_v3  ;;  %v9643_v3 = vld [vmem:[#allocation4 + $0x80] sm:$0xff] }
 0x740   :  { %17483 = vst [vmem:[#allocation14_spill] sm:$0xff] %v16930_v14  ;;  %17485 = vst [vmem:[#allocation18_spill] sm:$0xff] %v16934_v43  ;;  %v17494_v14 = vld [vmem:[#allocation24_spill] sm:$0xff]  ;;  %v17496_v43 = vld [vmem:[#allocation23_spill] sm:$0xff] }
 0x741   :  { %17487 = vst [vmem:[#allocation20_spill] sm:$0xff] %v16938_v41  ;;  %17489 = vst [vmem:[#allocation19_spill] sm:$0xff] %v16942_v33  ;;  %v16954_v23 = vmul.f32 %v16720_v60, %v17494_v14  ;;  %v16958_v7 = vmul.f32 %v16720_v60, %v17496_v43  ;;  %v17498_v41 = vld [vmem:[#allocation21_spill] sm:$0xff]  ;;  %v17500_v33 = vld [vmem:[#allocation26_spill] sm:$0xff]  ;;  %v16978_v43 = vmul.f32 %v16699_v28, %v16720_v60 }
 0x742   :  { %17491 = vst [vmem:[#allocation17_spill] sm:$0xff] %v16946_v45  ;;  %17493 = vst [vmem:[#allocation22_spill] sm:$0xff] %v16950_v59  ;;  %v16962_v24 = vmul.f32 %v17498_v41, %v16720_v60  ;;  %v16966_v10 = vmul.f32 %v17500_v33, %v16720_v60  ;;  %v17502_v45 = vld [vmem:[#allocation30_spill] sm:$0xff]  ;;  %v17504_v59 = vld [vmem:[#allocation25_spill] sm:$0xff]  ;;  %v9595_v41 = vadd.f32 %v16748_v31, %v16725_v37 }
 0x743   :  { %17495 = vst [vmem:[#allocation24_spill] sm:$0xff] %v16954_v23  ;;  %17497 = vst [vmem:[#allocation23_spill] sm:$0xff] %v16958_v7  ;;  %v16970_v34 = vmul.f32 %v16720_v60, %v17502_v45  ;;  %v16974_v14 = vmul.f32 %v17504_v59, %v16720_v60  ;;  %v9597_v33 = vadd.f32 %v16748_v31, %v16733_v51  ;;  %v9632_v23 = vld [vmem:[#allocation4 + $0x28] sm:$0xff]  ;;  %v9650_v5 = vld [vmem:[#allocation4 + $0xb8] sm:$0xff] }
 0x744   :  { %17499 = vst [vmem:[#allocation21_spill] sm:$0xff] %v16962_v24  ;;  %17501 = vst [vmem:[#allocation26_spill] sm:$0xff] %v16966_v10  ;;  %v9596_v24 = vadd.f32 %v16748_v31, %v16729_v13  ;;  %v9598_v45 = vadd.f32 %v16748_v31, %v16737_v36  ;;  %v9599_v59 = vadd.f32 %v16748_v31, %v16741_v53  ;;  %v9629_v36 = vld [vmem:[#allocation4 + $0x10] sm:$0xff]  ;;  %v9627_v53 = vld [vmem:[#allocation4] sm:$0xff] }
 0x745   :  { %17503 = vst [vmem:[#allocation30_spill] sm:$0xff] %v16970_v34  ;;  %17505 = vst [vmem:[#allocation25_spill] sm:$0xff] %v16974_v14  ;;  %v9600_v14 = vadd.f32 %v16748_v31, %v16745_v56  ;;  %v9601_v28 = vadd.f32 %v16748_v31, %v16752_v47  ;;  %v9602_v60 = vadd.f32 %v16748_v31, %v16756_v8  ;;  %v9628_v34 = vld [vmem:[#allocation4 + $0x8] sm:$0xff]  ;;  %v9631_v10 = vld [vmem:[#allocation4 + $0x20] sm:$0xff] }
 0x746   :  { %17506 = vst [vmem:[#allocation45_spill] sm:$0xff] %v16978_v43  ;;  %v9603_v37 = vadd.f32 %v16748_v31, %v16760_v9  ;;  %v9604_v13 = vadd.f32 %v16748_v31, %v16764_v16  ;;  %v9605_v51 = vadd.f32 %v16748_v31, %v16768_v30  ;;  %v9606_v56 = vadd.f32 %v16748_v31, %v16772_v48  ;;  %v9630_v43 = vld [vmem:[#allocation4 + $0x18] sm:$0xff]  ;;  %v9633_v16 = vld [vmem:[#allocation4 + $0x30] sm:$0xff] }
 0x747   :  { %v9607_v47 = vadd.f32 %v16748_v31, %v16776_v55  ;;  %v9608_v8 = vadd.f32 %v16748_v31, %v16781_v6  ;;  %v9609_v9 = vadd.f32 %v16748_v31, %v16785_v50  ;;  %v9610_v30 = vadd.f32 %v16748_v31, %v16789_v61  ;;  %v9634_v6 = vld [vmem:[#allocation4 + $0x38] sm:$0xff]  ;;  %v9635_v50 = vld [vmem:[#allocation4 + $0x40] sm:$0xff]  ;;  %v9653_v57 = vld [vmem:[#allocation4 + $0xd0] sm:$0xff] }
 0x748   :  { %v9611_v7 = vadd.f32 %v16748_v31, %v16793_v22  ;;  %v9612_v48 = vadd.f32 %v16748_v31, %v16797_v35  ;;  %v9613_v55 = vadd.f32 %v16748_v31, %v16801_v17  ;;  %v9616_v61 = vadd.f32 %v16748_v31, %v16813_v32  ;;  %v9638_v35 = vld [vmem:[#allocation4 + $0x58] sm:$0xff] }
 0x749   :  { %v9617_v22 = vadd.f32 %v16748_v31, %v16817_v46  ;;  %v9618_v17 = vadd.f32 %v16748_v31, %v16821_v63  ;;  %v9642_v32 = vld [vmem:[#allocation4 + $0x78] sm:$0xff]  ;;  %v9622_v46 = vadd.f32 %v16748_v31, %v16837_v25  ;;  %v9624_v63 = vadd.f32 %v16748_v31, %v16845_v49  ;;  %v9649_v25 = vld [vmem:[#allocation4 + $0xb0] sm:$0xff]  ;;  %v9648_v31 = vld [vmem:[#allocation4 + $0xa8] sm:$0xff] }
 0x74a   :  { %v9659_v42 = vadd.f32 %v9627_v53, %v9595_v41  ;;  %v9660_v19 = vadd.f32 %v9628_v34, %v9596_v24  ;;  %v9661_v26 = vadd.f32 %v9629_v36, %v9597_v33  ;;  %v9662_v54 = vadd.f32 %v9630_v43, %v9598_v45  ;;  %v9651_v33 = vld [vmem:[#allocation4 + $0xc0] sm:$0xff]  ;;  %v9654_v36 = vld [vmem:[#allocation4 + $0xd8] sm:$0xff]  ;;  %v9652_v43 = vld [vmem:[#allocation4 + $0xc8] sm:$0xff] }
 0x74b   :  { %v9663_v1 = vadd.f32 %v9631_v10, %v9599_v59  ;;  %v9664_v2 = vadd.f32 %v9632_v23, %v9600_v14  ;;  %v9665_v49 = vadd.f32 %v9633_v16, %v9601_v28  ;;  %v9666_v41 = vadd.f32 %v9634_v6, %v9602_v60  ;;  %v9657_v23 = vld [vmem:[#allocation4 + $0xf0] sm:$0xff]  ;;  %v9655_v16 = vld [vmem:[#allocation4 + $0xe0] sm:$0xff]  ;;  %v9656_v28 = vld [vmem:[#allocation4 + $0xe8] sm:$0xff] }
 0x74c   :  { %v9667_v53 = vadd.f32 %v9635_v50, %v9603_v37  ;;  %v9668_v24 = vadd.f32 %v9636_v29, %v9604_v13  ;;  %v9669_v34 = vadd.f32 %v9637_v39, %v9605_v51  ;;  %v9670_v45 = vadd.f32 %v9638_v35, %v9606_v56  ;;  %v9658_v13 = vld [vmem:[#allocation4 + $0xf8] sm:$0xff] }
 0x74d   :  { %v9671_v10 = vadd.f32 %v9639_v52, %v9607_v47  ;;  %v9672_v59 = vadd.f32 %v9640_v38, %v9608_v8  ;;  %v9673_v14 = vadd.f32 %v9641_v4, %v9609_v9  ;;  %v9674_v6 = vadd.f32 %v9642_v32, %v9610_v30 }
 0x74e   :  { %v9675_v60 = vadd.f32 %v9643_v3, %v9611_v7  ;;  %v9676_v37 = vadd.f32 %v9644_v20, %v9612_v48  ;;  %v9677_v50 = vadd.f32 %v9645_v11, %v9613_v55  ;;  %v17044_v29 = vadd.f32 %v9646_v12, %v9614_v0 }
 0x74f   :  { %v17046_v39 = vadd.f32 %v9647_v21, %v9615_v27  ;;  %v17048_v51 = vadd.f32 %v9648_v31, %v9616_v61  ;;  %v17050_v35 = vadd.f32 %v9649_v25, %v9617_v22  ;;  %v17052_v56 = vadd.f32 %v9650_v5, %v9618_v17 }
 0x750   :  { %v17054_v38 = vadd.f32 %v9651_v33, %v9619_v40  ;;  %v17056_v52 = vadd.f32 %v9652_v43, %v9620_v18  ;;  %v17058_v4 = vadd.f32 %v9653_v57, %v9621_v62  ;;  %v17060_v7 = vadd.f32 %v9654_v36, %v9622_v46  ;;  %v17510_v36 = vld [vmem:[#allocation44_spill] sm:$0xff] }
 0x751   :  { %v17062_v20 = vadd.f32 %v9655_v16, %v9623_v15  ;;  %v17064_v12 = vadd.f32 %v9656_v28, %v9624_v63  ;;  %v17066_v21 = vadd.f32 %v9657_v23, %v9625_v58  ;;  %v17068_v31 = vadd.f32 %v9658_v13, %v9626_v44  ;;  %v17513_v23 = vld [vmem:[#allocation36_spill] sm:$0xff]  ;;  %v17514_v28 = vld [vmem:[#allocation29_spill] sm:$0xff] }
 0x752   :  { %v9691_v11 = vmax.f32 %v9659_v42, 0.0  ;;  %v9692_v27 = vmax.f32 %v9660_v19, 0.0  ;;  %v9693_v0 = vmax.f32 %v9661_v26, 0.0  ;;  %v9694_v47 = vmax.f32 %v9662_v54, 0.0 }
 0x753   :  { %v9695_v40 = vmax.f32 %v9663_v1, 0.0  ;;  %v9696_v8 = vmax.f32 %v9664_v2, 0.0  ;;  %v9697_v9 = vmax.f32 %v9665_v49, 0.0  ;;  %v9698_v30 = vmax.f32 %v9666_v41, 0.0  ;;  %v17507_v41 = vld [vmem:[#allocation27_spill] sm:$0xff] }
 0x754   :  { %v9699_v48 = vmax.f32 %v9667_v53, 0.0  ;;  %v9700_v55 = vmax.f32 %v9668_v24, 0.0  ;;  %v9701_v61 = vmax.f32 %v9669_v34, 0.0  ;;  %9723 = vst.msk [vmem:[#allocation10] sm:$0xff] %vm69_vm0, %v9691_v11  ;;  %9724 = vst.msk [vmem:[#allocation10 + $0x8] sm:$0xff] %vm69_vm0, %v9692_v27  ;;  %v9702_v15 = vmax.f32 %v9670_v45, 0.0 }
 0x755   :  { %9725 = vst.msk [vmem:[#allocation10 + $0x10] sm:$0xff] %vm69_vm0, %v9693_v0  ;;  %v9703_v22 = vmax.f32 %v9671_v10, 0.0  ;;  %v9704_v17 = vmax.f32 %v9672_v59, 0.0  ;;  %v9705_v42 = vmax.f32 %v9673_v14, 0.0  ;;  %9726 = vst.msk [vmem:[#allocation10 + $0x18] sm:$0xff] %vm69_vm0, %v9694_v47  ;;  %v9706_v2 = vmax.f32 %v9674_v6, 0.0 }
 0x756   :  { %9727 = vst.msk [vmem:[#allocation10 + $0x20] sm:$0xff] %vm69_vm0, %v9695_v40  ;;  %9728 = vst.msk [vmem:[#allocation10 + $0x28] sm:$0xff] %vm69_vm0, %v9696_v8  ;;  %v9707_v54 = vmax.f32 %v9675_v60, 0.0  ;;  %v9708_v26 = vmax.f32 %v9676_v37, 0.0  ;;  %v9709_v19 = vmax.f32 %v9677_v50, 0.0  ;;  %v9710_v18 = vmax.f32 %v17044_v29, 0.0 }
 0x757   :  { %9729 = vst.msk [vmem:[#allocation10 + $0x30] sm:$0xff] %vm69_vm0, %v9697_v9  ;;  %9730 = vst.msk [vmem:[#allocation10 + $0x38] sm:$0xff] %vm69_vm0, %v9698_v30  ;;  %v9711_v62 = vmax.f32 %v17046_v39, 0.0  ;;  %v9712_v32 = vmax.f32 %v17048_v51, 0.0  ;;  %v9713_v46 = vmax.f32 %v17050_v35, 0.0  ;;  %v9714_v63 = vmax.f32 %v17052_v56, 0.0 }
 0x758   :  { %9731 = vst.msk [vmem:[#allocation10 + $0x40] sm:$0xff] %vm69_vm0, %v9699_v48  ;;  %9732 = vst.msk [vmem:[#allocation10 + $0x48] sm:$0xff] %vm69_vm0, %v9700_v55  ;;  %v9715_v58 = vmax.f32 %v17054_v38, 0.0  ;;  %v9716_v3 = vmax.f32 %v17056_v52, 0.0  ;;  %v9717_v44 = vmax.f32 %v17058_v4, 0.0  ;;  %v9718_v25 = vmax.f32 %v17060_v7, 0.0 }
 0x759   :  { %9733 = vst.msk [vmem:[#allocation10 + $0x50] sm:$0xff] %vm69_vm0, %v9701_v61  ;;  %9734 = vst.msk [vmem:[#allocation10 + $0x58] sm:$0xff] %vm69_vm0, %v9702_v15  ;;  %v9719_v1 = vmax.f32 %v17062_v20, 0.0  ;;  %v9720_v49 = vmax.f32 %v17064_v12, 0.0  ;;  %v9721_v5 = vmax.f32 %v17066_v21, 0.0  ;;  %v9722_v57 = vmax.f32 %v17068_v31, 0.0 }
 0x75a   :  { %9735 = vst.msk [vmem:[#allocation10 + $0x60] sm:$0xff] %vm69_vm0, %v9703_v22  ;;  %9736 = vst.msk [vmem:[#allocation10 + $0x68] sm:$0xff] %vm69_vm0, %v9704_v17  ;;  %v17508_v53 = vld [vmem:[#allocation28_spill] sm:$0xff]  ;;  %v17509_v34 = vld [vmem:[#allocation43_spill] sm:$0xff]  ;;  %v9821_v43 = vadd.f32 %v17510_v36, %v17507_v41  ;;  %v9824_v16 = vadd.f32 %v17513_v23, %v17507_v41  ;;  %v9825_v6 = vadd.f32 %v17514_v28, %v17507_v41 }
 0x75b   :  { %9737 = vst.msk [vmem:[#allocation10 + $0x70] sm:$0xff] %vm69_vm0, %v9705_v42  ;;  %9738 = vst.msk [vmem:[#allocation10 + $0x78] sm:$0xff] %vm69_vm0, %v9706_v2  ;;  %v9819_v24 = vadd.f32 %v17508_v53, %v17507_v41  ;;  %v9820_v33 = vadd.f32 %v17509_v34, %v17507_v41  ;;  %v17511_v45 = vld [vmem:[#allocation32_spill] sm:$0xff]  ;;  %v17512_v59 = vld [vmem:[#allocation31_spill] sm:$0xff] }
 0x75c   :  { %9739 = vst.msk [vmem:[#allocation10 + $0x80] sm:$0xff] %vm69_vm0, %v9707_v54  ;;  %9740 = vst.msk [vmem:[#allocation10 + $0x88] sm:$0xff] %vm69_vm0, %v9708_v26  ;;  %v9822_v10 = vadd.f32 %v17511_v45, %v17507_v41  ;;  %v9823_v14 = vadd.f32 %v17512_v59, %v17507_v41  ;;  %v17515_v60 = vld [vmem:[#allocation34_spill] sm:$0xff]  ;;  %v17516_v50 = vld [vmem:[#allocation35_spill] sm:$0xff] }
 0x75d   :  { %9741 = vst.msk [vmem:[#allocation10 + $0x90] sm:$0xff] %vm69_vm0, %v9709_v19  ;;  %9742 = vst.msk [vmem:[#allocation10 + $0x98] sm:$0xff] %vm69_vm0, %v9710_v18  ;;  %v9826_v37 = vadd.f32 %v17515_v60, %v17507_v41  ;;  %v9827_v13 = vadd.f32 %v17516_v50, %v17507_v41  ;;  %v17517_v29 = vld [vmem:[#allocation40_spill] sm:$0xff]  ;;  %v17518_v51 = vld [vmem:[#allocation33_spill] sm:$0xff] }
 0x75e   :  { %9743 = vst.msk [vmem:[#allocation10 + $0xa0] sm:$0xff] %vm69_vm0, %v9711_v62  ;;  %9744 = vst.msk [vmem:[#allocation10 + $0xa8] sm:$0xff] %vm69_vm0, %v9712_v32  ;;  %v9828_v39 = vadd.f32 %v17517_v29, %v17507_v41  ;;  %v9829_v35 = vadd.f32 %v17518_v51, %v17507_v41  ;;  %v9853_v56 = vld [vmem:[#allocation4 + $0x110] sm:$0xff]  ;;  %v9851_v38 = vld [vmem:[#allocation4 + $0x100] sm:$0xff] }
 0x75f   :  { %9745 = vst.msk [vmem:[#allocation10 + $0xb0] sm:$0xff] %vm69_vm0, %v9713_v46  ;;  %9746 = vst.msk [vmem:[#allocation10 + $0xb8] sm:$0xff] %vm69_vm0, %v9714_v63  ;;  %v9854_v52 = vld [vmem:[#allocation4 + $0x118] sm:$0xff]  ;;  %v9852_v4 = vld [vmem:[#allocation4 + $0x108] sm:$0xff] }
 0x760   :  { %9747 = vst.msk [vmem:[#allocation10 + $0xc0] sm:$0xff] %vm69_vm0, %v9715_v58  ;;  %9748 = vst.msk [vmem:[#allocation10 + $0xc8] sm:$0xff] %vm69_vm0, %v9716_v3  ;;  %v17519_v7 = vld [vmem:[#allocation38_spill] sm:$0xff]  ;;  %v17520_v12 = vld [vmem:[#allocation39_spill] sm:$0xff] }
 0x761   :  { %9749 = vst.msk [vmem:[#allocation10 + $0xd0] sm:$0xff] %vm69_vm0, %v9717_v44  ;;  %9750 = vst.msk [vmem:[#allocation10 + $0xd8] sm:$0xff] %vm69_vm0, %v9718_v25  ;;  %v9830_v20 = vadd.f32 %v17519_v7, %v17507_v41  ;;  %v9831_v21 = vadd.f32 %v17520_v12, %v17507_v41  ;;  %v17521_v31 = vld [vmem:[#allocation41_spill] sm:$0xff]  ;;  %v9857_v47 = vld [vmem:[#allocation4 + $0x130] sm:$0xff] }
 0x762   :  { %9751 = vst.msk [vmem:[#allocation10 + $0xe0] sm:$0xff] %vm69_vm0, %v9719_v1  ;;  %9752 = vst.msk [vmem:[#allocation10 + $0xe8] sm:$0xff] %vm69_vm0, %v9720_v49  ;;  %v9832_v11 = vadd.f32 %v17521_v31, %v17507_v41  ;;  %v17522_v27 = vld [vmem:[#allocation37_spill] sm:$0xff]  ;;  %v9855_v40 = vld [vmem:[#allocation4 + $0x120] sm:$0xff] }
 0x763   :  { %9753 = vst.msk [vmem:[#allocation10 + $0xf0] sm:$0xff] %vm69_vm0, %v9721_v5  ;;  %9754 = vst.msk [vmem:[#allocation10 + $0xf8] sm:$0xff] %vm69_vm0, %v9722_v57  ;;  %v9833_v0 = vadd.f32 %v17522_v27, %v17507_v41  ;;  %v9858_v8 = vld [vmem:[#allocation4 + $0x138] sm:$0xff]  ;;  %v17523_v9 = vld [vmem:[#allocation42_spill] sm:$0xff] }
 0x764   :  { %v9834_v30 = vadd.f32 %v17523_v9, %v17507_v41  ;;  %v17524_v48 = vld [vmem:[#allocation16_spill] sm:$0xff]  ;;  %v17525_v61 = vld [vmem:[#allocation15_spill] sm:$0xff]  ;;  %v17526_v22 = vld [vmem:[#allocation14_spill] sm:$0xff] }
 0x765   :  { %v9835_v55 = vadd.f32 %v17524_v48, %v17507_v41  ;;  %v9836_v15 = vadd.f32 %v17525_v61, %v17507_v41  ;;  %v9837_v17 = vadd.f32 %v17526_v22, %v17507_v41  ;;  %v9856_v42 = vld [vmem:[#allocation4 + $0x128] sm:$0xff]  ;;  %v9861_v2 = vld [vmem:[#allocation4 + $0x150] sm:$0xff]  ;;  %v9859_v54 = vld [vmem:[#allocation4 + $0x140] sm:$0xff]  ;;  %v9883_v22 = vadd.f32 %v9851_v38, %v9819_v24 }
 0x766   :  { %v17527_v26 = vld [vmem:[#allocation18_spill] sm:$0xff]  ;;  %v17528_v18 = vld [vmem:[#allocation20_spill] sm:$0xff]  ;;  %v17529_v32 = vld [vmem:[#allocation19_spill] sm:$0xff]  ;;  %v9891_v24 = vadd.f32 %v9859_v54, %v9827_v13 }
 0x767   :  { %v9838_v19 = vadd.f32 %v17527_v26, %v17507_v41  ;;  %v9839_v62 = vadd.f32 %v17528_v18, %v17507_v41  ;;  %v9840_v46 = vadd.f32 %v17529_v32, %v17507_v41  ;;  %v17530_v63 = vld [vmem:[#allocation17_spill] sm:$0xff]  ;;  %v9862_v3 = vld [vmem:[#allocation4 + $0x158] sm:$0xff]  ;;  %v9865_v25 = vld [vmem:[#allocation4 + $0x170] sm:$0xff]  ;;  %v9884_v26 = vadd.f32 %v9852_v4, %v9820_v33 }
 0x768   :  { %v9841_v58 = vadd.f32 %v17530_v63, %v17507_v41  ;;  %v9860_v44 = vld [vmem:[#allocation4 + $0x148] sm:$0xff]  ;;  %v17531_v1 = vld [vmem:[#allocation22_spill] sm:$0xff]  ;;  %v17532_v5 = vld [vmem:[#allocation24_spill] sm:$0xff]  ;;  %v9885_v18 = vadd.f32 %v9853_v56, %v9821_v43  ;;  %v9886_v32 = vadd.f32 %v9854_v52, %v9822_v10  ;;  %v9893_v4 = vadd.f32 %v9861_v2, %v9829_v35 }
 0x769   :  { %v9842_v49 = vadd.f32 %v17531_v1, %v17507_v41  ;;  %v9843_v57 = vadd.f32 %v17532_v5, %v17507_v41  ;;  %v17533_v53 = vld [vmem:[#allocation23_spill] sm:$0xff]  ;;  %v17534_v36 = vld [vmem:[#allocation21_spill] sm:$0xff]  ;;  %v9863_v59 = vld [vmem:[#allocation4 + $0x160] sm:$0xff]  ;;  %v9892_v38 = vadd.f32 %v9860_v44, %v9828_v39  ;;  %v9894_v33 = vadd.f32 %v9862_v3, %v9830_v20 }
 0x76a   :  { %v9844_v34 = vadd.f32 %v17533_v53, %v17507_v41  ;;  %v9845_v45 = vadd.f32 %v17534_v36, %v17507_v41  ;;  %v9866_v23 = vld [vmem:[#allocation4 + $0x178] sm:$0xff]  ;;  %v9864_v28 = vld [vmem:[#allocation4 + $0x168] sm:$0xff]  ;;  %v17535_v60 = vld [vmem:[#allocation26_spill] sm:$0xff]  ;;  %v9887_v53 = vadd.f32 %v9855_v40, %v9823_v14  ;;  %v9888_v36 = vadd.f32 %v9856_v42, %v9824_v16 }
 0x76b   :  { %v9846_v50 = vadd.f32 %v17535_v60, %v17507_v41  ;;  %v17536_v29 = vld [vmem:[#allocation30_spill] sm:$0xff]  ;;  %v17537_v7 = vld [vmem:[#allocation25_spill] sm:$0xff]  ;;  %v9867_v48 = vld [vmem:[#allocation4 + $0x180] sm:$0xff]  ;;  %v9889_v60 = vadd.f32 %v9857_v47, %v9825_v6  ;;  %v9895_v52 = vadd.f32 %v9863_v59, %v9831_v21  ;;  %v9896_v14 = vadd.f32 %v9864_v28, %v9832_v11 }
 0x76c   :  { %v9847_v51 = vadd.f32 %v17536_v29, %v17507_v41  ;;  %v9849_v12 = vadd.f32 %v17537_v7, %v17507_v41  ;;  %v17538_v31 = vld [vmem:[#allocation45_spill] sm:$0xff]  ;;  %v9869_v9 = vld [vmem:[#allocation4 + $0x190] sm:$0xff]  ;;  %v9870_v61 = vld [vmem:[#allocation4 + $0x198] sm:$0xff]  ;;  %v9890_v29 = vadd.f32 %v9858_v8, %v9826_v37  ;;  %v9897_v40 = vadd.f32 %v9865_v25, %v9833_v0 }
 0x76d   :  { %v9850_v27 = vadd.f32 %v17538_v31, %v17507_v41  ;;  %v9868_v63 = vld [vmem:[#allocation4 + $0x188] sm:$0xff]  ;;  %v9873_v1 = vld [vmem:[#allocation4 + $0x1b0] sm:$0xff]  ;;  %v9871_v5 = vld [vmem:[#allocation4 + $0x1a0] sm:$0xff]  ;;  %v9898_v16 = vadd.f32 %v9866_v23, %v9834_v30  ;;  %v9899_v8 = vadd.f32 %v9867_v48, %v9835_v55  ;;  %v17179_v13 = vadd.f32 %v9869_v9, %v9837_v17 }
 0x76e   :  { %v9874_v7 = vld [vmem:[#allocation4 + $0x1b8] sm:$0xff]  ;;  %v9872_v31 = vld [vmem:[#allocation4 + $0x1a8] sm:$0xff]  ;;  %v9877_v41 = vld [vmem:[#allocation4 + $0x1d0] sm:$0xff]  ;;  %v17177_v37 = vadd.f32 %v9868_v63, %v9836_v15  ;;  %v17181_v54 = vadd.f32 %v9870_v61, %v9838_v19  ;;  %v17183_v39 = vadd.f32 %v9871_v5, %v9839_v62  ;;  %v17187_v20 = vadd.f32 %v9873_v1, %v9841_v58 }
 0x76f   :  { %v9875_v43 = vld [vmem:[#allocation4 + $0x1c0] sm:$0xff]  ;;  %v9878_v56 = vld [vmem:[#allocation4 + $0x1d8] sm:$0xff]  ;;  %v9876_v10 = vld [vmem:[#allocation4 + $0x1c8] sm:$0xff]  ;;  %v17185_v35 = vadd.f32 %v9872_v31, %v9840_v46  ;;  %v17189_v21 = vadd.f32 %v9874_v7, %v9842_v49  ;;  %v17195_v30 = vadd.f32 %v9877_v41, %v9845_v45  ;;  %v9915_v19 = vmax.f32 %v9883_v22, 0.0 }
 0x770   :  { %v9881_v42 = vld [vmem:[#allocation4 + $0x1f0] sm:$0xff]  ;;  %v9879_v6 = vld [vmem:[#allocation4 + $0x1e0] sm:$0xff]  ;;  %v9882_v47 = vld [vmem:[#allocation4 + $0x1f8] sm:$0xff]  ;;  %v17191_v11 = vadd.f32 %v9875_v43, %v9843_v57  ;;  %v17193_v0 = vadd.f32 %v9876_v10, %v9844_v34  ;;  %v17197_v55 = vadd.f32 %v9878_v56, %v9846_v50  ;;  %v9916_v62 = vmax.f32 %v9884_v26, 0.0 }
 0x771   :  { %v17199_v15 = vadd.f32 %v9879_v6, %v9847_v51  ;;  %v17201_v17 = vadd.f32 %v9881_v42, %v9849_v12  ;;  %v17203_v2 = vadd.f32 %v9882_v47, %v9850_v27  ;;  %v9917_v46 = vmax.f32 %v9885_v18, 0.0  ;;  %9948 = vst.msk [vmem:[#allocation10 + $0x100] sm:$0xff] %vm69_vm0, %v9915_v19 }
 0x772   :  { %v9918_v58 = vmax.f32 %v9886_v32, 0.0  ;;  %v9919_v3 = vmax.f32 %v9887_v53, 0.0  ;;  %v9920_v44 = vmax.f32 %v9888_v36, 0.0  ;;  %v9921_v25 = vmax.f32 %v9889_v60, 0.0  ;;  %9949 = vst.msk [vmem:[#allocation10 + $0x108] sm:$0xff] %vm69_vm0, %v9916_v62 }
 0x773   :  { %v9922_v49 = vmax.f32 %v9890_v29, 0.0  ;;  %v9923_v57 = vmax.f32 %v9891_v24, 0.0  ;;  %v9924_v34 = vmax.f32 %v9892_v38, 0.0  ;;  %v9925_v45 = vmax.f32 %v9893_v4, 0.0  ;;  %9950 = vst.msk [vmem:[#allocation10 + $0x110] sm:$0xff] %vm69_vm0, %v9917_v46 }
 0x774   :  { %v9926_v59 = vmax.f32 %v9894_v33, 0.0  ;;  %v9927_v23 = vmax.f32 %v9895_v52, 0.0  ;;  %9951 = vst.msk [vmem:[#allocation10 + $0x118] sm:$0xff] %vm69_vm0, %v9918_v58  ;;  %9952 = vst.msk [vmem:[#allocation10 + $0x120] sm:$0xff] %vm69_vm0, %v9919_v3  ;;  %v9928_v28 = vmax.f32 %v9896_v14, 0.0  ;;  %v9929_v50 = vmax.f32 %v9897_v40, 0.0 }
 0x775   :  { %v9930_v51 = vmax.f32 %v9898_v16, 0.0  ;;  %v9931_v12 = vmax.f32 %v9899_v8, 0.0  ;;  %9953 = vst.msk [vmem:[#allocation10 + $0x128] sm:$0xff] %vm69_vm0, %v9920_v44  ;;  %9954 = vst.msk [vmem:[#allocation10 + $0x130] sm:$0xff] %vm69_vm0, %v9921_v25  ;;  %v9932_v27 = vmax.f32 %v17177_v37, 0.0  ;;  %v9933_v9 = vmax.f32 %v17179_v13, 0.0 }
 0x776   :  { %9955 = vst.msk [vmem:[#allocation10 + $0x138] sm:$0xff] %vm69_vm0, %v9922_v49  ;;  %9956 = vst.msk [vmem:[#allocation10 + $0x140] sm:$0xff] %vm69_vm0, %v9923_v57  ;;  %v9934_v48 = vmax.f32 %v17181_v54, 0.0  ;;  %v9935_v61 = vmax.f32 %v17183_v39, 0.0  ;;  %v9936_v22 = vmax.f32 %v17185_v35, 0.0  ;;  %v9937_v26 = vmax.f32 %v17187_v20, 0.0 }
 0x777   :  { %9957 = vst.msk [vmem:[#allocation10 + $0x148] sm:$0xff] %vm69_vm0, %v9924_v34  ;;  %9958 = vst.msk [vmem:[#allocation10 + $0x150] sm:$0xff] %vm69_vm0, %v9925_v45  ;;  %v9938_v18 = vmax.f32 %v17189_v21, 0.0  ;;  %v9939_v32 = vmax.f32 %v17191_v11, 0.0  ;;  %v9940_v63 = vmax.f32 %v17193_v0, 0.0  ;;  %v9941_v1 = vmax.f32 %v17195_v30, 0.0 }
 0x778   :  { %9959 = vst.msk [vmem:[#allocation10 + $0x158] sm:$0xff] %vm69_vm0, %v9926_v59  ;;  %9960 = vst.msk [vmem:[#allocation10 + $0x160] sm:$0xff] %vm69_vm0, %v9927_v23  ;;  %v9942_v5 = vmax.f32 %v17197_v55, 0.0  ;;  %v9943_v53 = vmax.f32 %v17199_v15, 0.0  ;;  %v9945_v36 = vmax.f32 %v17201_v17, 0.0  ;;  %v9946_v60 = vmax.f32 %v17203_v2, 0.0 }
 0x779   :  { %9961 = vst.msk [vmem:[#allocation10 + $0x168] sm:$0xff] %vm69_vm0, %v9928_v28  ;;  %9962 = vst.msk [vmem:[#allocation10 + $0x170] sm:$0xff] %vm69_vm0, %v9929_v50 }
 0x77a   :  { %9963 = vst.msk [vmem:[#allocation10 + $0x178] sm:$0xff] %vm69_vm0, %v9930_v51  ;;  %9964 = vst.msk [vmem:[#allocation10 + $0x180] sm:$0xff] %vm69_vm0, %v9931_v12 }
 0x77b   :  { %9965 = vst.msk [vmem:[#allocation10 + $0x188] sm:$0xff] %vm69_vm0, %v9932_v27  ;;  %9966 = vst.msk [vmem:[#allocation10 + $0x190] sm:$0xff] %vm69_vm0, %v9933_v9 }
 0x77c   :  { %9967 = vst.msk [vmem:[#allocation10 + $0x198] sm:$0xff] %vm69_vm0, %v9934_v48  ;;  %9968 = vst.msk [vmem:[#allocation10 + $0x1a0] sm:$0xff] %vm69_vm0, %v9935_v61 }
 0x77d   :  { %9969 = vst.msk [vmem:[#allocation10 + $0x1a8] sm:$0xff] %vm69_vm0, %v9936_v22  ;;  %9970 = vst.msk [vmem:[#allocation10 + $0x1b0] sm:$0xff] %vm69_vm0, %v9937_v26 }
 0x77e   :  { %9971 = vst.msk [vmem:[#allocation10 + $0x1b8] sm:$0xff] %vm69_vm0, %v9938_v18  ;;  %9972 = vst.msk [vmem:[#allocation10 + $0x1c0] sm:$0xff] %vm69_vm0, %v9939_v32 }
 0x77f   :  { %9973 = vst.msk [vmem:[#allocation10 + $0x1c8] sm:$0xff] %vm69_vm0, %v9940_v63  ;;  %9974 = vst.msk [vmem:[#allocation10 + $0x1d0] sm:$0xff] %vm69_vm0, %v9941_v1 }
 0x780   :  { %9975 = vst.msk [vmem:[#allocation10 + $0x1d8] sm:$0xff] %vm69_vm0, %v9942_v5  ;;  %9976 = vst.msk [vmem:[#allocation10 + $0x1e0] sm:$0xff] %vm69_vm0, %v9943_v53 }
 0x781   :  { %9978 = vst.msk [vmem:[#allocation10 + $0x1f0] sm:$0xff] %vm69_vm0, %v9945_v36  ;;  %9979 = vst.msk [vmem:[#allocation10 + $0x1f8] sm:$0xff] %vm69_vm0, %v9946_v60 }
 0x782   :  { %13596 = shalt.err (!%p13593_p0)
}
 0x783   :  { %s13597_s24 = scalar_lea.hbm %s17272_s7, 8192 }
 0x784   :  { %p13598_p1 = scmp.ne.s32.totalorder %s17272_s7, %s13597_s24  ;;  %p13601_p2 = scmp.lt.u32.totalorder %s13597_s24, %s17272_s7 }
 0x786   :  { %p13603_p3 = pnand %p13601_p2, %p13598_p1 }
 0x788   :  { %13606 = shalt.err (!%p13603_p3)
}
 0x789   :  { %9991 = dma.vmem_to_hbm [thread:$0]  %s9986_s6, 8192, %s17272_s7, [#allocation6], %s13617_s1, %s13617_s1, %s13618_s25  }
 0x78a   :  { %13611 = dma.done.wait [#allocation6], 8192  }
 0x78b   :  { %13612 = vsyncadd [#allocation6], 4294959104 }
 0x78c   :  { %9995 = vsyncpa [#allocation5], 1 }
 0x78d   :  { %9996 = vsyncpa [#allocation8], 1 }
 0x78e   :  { %9997 = vsyncpa [#allocation6], 1 }

</bundles_post_ra>
